<compile_context>
chip_gen: v6e
topology: v6e:2x2x1
jax: 0.10.0
libtpu: 0.0.40
codegen_flags: <defaults>
</compile_context>

<pallas_src>
import jax
import jax.numpy as jnp
from jax.experimental import pallas as pl
from jax.experimental.pallas import tpu as pltpu

KS = 3  # kernel size (padding = 1, SAME)


def _conv_taps(pad_img_b, w_ref, b_ref, H, W):
    """3x3 SAME conv via 9 shifted bf16 matmuls with f32 accumulation.

    pad_img_b: (H+2, W+2, Cin) bf16 array (already zero padded)
    w_ref:     (9, Cin, Cout) bf16 VMEM ref
    b_ref:     (1, Cout) f32 VMEM ref (seeds the accumulator)
    returns:   (H, W, Cout) f32
    """
    cout = w_ref.shape[-1]
    # Seed the accumulator with the bias (removes a separate add pass).
    acc = jnp.broadcast_to(
        b_ref[...].reshape(1, 1, cout), (H, W, cout)).astype(jnp.float32)
    for dy in range(KS):
        for dx in range(KS):
            patch = pad_img_b[dy:dy + H, dx:dx + W, :]        # (H, W, Cin) bf16
            wk = w_ref[dy * KS + dx]                          # (Cin, Cout) bf16
            acc = acc + jnp.einsum(
                "hwc,cd->hwd", patch, wk,
                preferred_element_type=jnp.float32)
    return acc


def _convgru_kernel(h_ref, x_ref, wzr_ref, bzr_ref, wq_ref, bq_ref,
                    out_ref, pad_ref):
    # h_ref  : (1, H, W, chid)   f32   hidden state
    # x_ref  : (1, H, W, cx)     f32   input features
    # wzr_ref: (9, ctot, 2*chid) bf16  fused [convz | convr] taps
    # bzr_ref: (1, 2*chid)       f32
    # wq_ref : (9, ctot, chid)   bf16  convq taps
    # bq_ref : (1, chid)         f32
    # out_ref: (1, H, W, chid)   f32
    # pad_ref (scratch): (H+2, W+2, ctot) bf16  padded [h|rh, x] slab
    H = out_ref.shape[1]
    W = out_ref.shape[2]
    chid = out_ref.shape[3]

    h = h_ref[0]                                              # (H, W, chid) f32
    x = x_ref[0]                                              # (H, W, cx)   f32

    # Assemble the zero-padded bf16 [h, x] slab in VMEM scratch.
    # Rebuilt from scratch every step (zero fill is ~31 KiB of VMEM stores).
    pad_ref[...] = jnp.zeros(pad_ref.shape, pad_ref.dtype)
    pad_ref[1:1 + H, 1:1 + W, :chid] = h.astype(jnp.bfloat16)
    pad_ref[1:1 + H, 1:1 + W, chid:] = x.astype(jnp.bfloat16)

    # Fused z/r gates: one 9-tap conv, 2*chid output lanes, then split.
    zr = jax.nn.sigmoid(_conv_taps(pad_ref[...], wzr_ref, bzr_ref, H, W))
    z = zr[:, :, :chid]
    r = zr[:, :, chid:]

    # Reuse the same scratch for the q conv: only the interior h channels
    # change (zero border and x channels are still valid).
    pad_ref[1:1 + H, 1:1 + W, :chid] = (r * h).astype(jnp.bfloat16)
    q = jnp.tanh(_conv_taps(pad_ref[...], wq_ref, bq_ref, H, W))

    # h' = (1-z)*h + z*q  ==  h + z*(q - h)   (one fewer VPU multiply)
    out_ref[0] = (h + z * (q - h)).astype(out_ref.dtype)


def _to_taps(w_oihw):
    """(O, I, kh, kw) -> (kh*kw, I, O)."""
    o, i, kh, kw = w_oihw.shape
    return jnp.transpose(w_oihw, (2, 3, 1, 0)).reshape(kh * kw, i, o)


@jax.jit
def convgru_pallas(h, x, params):
    """h, x: NHWC float32.  Returns updated h (NHWC)."""
    N, H, W, chid = h.shape
    cx = x.shape[-1]
    ctot = chid + cx

    # Fused z/r weights: (9, ctot, 2*chid) in bf16 (halves weight DMA bytes).
    wzr9 = jnp.concatenate(
        [_to_taps(params["wz"]), _to_taps(params["wr"])], axis=-1
    ).astype(jnp.bfloat16)
    wq9 = _to_taps(params["wq"]).astype(jnp.bfloat16)         # (9, ctot, chid)
    bzr = jnp.concatenate([params["bz"], params["br"]]).reshape(1, 2 * chid)
    bq = params["bq"].reshape(1, chid)

    grid_spec = pltpu.PrefetchScalarGridSpec(
        num_scalar_prefetch=0,
        grid=(N,),
        in_specs=[
            pl.BlockSpec((1, H, W, chid), lambda b: (b, 0, 0, 0)),
            pl.BlockSpec((1, H, W, cx), lambda b: (b, 0, 0, 0)),
            pl.BlockSpec((KS * KS, ctot, 2 * chid), lambda b: (0, 0, 0)),
            pl.BlockSpec((1, 2 * chid), lambda b: (0, 0)),
            pl.BlockSpec((KS * KS, ctot, chid), lambda b: (0, 0, 0)),
            pl.BlockSpec((1, chid), lambda b: (0, 0)),
        ],
        out_specs=pl.BlockSpec((1, H, W, chid), lambda b: (b, 0, 0, 0)),
        scratch_shapes=[pltpu.VMEM((H + 2, W + 2, ctot), jnp.bfloat16)],
    )

    return pl.pallas_call(
        _convgru_kernel,
        out_shape=jax.ShapeDtypeStruct((N, H, W, chid), jnp.float32),
        grid_spec=grid_spec,
        compiler_params=pltpu.CompilerParams(
            dimension_semantics=("parallel",)),   # batches are independent
    )(h, x, wzr9, bzr, wq9, bq)


# ---------------- pure-JAX references (for correctness check) ---------------
def _conv_ref(x_nhwc, w_oihw, b, *, bf16_inputs):
    w_hwio = jnp.transpose(w_oihw, (2, 3, 1, 0))
    if bf16_inputs:
        x_nhwc = x_nhwc.astype(jnp.bfloat16)
        w_hwio = w_hwio.astype(jnp.bfloat16)
    y = jax.lax.conv_general_dilated(
        x_nhwc, w_hwio, window_strides=(1, 1), padding="SAME",
        dimension_numbers=("NHWC", "HWIO", "NHWC"),
        preferred_element_type=jnp.float32)
    return y + b


def convgru_ref(h, x, params, *, bf16_inputs):
    """bf16_inputs=True mirrors the kernel's matmul precision exactly."""
    hx = jnp.concatenate([h, x], axis=-1)
    z = jax.nn.sigmoid(_conv_ref(hx, params["wz"], params["bz"],
                                 bf16_inputs=bf16_inputs))
    r = jax.nn.sigmoid(_conv_ref(hx, params["wr"], params["br"],
                                 bf16_inputs=bf16_inputs))
    rhx = jnp.concatenate([r * h, x], axis=-1)
    q = jnp.tanh(_conv_ref(rhx, params["wq"], params["bq"],
                           bf16_inputs=bf16_inputs))
    return (1.0 - z) * h + z * q


if __name__ == "__main__":
    # small shapes: batch=2, hidden_dim=32, input_dim=16, spatial=16x16
    N, H, W = 2, 16, 16
    hidden_dim, input_dim = 32, 16
    ctot = hidden_dim + input_dim

    key = jax.random.PRNGKey(0)
    keys = jax.random.split(key, 8)

    # deterministic synthetic parameters (PyTorch conv weight layout: O,I,kh,kw)
    params = {
        "wz": 0.1 * jax.random.normal(keys[0], (hidden_dim, ctot, KS, KS), jnp.float32),
        "bz": 0.1 * jax.random.normal(keys[1], (hidden_dim,), jnp.float32),
        "wr": 0.1 * jax.random.normal(keys[2], (hidden_dim, ctot, KS, KS), jnp.float32),
        "br": 0.1 * jax.random.normal(keys[3], (hidden_dim,), jnp.float32),
        "wq": 0.1 * jax.random.normal(keys[4], (hidden_dim, ctot, KS, KS), jnp.float32),
        "bq": 0.1 * jax.random.normal(keys[5], (hidden_dim,), jnp.float32),
    }

    # inputs in NHWC (PyTorch equivalent would be NCHW; layout documented above)
    h0 = jax.random.normal(keys[6], (N, H, W, hidden_dim), jnp.float32)
    x0 = jax.random.normal(keys[7], (N, H, W, input_dim), jnp.float32)

    out = jax.block_until_ready(convgru_pallas(h0, x0, params))
    assert out.shape == (N, H, W, hidden_dim)

    # Tight check vs a reference that mirrors the kernel's bf16-matmul /
    # f32-accumulation precision.
    ref_bf16 = jax.block_until_ready(convgru_ref(h0, x0, params, bf16_inputs=True))
    assert jnp.allclose(out, ref_bf16, atol=5e-3, rtol=5e-3), (
        f"max abs diff vs bf16-precision ref: {jnp.max(jnp.abs(out - ref_bf16))}")

    # Loose sanity check vs the full-f32 reference (bounds bf16 matmul error).
    ref_f32 = jax.block_until_ready(convgru_ref(h0, x0, params, bf16_inputs=False))
    assert jnp.allclose(out, ref_f32, atol=5e-2, rtol=5e-2), (
        f"max abs diff vs f32 ref: {jnp.max(jnp.abs(out - ref_f32))}")

    print("KERNEL_OK")
</pallas_src>

<mosaic_0001>
module attributes {stable_mosaic.version = 11 : i64} {
  func.func @_convgru_kernel(%arg0: i32, %arg1: memref<1x16x16x32xf32, #tpu.memory_space<vmem>>, %arg2: memref<1x16x16x16xf32, #tpu.memory_space<vmem>>, %arg3: memref<9x48x64xbf16, #tpu.memory_space<vmem>>, %arg4: memref<1x64xf32, #tpu.memory_space<vmem>>, %arg5: memref<9x48x32xbf16, #tpu.memory_space<vmem>>, %arg6: memref<1x32xf32, #tpu.memory_space<vmem>>, %arg7: memref<1x16x16x32xf32, #tpu.memory_space<vmem>>, %arg8: memref<18x18x48xbf16, #tpu.memory_space<vmem>>) attributes {dimension_semantics = [#tpu.dimension_semantics<parallel>], iteration_bounds = array<i64: 2>, scalar_prefetch = 0 : i64, scratch_operands = 1 : i64, tpu.core_type = #tpu.core_type<tc>, window_params = [{transform_indices = @transform_0, window_bounds = array<i64: 1, 16, 16, 32>}, {transform_indices = @transform_1, window_bounds = array<i64: 1, 16, 16, 16>}, {pipeline_mode = #tpu.pipeline_mode<synchronous>, transform_indices = @transform_2, window_bounds = array<i64: 9, 48, 64>}, {pipeline_mode = #tpu.pipeline_mode<synchronous>, transform_indices = @transform_3, window_bounds = array<i64: 1, 64>}, {pipeline_mode = #tpu.pipeline_mode<synchronous>, transform_indices = @transform_4, window_bounds = array<i64: 9, 48, 32>}, {pipeline_mode = #tpu.pipeline_mode<synchronous>, transform_indices = @transform_5, window_bounds = array<i64: 1, 32>}, {transform_indices = @transform_6, window_bounds = array<i64: 1, 16, 16, 32>}]} {
    %c0 = arith.constant 0 : index
    %c0_0 = arith.constant 0 : index
    %c0_1 = arith.constant 0 : index
    %c0_2 = arith.constant 0 : index
    %0 = vector.load %arg1[%c0, %c0_0, %c0_1, %c0_2] : memref<1x16x16x32xf32, #tpu.memory_space<vmem>>, vector<1x16x16x32xf32>
    %1 = vector.shape_cast %0 : vector<1x16x16x32xf32> to vector<16x16x32xf32>
    %c0_3 = arith.constant 0 : index
    %c0_4 = arith.constant 0 : index
    %c0_5 = arith.constant 0 : index
    %c0_6 = arith.constant 0 : index
    %2 = vector.load %arg2[%c0_3, %c0_4, %c0_5, %c0_6] : memref<1x16x16x16xf32, #tpu.memory_space<vmem>>, vector<1x16x16x16xf32>
    %3 = vector.shape_cast %2 : vector<1x16x16x16xf32> to vector<16x16x16xf32>
    %cst = arith.constant 0.000000e+00 : bf16
    %4 = vector.broadcast %cst : bf16 to vector<18x18x48xbf16>
    %c0_7 = arith.constant 0 : index
    %c0_8 = arith.constant 0 : index
    %c0_9 = arith.constant 0 : index
    %5 = vector.load %arg8[%c0_7, %c0_8, %c0_9] : memref<18x18x48xbf16, #tpu.memory_space<vmem>>, vector<18x18x48xbf16>
    tpu.vector_store %arg8[%c0_7, %c0_8, %c0_9], %4 {strides = array<i32>} : memref<18x18x48xbf16, #tpu.memory_space<vmem>>, vector<18x18x48xbf16>,
    %6 = arith.truncf %1 : vector<16x16x32xf32> to vector<16x16x32xbf16>
    %c1 = arith.constant 1 : index
    %c1_10 = arith.constant 1 : index
    %c0_11 = arith.constant 0 : index
    %7 = vector.load %arg8[%c1, %c1_10, %c0_11] : memref<18x18x48xbf16, #tpu.memory_space<vmem>>, vector<16x16x32xbf16>
    tpu.vector_store %arg8[%c1, %c1_10, %c0_11], %6 {strides = array<i32>} : memref<18x18x48xbf16, #tpu.memory_space<vmem>>, vector<16x16x32xbf16>,
    %8 = arith.truncf %3 : vector<16x16x16xf32> to vector<16x16x16xbf16>
    %c1_12 = arith.constant 1 : index
    %c1_13 = arith.constant 1 : index
    %c32 = arith.constant 32 : index
    %9 = vector.load %arg8[%c1_12, %c1_13, %c32] : memref<18x18x48xbf16, #tpu.memory_space<vmem>>, vector<16x16x16xbf16>
    tpu.vector_store %arg8[%c1_12, %c1_13, %c32], %8 {strides = array<i32>} : memref<18x18x48xbf16, #tpu.memory_space<vmem>>, vector<16x16x16xbf16>,
    %c0_14 = arith.constant 0 : index
    %c0_15 = arith.constant 0 : index
    %c0_16 = arith.constant 0 : index
    %10 = vector.load %arg8[%c0_14, %c0_15, %c0_16] : memref<18x18x48xbf16, #tpu.memory_space<vmem>>, vector<18x18x48xbf16>
    %c0_17 = arith.constant 0 : index
    %c0_18 = arith.constant 0 : index
    %11 = vector.load %arg4[%c0_17, %c0_18] : memref<1x64xf32, #tpu.memory_space<vmem>>, vector<1x64xf32>
    %12 = vector.shape_cast %11 : vector<1x64xf32> to vector<1x1x64xf32>
    %13 = vector.shape_cast %12 : vector<1x1x64xf32> to vector<1x1x64xf32>
    %14 = vector.broadcast %13 : vector<1x1x64xf32> to vector<16x16x64xf32>
    %15 = vector.extract_strided_slice %10 {offsets = [0, 0, 0], sizes = [16, 16, 48], strides = [1, 1, 1]} : vector<18x18x48xbf16> to vector<16x16x48xbf16>
    %c0_19 = arith.constant 0 : index
    %c0_20 = arith.constant 0 : index
    %c0_21 = arith.constant 0 : index
    %16 = vector.load %arg3[%c0_19, %c0_20, %c0_21] : memref<9x48x64xbf16, #tpu.memory_space<vmem>>, vector<1x48x64xbf16>
    %17 = vector.shape_cast %16 : vector<1x48x64xbf16> to vector<48x64xbf16>
    "tpu.trace_start"() <{level = 10 : i32, message = "hwc,cd->hwd"}> : () -> ()
    %cst_22 = arith.constant dense<0.000000e+00> : vector<16x16x64xf32>
    %18 = tpu.matmul %15, %17, %cst_22 {dimension_numbers = #tpu.dot_dimension_numbers<[2], [0], [0, 1], [1], [0, 0, 0, 1, 1, 1], [], []>} : vector<16x16x48xbf16>, vector<48x64xbf16>, vector<16x16x64xf32> -> vector<16x16x64xf32>
    "tpu.trace_stop"() : () -> ()
    %19 = arith.addf %14, %18 : vector<16x16x64xf32>
    %20 = vector.extract_strided_slice %10 {offsets = [0, 1, 0], sizes = [16, 16, 48], strides = [1, 1, 1]} : vector<18x18x48xbf16> to vector<16x16x48xbf16>
    %c1_23 = arith.constant 1 : index
    %c0_24 = arith.constant 0 : index
    %c0_25 = arith.constant 0 : index
    %21 = vector.load %arg3[%c1_23, %c0_24, %c0_25] : memref<9x48x64xbf16, #tpu.memory_space<vmem>>, vector<1x48x64xbf16>
    %22 = vector.shape_cast %21 : vector<1x48x64xbf16> to vector<48x64xbf16>
    "tpu.trace_start"() <{level = 10 : i32, message = "hwc,cd->hwd"}> : () -> ()
    %cst_26 = arith.constant dense<0.000000e+00> : vector<16x16x64xf32>
    %23 = tpu.matmul %20, %22, %cst_26 {dimension_numbers = #tpu.dot_dimension_numbers<[2], [0], [0, 1], [1], [0, 0, 0, 1, 1, 1], [], []>} : vector<16x16x48xbf16>, vector<48x64xbf16>, vector<16x16x64xf32> -> vector<16x16x64xf32>
    "tpu.trace_stop"() : () -> ()
    %24 = arith.addf %19, %23 : vector<16x16x64xf32>
    %25 = vector.extract_strided_slice %10 {offsets = [0, 2, 0], sizes = [16, 16, 48], strides = [1, 1, 1]} : vector<18x18x48xbf16> to vector<16x16x48xbf16>
    %c2 = arith.constant 2 : index
    %c0_27 = arith.constant 0 : index
    %c0_28 = arith.constant 0 : index
    %26 = vector.load %arg3[%c2, %c0_27, %c0_28] : memref<9x48x64xbf16, #tpu.memory_space<vmem>>, vector<1x48x64xbf16>
    %27 = vector.shape_cast %26 : vector<1x48x64xbf16> to vector<48x64xbf16>
    "tpu.trace_start"() <{level = 10 : i32, message = "hwc,cd->hwd"}> : () -> ()
    %cst_29 = arith.constant dense<0.000000e+00> : vector<16x16x64xf32>
    %28 = tpu.matmul %25, %27, %cst_29 {dimension_numbers = #tpu.dot_dimension_numbers<[2], [0], [0, 1], [1], [0, 0, 0, 1, 1, 1], [], []>} : vector<16x16x48xbf16>, vector<48x64xbf16>, vector<16x16x64xf32> -> vector<16x16x64xf32>
    "tpu.trace_stop"() : () -> ()
    %29 = arith.addf %24, %28 : vector<16x16x64xf32>
    %30 = vector.extract_strided_slice %10 {offsets = [1, 0, 0], sizes = [16, 16, 48], strides = [1, 1, 1]} : vector<18x18x48xbf16> to vector<16x16x48xbf16>
    %c3 = arith.constant 3 : index
    %c0_30 = arith.constant 0 : index
    %c0_31 = arith.constant 0 : index
    %31 = vector.load %arg3[%c3, %c0_30, %c0_31] : memref<9x48x64xbf16, #tpu.memory_space<vmem>>, vector<1x48x64xbf16>
    %32 = vector.shape_cast %31 : vector<1x48x64xbf16> to vector<48x64xbf16>
    "tpu.trace_start"() <{level = 10 : i32, message = "hwc,cd->hwd"}> : () -> ()
    %cst_32 = arith.constant dense<0.000000e+00> : vector<16x16x64xf32>
    %33 = tpu.matmul %30, %32, %cst_32 {dimension_numbers = #tpu.dot_dimension_numbers<[2], [0], [0, 1], [1], [0, 0, 0, 1, 1, 1], [], []>} : vector<16x16x48xbf16>, vector<48x64xbf16>, vector<16x16x64xf32> -> vector<16x16x64xf32>
    "tpu.trace_stop"() : () -> ()
    %34 = arith.addf %29, %33 : vector<16x16x64xf32>
    %35 = vector.extract_strided_slice %10 {offsets = [1, 1, 0], sizes = [16, 16, 48], strides = [1, 1, 1]} : vector<18x18x48xbf16> to vector<16x16x48xbf16>
    %c4 = arith.constant 4 : index
    %c0_33 = arith.constant 0 : index
    %c0_34 = arith.constant 0 : index
    %36 = vector.load %arg3[%c4, %c0_33, %c0_34] : memref<9x48x64xbf16, #tpu.memory_space<vmem>>, vector<1x48x64xbf16>
    %37 = vector.shape_cast %36 : vector<1x48x64xbf16> to vector<48x64xbf16>
    "tpu.trace_start"() <{level = 10 : i32, message = "hwc,cd->hwd"}> : () -> ()
    %cst_35 = arith.constant dense<0.000000e+00> : vector<16x16x64xf32>
    %38 = tpu.matmul %35, %37, %cst_35 {dimension_numbers = #tpu.dot_dimension_numbers<[2], [0], [0, 1], [1], [0, 0, 0, 1, 1, 1], [], []>} : vector<16x16x48xbf16>, vector<48x64xbf16>, vector<16x16x64xf32> -> vector<16x16x64xf32>
    "tpu.trace_stop"() : () -> ()
    %39 = arith.addf %34, %38 : vector<16x16x64xf32>
    %40 = vector.extract_strided_slice %10 {offsets = [1, 2, 0], sizes = [16, 16, 48], strides = [1, 1, 1]} : vector<18x18x48xbf16> to vector<16x16x48xbf16>
    %c5 = arith.constant 5 : index
    %c0_36 = arith.constant 0 : index
    %c0_37 = arith.constant 0 : index
    %41 = vector.load %arg3[%c5, %c0_36, %c0_37] : memref<9x48x64xbf16, #tpu.memory_space<vmem>>, vector<1x48x64xbf16>
    %42 = vector.shape_cast %41 : vector<1x48x64xbf16> to vector<48x64xbf16>
    "tpu.trace_start"() <{level = 10 : i32, message = "hwc,cd->hwd"}> : () -> ()
    %cst_38 = arith.constant dense<0.000000e+00> : vector<16x16x64xf32>
    %43 = tpu.matmul %40, %42, %cst_38 {dimension_numbers = #tpu.dot_dimension_numbers<[2], [0], [0, 1], [1], [0, 0, 0, 1, 1, 1], [], []>} : vector<16x16x48xbf16>, vector<48x64xbf16>, vector<16x16x64xf32> -> vector<16x16x64xf32>
    "tpu.trace_stop"() : () -> ()
    %44 = arith.addf %39, %43 : vector<16x16x64xf32>
    %45 = vector.extract_strided_slice %10 {offsets = [2, 0, 0], sizes = [16, 16, 48], strides = [1, 1, 1]} : vector<18x18x48xbf16> to vector<16x16x48xbf16>
    %c6 = arith.constant 6 : index
    %c0_39 = arith.constant 0 : index
    %c0_40 = arith.constant 0 : index
    %46 = vector.load %arg3[%c6, %c0_39, %c0_40] : memref<9x48x64xbf16, #tpu.memory_space<vmem>>, vector<1x48x64xbf16>
    %47 = vector.shape_cast %46 : vector<1x48x64xbf16> to vector<48x64xbf16>
    "tpu.trace_start"() <{level = 10 : i32, message = "hwc,cd->hwd"}> : () -> ()
    %cst_41 = arith.constant dense<0.000000e+00> : vector<16x16x64xf32>
    %48 = tpu.matmul %45, %47, %cst_41 {dimension_numbers = #tpu.dot_dimension_numbers<[2], [0], [0, 1], [1], [0, 0, 0, 1, 1, 1], [], []>} : vector<16x16x48xbf16>, vector<48x64xbf16>, vector<16x16x64xf32> -> vector<16x16x64xf32>
    "tpu.trace_stop"() : () -> ()
    %49 = arith.addf %44, %48 : vector<16x16x64xf32>
    %50 = vector.extract_strided_slice %10 {offsets = [2, 1, 0], sizes = [16, 16, 48], strides = [1, 1, 1]} : vector<18x18x48xbf16> to vector<16x16x48xbf16>
    %c7 = arith.constant 7 : index
    %c0_42 = arith.constant 0 : index
    %c0_43 = arith.constant 0 : index
    %51 = vector.load %arg3[%c7, %c0_42, %c0_43] : memref<9x48x64xbf16, #tpu.memory_space<vmem>>, vector<1x48x64xbf16>
    %52 = vector.shape_cast %51 : vector<1x48x64xbf16> to vector<48x64xbf16>
    "tpu.trace_start"() <{level = 10 : i32, message = "hwc,cd->hwd"}> : () -> ()
    %cst_44 = arith.constant dense<0.000000e+00> : vector<16x16x64xf32>
    %53 = tpu.matmul %50, %52, %cst_44 {dimension_numbers = #tpu.dot_dimension_numbers<[2], [0], [0, 1], [1], [0, 0, 0, 1, 1, 1], [], []>} : vector<16x16x48xbf16>, vector<48x64xbf16>, vector<16x16x64xf32> -> vector<16x16x64xf32>
    "tpu.trace_stop"() : () -> ()
    %54 = arith.addf %49, %53 : vector<16x16x64xf32>
    %55 = vector.extract_strided_slice %10 {offsets = [2, 2, 0], sizes = [16, 16, 48], strides = [1, 1, 1]} : vector<18x18x48xbf16> to vector<16x16x48xbf16>
    %c8 = arith.constant 8 : index
    %c0_45 = arith.constant 0 : index
    %c0_46 = arith.constant 0 : index
    %56 = vector.load %arg3[%c8, %c0_45, %c0_46] : memref<9x48x64xbf16, #tpu.memory_space<vmem>>, vector<1x48x64xbf16>
    %57 = vector.shape_cast %56 : vector<1x48x64xbf16> to vector<48x64xbf16>
    "tpu.trace_start"() <{level = 10 : i32, message = "hwc,cd->hwd"}> : () -> ()
    %cst_47 = arith.constant dense<0.000000e+00> : vector<16x16x64xf32>
    %58 = tpu.matmul %55, %57, %cst_47 {dimension_numbers = #tpu.dot_dimension_numbers<[2], [0], [0, 1], [1], [0, 0, 0, 1, 1, 1], [], []>} : vector<16x16x48xbf16>, vector<48x64xbf16>, vector<16x16x64xf32> -> vector<16x16x64xf32>
    "tpu.trace_stop"() : () -> ()
    %59 = arith.addf %54, %58 : vector<16x16x64xf32>
    %60 = arith.negf %59 : vector<16x16x64xf32>
    %61 = math.exp %60 : vector<16x16x64xf32>
    %cst_48 = arith.constant 1.000000e+00 : f32
    %62 = vector.broadcast %cst_48 : f32 to vector<16x16x64xf32>
    %63 = arith.addf %62, %61 : vector<16x16x64xf32>
    %64 = arith.divf %62, %63 : vector<16x16x64xf32>
    %65 = vector.extract_strided_slice %64 {offsets = [0, 0, 0], sizes = [16, 16, 32], strides = [1, 1, 1]} : vector<16x16x64xf32> to vector<16x16x32xf32>
    %66 = vector.extract_strided_slice %64 {offsets = [0, 0, 32], sizes = [16, 16, 32], strides = [1, 1, 1]} : vector<16x16x64xf32> to vector<16x16x32xf32>
    %67 = arith.mulf %66, %1 : vector<16x16x32xf32>
    %68 = arith.truncf %67 : vector<16x16x32xf32> to vector<16x16x32xbf16>
    %c1_49 = arith.constant 1 : index
    %c1_50 = arith.constant 1 : index
    %c0_51 = arith.constant 0 : index
    %69 = vector.load %arg8[%c1_49, %c1_50, %c0_51] : memref<18x18x48xbf16, #tpu.memory_space<vmem>>, vector<16x16x32xbf16>
    tpu.vector_store %arg8[%c1_49, %c1_50, %c0_51], %68 {strides = array<i32>} : memref<18x18x48xbf16, #tpu.memory_space<vmem>>, vector<16x16x32xbf16>,
    %c0_52 = arith.constant 0 : index
    %c0_53 = arith.constant 0 : index
    %c0_54 = arith.constant 0 : index
    %70 = vector.load %arg8[%c0_52, %c0_53, %c0_54] : memref<18x18x48xbf16, #tpu.memory_space<vmem>>, vector<18x18x48xbf16>
    %c0_55 = arith.constant 0 : index
    %c0_56 = arith.constant 0 : index
    %71 = vector.load %arg6[%c0_55, %c0_56] : memref<1x32xf32, #tpu.memory_space<vmem>>, vector<1x32xf32>
    %72 = vector.shape_cast %71 : vector<1x32xf32> to vector<1x1x32xf32>
    %73 = vector.shape_cast %72 : vector<1x1x32xf32> to vector<1x1x32xf32>
    %74 = vector.broadcast %73 : vector<1x1x32xf32> to vector<16x16x32xf32>
    %75 = vector.extract_strided_slice %70 {offsets = [0, 0, 0], sizes = [16, 16, 48], strides = [1, 1, 1]} : vector<18x18x48xbf16> to vector<16x16x48xbf16>
    %c0_57 = arith.constant 0 : index
    %c0_58 = arith.constant 0 : index
    %c0_59 = arith.constant 0 : index
    %76 = vector.load %arg5[%c0_57, %c0_58, %c0_59] : memref<9x48x32xbf16, #tpu.memory_space<vmem>>, vector<1x48x32xbf16>
    %77 = vector.shape_cast %76 : vector<1x48x32xbf16> to vector<48x32xbf16>
    "tpu.trace_start"() <{level = 10 : i32, message = "hwc,cd->hwd"}> : () -> ()
    %cst_60 = arith.constant dense<0.000000e+00> : vector<16x16x32xf32>
    %78 = tpu.matmul %75, %77, %cst_60 {dimension_numbers = #tpu.dot_dimension_numbers<[2], [0], [0, 1], [1], [0, 0, 0, 1, 1, 1], [], []>} : vector<16x16x48xbf16>, vector<48x32xbf16>, vector<16x16x32xf32> -> vector<16x16x32xf32>
    "tpu.trace_stop"() : () -> ()
    %79 = arith.addf %74, %78 : vector<16x16x32xf32>
    %80 = vector.extract_strided_slice %70 {offsets = [0, 1, 0], sizes = [16, 16, 48], strides = [1, 1, 1]} : vector<18x18x48xbf16> to vector<16x16x48xbf16>
    %c1_61 = arith.constant 1 : index
    %c0_62 = arith.constant 0 : index
    %c0_63 = arith.constant 0 : index
    %81 = vector.load %arg5[%c1_61, %c0_62, %c0_63] : memref<9x48x32xbf16, #tpu.memory_space<vmem>>, vector<1x48x32xbf16>
    %82 = vector.shape_cast %81 : vector<1x48x32xbf16> to vector<48x32xbf16>
    "tpu.trace_start"() <{level = 10 : i32, message = "hwc,cd->hwd"}> : () -> ()
    %cst_64 = arith.constant dense<0.000000e+00> : vector<16x16x32xf32>
    %83 = tpu.matmul %80, %82, %cst_64 {dimension_numbers = #tpu.dot_dimension_numbers<[2], [0], [0, 1], [1], [0, 0, 0, 1, 1, 1], [], []>} : vector<16x16x48xbf16>, vector<48x32xbf16>, vector<16x16x32xf32> -> vector<16x16x32xf32>
    "tpu.trace_stop"() : () -> ()
    %84 = arith.addf %79, %83 : vector<16x16x32xf32>
    %85 = vector.extract_strided_slice %70 {offsets = [0, 2, 0], sizes = [16, 16, 48], strides = [1, 1, 1]} : vector<18x18x48xbf16> to vector<16x16x48xbf16>
    %c2_65 = arith.constant 2 : index
    %c0_66 = arith.constant 0 : index
    %c0_67 = arith.constant 0 : index
    %86 = vector.load %arg5[%c2_65, %c0_66, %c0_67] : memref<9x48x32xbf16, #tpu.memory_space<vmem>>, vector<1x48x32xbf16>
    %87 = vector.shape_cast %86 : vector<1x48x32xbf16> to vector<48x32xbf16>
    "tpu.trace_start"() <{level = 10 : i32, message = "hwc,cd->hwd"}> : () -> ()
    %cst_68 = arith.constant dense<0.000000e+00> : vector<16x16x32xf32>
    %88 = tpu.matmul %85, %87, %cst_68 {dimension_numbers = #tpu.dot_dimension_numbers<[2], [0], [0, 1], [1], [0, 0, 0, 1, 1, 1], [], []>} : vector<16x16x48xbf16>, vector<48x32xbf16>, vector<16x16x32xf32> -> vector<16x16x32xf32>
    "tpu.trace_stop"() : () -> ()
    %89 = arith.addf %84, %88 : vector<16x16x32xf32>
    %90 = vector.extract_strided_slice %70 {offsets = [1, 0, 0], sizes = [16, 16, 48], strides = [1, 1, 1]} : vector<18x18x48xbf16> to vector<16x16x48xbf16>
    %c3_69 = arith.constant 3 : index
    %c0_70 = arith.constant 0 : index
    %c0_71 = arith.constant 0 : index
    %91 = vector.load %arg5[%c3_69, %c0_70, %c0_71] : memref<9x48x32xbf16, #tpu.memory_space<vmem>>, vector<1x48x32xbf16>
    %92 = vector.shape_cast %91 : vector<1x48x32xbf16> to vector<48x32xbf16>
    "tpu.trace_start"() <{level = 10 : i32, message = "hwc,cd->hwd"}> : () -> ()
    %cst_72 = arith.constant dense<0.000000e+00> : vector<16x16x32xf32>
    %93 = tpu.matmul %90, %92, %cst_72 {dimension_numbers = #tpu.dot_dimension_numbers<[2], [0], [0, 1], [1], [0, 0, 0, 1, 1, 1], [], []>} : vector<16x16x48xbf16>, vector<48x32xbf16>, vector<16x16x32xf32> -> vector<16x16x32xf32>
    "tpu.trace_stop"() : () -> ()
    %94 = arith.addf %89, %93 : vector<16x16x32xf32>
    %95 = vector.extract_strided_slice %70 {offsets = [1, 1, 0], sizes = [16, 16, 48], strides = [1, 1, 1]} : vector<18x18x48xbf16> to vector<16x16x48xbf16>
    %c4_73 = arith.constant 4 : index
    %c0_74 = arith.constant 0 : index
    %c0_75 = arith.constant 0 : index
    %96 = vector.load %arg5[%c4_73, %c0_74, %c0_75] : memref<9x48x32xbf16, #tpu.memory_space<vmem>>, vector<1x48x32xbf16>
    %97 = vector.shape_cast %96 : vector<1x48x32xbf16> to vector<48x32xbf16>
    "tpu.trace_start"() <{level = 10 : i32, message = "hwc,cd->hwd"}> : () -> ()
    %cst_76 = arith.constant dense<0.000000e+00> : vector<16x16x32xf32>
    %98 = tpu.matmul %95, %97, %cst_76 {dimension_numbers = #tpu.dot_dimension_numbers<[2], [0], [0, 1], [1], [0, 0, 0, 1, 1, 1], [], []>} : vector<16x16x48xbf16>, vector<48x32xbf16>, vector<16x16x32xf32> -> vector<16x16x32xf32>
    "tpu.trace_stop"() : () -> ()
    %99 = arith.addf %94, %98 : vector<16x16x32xf32>
    %100 = vector.extract_strided_slice %70 {offsets = [1, 2, 0], sizes = [16, 16, 48], strides = [1, 1, 1]} : vector<18x18x48xbf16> to vector<16x16x48xbf16>
    %c5_77 = arith.constant 5 : index
    %c0_78 = arith.constant 0 : index
    %c0_79 = arith.constant 0 : index
    %101 = vector.load %arg5[%c5_77, %c0_78, %c0_79] : memref<9x48x32xbf16, #tpu.memory_space<vmem>>, vector<1x48x32xbf16>
    %102 = vector.shape_cast %101 : vector<1x48x32xbf16> to vector<48x32xbf16>
    "tpu.trace_start"() <{level = 10 : i32, message = "hwc,cd->hwd"}> : () -> ()
    %cst_80 = arith.constant dense<0.000000e+00> : vector<16x16x32xf32>
    %103 = tpu.matmul %100, %102, %cst_80 {dimension_numbers = #tpu.dot_dimension_numbers<[2], [0], [0, 1], [1], [0, 0, 0, 1, 1, 1], [], []>} : vector<16x16x48xbf16>, vector<48x32xbf16>, vector<16x16x32xf32> -> vector<16x16x32xf32>
    "tpu.trace_stop"() : () -> ()
    %104 = arith.addf %99, %103 : vector<16x16x32xf32>
    %105 = vector.extract_strided_slice %70 {offsets = [2, 0, 0], sizes = [16, 16, 48], strides = [1, 1, 1]} : vector<18x18x48xbf16> to vector<16x16x48xbf16>
    %c6_81 = arith.constant 6 : index
    %c0_82 = arith.constant 0 : index
    %c0_83 = arith.constant 0 : index
    %106 = vector.load %arg5[%c6_81, %c0_82, %c0_83] : memref<9x48x32xbf16, #tpu.memory_space<vmem>>, vector<1x48x32xbf16>
    %107 = vector.shape_cast %106 : vector<1x48x32xbf16> to vector<48x32xbf16>
    "tpu.trace_start"() <{level = 10 : i32, message = "hwc,cd->hwd"}> : () -> ()
    %cst_84 = arith.constant dense<0.000000e+00> : vector<16x16x32xf32>
    %108 = tpu.matmul %105, %107, %cst_84 {dimension_numbers = #tpu.dot_dimension_numbers<[2], [0], [0, 1], [1], [0, 0, 0, 1, 1, 1], [], []>} : vector<16x16x48xbf16>, vector<48x32xbf16>, vector<16x16x32xf32> -> vector<16x16x32xf32>
    "tpu.trace_stop"() : () -> ()
    %109 = arith.addf %104, %108 : vector<16x16x32xf32>
    %110 = vector.extract_strided_slice %70 {offsets = [2, 1, 0], sizes = [16, 16, 48], strides = [1, 1, 1]} : vector<18x18x48xbf16> to vector<16x16x48xbf16>
    %c7_85 = arith.constant 7 : index
    %c0_86 = arith.constant 0 : index
    %c0_87 = arith.constant 0 : index
    %111 = vector.load %arg5[%c7_85, %c0_86, %c0_87] : memref<9x48x32xbf16, #tpu.memory_space<vmem>>, vector<1x48x32xbf16>
    %112 = vector.shape_cast %111 : vector<1x48x32xbf16> to vector<48x32xbf16>
    "tpu.trace_start"() <{level = 10 : i32, message = "hwc,cd->hwd"}> : () -> ()
    %cst_88 = arith.constant dense<0.000000e+00> : vector<16x16x32xf32>
    %113 = tpu.matmul %110, %112, %cst_88 {dimension_numbers = #tpu.dot_dimension_numbers<[2], [0], [0, 1], [1], [0, 0, 0, 1, 1, 1], [], []>} : vector<16x16x48xbf16>, vector<48x32xbf16>, vector<16x16x32xf32> -> vector<16x16x32xf32>
    "tpu.trace_stop"() : () -> ()
    %114 = arith.addf %109, %113 : vector<16x16x32xf32>
    %115 = vector.extract_strided_slice %70 {offsets = [2, 2, 0], sizes = [16, 16, 48], strides = [1, 1, 1]} : vector<18x18x48xbf16> to vector<16x16x48xbf16>
    %c8_89 = arith.constant 8 : index
    %c0_90 = arith.constant 0 : index
    %c0_91 = arith.constant 0 : index
    %116 = vector.load %arg5[%c8_89, %c0_90, %c0_91] : memref<9x48x32xbf16, #tpu.memory_space<vmem>>, vector<1x48x32xbf16>
    %117 = vector.shape_cast %116 : vector<1x48x32xbf16> to vector<48x32xbf16>
    "tpu.trace_start"() <{level = 10 : i32, message = "hwc,cd->hwd"}> : () -> ()
    %cst_92 = arith.constant dense<0.000000e+00> : vector<16x16x32xf32>
    %118 = tpu.matmul %115, %117, %cst_92 {dimension_numbers = #tpu.dot_dimension_numbers<[2], [0], [0, 1], [1], [0, 0, 0, 1, 1, 1], [], []>} : vector<16x16x48xbf16>, vector<48x32xbf16>, vector<16x16x32xf32> -> vector<16x16x32xf32>
    "tpu.trace_stop"() : () -> ()
    %119 = arith.addf %114, %118 : vector<16x16x32xf32>
    %120 = math.tanh %119 : vector<16x16x32xf32>
    %121 = arith.subf %120, %1 : vector<16x16x32xf32>
    %122 = arith.mulf %65, %121 : vector<16x16x32xf32>
    %123 = arith.addf %1, %122 : vector<16x16x32xf32>
    %c0_93 = arith.constant 0 : index
    %c0_94 = arith.constant 0 : index
    %c0_95 = arith.constant 0 : index
    %c0_96 = arith.constant 0 : index
    %124 = vector.load %arg7[%c0_93, %c0_94, %c0_95, %c0_96] : memref<1x16x16x32xf32, #tpu.memory_space<vmem>>, vector<1x16x16x32xf32>
    %125 = vector.shape_cast %124 : vector<1x16x16x32xf32> to vector<16x16x32xf32>
    %126 = vector.shape_cast %123 : vector<16x16x32xf32> to vector<1x16x16x32xf32>
    tpu.vector_store %arg7[%c0_93, %c0_94, %c0_95, %c0_96], %126 {strides = array<i32>} : memref<1x16x16x32xf32, #tpu.memory_space<vmem>>, vector<1x16x16x32xf32>,
    return
  }
  func.func @transform_0(%arg0: i32) -> (i32, i32, i32, i32) {
    %c0_i32 = arith.constant 0 : i32
    %c0_i32_0 = arith.constant 0 : i32
    %c0_i32_1 = arith.constant 0 : i32
    %c0_i32_2 = arith.constant 0 : i32
    return %arg0, %c0_i32, %c0_i32_0, %c0_i32_1 : i32, i32, i32, i32
  }
  func.func @transform_1(%arg0: i32) -> (i32, i32, i32, i32) {
    %c0_i32 = arith.constant 0 : i32
    %c0_i32_0 = arith.constant 0 : i32
    %c0_i32_1 = arith.constant 0 : i32
    %c0_i32_2 = arith.constant 0 : i32
    return %arg0, %c0_i32, %c0_i32_0, %c0_i32_1 : i32, i32, i32, i32
  }
  func.func @transform_2(%arg0: i32) -> (i32, i32, i32) {
    %c0_i32 = arith.constant 0 : i32
    %c0_i32_0 = arith.constant 0 : i32
    %c0_i32_1 = arith.constant 0 : i32
    %c0_i32_2 = arith.constant 0 : i32
    return %c0_i32, %c0_i32_0, %c0_i32_1 : i32, i32, i32
  }
  func.func @transform_3(%arg0: i32) -> (i32, i32) {
    %c0_i32 = arith.constant 0 : i32
    %c0_i32_0 = arith.constant 0 : i32
    %c0_i32_1 = arith.constant 0 : i32
    return %c0_i32, %c0_i32_0 : i32, i32
  }
  func.func @transform_4(%arg0: i32) -> (i32, i32, i32) {
    %c0_i32 = arith.constant 0 : i32
    %c0_i32_0 = arith.constant 0 : i32
    %c0_i32_1 = arith.constant 0 : i32
    %c0_i32_2 = arith.constant 0 : i32
    return %c0_i32, %c0_i32_0, %c0_i32_1 : i32, i32, i32
  }
  func.func @transform_5(%arg0: i32) -> (i32, i32) {
    %c0_i32 = arith.constant 0 : i32
    %c0_i32_0 = arith.constant 0 : i32
    %c0_i32_1 = arith.constant 0 : i32
    return %c0_i32, %c0_i32_0 : i32, i32
  }
  func.func @transform_6(%arg0: i32) -> (i32, i32, i32, i32) {
    %c0_i32 = arith.constant 0 : i32
    %c0_i32_0 = arith.constant 0 : i32
    %c0_i32_1 = arith.constant 0 : i32
    %c0_i32_2 = arith.constant 0 : i32
    return %arg0, %c0_i32, %c0_i32_0, %c0_i32_1 : i32, i32, i32, i32
  }
}

</mosaic_0001>

<bundles_post_ra>
// kernel: convgru_pallas.1
= control target key start
LH: loop header
LB: loop body
LE: loop exit
PB: predicated region body
PF: predicated region fallthrough
CT: control target
= control target key end

     0   :  { %11 = vsyncpa [#allocation4], 0  ;;  %s16039_s0 = inlined_call_operand.vmem [shape: f32[2,16,16,32], index: 0, kind: input, shape index: {}]   ;;  %s16040_s1 = inlined_call_operand.vmem [shape: f32[2,16,16,16], index: 1, kind: input, shape index: {}]   ;;  %s16041_s2 = inlined_call_operand.vmem [shape: bf16[9,48,64], index: 2, kind: input, shape index: {}]   ;;  %s16042_s3 = inlined_call_operand.vmem [shape: f32[1,64], index: 3, kind: input, shape index: {}]   ;;  %s16043_s4 = inlined_call_operand.vmem [shape: bf16[9,48,32], index: 4, kind: input, shape index: {}]   ;;  %s16044_s5 = inlined_call_operand.vmem [shape: f32[1,32], index: 5, kind: input, shape index: {}]   ;;  %s16045_s6 = inlined_call_operand.hbm [shape: f32[2,16,16,32], index: 6, kind: output, shape index: {}]  }
   0x1   :  { %13 = vsyncpa [#allocation4 + $0x1], 0  ;;  %s11030_s21 = smov 0   ;;  %s11032_s22 = smov 0  }
   0x2   :  { %s11034_s23 = smov 0   ;;  %s11036_s24 = smov 0  }
   0x3 LB: > { %s11051_s25 = sadd.s32 4294967295, %s10987_s24   ;;  %s8706_s26 = sadd.s32 4294967294, %s10987_s24   ;;  %s10987_s24 = sphi %s11036_s24, %s16732_s24   ;;  %s10983_s23 = sphi %s11034_s23, %s16731_s23   ;;  %s10979_s22 = sphi %s11032_s22, %s16730_s22   ;;  %s10975_s21 = sphi %s11030_s21, %s16729_s21  }
   0x4   : > { %s11055_s27 = sadd.s32 1, %s10987_s24   ;;  %s162_s28 = sadd.s32 1, %s10983_s23 }
   0x5   : > { %s159_s29 = ssub.s32 %s10987_s24, %s11055_s27  ;;  %p172_p0 = scmp.ne.s32.totalorder %s10983_s23, %s10979_s22 }
   0x6   : > { %p160_p1 = scmp.eq.s32.totalorder %s159_s29, 0  ;;  %p173_p2 = scmp.eq.s32.totalorder %s11051_s25, 1 }
   0x7   : > { %p178_p3 = scmp.ne.s32.totalorder %s10979_s22, %s10975_s21  ;;  %p179_p4 = scmp.eq.s32.totalorder %s8706_s26, 1 }
   0x8   : > { %s11066_s30 = scalar_select %p160_p1, %s10983_s23, %s162_s28  }
   0x9   : > { %p11068_p5 = por %p173_p2, %p172_p0  ;;  %p11072_p6 = por %p179_p4, %p178_p3 }
   0xa   : > { %p8709_p7 = scmp.ge.s32.totalorder %s10987_s24, 1  ;;  %p225_p8 = scmp.lt.s32.totalorder %s10987_s24, 3 }
   0xc   : > { %p226_p9 = pnand %p8709_p7, %p225_p8 }
   0xe   : > { %229 = sbr.rel (%p226_p9) target bundleno = 1403 (0x57b), region = 44 }
  0x13   : > { %p260_p10 = scmp.lt.s32.totalorder %s11051_s25, 1  ;;  %vm335_vm0 = vcmask 388096   ;;  %v16046_v0 = vmov 0   ;;  %v10601_v1 = vld [vmem:[%s16041_s2 + $0x10] sm:$0xff]   ;;  %vm487_vm1 = vsmask.f32 256 }
  0x14   : > { %343 = vst.msk [vmem:[#allocation2 + $0x18] sm:$0xf] %vm335_vm0, %v16046_v0  ;;  %336 = vst.msk [vmem:[#allocation2] sm:$0xf] %vm335_vm0, %v16046_v0  ;;  %9873 = vmatprep.subr.bf16.mxu0 %v10601_v1  ;;  %vm488_vm2 = vsmask.f32 4368 }
  0x15   : > { %s11080_s9 = scalar_select %p260_p10, %s11051_s25, 1  ;;  %337 = vst.msk [vmem:[#allocation2 + $0x4] sm:$0xf] %vm335_vm0, %v16046_v0  ;;  %340 = vst.msk [vmem:[#allocation2 + $0xc] sm:$0xf] %vm335_vm0, %v16046_v0  ;;  %9874 = vmatpush3.bf16.msra.mxu0 %v10601_v1  ;;  %v16216_v37 = vmov 0 }
  0x16   : > { %341 = vst.msk [vmem:[#allocation2 + $0x10] sm:$0xf] %vm335_vm0, %v16046_v0  ;;  %344 = vst.msk [vmem:[#allocation2 + $0x1c] sm:$0xf] %vm335_vm0, %v16046_v0  ;;  %s10990_s16 = smov 32   ;;  %v10602_v63 = vld [vmem:[%s16041_s2 + $0x8] sm:$0xff]  }
  0x17   : > { %346 = vst.msk [vmem:[#allocation2 + $0x24] sm:$0xf] %vm335_vm0, %v16046_v0  ;;  %347 = vst.msk [vmem:[#allocation2 + $0x28] sm:$0xf] %vm335_vm0, %v16046_v0  ;;  %s9432_s12 = sshll.u32 %s11080_s9, 8  ;;  %9875 = vmatprep.subr.bf16.mxu0 %v10602_v63  ;;  %vm811_vm4 = vcmask 257024  }
  0x18   : > { %349 = vst.msk [vmem:[#allocation2 + $0x30] sm:$0xf] %vm335_vm0, %v16046_v0  ;;  %350 = vst.msk [vmem:[#allocation2 + $0x34] sm:$0xf] %vm335_vm0, %v16046_v0  ;;  %s11163_s15 = scalar_lea.vmem %s16040_s1, %s9432_s12  ;;  %s11301_s11 = scalar_lea.vmem %s16039_s0, %s9432_s12  ;;  %vm812_vm5 = vsmask.f32 7938 }
  0x19   : > { %352 = vst.msk [vmem:[#allocation2 + $0x3c] sm:$0xf] %vm335_vm0, %v16046_v0  ;;  %353 = vst.msk [vmem:[#allocation2 + $0x40] sm:$0xf] %vm335_vm0, %v16046_v0  ;;  %v305_v2 = vld [vmem:[%s11163_s15 + $0x10] sm:$0xff]  ;;  %v303_v3 = vld [vmem:[%s11163_s15] sm:$0xff]  ;;  %9876 = vmatpush3.bf16.msra.mxu0 %v10602_v63 }
  0x1a   : > { %355 = vst.msk [vmem:[#allocation2 + $0x48] sm:$0xf] %vm335_vm0, %v16046_v0  ;;  %356 = vst.msk [vmem:[#allocation2 + $0x4c] sm:$0xf] %vm335_vm0, %v16046_v0  ;;  %v306_v4 = vld [vmem:[%s11163_s15 + $0x18] sm:$0xff]  ;;  %v9468_v5 = vpack.c.bf16 %v305_v2, %v305_v2  ;;  %v9466_v6 = vpack.c.bf16 %v303_v3, %v303_v3  ;;  %v304_v8 = vld [vmem:[%s11163_s15 + $0x8] sm:$0xff] }
  0x1b   : > { %358 = vst.msk [vmem:[#allocation2 + $0x54] sm:$0xf] %vm335_vm0, %v16046_v0  ;;  %359 = vst.msk [vmem:[#allocation2 + $0x58] sm:$0xf] %vm335_vm0, %v16046_v0  ;;  %v9469_v7 = vpack.c.bf16 %v306_v4, %v306_v4  ;;  %v307_v9 = vld [vmem:[%s11163_s15 + $0x20] sm:$0xff]  ;;  %v308_v10 = vld [vmem:[%s11163_s15 + $0x28] sm:$0xff]  ;;  %v9467_v11 = vpack.c.bf16 %v304_v8, %v304_v8 }
  0x1c   : > { %361 = vst.msk [vmem:[#allocation2 + $0x60] sm:$0xf] %vm335_vm0, %v16046_v0  ;;  %362 = vst.msk [vmem:[#allocation2 + $0x64] sm:$0xf] %vm335_vm0, %v16046_v0  ;;  %v9470_v12 = vpack.c.bf16 %v307_v9, %v307_v9  ;;  %v9471_v13 = vpack.c.bf16 %v308_v10, %v308_v10  ;;  %v1043_v14 = vshrl.u32 %v9468_v5, 16  ;;  %v1046_v15 = vshll.u32 %v9468_v5, 16 }
  0x1d   : > { %364 = vst.msk [vmem:[#allocation2 + $0x6c] sm:$0xf] %vm335_vm0, %v16046_v0  ;;  %365 = vst.msk [vmem:[#allocation2 + $0x70] sm:$0xf] %vm335_vm0, %v16046_v0  ;;  %v1026_v16 = vshrl.u32 %v9466_v6, 16  ;;  %v1029_v17 = vshll.u32 %v9466_v6, 16 }
  0x1e   : > { %367 = vst.msk [vmem:[#allocation2 + $0x78] sm:$0xf] %vm335_vm0, %v16046_v0  ;;  %368 = vst.msk [vmem:[#allocation2 + $0x7c] sm:$0xf] %vm335_vm0, %v16046_v0  ;;  %v1051_v18 = vshrl.u32 %v9469_v7, 16  ;;  %v1054_v19 = vshll.u32 %v9469_v7, 16 }
  0x1f   : > { %370 = vst.msk [vmem:[#allocation2 + $0x84] sm:$0xf] %vm335_vm0, %v16046_v0  ;;  %371 = vst.msk [vmem:[#allocation2 + $0x88] sm:$0xf] %vm335_vm0, %v16046_v0  ;;  %v1034_v20 = vshrl.u32 %v9467_v11, 16  ;;  %v1037_v21 = vshll.u32 %v9467_v11, 16 }
  0x20   : > { %373 = vst.msk [vmem:[#allocation2 + $0x90] sm:$0xf] %vm335_vm0, %v16046_v0  ;;  %374 = vst.msk [vmem:[#allocation2 + $0x94] sm:$0xf] %vm335_vm0, %v16046_v0  ;;  %v1045_v22 = vrot.slane %v1043_v14, 7  ;;  %v1028_v23 = vrot.slane %v1026_v16, 7 }
  0x21   : > { %376 = vst.msk [vmem:[#allocation2 + $0x9c] sm:$0xf] %vm335_vm0, %v16046_v0  ;;  %377 = vst.msk [vmem:[#allocation2 + $0xa0] sm:$0xf] %vm335_vm0, %v16046_v0  ;;  %v1060_v24 = vshrl.u32 %v9470_v12, 16  ;;  %v1068_v25 = vshrl.u32 %v9471_v13, 16 }
  0x22   : > { %379 = vst.msk [vmem:[#allocation2 + $0xa8] sm:$0xf] %vm335_vm0, %v16046_v0  ;;  %380 = vst.msk [vmem:[#allocation2 + $0xac] sm:$0xf] %vm335_vm0, %v16046_v0  ;;  %v309_v26 = vld [vmem:[%s11163_s15 + $0x30] sm:$0xff]  ;;  %v11172_v27 = vrot.slane %v1051_v18, 7  ;;  %v1048_v33 = vor.u32 %v1046_v15, %v1045_v22  ;;  %v1031_v35 = vor.u32 %v1029_v17, %v1028_v23 }
  0x23   : > { %382 = vst.msk [vmem:[#allocation2 + $0xb4] sm:$0xf] %vm335_vm0, %v16046_v0  ;;  %383 = vst.msk [vmem:[#allocation2 + $0xb8] sm:$0xf] %vm335_vm0, %v16046_v0  ;;  %v11174_v28 = vrot.slane %v1034_v20, 7  ;;  %v1071_v29 = vshll.u32 %v9471_v13, 16  ;;  %v9472_v42 = vpack.c.bf16 %v309_v26, %v309_v26 }
  0x24   : > { %385 = vst.msk [vmem:[#allocation2 + $0xc0] sm:$0xf] %vm335_vm0, %v16046_v0  ;;  %386 = vst.msk [vmem:[#allocation2 + $0xc4] sm:$0xf] %vm335_vm0, %v16046_v0  ;;  %v1063_v30 = vshll.u32 %v9470_v12, 16  ;;  %v310_v31 = vld [vmem:[%s11163_s15 + $0x38] sm:$0xff]  ;;  %v1056_v38 = vor.u32 %v1054_v19, %v11172_v27  ;;  %1303 = vrot.lane.b32.xlu1 %v1048_v33, %s10990_s16  ;;  %1297 = vrot.lane.b32.xlu0 %v1031_v35, %s10990_s16 }
  0x25   : > { %388 = vst.msk [vmem:[#allocation2 + $0xcc] sm:$0xf] %vm335_vm0, %v16046_v0  ;;  %389 = vst.msk [vmem:[#allocation2 + $0xd0] sm:$0xf] %vm335_vm0, %v16046_v0  ;;  %v311_v32 = vld [vmem:[%s11163_s15 + $0x40] sm:$0xff]  ;;  %v1049_v34 = vrot.slane %v1045_v22, 4  ;;  %v1039_v39 = vor.u32 %v1037_v21, %v11174_v28  ;;  %v9473_v43 = vpack.c.bf16 %v310_v31, %v310_v31 }
  0x26   : > { %v1032_v36 = vrot.slane %v1028_v23, 4  ;;  %vm11180_vm3 = vmor %vm487_vm1, %vm488_vm2  ;;  %v1062_v40 = vrot.slane %v1060_v24, 7  ;;  %v11186_v41 = vrot.slane %v1068_v25, 7  ;;  %v312_v44 = vld [vmem:[%s11163_s15 + $0x48] sm:$0xff]  ;;  %v9474_v45 = vpack.c.bf16 %v311_v32, %v311_v32  ;;  %v313_v50 = vld [vmem:[%s11163_s15 + $0x50] sm:$0xff]  ;;  %s10991_s19 = smov 96  }
  0x27   : > { %v16217_v37 = vsel %vm11180_vm3, 4294967295, %v16216_v37  ;;  %v1057_v46 = vsel %vm11180_vm3, %v1049_v34, %v1056_v38  ;;  %v1077_v51 = vshrl.u32 %v9472_v42, 16  ;;  %v1085_v52 = vshrl.u32 %v9473_v43, 16  ;;  %v314_v54 = vld [vmem:[%s11163_s15 + $0x58] sm:$0xff]  ;;  %v10603_v5 = vld [vmem:[%s16041_s2] sm:$0xff]   ;;  %v316_v11 = vld [vmem:[%s11163_s15 + $0x68] sm:$0xff] }
  0x28   : > { %16218 = vst [vmem:[#allocation6_spill] sm:$0xff] %v16217_v37  ;;  %v1040_v47 = vsel %vm11180_vm3, %v1032_v36, %v1039_v39  ;;  %v1066_v48 = vrot.slane %v1062_v40, 4  ;;  %v1073_v49 = vor.u32 %v1071_v29, %v11186_v41  ;;  %v1088_v53 = vshll.u32 %v9473_v43, 16  ;;  %1305 = vrot.lane.b32.xlu1 %v1057_v46, %s10990_s16  ;;  %v315_v10 = vld [vmem:[%s11163_s15 + $0x60] sm:$0xff]  ;;  %v317_v15 = vld [vmem:[%s11163_s15 + $0x70] sm:$0xff]  ;;  %v318_v16 = vld [vmem:[%s11163_s15 + $0x78] sm:$0xff]  ;;  %9877 = vmatprep.subr.bf16.mxu0 %v10603_v5 }
  0x29   : > { %v1065_v55 = vor.u32 %v1063_v30, %v1062_v40  ;;  %v1080_v56 = vshll.u32 %v9472_v42, 16  ;;  %v9475_v57 = vpack.c.bf16 %v312_v44, %v312_v44  ;;  %v1094_v58 = vshrl.u32 %v9474_v45, 16  ;;  %1299 = vrot.lane.b32.xlu0 %v1040_v47, %s10990_s16  ;;  %v10605_v26 = vld [vmem:[%s16041_s2 + $0x40] sm:$0xff]   ;;  %9878 = vmatpush3.bf16.msra.mxu0 %v10603_v5  ;;  %v320_v44 = vld [vmem:[%s11163_s15 + $0x88] sm:$0xff]  ;;  %vm11366_vm6 = vmand %vm811_vm4, %vm812_vm5  ;;  %s257_s18 = sand.u32 1, %s10979_s22   ;;  %s10992_s10 = smov [#allocation3]  }
  0x2a   : > { %v1074_v59 = vsel %vm11180_vm3, %v1066_v48, %v1073_v49  ;;  %v1079_v60 = vrot.slane %v1077_v51, 7  ;;  %v11202_v61 = vrot.slane %v1085_v52, 7  ;;  %v9476_v62 = vpack.c.bf16 %v313_v50, %v313_v50  ;;  %v319_v38 = vld [vmem:[%s11163_s15 + $0x80] sm:$0xff]  ;;  %9949 = vmatprep.subr.bf16.mxu0 %v10605_v26  ;;  %s10931_s9 = sshll.u32 %s10992_s10, 4  ;;  %s10932_s9 = int_to_ptr.vmem [resolvable:$false] %s10931_s9 }
  0x2b   : > { %v1096_v1 = vrot.slane %v1094_v58, 7  ;;  %v1102_v2 = vshrl.u32 %v9475_v57, 16  ;;  %v1105_v3 = vshll.u32 %v9475_v57, 16  ;;  %v9477_v4 = vpack.c.bf16 %v314_v54, %v314_v54  ;;  %v322_v58 = vld [vmem:[%s11163_s15 + $0x98] sm:$0xff]  ;;  %s10933_s12 = scalar_lea.vmem %s10932_s9, 8192 }
  0x2c   : > { %v1083_v6 = vrot.slane %v1079_v60, 4  ;;  %v1090_v7 = vor.u32 %v1088_v53, %v11202_v61  ;;  %v1097_v8 = vshll.u32 %v9474_v45, 16  ;;  %v1111_v9 = vshrl.u32 %v9476_v62, 16  ;;  %1311 = vrot.lane.b32.xlu1 %v1074_v59, %s10990_s16  ;;  %v321_v53 = vld [vmem:[%s11163_s15 + $0x90] sm:$0xff]  ;;  %v323_v59 = vld [vmem:[%s11163_s15 + $0xa0] sm:$0xff] }
  0x2d   : > { %v1082_v12 = vor.u32 %v1080_v56, %v1079_v60  ;;  %v11213_v13 = vrot.slane %v1102_v2, 7  ;;  %v1119_v14 = vshrl.u32 %v9477_v4, 16  ;;  %v1041_v17 = vrot.slane %v11174_v28, 4  ;;  %1309 = vrot.lane.b32.xlu0 %v1065_v55, %s10990_s16  ;;  %v324_v60 = vld [vmem:[%s11163_s15 + $0xa8] sm:$0xff] }
  0x2e   : > { %v1091_v18 = vsel %vm11180_vm3, %v1083_v6, %v1090_v7  ;;  %v1100_v19 = vrot.slane %v1096_v1, 4  ;;  %v1113_v20 = vrot.slane %v1111_v9, 7  ;;  %v1122_v21 = vshll.u32 %v9477_v4, 16  ;;  %v325_v7 = vld [vmem:[%s11163_s15 + $0xb0] sm:$0xff] }
  0x2f   : > { %v1107_v22 = vor.u32 %v1105_v3, %v11213_v13  ;;  %v11223_v23 = vrot.slane %v1119_v14, 7  ;;  %v9478_v24 = vpack.c.bf16 %v315_v10, %v315_v10  ;;  %v9479_v25 = vpack.c.bf16 %v316_v11, %v316_v11 }
  0x30   : > { %v1099_v29 = vor.u32 %v1097_v8, %v1096_v1  ;;  %v1114_v30 = vshll.u32 %v9476_v62, 16  ;;  %v9480_v31 = vpack.c.bf16 %v317_v15, %v317_v15  ;;  %v9481_v32 = vpack.c.bf16 %v318_v16, %v318_v16  ;;  %1317 = vrot.lane.b32.xlu1 %v1091_v18, %s10990_s16 }
  0x31   : > { %v1117_v33 = vrot.slane %v1113_v20, 4  ;;  %v1124_v34 = vor.u32 %v1122_v21, %v11223_v23  ;;  %v1128_v35 = vshrl.u32 %v9478_v24, 16  ;;  %v1136_v36 = vshrl.u32 %v9479_v25, 16  ;;  %1315 = vrot.lane.b32.xlu0 %v1082_v12, %s10990_s16  ;;  %v326_v21 = vld [vmem:[%s11163_s15 + $0xb8] sm:$0xff] }
  0x32   : > { %v1139_v39 = vshll.u32 %v9479_v25, 16  ;;  %v1131_v40 = vshll.u32 %v9478_v24, 16  ;;  %v1145_v42 = vshrl.u32 %v9480_v31, 16  ;;  %v1153_v43 = vshrl.u32 %v9481_v32, 16 }
  0x33   : > { %v1108_v45 = vsel %vm11180_vm3, %v1100_v19, %v1107_v22  ;;  %v1130_v46 = vrot.slane %v1128_v35, 7  ;;  %v11235_v47 = vrot.slane %v1136_v36, 7  ;;  %v1156_v48 = vshll.u32 %v9481_v32, 16 }
  0x34   : > { %v1147_v49 = vrot.slane %v1145_v42, 7  ;;  %v11237_v50 = vrot.slane %v1153_v43, 7  ;;  %v1148_v51 = vshll.u32 %v9480_v31, 16  ;;  %v9482_v52 = vpack.c.bf16 %v319_v38, %v319_v38  ;;  %1323 = vrot.lane.b32.xlu1 %v1108_v45, %s10990_s16  ;;  %v328_v45 = vld [vmem:[%s11163_s15 + $0xc8] sm:$0xff] }
  0x35   : > { %v1116_v54 = vor.u32 %v1114_v30, %v1113_v20  ;;  %v1134_v55 = vrot.slane %v1130_v46, 4  ;;  %v1141_v56 = vor.u32 %v1139_v39, %v11235_v47  ;;  %v9483_v57 = vpack.c.bf16 %v320_v44, %v320_v44  ;;  %1321 = vrot.lane.b32.xlu0 %v1099_v29, %s10990_s16 }
  0x36   : > { %v1125_v62 = vsel %vm11180_vm3, %v1117_v33, %v1124_v34  ;;  %v1133_v63 = vor.u32 %v1131_v40, %v1130_v46  ;;  %v1151_v1 = vrot.slane %v1147_v49, 4  ;;  %v1162_v2 = vshrl.u32 %v9482_v52, 16  ;;  %v327_v34 = vld [vmem:[%s11163_s15 + $0xc0] sm:$0xff] }
  0x37   : > { %v1158_v3 = vor.u32 %v1156_v48, %v11237_v50  ;;  %v1150_v4 = vor.u32 %v1148_v51, %v1147_v49  ;;  %v1170_v5 = vshrl.u32 %v9483_v57, 16  ;;  %v1173_v6 = vshll.u32 %v9483_v57, 16 }
  0x38   : > { %v1142_v8 = vsel %vm11180_vm3, %v1134_v55, %v1141_v56  ;;  %v1164_v9 = vrot.slane %v1162_v2, 7  ;;  %v9484_v10 = vpack.c.bf16 %v321_v53, %v321_v53  ;;  %v9485_v11 = vpack.c.bf16 %v322_v58, %v322_v58  ;;  %1329 = vrot.lane.b32.xlu1 %v1125_v62, %s10990_s16  ;;  %v330_v53 = vld [vmem:[%s11163_s15 + $0xd8] sm:$0xff] }
  0x39   : > { %v11252_v12 = vrot.slane %v1170_v5, 7  ;;  %v1165_v14 = vshll.u32 %v9482_v52, 16  ;;  %v9486_v15 = vpack.c.bf16 %v323_v59, %v323_v59  ;;  %v9487_v16 = vpack.c.bf16 %v324_v60, %v324_v60  ;;  %1327 = vrot.lane.b32.xlu0 %v1116_v54, %s10990_s16  ;;  %v329_v52 = vld [vmem:[%s11163_s15 + $0xd0] sm:$0xff] }
  0x3a   : > { %v1168_v18 = vrot.slane %v1164_v9, 4  ;;  %v1179_v19 = vshrl.u32 %v9484_v10, 16  ;;  %v1187_v20 = vshrl.u32 %v9485_v11, 16  ;;  %v11257_v22 = vpack.c.bf16 %v325_v7, %v325_v7 }
  0x3b   : > { %v1175_v24 = vor.u32 %v1173_v6, %v11252_v12  ;;  %v1190_v25 = vshll.u32 %v9485_v11, 16  ;;  %v1182_v26 = vshll.u32 %v9484_v10, 16  ;;  %v1196_v29 = vshrl.u32 %v9486_v15, 16 }
  0x3c   : > { %v1181_v30 = vrot.slane %v1179_v19, 7  ;;  %v11260_v31 = vrot.slane %v1187_v20, 7  ;;  %v1204_v32 = vshrl.u32 %v9487_v16, 16  ;;  %v1207_v33 = vshll.u32 %v9487_v16, 16  ;;  %1335 = vrot.lane.b32.xlu1 %v1142_v8, %s10990_s16  ;;  %v331_v8 = vld [vmem:[%s11163_s15 + $0xe0] sm:$0xff] }
  0x3d   : > { %v1159_v35 = vsel %vm11180_vm3, %v1151_v1, %v1158_v3  ;;  %v1198_v36 = vrot.slane %v1196_v29, 7  ;;  %v1199_v38 = vshll.u32 %v9486_v15, 16  ;;  %v9489_v39 = vpack.c.bf16 %v326_v21, %v326_v21  ;;  %1333 = vrot.lane.b32.xlu0 %v1133_v63, %s10990_s16  ;;  %v332_v15 = vld [vmem:[%s11163_s15 + $0xe8] sm:$0xff] }
  0x3e   : > { %v1167_v40 = vor.u32 %v1165_v14, %v1164_v9  ;;  %v1185_v42 = vrot.slane %v1181_v30, 4  ;;  %v1192_v43 = vor.u32 %v1190_v25, %v11260_v31  ;;  %v11268_v44 = vrot.slane %v1204_v32, 7 }
  0x3f   : > { %v1176_v46 = vsel %vm11180_vm3, %v1168_v18, %v1175_v24  ;;  %v1202_v48 = vrot.slane %v1198_v36, 4  ;;  %v1213_v49 = vshrl.u32 %v11257_v22, 16  ;;  %v1221_v51 = vshrl.u32 %v9489_v39, 16 }
  0x40   : > { %v1184_v54 = vor.u32 %v1182_v26, %v1181_v30  ;;  %v1209_v55 = vor.u32 %v1207_v33, %v11268_v44  ;;  %v11277_v56 = vor.u32 %v1199_v38, %v1198_v36  ;;  %v1224_v57 = vshll.u32 %v9489_v39, 16  ;;  %1341 = vrot.lane.b32.xlu1 %v1159_v35, %s10990_s16 }
  0x41   : > { %v1215_v58 = vrot.slane %v1213_v49, 7  ;;  %v11279_v59 = vrot.slane %v1221_v51, 7  ;;  %v9490_v60 = vpack.c.bf16 %v327_v34, %v327_v34  ;;  %v9491_v62 = vpack.c.bf16 %v328_v45, %v328_v45  ;;  %1339 = vrot.lane.b32.xlu0 %v1150_v4, %s10990_s16  ;;  %v273_v49 = vld [vmem:[%s11301_s11 + $0x10] sm:$0xff]  ;;  %v271_v51 = vld [vmem:[%s11301_s11] sm:$0xff] }
  0x42   : > { %v1193_v63 = vsel %vm11180_vm3, %v1185_v42, %v1192_v43  ;;  %v1216_v1 = vshll.u32 %v11257_v22, 16  ;;  %v9492_v2 = vpack.c.bf16 %v329_v52, %v329_v52  ;;  %v9493_v3 = vpack.c.bf16 %v330_v53, %v330_v53  ;;  %v274_v52 = vld [vmem:[%s11301_s11 + $0x18] sm:$0xff] }
  0x43   : > { %v1210_v5 = vsel %vm11180_vm3, %v1202_v48, %v1209_v55  ;;  %v1219_v6 = vrot.slane %v1215_v58, 4  ;;  %v1230_v7 = vshrl.u32 %v9490_v60, 16  ;;  %v1058_v9 = vrot.slane %v11172_v27, 4 }
  0x44   : > { %v1226_v10 = vor.u32 %v1224_v57, %v11279_v59  ;;  %v1238_v11 = vshrl.u32 %v9491_v62, 16  ;;  %v1241_v4 = vshll.u32 %v9491_v62, 16  ;;  %v1247_v14 = vshrl.u32 %v9492_v2, 16  ;;  %1347 = vrot.lane.b32.xlu1 %v1176_v46, %s10990_s16  ;;  %v276_v62 = vld [vmem:[%s11301_s11 + $0x28] sm:$0xff] }
  0x45   : > { %v1232_v16 = vrot.slane %v1230_v7, 7  ;;  %v1233_v18 = vshll.u32 %v9490_v60, 16  ;;  %v1255_v19 = vshrl.u32 %v9493_v3, 16  ;;  %v1258_v20 = vshll.u32 %v9493_v3, 16  ;;  %1345 = vrot.lane.b32.xlu0 %v1167_v40, %s10990_s16  ;;  %v275_v60 = vld [vmem:[%s11301_s11 + $0x20] sm:$0xff] }
  0x46   : > { %v11294_v21 = vrot.slane %v1238_v11, 7  ;;  %v1249_v22 = vrot.slane %v1247_v14, 7  ;;  %v1250_v24 = vshll.u32 %v9492_v2, 16  ;;  %v9494_v25 = vpack.c.bf16 %v331_v8, %v331_v8 }
  0x47   : > { %v1218_v26 = vor.u32 %v1216_v1, %v1215_v58  ;;  %v1236_v29 = vrot.slane %v1232_v16, 4  ;;  %v11303_v30 = vrot.slane %v1255_v19, 7  ;;  %v9495_v32 = vpack.c.bf16 %v332_v15, %v332_v15  ;;  %v272_v58 = vld [vmem:[%s11301_s11 + $0x8] sm:$0xff] }
  0x48   : > { %v1227_v33 = vsel %vm11180_vm3, %v1219_v6, %v1226_v10  ;;  %v1243_v34 = vor.u32 %v1241_v4, %v11294_v21  ;;  %v1253_v35 = vrot.slane %v1249_v22, 4  ;;  %v1264_v36 = vshrl.u32 %v9494_v25, 16  ;;  %1353 = vrot.lane.b32.xlu1 %v1193_v63, %s10990_s16  ;;  %v277_v6 = vld [vmem:[%s11301_s11 + $0x30] sm:$0xff] }
  0x49   : > { %v11308_v38 = vor.u32 %v1233_v18, %v1232_v16  ;;  %v1260_v39 = vor.u32 %v1258_v20, %v11303_v30  ;;  %v1267_v40 = vshll.u32 %v9494_v25, 16  ;;  %v1272_v42 = vshrl.u32 %v9495_v32, 16  ;;  %1351 = vrot.lane.b32.xlu0 %v1184_v54, %s10990_s16 }
  0x4a   : > { %v11315_v43 = vsel %vm11180_vm3, %v1236_v29, %v1243_v34  ;;  %v11317_v45 = vor.u32 %v1250_v24, %v1249_v22  ;;  %v11319_v46 = vrot.slane %v1264_v36, 7  ;;  %v1275_v48 = vshll.u32 %v9495_v32, 16  ;;  %v824_v36 = vld [vmem:[#allocation2 + $0x18] sm:$0xf] }
  0x4b   : > { %v11326_v53 = vsel %vm11180_vm3, %v1253_v35, %v1260_v39  ;;  %v11328_v55 = vrot.slane %v1272_v42, 7  ;;  %v1092_v54 = vrot.slane %v11202_v61, 4  ;;  %v1075_v57 = vrot.slane %v11186_v41, 4  ;;  %v814_v39 = vld [vmem:[#allocation2 + $0xc] sm:$0xf] }
  0x4c   : > { %v11336_v63 = vor.u32 %v1267_v40, %v11319_v46  ;;  %v1270_v1 = vrot.slane %v11319_v46, 4  ;;  %v1126_v2 = vrot.slane %v11223_v23, 4  ;;  %v1109_v3 = vrot.slane %v11213_v13, 4  ;;  %1359 = vrot.lane.b32.xlu1 %v1210_v5, %s10990_s16  ;;  %v11512_v61 = vld [vmem:[%s11301_s11 + $0x88] sm:$0xff]  ;;  %v866_v23 = vld [vmem:[#allocation2 + $0x60] sm:$0xf] }
  0x4d   : > { %v1160_v7 = vrot.slane %v11237_v50, 4  ;;  %v1143_v8 = vrot.slane %v11235_v47, 4  ;;  %v1194_v10 = vrot.slane %v11260_v31, 4  ;;  %v1177_v11 = vrot.slane %v11252_v12, 4  ;;  %1357 = vrot.lane.b32.xlu0 %v11277_v56, %s10990_s16  ;;  %v894_v47 = vld [vmem:[#allocation2 + $0x90] sm:$0xf] }
  0x4e   : > { %v1228_v4 = vrot.slane %v11279_v59, 4  ;;  %v1211_v14 = vrot.slane %v11268_v44, 4  ;;  %v1277_v18 = vor.u32 %v1275_v48, %v11328_v55  ;;  %v9436_v19 = vpack.c.bf16 %v273_v49, %v273_v49  ;;  %v11664_v44 = vld [vmem:[%s11301_s11 + $0xe0] sm:$0xff] }
  0x4f   : > { %v9434_v20 = vpack.c.bf16 %v271_v51, %v271_v51  ;;  %v9437_v22 = vpack.c.bf16 %v274_v52, %v274_v52  ;;  %v9435_v24 = vpack.c.bf16 %v272_v58, %v272_v58  ;;  %v9438_v25 = vpack.c.bf16 %v275_v60, %v275_v60  ;;  %v11359_v60 = vld [vmem:[%s11301_s11 + $0x38] sm:$0xff]  ;;  %16224 = vst [vmem:[#allocation8_spill] sm:$0xff] %v11664_v44 }
  0x50   : > { %v9439_v29 = vpack.c.bf16 %v276_v62, %v276_v62  ;;  %v11354_v5 = vpack.c.bf16 %v277_v6, %v277_v6  ;;  %v508_v32 = vshrl.u32 %v9436_v19, 16  ;;  %v511_v56 = vshll.u32 %v9436_v19, 16  ;;  %1365 = vrot.lane.b32.xlu1 %v1227_v33, %s10990_s16  ;;  %v10620_v62 = vld [vmem:[%s16041_s2 + $0x28] sm:$0xff]  }
  0x51   : > { %v491_v34 = vshrl.u32 %v9434_v20, 16  ;;  %v494_v35 = vshll.u32 %v9434_v20, 16  ;;  %1363 = vrot.lane.b32.xlu0 %v1218_v26, %s10990_s16  ;;  %v516_v40 = vshrl.u32 %v9437_v22, 16  ;;  %v519_v42 = vshll.u32 %v9437_v22, 16  ;;  %9911 = vmatprep.subr.bf16.mxu1 %v10620_v62 }
  0x52   : > { %v499_v46 = vshrl.u32 %v9435_v24, 16  ;;  %v502_v48 = vshll.u32 %v9435_v24, 16  ;;  %v510_v49 = vrot.slane %v508_v32, 7  ;;  %v525_v52 = vshrl.u32 %v9438_v25, 16  ;;  %9912 = vmatpush3.bf16.msra.mxu1 %v10620_v62 }
  0x53   : > { %v493_v51 = vrot.slane %v491_v34, 7  ;;  %v528_v58 = vshll.u32 %v9438_v25, 16  ;;  %v16219_v26 = vmov 0  ;;  %v11370_v33 = vrot.slane %v516_v40, 7  ;;  %v11491_v40 = vld [vmem:[%s11301_s11 + $0x78] sm:$0xff] }
  0x54   : > { %v16220_v26 = vsel %vm11366_vm6, 4294967295, %v16219_v26  ;;  %v11372_v6 = vrot.slane %v499_v46, 7  ;;  %v533_v19 = vshrl.u32 %v9439_v29, 16  ;;  %v536_v20 = vshll.u32 %v9439_v29, 16  ;;  %1371 = vrot.lane.b32.xlu1 %v11315_v43, %s10990_s16 }
  0x55   : > { %16221 = vst [vmem:[#allocation7_spill] sm:$0xff] %v16220_v26  ;;  %v513_v22 = vor.u32 %v511_v56, %v510_v49  ;;  %v496_v24 = vor.u32 %v494_v35, %v493_v51  ;;  %v514_v25 = vrot.slane %v510_v49, 4  ;;  %v497_v32 = vrot.slane %v493_v51, 4  ;;  %1369 = vrot.lane.b32.xlu0 %v11308_v38, %s10990_s16  ;;  %v831_v56 = vld [vmem:[#allocation2 + $0x24] sm:$0xf] }
  0x56   : > { %v11380_v34 = vsel %vm11180_vm3, %v1270_v1, %v1277_v18  ;;  %v521_v46 = vor.u32 %v519_v42, %v11370_v33  ;;  %v504_v29 = vor.u32 %v502_v48, %v11372_v6  ;;  %v11385_v35 = vld [vmem:[#allocation2] sm:$0xf]  ;;  %v11387_v49 = vld [vmem:[#allocation2 + $0x4] sm:$0xf]  ;;  %v527_v51 = vrot.slane %v525_v52, 7 }
  0x57   : > { %v825_v43 = vsel %vm11366_vm6, %v513_v22, %v824_v36  ;;  %v815_v38 = vsel %vm11366_vm6, %v496_v24, %v814_v39  ;;  %v11393_v1 = vrot.slane %v533_v19, 7  ;;  %v10623_v18 = vld [vmem:[%s16041_s2 + $0x20] sm:$0xff]   ;;  %v9441_v39 = vpack.c.bf16 %v11359_v60, %v11359_v60  ;;  %v838_v24 = vld [vmem:[#allocation2 + $0x30] sm:$0xf] }
  0x58   : > { %826 = vst [vmem:[#allocation2 + $0x18] sm:$0xf] %v825_v43  ;;  %816 = vst [vmem:[#allocation2 + $0xc] sm:$0xf] %v815_v38  ;;  %v522_v42 = vsel %vm11180_vm3, %v514_v25, %v521_v46  ;;  %v505_v36 = vsel %vm11180_vm3, %v497_v32, %v504_v29  ;;  %v542_v48 = vshrl.u32 %v11354_v5, 16  ;;  %v530_v62 = vor.u32 %v528_v58, %v527_v51  ;;  %v11410_v25 = vld [vmem:[%s11301_s11 + $0x40] sm:$0xff] }
  0x59   : > { %827 = vst.msk [vmem:[#allocation2 + $0x1c] sm:$0xf] %vm811_vm4, %v522_v42  ;;  %818 = vst.msk [vmem:[#allocation2 + $0x10] sm:$0xf] %vm811_vm4, %v505_v36  ;;  %v531_v19 = vrot.slane %v527_v51, 4  ;;  %v538_v22 = vor.u32 %v536_v20, %v11393_v1  ;;  %9913 = vmatprep.subr.bf16.mxu1 %v10623_v18  ;;  %1377 = vrot.lane.b32.xlu1 %v11326_v53, %s10990_s16  ;;  %v545_v46 = vshll.u32 %v11354_v5, 16 }
  0x5a   : > { %1375 = vrot.lane.b32.xlu0 %v11317_v45, %s10990_s16  ;;  %v544_v32 = vrot.slane %v542_v48, 7  ;;  %v550_v29 = vshrl.u32 %v9441_v39, 16  ;;  %v553_v43 = vshll.u32 %v9441_v39, 16  ;;  %v11418_v58 = vld [vmem:[%s11301_s11 + $0x48] sm:$0xff]  ;;  %v11421_v38 = vld [vmem:[%s11301_s11 + $0x50] sm:$0xff]  ;;  %v11424_v20 = vld [vmem:[%s11301_s11 + $0x58] sm:$0xff]  ;;  %v832_v53 = vsel %vm11366_vm6, %v530_v62, %v831_v56  ;;  %9914 = vmatpush3.bf16.msra.mxu1 %v10623_v18 }
  0x5b   : > { %v539_v51 = vsel %vm11180_vm3, %v531_v19, %v538_v22  ;;  %v8780_v45 = vcombine.low %v11385_v35, %v11387_v49  ;;  %vm1723_vm7 = vcmask 392192   ;;  %v10624_v5 = vld [vmem:[%s16041_s2 + $0x18] sm:$0xff]   ;;  %833 = vst [vmem:[#allocation2 + $0x24] sm:$0xf] %v832_v53  ;;  %v11440_v19 = vld [vmem:[%s11301_s11 + $0x60] sm:$0xff]  ;;  %v16048_v53 = vrot.slane %v11387_v49, 5 }
  0x5c   : > { %834 = vst.msk [vmem:[#allocation2 + $0x28] sm:$0xf] %vm811_vm4, %v539_v51  ;;  %v547_v36 = vor.u32 %v545_v46, %v544_v32  ;;  %v548_v39 = vrot.slane %v544_v32, 4  ;;  %v11437_v48 = vrot.slane %v550_v29, 7  ;;  %9915 = vmatprep.subr.bf16.mxu1 %v10624_v5  ;;  %v9442_v51 = vpack.c.bf16 %v11410_v25, %v11410_v25  ;;  %v845_v62 = vld [vmem:[#allocation2 + $0x3c] sm:$0xf] }
  0x5d   : > { %9879 = vmatprep.mubr.msk.bf16.mxu0 %vm1723_vm7, %v8780_v45  ;;  %1301 = vrot.lane.b32.xlu1 %v1041_v17, %s10990_s16  ;;  %v9443_v28 = vpack.c.bf16 %v11418_v58, %v11418_v58  ;;  %v9444_v17 = vpack.c.bf16 %v11421_v38, %v11421_v38  ;;  %v11486_v42 = vld [vmem:[%s11301_s11 + $0x70] sm:$0xff]  ;;  %vm338_vm8 = vcmask 385024   ;;  %vm819_vm9 = vcmask 253952  }
  0x5e   : > { %1381 = vrot.lane.b32.xlu0 %v11336_v63, %s10990_s16  ;;  %v555_v32 = vor.u32 %v553_v43, %v11437_v48  ;;  %v839_v46 = vsel %vm11366_vm6, %v547_v36, %v838_v24  ;;  %v9445_v63 = vpack.c.bf16 %v11424_v20, %v11424_v20  ;;  %v11466_v43 = vld [vmem:[%s11301_s11 + $0x68] sm:$0xff]  ;;  %9916 = vmatpush3.bf16.msra.mxu1 %v10624_v5  ;;  %v559_v45 = vshrl.u32 %v9442_v51, 16  ;;  %vm11735_vm10 = vmand %vm819_vm9, %vm487_vm1 }
  0x5f   : > { %840 = vst [vmem:[#allocation2 + $0x30] sm:$0xf] %v839_v46  ;;  %v562_v36 = vshll.u32 %v9442_v51, 16  ;;  %v9446_v46 = vpack.c.bf16 %v11440_v19, %v11440_v19  ;;  %v567_v29 = vshrl.u32 %v9443_v28, 16  ;;  %v570_v22 = vshll.u32 %v9443_v28, 16  ;;  %v10626_v28 = vld [vmem:[%s16041_s2 + $0x58] sm:$0xff]  }
  0x60   : > { %v556_v24 = vsel %vm11180_vm3, %v548_v39, %v555_v32  ;;  %v576_v18 = vshrl.u32 %v9444_v17, 16  ;;  %v579_v56 = vshll.u32 %v9444_v17, 16  ;;  %v561_v5 = vrot.slane %v559_v45, 7  ;;  %v852_v51 = vld [vmem:[#allocation2 + $0x48] sm:$0xf]  ;;  %9987 = vmatprep.subr.bf16.mxu1 %v10626_v28 }
  0x61   : > { %841 = vst.msk [vmem:[#allocation2 + $0x34] sm:$0xf] %vm811_vm4, %v556_v24  ;;  %1307 = vrot.lane.b32.xlu1 %v1058_v9, %s10990_s16  ;;  %v584_v39 = vshrl.u32 %v9445_v63, 16  ;;  %v587_v32 = vshll.u32 %v9445_v63, 16  ;;  %v9447_v24 = vpack.c.bf16 %v11466_v43, %v11466_v43  ;;  %v11483_v17 = vrot.slane %v567_v29, 7 }
  0x62   : > { %1383 = vrot.lane.b32.xlu0 %v11380_v34, %s10990_s16  ;;  %v578_v52 = vrot.slane %v576_v18, 7  ;;  %v593_v27 = vshrl.u32 %v9446_v46, 16  ;;  %v596_v9 = vshll.u32 %v9446_v46, 16  ;;  %v564_v34 = vor.u32 %v562_v36, %v561_v5 }
  0x63   : > { %v565_v0 = vrot.slane %v561_v5, 4  ;;  %v11488_v45 = vrot.slane %v584_v39, 7  ;;  %v601_v63 = vshrl.u32 %v9447_v24, 16  ;;  %v572_v29 = vor.u32 %v570_v22, %v11483_v17  ;;  %v11509_v22 = vld [vmem:[%s11301_s11 + $0x80] sm:$0xff] }
  0x64   : > { %v581_v15 = vor.u32 %v579_v56, %v578_v52  ;;  %v582_v18 = vrot.slane %v578_v52, 4  ;;  %v11503_v36 = vrot.slane %v16048_v53, 4  ;;  %v846_v46 = vsel %vm11366_vm6, %v564_v34, %v845_v62  ;;  %v859_v52 = vld [vmem:[#allocation2 + $0x54] sm:$0xf]  ;;  %v880_v53 = vld [vmem:[#allocation2 + $0x78] sm:$0xf] }
  0x65   : > { %1319 = vrot.lane.b32.xlu1 %v1092_v54, %s10990_s16  ;;  %v589_v5 = vor.u32 %v587_v32, %v11488_v45  ;;  %v595_v56 = vrot.slane %v593_v27, 7  ;;  %v573_v41 = vsel %vm11180_vm3, %v565_v0, %v572_v29  ;;  %847 = vst [vmem:[#allocation2 + $0x3c] sm:$0xf] %v846_v46  ;;  %v604_v62 = vshll.u32 %v9447_v24, 16  ;;  %v11526_v0 = vld [vmem:[%s11301_s11 + $0x90] sm:$0xff] }
  0x66   : > { %1313 = vrot.lane.b32.xlu0 %v1075_v57, %s10990_s16  ;;  %v853_v54 = vsel %vm11366_vm6, %v581_v15, %v852_v51  ;;  %v11518_v57 = vrot.slane %v601_v63, 7  ;;  %848 = vst.msk [vmem:[#allocation2 + $0x40] sm:$0xf] %vm811_vm4, %v573_v41  ;;  %v9448_v27 = vpack.c.bf16 %v11486_v42, %v11486_v42  ;;  %v9449_v51 = vpack.c.bf16 %v11491_v40, %v11491_v40 }
  0x67   : > { %v590_v39 = vsel %vm11180_vm3, %v582_v18, %v589_v5  ;;  %854 = vst [vmem:[#allocation2 + $0x48] sm:$0xf] %v853_v54  ;;  %v598_v32 = vor.u32 %v596_v9, %v595_v56  ;;  %v599_v28 = vrot.slane %v595_v56, 4  ;;  %v9450_v24 = vpack.c.bf16 %v11509_v22, %v11509_v22  ;;  %v11536_v9 = vld [vmem:[%s11301_s11 + $0x98] sm:$0xff]  ;;  %v11551_v54 = vld [vmem:[%s11301_s11 + $0xa0] sm:$0xff] }
  0x68   : > { %855 = vst.msk [vmem:[#allocation2 + $0x4c] sm:$0xf] %vm811_vm4, %v590_v39  ;;  %v606_v15 = vor.u32 %v604_v62, %v11518_v57  ;;  %v610_v29 = vshrl.u32 %v9448_v27, 16  ;;  %v613_v18 = vshll.u32 %v9448_v27, 16  ;;  %v9451_v46 = vpack.c.bf16 %v11512_v61, %v11512_v61  ;;  %v873_v39 = vld [vmem:[#allocation2 + $0x6c] sm:$0xf] }
  0x69   : > { %1331 = vrot.lane.b32.xlu1 %v1126_v2, %s10990_s16  ;;  %v860_v63 = vsel %vm11366_vm6, %v598_v32, %v859_v52  ;;  %v618_v56 = vshrl.u32 %v9449_v51, 16  ;;  %v621_v41 = vshll.u32 %v9449_v51, 16  ;;  %v627_v2 = vshrl.u32 %v9450_v24, 16 }
  0x6a   : > { %1325 = vrot.lane.b32.xlu0 %v1109_v3, %s10990_s16  ;;  %v607_v5 = vsel %vm11180_vm3, %v599_v28, %v606_v15  ;;  %861 = vst [vmem:[#allocation2 + $0x54] sm:$0xf] %v860_v63  ;;  %v612_v13 = vrot.slane %v610_v29, 7  ;;  %v630_v3 = vshll.u32 %v9450_v24, 16  ;;  %v635_v52 = vshrl.u32 %v9451_v46, 16 }
  0x6b   : > { %862 = vst.msk [vmem:[#allocation2 + $0x58] sm:$0xf] %vm811_vm4, %v607_v5  ;;  %v638_v62 = vshll.u32 %v9451_v46, 16  ;;  %v11554_v32 = vrot.slane %v618_v56, 7  ;;  %v629_v27 = vrot.slane %v627_v2, 7  ;;  %v9452_v28 = vpack.c.bf16 %v11526_v0, %v11526_v0  ;;  %v11571_v2 = vld [vmem:[%s11301_s11 + $0xa8] sm:$0xff] }
  0x6c   : > { %v9453_v15 = vpack.c.bf16 %v11536_v9, %v11536_v9  ;;  %v615_v24 = vor.u32 %v613_v18, %v612_v13  ;;  %v616_v63 = vrot.slane %v612_v13, 4  ;;  %v11567_v29 = vrot.slane %v635_v52, 7 }
  0x6d   : > { %1343 = vrot.lane.b32.xlu1 %v1160_v7, %s10990_s16  ;;  %v623_v46 = vor.u32 %v621_v41, %v11554_v32  ;;  %v632_v5 = vor.u32 %v630_v3, %v629_v27  ;;  %v633_v56 = vrot.slane %v629_v27, 4  ;;  %v9454_v50 = vpack.c.bf16 %v11551_v54, %v11551_v54  ;;  %v11576_v7 = vld [vmem:[%s11301_s11 + $0xb0] sm:$0xff] }
  0x6e   : > { %1337 = vrot.lane.b32.xlu0 %v1143_v8, %s10990_s16  ;;  %v867_v8 = vsel %vm11366_vm6, %v615_v24, %v866_v23  ;;  %v640_v18 = vor.u32 %v638_v62, %v11567_v29  ;;  %v644_v13 = vshrl.u32 %v9452_v28, 16  ;;  %v647_v52 = vshll.u32 %v9452_v28, 16  ;;  %v11598_v24 = vld [vmem:[%s11301_s11 + $0xb8] sm:$0xff] }
  0x6f   : > { %v624_v41 = vsel %vm11180_vm3, %v616_v63, %v623_v46  ;;  %868 = vst [vmem:[#allocation2 + $0x60] sm:$0xf] %v867_v8  ;;  %v874_v3 = vsel %vm11366_vm6, %v632_v5, %v873_v39  ;;  %v652_v27 = vshrl.u32 %v9453_v15, 16  ;;  %v655_v39 = vshll.u32 %v9453_v15, 16  ;;  %v11606_v8 = vld [vmem:[%s11301_s11 + $0xc0] sm:$0xff] }
  0x70   : > { %869 = vst.msk [vmem:[#allocation2 + $0x64] sm:$0xf] %vm811_vm4, %v624_v41  ;;  %v641_v23 = vsel %vm11180_vm3, %v633_v56, %v640_v18  ;;  %875 = vst [vmem:[#allocation2 + $0x6c] sm:$0xf] %v874_v3  ;;  %v646_v62 = vrot.slane %v644_v13, 7  ;;  %v9455_v28 = vpack.c.bf16 %v11571_v2, %v11571_v2  ;;  %v661_v12 = vshrl.u32 %v9454_v50, 16 }
  0x71   : > { %1355 = vrot.lane.b32.xlu1 %v1194_v10, %s10990_s16  ;;  %876 = vst.msk [vmem:[#allocation2 + $0x70] sm:$0xf] %vm811_vm4, %v641_v23  ;;  %v11601_v31 = vrot.slane %v652_v27, 7  ;;  %v664_v10 = vshll.u32 %v9454_v50, 16  ;;  %v887_v56 = vld [vmem:[#allocation2 + $0x84] sm:$0xf]  ;;  %v9457_v3 = vpack.c.bf16 %v11598_v24, %v11598_v24 }
  0x72   : > { %1349 = vrot.lane.b32.xlu0 %v1177_v11, %s10990_s16  ;;  %v9456_v11 = vpack.c.bf16 %v11576_v7, %v11576_v7  ;;  %v649_v63 = vor.u32 %v647_v52, %v646_v62  ;;  %v650_v46 = vrot.slane %v646_v62, 4  ;;  %v669_v5 = vshrl.u32 %v9455_v28, 16  ;;  %v11613_v50 = vld [vmem:[%s11301_s11 + $0xd0] sm:$0xff] }
  0x73   : > { %v672_v15 = vshll.u32 %v9455_v28, 16  ;;  %v657_v13 = vor.u32 %v655_v39, %v11601_v31  ;;  %v663_v41 = vrot.slane %v661_v12, 7  ;;  %v11626_v39 = vld [vmem:[%s11301_s11 + $0xc8] sm:$0xff]  ;;  %v686_v12 = vshrl.u32 %v9457_v3, 16 }
  0x74   : > { %v881_v52 = vsel %vm11366_vm6, %v649_v63, %v880_v53  ;;  %v11623_v27 = vrot.slane %v669_v5, 7  ;;  %v678_v23 = vshrl.u32 %v9456_v11, 16  ;;  %v681_v62 = vshll.u32 %v9456_v11, 16 }
  0x75   : > { %1367 = vrot.lane.b32.xlu1 %v1228_v4, %s10990_s16  ;;  %v658_v28 = vsel %vm11180_vm3, %v650_v46, %v657_v13  ;;  %882 = vst [vmem:[#allocation2 + $0x78] sm:$0xf] %v881_v52  ;;  %v666_v59 = vor.u32 %v664_v10, %v663_v41  ;;  %v667_v4 = vrot.slane %v663_v41, 4  ;;  %v689_v63 = vshll.u32 %v9457_v3, 16  ;;  %v11642_v13 = vld [vmem:[%s11301_s11 + $0xd8] sm:$0xff] }
  0x76   : > { %1361 = vrot.lane.b32.xlu0 %v1211_v14, %s10990_s16  ;;  %883 = vst.msk [vmem:[#allocation2 + $0x7c] sm:$0xf] %vm811_vm4, %v658_v28  ;;  %v674_v14 = vor.u32 %v672_v15, %v11623_v27  ;;  %v680_v53 = vrot.slane %v678_v23, 7  ;;  %v11635_v5 = vrot.slane %v686_v12, 7  ;;  %v9458_v46 = vpack.c.bf16 %v11606_v8, %v11606_v8  ;;  %v334_v28 = vld [vmem:[%s11163_s15 + $0xf8] sm:$0xff] }
  0x77   : > { %v888_v11 = vsel %vm11366_vm6, %v666_v59, %v887_v56  ;;  %v9459_v10 = vpack.c.bf16 %v11626_v39, %v11626_v39  ;;  %v16222_v41 = vrot.slane %v11303_v30, 4  ;;  %v16223_v15 = vrot.slane %v11294_v21, 4 }
  0x78   : > { %v675_v56 = vsel %vm11180_vm3, %v667_v4, %v674_v14  ;;  %889 = vst [vmem:[#allocation2 + $0x84] sm:$0xf] %v888_v11  ;;  %v683_v3 = vor.u32 %v681_v62, %v680_v53  ;;  %v684_v52 = vrot.slane %v680_v53, 4  ;;  %v9460_v23 = vpack.c.bf16 %v11613_v50, %v11613_v50  ;;  %v901_v14 = vld [vmem:[#allocation2 + $0x9c] sm:$0xf] }
  0x79   : > { %1379 = vrot.lane.b32.xlu1 %v16222_v41, %s10990_s16  ;;  %890 = vst.msk [vmem:[#allocation2 + $0x88] sm:$0xf] %vm811_vm4, %v675_v56  ;;  %v691_v30 = vor.u32 %v689_v63, %v11635_v5  ;;  %v695_v59 = vshrl.u32 %v9458_v46, 16  ;;  %v698_v12 = vshll.u32 %v9458_v46, 16  ;;  %v703_v41 = vshrl.u32 %v9459_v10, 16 }
  0x7a   : > { %1373 = vrot.lane.b32.xlu0 %v16223_v15, %s10990_s16  ;;  %v895_v21 = vsel %vm11366_vm6, %v683_v3, %v894_v47  ;;  %v706_v4 = vshll.u32 %v9459_v10, 16  ;;  %v9461_v62 = vpack.c.bf16 %v11642_v13, %v11642_v13  ;;  %v712_v15 = vshrl.u32 %v9460_v23, 16  ;;  %v908_v3 = vld [vmem:[#allocation2 + $0xa8] sm:$0xf] }
  0x7b   : > { %v692_v53 = vsel %vm11180_vm3, %v684_v52, %v691_v30  ;;  %896 = vst [vmem:[#allocation2 + $0x90] sm:$0xf] %v895_v21  ;;  %v697_v11 = vrot.slane %v695_v59, 7  ;;  %v715_v56 = vshll.u32 %v9460_v23, 16  ;;  %v16225_v63 = vrot.slane %v11328_v55, 4  ;;  %v333_v55 = vld [vmem:[%s11163_s15 + $0xf0] sm:$0xff] }
  0x7c   : > { %897 = vst.msk [vmem:[#allocation2 + $0x94] sm:$0xf] %vm811_vm4, %v692_v53  ;;  %v11670_v47 = vrot.slane %v703_v41, 7  ;;  %v720_v46 = vshrl.u32 %v9461_v62, 16  ;;  %v723_v10 = vshll.u32 %v9461_v62, 16  ;;  %v714_v21 = vrot.slane %v712_v15, 7 }
  0x7d   : > { %v700_v30 = vor.u32 %v698_v12, %v697_v11  ;;  %v701_v59 = vrot.slane %v697_v11, 4  ;;  %v16226_v23 = vmov 0   ;;  %v11715_v53 = vld [vmem:[%s11301_s11 + $0xe8] sm:$0xff]  ;;  %v9462_v52 = vpack.c.bf16 %v11664_v44, %v11664_v44  ;;  %s9530_s15 = sshll.u32 %s11051_s25, 12  ;;  %s15999_s25 = scalar_lea.sflag [#allocation4], %s257_s18 }
  0x7e   : > { %1385 = vrot.lane.b32.xlu0 %v16225_v63, %s10990_s16  ;;  %342 = vst.msk [vmem:[#allocation2 + $0x14] sm:$0x1] %vm338_vm8, %v16226_v23  ;;  %339 = vst.msk [vmem:[#allocation2 + $0x8] sm:$0x1] %vm338_vm8, %v16226_v23  ;;  %v708_v41 = vor.u32 %v706_v4, %v11670_v47  ;;  %v11712_v62 = vrot.slane %v720_v46, 7  ;;  %v717_v15 = vor.u32 %v715_v56, %v714_v21  ;;  %v718_v63 = vrot.slane %v714_v21, 4  ;;  %s15991_s29 = scalar_lea.hbm %s16045_s6, %s9530_s15 }
  0x7f   : > { %345 = vst.msk [vmem:[#allocation2 + $0x20] sm:$0x1] %vm338_vm8, %v16226_v23  ;;  %348 = vst.msk [vmem:[#allocation2 + $0x2c] sm:$0x1] %vm338_vm8, %v16226_v23  ;;  %v902_v11 = vsel %vm11366_vm6, %v700_v30, %v901_v14  ;;  %v9496_v46 = vpack.c.bf16 %v333_v55, %v333_v55  ;;  %v729_v56 = vshrl.u32 %v9462_v52, 16  ;;  %v732_v30 = vshll.u32 %v9462_v52, 16 }
  0x80   : > { %351 = vst.msk [vmem:[#allocation2 + $0x38] sm:$0x1] %vm338_vm8, %v16226_v23  ;;  %354 = vst.msk [vmem:[#allocation2 + $0x44] sm:$0x1] %vm338_vm8, %v16226_v23  ;;  %v725_v4 = vor.u32 %v723_v10, %v11712_v62  ;;  %v909_v14 = vsel %vm11366_vm6, %v717_v15, %v908_v3  ;;  %v9463_v21 = vpack.c.bf16 %v11715_v53, %v11715_v53  ;;  %v915_v52 = vld [vmem:[#allocation2 + $0xb4] sm:$0xf] }
  0x81   : > { %357 = vst.msk [vmem:[#allocation2 + $0x50] sm:$0x1] %vm338_vm8, %v16226_v23  ;;  %360 = vst.msk [vmem:[#allocation2 + $0x5c] sm:$0x1] %vm338_vm8, %v16226_v23  ;;  %v1281_v10 = vshrl.u32 %v9496_v46, 16  ;;  %v1284_v55 = vshll.u32 %v9496_v46, 16 }
  0x82   : > { %363 = vst.msk [vmem:[#allocation2 + $0x68] sm:$0x1] %vm338_vm8, %v16226_v23  ;;  %366 = vst.msk [vmem:[#allocation2 + $0x74] sm:$0x1] %vm338_vm8, %v16226_v23  ;;  %v726_v18 = vsel %vm11180_vm3, %v718_v63, %v725_v4  ;;  %v737_v15 = vshrl.u32 %v9463_v21, 16  ;;  %v16231_v34 = vrot.slane %v11372_v6, 4 }
  0x83   : > { %369 = vst.msk [vmem:[#allocation2 + $0x80] sm:$0x1] %vm338_vm8, %v16226_v23  ;;  %372 = vst.msk [vmem:[#allocation2 + $0x8c] sm:$0x1] %vm338_vm8, %v16226_v23  ;;  %v1283_v63 = vrot.slane %v1281_v10, 7  ;;  %vm2689_vm13 = vcmask 1042432  }
  0x84   : > { %375 = vst.msk [vmem:[#allocation2 + $0x98] sm:$0x1] %vm338_vm8, %v16226_v23  ;;  %378 = vst.msk [vmem:[#allocation2 + $0xa4] sm:$0x1] %vm338_vm8, %v16226_v23  ;;  %vm1972_vm11 = vsmask.f32 3328 }
  0x85   : > { %381 = vst.msk [vmem:[#allocation2 + $0xb0] sm:$0x1] %vm338_vm8, %v16226_v23  ;;  %384 = vst.msk [vmem:[#allocation2 + $0xbc] sm:$0x1] %vm338_vm8, %v16226_v23  ;;  %v821_v12 = vld [vmem:[#allocation2 + $0x14] sm:$0x1] }
  0x86   : > { %387 = vst.msk [vmem:[#allocation2 + $0xc8] sm:$0x1] %vm338_vm8, %v16226_v23  ;;  %390 = vst.msk [vmem:[#allocation2 + $0xd4] sm:$0x1] %vm338_vm8, %v16226_v23  ;;  %v709_v23 = vsel %vm11180_vm3, %v701_v59, %v708_v41  ;;  %v16228_v59 = vmov 0  ;;  %v9497_v41 = vpack.c.bf16 %v334_v28, %v334_v28  ;;  %v822_v51 = vsel %vm11735_vm10, %v16231_v34, %v821_v12 }
  0x87   : > { %16227 = vst [vmem:[#allocation9_spill] sm:$0xff] %v11715_v53  ;;  %903 = vst [vmem:[#allocation2 + $0x9c] sm:$0xf] %v902_v11  ;;  %v16229_v59 = vsel %vm11735_vm10, 4294967295, %v16228_v59  ;;  %v731_v11 = vrot.slane %v729_v56, 7  ;;  %v16232_v28 = vrot.slane %v11370_v33, 4 }
  0x88   : > { %904 = vst.msk [vmem:[#allocation2 + $0xa0] sm:$0xf] %vm811_vm4, %v709_v23  ;;  %910 = vst [vmem:[#allocation2 + $0xa8] sm:$0xf] %v909_v14  ;;  %v740_v23 = vshll.u32 %v9463_v21, 16  ;;  %v1289_v14 = vshrl.u32 %v9497_v41, 16  ;;  %v1286_v21 = vor.u32 %v1284_v55, %v1283_v63 }
  0x89   : > { %16230 = vst [vmem:[#allocation10_spill] sm:$0xff] %v16229_v59  ;;  %911 = vst.msk [vmem:[#allocation2 + $0xac] sm:$0xf] %vm811_vm4, %v726_v18  ;;  %v828_v4 = vld [vmem:[#allocation2 + $0x20] sm:$0x1]  ;;  %v734_v46 = vor.u32 %v732_v30, %v731_v11  ;;  %v735_v3 = vrot.slane %v731_v11, 4 }
  0x8a   : > { %v829_v18 = vsel %vm11735_vm10, %v16232_v28, %v828_v4  ;;  %v842_v56 = vld [vmem:[#allocation2 + $0x38] sm:$0x1]  ;;  %v835_v16 = vld [vmem:[#allocation2 + $0x2c] sm:$0x1]  ;;  %823 = vst [vmem:[#allocation2 + $0x14] sm:$0x1] %v822_v51  ;;  %1387 = vrot.lane.b32.xlu1 %v1286_v21, %s10990_s16 }
  0x8b   : > { %830 = vst [vmem:[#allocation2 + $0x20] sm:$0x1] %v829_v18  ;;  %v11749_v10 = vrot.slane %v737_v15, 7  ;;  %v1287_v53 = vrot.slane %v1283_v63, 4  ;;  %v1291_v44 = vrot.slane %v1289_v14, 7  ;;  %v916_v34 = vsel %vm11366_vm6, %v734_v46, %v915_v52 }
  0x8c   : > { %v856_v6 = vld [vmem:[#allocation2 + $0x50] sm:$0x1]  ;;  %v1292_v12 = vshll.u32 %v9497_v41, 16  ;;  %v16233_v33 = vrot.slane %v11437_v48, 4  ;;  %v16234_v11 = vrot.slane %v11393_v1, 4  ;;  %v16235_v48 = vrot.slane %v11488_v45, 4 }
  0x8d   : > { %v849_v55 = vld [vmem:[#allocation2 + $0x44] sm:$0x1]  ;;  %917 = vst [vmem:[#allocation2 + $0xb4] sm:$0xf] %v916_v34  ;;  %v742_v15 = vor.u32 %v740_v23, %v11749_v10  ;;  %v744_v63 = vrot.slane %v11749_v10, 4  ;;  %v1296_v52 = vrot.slane %v1291_v44, 4 }
  0x8e   : > { %v843_v30 = vsel %vm11735_vm10, %v16233_v33, %v842_v56  ;;  %v836_v51 = vsel %vm11735_vm10, %v16234_v11, %v835_v16  ;;  %v857_v41 = vsel %vm11735_vm10, %v16235_v48, %v856_v6  ;;  %v1560_v1 = vld [vmem:[#allocation2 + $0x8] sm:$0x1]  ;;  %v1294_v14 = vor.u32 %v1292_v12, %v1291_v44  ;;  %v884_v11 = vld [vmem:[#allocation2 + $0x80] sm:$0x1]  ;;  %v1443_v10 = vld [vmem:[#allocation2 + $0xc] sm:$0xf] }
  0x8f   : > { %844 = vst [vmem:[#allocation2 + $0x38] sm:$0x1] %v843_v30  ;;  %837 = vst [vmem:[#allocation2 + $0x2c] sm:$0x1] %v836_v51  ;;  %v870_v4 = vld [vmem:[#allocation2 + $0x68] sm:$0x1]  ;;  %v743_v18 = vsel %vm11180_vm3, %v735_v3, %v742_v15  ;;  %1391 = vrot.lane.b32.xlu1 %v1296_v52, %s10990_s16 }
  0x90   : > { %858 = vst [vmem:[#allocation2 + $0x50] sm:$0x1] %v857_v41  ;;  %v16236_v16 = vrot.slane %v11483_v17, 4  ;;  %vm1973_vm12 = vsmask.f32 7440  ;;  %v16237_v23 = vshrl.u32 %v11385_v35, 16  ;;  %v1295_v34 = vsel %vm11180_vm3, %v1287_v53, %v1294_v14 }
  0x91   : > { %v16238_v45 = vshll.u32 %v11385_v35, 16  ;;  %v1985_v21 = vshll.u32 %v11387_v49, 16  ;;  %v16239_v44 = vshrl.u32 %v11387_v49, 16  ;;  %v863_v17 = vld [vmem:[#allocation2 + $0x5c] sm:$0x1]  ;;  %v1995_v12 = vshll.u32 %v1560_v1, 16  ;;  %1389 = vrot.lane.b32.xlu0 %v1295_v34, %s10990_s16  ;;  %vm11812_vm15 = vmor %vm1972_vm11, %vm1973_vm12 }
  0x92   : > { %v850_v46 = vsel %vm11735_vm10, %v16236_v16, %v849_v55  ;;  %v1978_v28 = vrot.slane %v16237_v23, 4  ;;  %918 = vst.msk [vmem:[#allocation2 + $0xb8] sm:$0xf] %vm811_vm4, %v743_v18  ;;  %v2697_v33 = vrot.slane %v1560_v1, 5  ;;  %v16240_v30 = vrot.slane %v11554_v32, 4 }
  0x93   : > { %851 = vst [vmem:[#allocation2 + $0x44] sm:$0x1] %v850_v46  ;;  %v1981_v56 = vrot.slane %v16238_v45, 5  ;;  %v1991_v6 = vrot.slane %v16239_v44, 4  ;;  %v877_v51 = vld [vmem:[#allocation2 + $0x74] sm:$0x1] }
  0x94   : > { %v871_v3 = vsel %vm11735_vm10, %v16240_v30, %v870_v4  ;;  %v1987_v15 = vrot.slane %v1985_v21, 5  ;;  %v16241_v48 = vrot.slane %v11518_v57, 4  ;;  %v16242_v41 = vrot.slane %v11601_v31, 4  ;;  %v898_v1 = vld [vmem:[#allocation2 + $0x98] sm:$0x1] }
  0x95   : > { %v1982_v55 = vor.u32 %v1981_v56, %v1978_v28  ;;  %872 = vst [vmem:[#allocation2 + $0x68] sm:$0x1] %v871_v3  ;;  %v891_v4 = vld [vmem:[#allocation2 + $0x8c] sm:$0x1]  ;;  %v1997_v14 = vrot.slane %v1995_v12, 5  ;;  %v16243_v52 = vrot.slane %v11567_v29, 4 }
  0x96   : > { %v864_v53 = vsel %vm11735_vm10, %v16241_v48, %v863_v17  ;;  %v885_v32 = vsel %vm11735_vm10, %v16242_v41, %v884_v11  ;;  %v16244_v57 = vrot.slane %v11635_v5, 4  ;;  %v1992_v23 = vor.u32 %v1991_v6, %v1987_v15  ;;  %v912_v18 = vld [vmem:[#allocation2 + $0xb0] sm:$0x1]  ;;  %v905_v45 = vld [vmem:[#allocation2 + $0xa4] sm:$0x1]  ;;  %v1298_v41 = vpop.permute.xlu0 %1297 }
  0x97   : > { %865 = vst [vmem:[#allocation2 + $0x5c] sm:$0x1] %v864_v53  ;;  %886 = vst [vmem:[#allocation2 + $0x80] sm:$0x1] %v885_v32  ;;  %v878_v16 = vsel %vm11735_vm10, %v16243_v52, %v877_v51  ;;  %v1983_v31 = vrot.slane %v1982_v55, 4  ;;  %vm2690_vm14 = vcmask 1046532   ;;  %v1304_v53 = vpop.permute.xlu1 %1303 }
  0x98   : > { %v899_v46 = vsel %vm11735_vm10, %v16244_v57, %v898_v1  ;;  %879 = vst [vmem:[#allocation2 + $0x74] sm:$0x1] %v878_v16  ;;  %v16245_v28 = vrot.slane %v11623_v27, 4  ;;  %v16246_v5 = vmov 0  ;;  %v16249_v56 = vrot.slane %v11712_v62, 4  ;;  %vm11827_vm0 = vmor %vm2689_vm13, %vm2690_vm14  ;;  %v10883_v12 = vld [vmem:[%s11301_s11] sm:$0xff] }
  0x99   : > { %900 = vst [vmem:[#allocation2 + $0x98] sm:$0x1] %v899_v46  ;;  %v16247_v5 = vsel %vm11812_vm15, 4294967295, %v16246_v5  ;;  %v16250_v27 = vrot.slane %v11670_v47, 4  ;;  %v1988_v6 = vsel %vm11812_vm15, %v1983_v31, %v1987_v15  ;;  %v1993_v17 = vrot.slane %v1992_v23, 4  ;;  %4747 = vrot.lane.b32.xlu0 %v10883_v12, %s10990_s16  ;;  %v10884_v47 = vld [vmem:[%s11301_s11 + $0x8] sm:$0xff] }
  0x9a   : > { %v892_v29 = vsel %vm11735_vm10, %v16245_v28, %v891_v4  ;;  %16248 = vst [vmem:[#allocation11_spill] sm:$0xff] %v16247_v5  ;;  %v913_v21 = vsel %vm11735_vm10, %v16249_v56, %v912_v18  ;;  %v16251_v34 = vmov 0  ;;  %v919_v62 = vld [vmem:[#allocation2 + $0xbc] sm:$0x1]  ;;  %4749 = vrot.lane.b32.xlu1 %v10884_v47, %s10990_s16  ;;  %vm1441_vm2 = vcmask 388352   ;;  %v10887_v4 = vld [vmem:[%s11301_s11 + $0x20] sm:$0xff] }
  0x9b   : > { %893 = vst [vmem:[#allocation2 + $0x8c] sm:$0x1] %v892_v29  ;;  %v906_v44 = vsel %vm11735_vm10, %v16250_v27, %v905_v45  ;;  %v16252_v34 = vsel %vm11827_vm0, 4294967295, %v16251_v34  ;;  %914 = vst [vmem:[#allocation2 + $0xb0] sm:$0x1] %v913_v21  ;;  %v16254_v30 = vrot.slane %v11387_v49, 5  ;;  %v11846_v51 = vsel %vm11827_vm0, %v11503_v36, %v2697_v33  ;;  %v1306_v52 = vpop.permute.xlu1 %1305  ;;  %v1300_v16 = vpop.permute.xlu0 %1299 }
  0x9c   : > { %16253 = vst [vmem:[#allocation12_spill] sm:$0xff] %v16252_v34  ;;  %907 = vst [vmem:[#allocation2 + $0xa4] sm:$0x1] %v906_v44  ;;  %v16255_v3 = vrot.slane %v11385_v35, 9  ;;  %v920_v55 = vsel %vm11735_vm10, %v744_v63, %v919_v62  ;;  %v1998_v15 = vsel %vm11812_vm15, %v1993_v17, %v1997_v14  ;;  %v16256_v48 = vmov 0  ;;  %v10885_v33 = vld [vmem:[%s11301_s11 + $0x10] sm:$0xff] }
  0x9d   : > { %921 = vst [vmem:[#allocation2 + $0xbc] sm:$0x1] %v920_v55  ;;  %v8821_v49 = vcombine.low %v1988_v6, %v1998_v15  ;;  %vm11858_vm8 = vmand %vm1441_vm2, %vm812_vm5  ;;  %v1453_v36 = vld [vmem:[#allocation2 + $0x18] sm:$0xf]  ;;  %4751 = vrot.lane.b32.xlu0 %v10885_v33, %s10990_s16  ;;  %v10888_v14 = vld [vmem:[%s11301_s11 + $0x28] sm:$0xff]  ;;  %vm1448_vm5 = vcmask 385280  }
  0x9e   : > { %v11841_v11 = vsel %vm11827_vm0, %v16255_v3, %v16254_v30  ;;  %v16257_v48 = vsel %vm11858_vm8, 4294967295, %v16256_v48  ;;  %v10886_v63 = vld [vmem:[%s11301_s11 + $0x18] sm:$0xff]  ;;  %v1454_v32 = vsel %vm11858_vm8, %v1304_v53, %v1453_v36  ;;  %v1444_v1 = vsel %vm11858_vm8, %v1298_v41, %v1443_v10  ;;  %1456 = vst.msk [vmem:[#allocation2 + $0x1c] sm:$0xf] %vm1441_vm2, %v1306_v52  ;;  %1447 = vst.msk [vmem:[#allocation2 + $0x10] sm:$0xf] %vm1441_vm2, %v1300_v16 }
  0x9f   : > { %16258 = vst [vmem:[#allocation13_spill] sm:$0xff] %v16257_v48  ;;  %4753 = vrot.lane.b32.xlu1 %v10886_v63, %s10990_s16  ;;  %9917 = vmatprep.mubr.msk.bf16.mxu1 %vm1723_vm7, %v8821_v49  ;;  %1455 = vst [vmem:[#allocation2 + $0x18] sm:$0xf] %v1454_v32  ;;  %v1460_v57 = vld [vmem:[#allocation2 + $0x24] sm:$0xf]  ;;  %v10889_v46 = vld [vmem:[%s11301_s11 + $0x30] sm:$0xff]  ;;  %v1312_v31 = vpop.permute.xlu1 %1311  ;;  %v1310_v23 = vpop.permute.xlu0 %1309 }
  0xa0   : > { %1445 = vst [vmem:[#allocation2 + $0xc] sm:$0xf] %v1444_v1  ;;  %1463 = vst.msk [vmem:[#allocation2 + $0x28] sm:$0xf] %vm1441_vm2, %v1312_v31  ;;  %v1461_v28 = vsel %vm11858_vm8, %v1310_v23, %v1460_v57  ;;  %v1467_v29 = vld [vmem:[#allocation2 + $0x30] sm:$0xf] }
  0xa1   : > { %4755 = vrot.lane.b32.xlu0 %v10887_v4, %s10990_s16  ;;  %1462 = vst [vmem:[#allocation2 + $0x24] sm:$0xf] %v1461_v28  ;;  %v1474_v17 = vld [vmem:[#allocation2 + $0x3c] sm:$0xf]  ;;  %v10890_v47 = vld [vmem:[%s16041_s2 + $0x40] sm:$0xff]   ;;  %v11955_v52 = vld [vmem:[%s16041_s2 + $0x70] sm:$0xff]  }
  0xa2   : > { %v1481_v55 = vld [vmem:[#allocation2 + $0x48] sm:$0xf]  ;;  %v1488_v16 = vld [vmem:[#allocation2 + $0x54] sm:$0xf]  ;;  %vm12223_vm9 = vmand %vm1448_vm5, %vm487_vm1  ;;  %vm8585_vm1 = vcmask 261120  }
  0xa3   : > { %4757 = vrot.lane.b32.xlu1 %v10888_v14, %s10990_s16  ;;  %v1318_v45 = vpop.permute.xlu1 %1317  ;;  %v1316_v56 = vpop.permute.xlu0 %1315  ;;  %v1450_v37 = vld [vmem:[#allocation2 + $0x14] sm:$0x1]  ;;  %v1464_v48 = vld [vmem:[#allocation2 + $0x2c] sm:$0x1] }
  0xa4   : > { %1470 = vst.msk [vmem:[#allocation2 + $0x34] sm:$0xf] %vm1441_vm2, %v1318_v45  ;;  %v1468_v44 = vsel %vm11858_vm8, %v1316_v56, %v1467_v29  ;;  %v1495_v45 = vld [vmem:[#allocation2 + $0x60] sm:$0xf] }
  0xa5   : > { %4759 = vrot.lane.b32.xlu0 %v10889_v46, %s10990_s16  ;;  %v11892_v21 = vld [vmem:[#allocation2 + $0x10] sm:$0xf]  ;;  %v11894_v27 = vld [vmem:[#allocation2 + $0x1c] sm:$0xf]  ;;  %1469 = vst [vmem:[#allocation2 + $0x30] sm:$0xf] %v1468_v44 }
  0xa6   : > { %v11884_v18 = vld [vmem:[#allocation2 + $0x18] sm:$0xf]  ;;  %v2009_v4 = vshll.u32 %v11892_v21, 16  ;;  %v2013_v14 = vshrl.u32 %v11892_v21, 16 }
  0xa7   : > { %4761 = vrot.lane.b32.xlu1 %v11359_v60, %s10990_s16  ;;  %v11890_v60 = vld [vmem:[#allocation2 + $0xc] sm:$0xf]  ;;  %v1324_v30 = vpop.permute.xlu1 %1323  ;;  %v1322_v3 = vpop.permute.xlu0 %1321  ;;  %v11931_v49 = vld [vmem:[#allocation2 + $0x28] sm:$0xf]  ;;  %v2024_v33 = vshrl.u32 %v11884_v18, 16  ;;  %v2027_v63 = vshll.u32 %v11884_v18, 16 }
  0xa8   : > { %v11901_v6 = vcombine.low %v11890_v60, %v11892_v21  ;;  %v2000_v62 = vshrl.u32 %v11890_v60, 16  ;;  %v2003_v12 = vshll.u32 %v11890_v60, 16  ;;  %1477 = vst.msk [vmem:[#allocation2 + $0x40] sm:$0xf] %vm1441_vm2, %v1324_v30  ;;  %v11929_v15 = vld [vmem:[#allocation2 + $0x24] sm:$0xf] }
  0xa9   : > { %4763 = vrot.lane.b32.xlu0 %v11410_v25, %s10990_s16  ;;  %v11905_v25 = vcombine.low %v11884_v18, %v11894_v27  ;;  %v2026_v31 = vrot.slane %v2024_v33, 4  ;;  %v2029_v23 = vrot.slane %v2027_v63, 5  ;;  %v11972_v56 = vrot.slane %v2009_v4, 5  ;;  %v1502_v63 = vld [vmem:[#allocation2 + $0x6c] sm:$0xf] }
  0xaa   : > { %16259 = vst [vmem:[#allocation14_spill] sm:$0xff] %v11901_v6  ;;  %9880 = vmatmul.mubr.msk.bf16.vlgmr.msra.gmra.mxu0 %vm1723_vm7, %v11901_v6  ;;  %v2002_v36 = vrot.slane %v2000_v62, 4  ;;  %v2005_v10 = vrot.slane %v2003_v12, 5  ;;  %v2037_v62 = vshrl.u32 %v11894_v27, 16  ;;  %v2701_v12 = vrot.slane %v11892_v21, 5 }
  0xab   : > { %4765 = vrot.lane.b32.xlu1 %v11418_v58, %s10990_s16  ;;  %16260 = vst [vmem:[#allocation15_spill] sm:$0xff] %v11905_v25  ;;  %v10612_v58 = vld [vmem:[%s16041_s2 + $0x38] sm:$0xff]   ;;  %9950 = vmatpush3.bf16.msra.mxu0 %v10890_v47  ;;  %v1330_v53 = vpop.permute.xlu1 %1329  ;;  %v1328_v41 = vpop.permute.xlu0 %1327  ;;  %v11939_v32 = vld [vmem:[#allocation2 + $0x34] sm:$0xf]  ;;  %v2030_v30 = vor.u32 %v2029_v23, %v2026_v31  ;;  %v8864_v33 = vrot.slane %v11884_v18, 9  ;;  %v2708_v4 = vrot.slane %v11894_v27, 5 }
  0xac   : > { %9883 = vmatprep.mubr.msk.bf16.mxu0 %vm1723_vm7, %v11905_v25  ;;  %9951 = vmatprep.subr.bf16.mxu0 %v10612_v58  ;;  %1484 = vst.msk [vmem:[#allocation2 + $0x4c] sm:$0xf] %vm1441_vm2, %v1330_v53  ;;  %v1482_v1 = vsel %vm11858_vm8, %v1328_v41, %v1481_v55  ;;  %v2006_v46 = vor.u32 %v2005_v10, %v2002_v36  ;;  %v2048_v36 = vshrl.u32 %v11929_v15, 16  ;;  %v2051_v10 = vshll.u32 %v11929_v15, 16 }
  0xad   : > { %4767 = vrot.lane.b32.xlu0 %v11421_v38, %s10990_s16  ;;  %v1475_v38 = vsel %vm11858_vm8, %v1322_v3, %v1474_v17  ;;  %1483 = vst [vmem:[#allocation2 + $0x48] sm:$0xf] %v1482_v1  ;;  %v2033_v17 = vshll.u32 %v11894_v27, 16  ;;  %v8863_v3 = vrot.slane %v11890_v60, 9  ;;  %v12010_v1 = vrot.slane %v2037_v62, 4 }
  0xae   : > { %1476 = vst [vmem:[#allocation2 + $0x3c] sm:$0xf] %v1475_v38  ;;  %v11986_v47 = vrot.slane %v2006_v46, 4  ;;  %v2053_v31 = vrot.slane %v2051_v10, 5  ;;  %v2057_v23 = vshll.u32 %v11931_v49, 16  ;;  %v12062_v10 = vrot.slane %v2708_v4, 4 }
  0xaf   : > { %4769 = vrot.lane.b32.xlu1 %v11424_v20, %s10990_s16  ;;  %v10619_v20 = vld [vmem:[%s16041_s2 + $0x30] sm:$0xff]   ;;  %9952 = vmatpush3.bf16.msra.mxu0 %v10612_v58  ;;  %v1336_v28 = vpop.permute.xlu1 %1335  ;;  %v1334_v29 = vpop.permute.xlu0 %1333  ;;  %v11977_v58 = vld [vmem:[#allocation2 + $0x40] sm:$0xf]  ;;  %v12008_v41 = vrot.slane %v2033_v17, 5  ;;  %v12029_v27 = vsel %vm11827_vm0, %v8863_v3, %v2701_v12  ;;  %v12050_v3 = vsel %vm11827_vm0, %v8864_v33, %v2708_v4 }
  0xb0   : > { %9953 = vmatprep.subr.bf16.mxu0 %v10619_v20  ;;  %1491 = vst.msk [vmem:[#allocation2 + $0x58] sm:$0xf] %vm1441_vm2, %v1336_v28  ;;  %v2061_v28 = vshrl.u32 %v11931_v49, 16 }
  0xb1   : > { %4771 = vrot.lane.b32.xlu0 %v11440_v19, %s10990_s16  ;;  %v11946_v19 = vcombine.low %v11929_v15, %v11931_v49 }
  0xb3   : > { %4773 = vrot.lane.b32.xlu1 %v11466_v43, %s10990_s16  ;;  %16261 = vst [vmem:[#allocation16_spill] sm:$0xff] %v11946_v19  ;;  %v11948_v43 = vld [vmem:[#allocation2 + $0x30] sm:$0xf]  ;;  %9884 = vmatmul.mubr.msk.bf16.gmra.mxu0 %vm1723_vm7, %v11946_v19  ;;  %v1342_v38 = vpop.permute.xlu1 %1341  ;;  %v11989_v55 = vld [vmem:[#allocation2 + $0x4c] sm:$0xf] }
  0xb4   : > { %v11959_v57 = vcombine.low %v11948_v43, %v11939_v32  ;;  %9954 = vmatpush3.bf16.msra.mxu0 %v10619_v20  ;;  %v1340_v20 = vpop.permute.xlu0 %1339  ;;  %1498 = vst.msk [vmem:[#allocation2 + $0x64] sm:$0xf] %vm1441_vm2, %v1342_v38  ;;  %v12000_v21 = vld [vmem:[#allocation2 + $0x48] sm:$0xf]  ;;  %v2075_v17 = vshll.u32 %v11948_v43, 16  ;;  %v2736_v19 = vrot.slane %v11989_v55, 5 }
  0xb5   : > { %4775 = vrot.lane.b32.xlu0 %v11486_v42, %s10990_s16  ;;  %v1489_v42 = vsel %vm11858_vm8, %v1334_v29, %v1488_v16  ;;  %10025 = vmatprep.subr.bf16.mxu0 %v11955_v52  ;;  %v11975_v44 = vld [vmem:[#allocation2 + $0x3c] sm:$0xf]  ;;  %v12006_v53 = vcombine.low %v12000_v21, %v11989_v55  ;;  %v12025_v16 = vrot.slane %v2030_v30, 4  ;;  %v2040_v30 = vor.u32 %v12010_v1, %v12008_v41 }
  0xb6   : > { %16262 = vst [vmem:[#allocation17_spill] sm:$0xff] %v11959_v57  ;;  %9887 = vmatprep.mubr.msk.bf16.mxu0 %vm1723_vm7, %v11959_v57  ;;  %1490 = vst [vmem:[#allocation2 + $0x54] sm:$0xf] %v1489_v42  ;;  %v1509_v42 = vld [vmem:[#allocation2 + $0x78] sm:$0xf]  ;;  %v2096_v38 = vshrl.u32 %v11975_v44, 16 }
  0xb7   : > { %4777 = vrot.lane.b32.xlu1 %v11491_v40, %s10990_s16  ;;  %v2015_v40 = vrot.slane %v2013_v14, 4  ;;  %16264 = vst [vmem:[#allocation19_spill] sm:$0xff] %v12006_v53  ;;  %v12017_v14 = vrot.slane %v2701_v12, 4  ;;  %v12044_v12 = vld [vmem:[#allocation2 + $0x58] sm:$0xf]  ;;  %v2077_v18 = vrot.slane %v2075_v17, 5 }
  0xb8   : > { %v1346_v46 = vpop.permute.xlu0 %1345  ;;  %v2105_v17 = vshll.u32 %v11977_v58, 16  ;;  %v2157_v25 = vshrl.u32 %v12044_v12, 16 }
  0xb9   : > { %4779 = vrot.lane.b32.xlu0 %v11509_v22, %s10990_s16  ;;  %v1496_v22 = vsel %vm11858_vm8, %v1340_v20, %v1495_v45  ;;  %v2016_v60 = vor.u32 %v2015_v40, %v11972_v56  ;;  %v1503_v29 = vsel %vm11858_vm8, %v1346_v46, %v1502_v63  ;;  %v2072_v40 = vshrl.u32 %v11948_v43, 16 }
  0xba   : > { %1497 = vst [vmem:[#allocation2 + $0x60] sm:$0xf] %v1496_v22  ;;  %1504 = vst [vmem:[#allocation2 + $0x6c] sm:$0xf] %v1503_v29  ;;  %v2099_v20 = vshll.u32 %v11975_v44, 16  ;;  %v2081_v22 = vshll.u32 %v11939_v32, 16 }
  0xbb   : > { %4781 = vrot.lane.b32.xlu1 %v11512_v61, %s10990_s16  ;;  %v11998_v61 = vcombine.low %v11975_v44, %v11977_v58  ;;  %v12038_v45 = vrot.slane %v2016_v60, 4  ;;  %v2085_v60 = vshrl.u32 %v11939_v32, 16  ;;  %v12066_v1 = vld [vmem:[#allocation2 + $0x64] sm:$0xf]  ;;  %v2063_v46 = vrot.slane %v2061_v28, 4 }
  0xbc   : > { %v1352_v63 = vpop.permute.xlu0 %1351  ;;  %v2074_v35 = vrot.slane %v2072_v40, 4  ;;  %v2101_v28 = vrot.slane %v2099_v20, 5  ;;  %v2123_v20 = vshll.u32 %v12000_v21, 16 }
  0xbd   : > { %16263 = vst [vmem:[#allocation18_spill] sm:$0xff] %v11998_v61  ;;  %4783 = vrot.lane.b32.xlu0 %v11526_v0, %s10990_s16  ;;  %9888 = vmatmul.mubr.msk.bf16.gmra.mxu0 %vm1723_vm7, %v11998_v61  ;;  %v1348_v0 = vpop.permute.xlu1 %1347  ;;  %v12042_v62 = vld [vmem:[#allocation2 + $0x54] sm:$0xf]  ;;  %v1510_v4 = vsel %vm11858_vm8, %v1352_v63, %v1509_v42  ;;  %v12091_v42 = vrot.slane %v2081_v22, 5  ;;  %v2087_v40 = vrot.slane %v2085_v60, 4 }
  0xbe   : > { %9891 = vmatprep.mubr.msk.bf16.mxu0 %vm1723_vm7, %v12006_v53  ;;  %1505 = vst.msk [vmem:[#allocation2 + $0x70] sm:$0xf] %vm1441_vm2, %v1348_v0  ;;  %v12076_v29 = vcombine.low %v12042_v62, %v12044_v12  ;;  %1511 = vst [vmem:[#allocation2 + $0x78] sm:$0xf] %v1510_v4  ;;  %v1523_v60 = vld [vmem:[#allocation2 + $0x90] sm:$0xf] }
  0xbf   : > { %4785 = vrot.lane.b32.xlu1 %v11536_v9, %s10990_s16  ;;  %v2050_v9 = vrot.slane %v2048_v36, 4  ;;  %v8866_v53 = vrot.slane %v11948_v43, 9  ;;  %v2722_v43 = vrot.slane %v11939_v32, 5 }
  0xc0   : > { %16265 = vst [vmem:[#allocation20_spill] sm:$0xff] %v12076_v29 }
  0xc1   : > { %4787 = vrot.lane.b32.xlu0 %v11551_v54, %s10990_s16  ;;  %v1354_v33 = vpop.permute.xlu1 %1353  ;;  %v2054_v0 = vor.u32 %v2053_v31, %v2050_v9  ;;  %v12068_v54 = vrot.slane %v2057_v23, 5  ;;  %v12078_v36 = vld [vmem:[#allocation2 + $0x60] sm:$0xf]  ;;  %v1516_v9 = vld [vmem:[#allocation2 + $0x84] sm:$0xf]  ;;  %v2098_v23 = vrot.slane %v2096_v38, 4 }
  0xc2   : > { %1512 = vst.msk [vmem:[#allocation2 + $0x7c] sm:$0xf] %vm1441_vm2, %v1354_v33  ;;  %v12082_v31 = vcombine.low %v12078_v36, %v12066_v1  ;;  %v2109_v33 = vshrl.u32 %v11977_v58, 16  ;;  %v12097_v38 = vrot.slane %v2040_v30, 4  ;;  %v12108_v30 = vld [vmem:[#allocation2 + $0x6c] sm:$0xf] }
  0xc3   : > { %4789 = vrot.lane.b32.xlu1 %v11571_v2, %s10990_s16  ;;  %v8865_v2 = vrot.slane %v11929_v15, 9  ;;  %v2715_v15 = vrot.slane %v11931_v49, 5  ;;  %v1358_v49 = vpop.permute.xlu0 %1357  ;;  %v2064_v4 = vor.u32 %v2063_v46, %v12068_v54  ;;  %v2102_v61 = vor.u32 %v2101_v28, %v2098_v23 }
  0xc4   : > { %16266 = vst [vmem:[#allocation21_spill] sm:$0xff] %v12082_v31  ;;  %v1517_v22 = vsel %vm11858_vm8, %v1358_v49, %v1516_v9  ;;  %v2133_v9 = vshrl.u32 %v11989_v55, 16  ;;  %v2111_v46 = vrot.slane %v2109_v33, 4 }
  0xc5   : > { %4791 = vrot.lane.b32.xlu0 %v11576_v7, %s10990_s16  ;;  %9892 = vmatmul.mubr.msk.bf16.gmra.mxu0 %vm1723_vm7, %v12076_v29  ;;  %v1360_v63 = vpop.permute.xlu1 %1359  ;;  %v12099_v7 = vrot.slane %v2054_v0, 4  ;;  %v2078_v29 = vor.u32 %v2077_v18, %v2074_v35  ;;  %1518 = vst [vmem:[#allocation2 + $0x84] sm:$0xf] %v1517_v22  ;;  %v12110_v0 = vld [vmem:[#allocation2 + $0x70] sm:$0xf]  ;;  %v2088_v35 = vor.u32 %v2087_v40, %v12091_v42  ;;  %v12124_v18 = vrot.slane %v2105_v17, 5 }
  0xc6   : > { %9895 = vmatprep.mubr.msk.bf16.mxu0 %vm1723_vm7, %v12082_v31  ;;  %1519 = vst.msk [vmem:[#allocation2 + $0x88] sm:$0xf] %vm1441_vm2, %v1360_v63  ;;  %v12114_v31 = vsel %vm11827_vm0, %v8865_v2, %v2715_v15  ;;  %v2129_v63 = vshll.u32 %v11989_v55, 16  ;;  %v12132_v49 = vrot.slane %v2715_v15, 4  ;;  %v2125_v22 = vrot.slane %v2123_v20, 5 }
  0xc7   : > { %4793 = vrot.lane.b32.xlu1 %v11598_v24, %s10990_s16  ;;  %v2120_v24 = vshrl.u32 %v12000_v21, 16  ;;  %16267 = vst [vmem:[#allocation22_spill] sm:$0xff] %v12114_v31  ;;  %16268 = vst [vmem:[#allocation23_spill] sm:$0xff] %v12124_v18  ;;  %v1364_v23 = vpop.permute.xlu0 %1363  ;;  %v12139_v40 = vcombine.low %v12108_v30, %v12110_v0  ;;  %v12141_v17 = vld [vmem:[#allocation2 + $0x78] sm:$0xf]  ;;  %v12143_v33 = vrot.slane %v2064_v4, 4  ;;  %v12165_v4 = vsel %vm11827_vm0, %v8866_v53, %v2722_v43 }
  0xc8   : > { %v1524_v32 = vsel %vm11858_vm8, %v1364_v23, %v1523_v60  ;;  %v12145_v57 = vrot.slane %v2078_v29, 4  ;;  %v1530_v15 = vld [vmem:[#allocation2 + $0x9c] sm:$0xf]  ;;  %v12151_v20 = vrot.slane %v2102_v61, 4  ;;  %v2135_v60 = vrot.slane %v2133_v9, 4  ;;  %16272 = vst [vmem:[#allocation27_spill] sm:$0xff] %v12165_v4 }
  0xc9   : > { %4795 = vrot.lane.b32.xlu0 %v11606_v8, %s10990_s16  ;;  %v1366_v2 = vpop.permute.xlu1 %1365  ;;  %v12126_v28 = vld [vmem:[#allocation2 + $0x7c] sm:$0xf]  ;;  %16269 = vst [vmem:[#allocation24_spill] sm:$0xff] %v12139_v40  ;;  %1525 = vst [vmem:[#allocation2 + $0x90] sm:$0xf] %v1524_v32  ;;  %v12161_v29 = vrot.slane %v2088_v35, 4  ;;  %v2112_v61 = vor.u32 %v2111_v46, %v12124_v18 }
  0xca   : > { %1526 = vst.msk [vmem:[#allocation2 + $0x94] sm:$0xf] %vm1441_vm2, %v1366_v2  ;;  %16271 = vst [vmem:[#allocation26_spill] sm:$0xff] %v12151_v20  ;;  %v12153_v2 = vrot.slane %v2129_v63, 5  ;;  %v8867_v63 = vrot.slane %v11975_v44, 9  ;;  %v2144_v32 = vshrl.u32 %v12042_v62, 16 }
  0xcb   : > { %4797 = vrot.lane.b32.xlu1 %v11626_v39, %s10990_s16  ;;  %v2122_v39 = vrot.slane %v2120_v24, 4  ;;  %v12149_v24 = vcombine.low %v12141_v17, %v12126_v28  ;;  %v1370_v23 = vpop.permute.xlu0 %1369  ;;  %v2147_v35 = vshll.u32 %v12042_v62, 16  ;;  %v1537_v46 = vld [vmem:[#allocation2 + $0xa8] sm:$0xf]  ;;  %v12177_v8 = vrot.slane %v2722_v43, 4 }
  0xcc   : > { %v1531_v53 = vsel %vm11858_vm8, %v1370_v23, %v1530_v15  ;;  %v2168_v44 = vshrl.u32 %v12078_v36, 16  ;;  %v2136_v15 = vor.u32 %v2135_v60, %v12153_v2  ;;  %v16274_v23 = vld [vmem:[#allocation8_spill] sm:$0xff]  ;;  %v8869_v31 = vrot.slane %v12042_v62, 9 }
  0xcd   : > { %16270 = vst [vmem:[#allocation25_spill] sm:$0xff] %v12149_v24  ;;  %4799 = vrot.lane.b32.xlu0 %v11613_v50, %s10990_s16  ;;  %9896 = vmatmul.mubr.msk.bf16.gmra.mxu0 %vm1723_vm7, %v12139_v40  ;;  %v1372_v9 = vpop.permute.xlu1 %1371  ;;  %v2126_v50 = vor.u32 %v2125_v22, %v2122_v39  ;;  %16273 = vst [vmem:[#allocation28_spill] sm:$0xff] %v12177_v8  ;;  %v2171_v40 = vshll.u32 %v12078_v36, 16  ;;  %v12181_v39 = vld [vmem:[#allocation2 + $0x84] sm:$0xf]  ;;  %v2153_v22 = vshll.u32 %v12044_v12, 16 }
  0xce   : > { %9899 = vmatprep.mubr.msk.bf16.mxu0 %vm1723_vm7, %v12149_v24  ;;  %1533 = vst.msk [vmem:[#allocation2 + $0xa0] sm:$0xf] %vm1441_vm2, %v1372_v9  ;;  %1532 = vst [vmem:[#allocation2 + $0x9c] sm:$0xf] %v1531_v53  ;;  %v8868_v9 = vrot.slane %v12000_v21, 9  ;;  %v16275_v53 = vld [vmem:[#allocation9_spill] sm:$0xff] }
  0xcf   : > { %4801 = vrot.lane.b32.xlu1 %v11642_v13, %s10990_s16  ;;  %v2729_v13 = vrot.slane %v11977_v58, 5  ;;  %v12183_v58 = vld [vmem:[#allocation2 + $0x88] sm:$0xf]  ;;  %v12199_v24 = vrot.slane %v2112_v61, 4  ;;  %v1376_v43 = vpop.permute.xlu0 %1375  ;;  %v12206_v60 = vrot.slane %v2126_v50, 4  ;;  %v2170_v50 = vrot.slane %v2168_v44, 4 }
  0xd0   : > { %v1538_v55 = vsel %vm11858_vm8, %v1376_v43, %v1537_v46  ;;  %v12217_v61 = vcombine.low %v12181_v39, %v12183_v58  ;;  %v12219_v26 = vld [vmem:[#allocation2 + $0x90] sm:$0xf]  ;;  %v2173_v18 = vrot.slane %v2171_v40, 5  ;;  %v2177_v46 = vshll.u32 %v12066_v1, 16 }
  0xd1   : > { %4803 = vrot.lane.b32.xlu0 %v16274_v23, %s10990_s16  ;;  %16276 = vst [vmem:[#allocation8_spill] sm:$0xff] %v12199_v24  ;;  %v1378_v6 = vpop.permute.xlu1 %1377  ;;  %v12204_v59 = vld [vmem:[#allocation2 + $0x94] sm:$0xf]  ;;  %v12210_v21 = vsel %vm11827_vm0, %v8867_v63, %v2729_v13  ;;  %v2146_v23 = vrot.slane %v2144_v32, 4  ;;  %1539 = vst [vmem:[#allocation2 + $0xa8] sm:$0xf] %v1538_v55 }
  0xd2   : > { %16277 = vst [vmem:[#allocation9_spill] sm:$0xff] %v12204_v59  ;;  %16278 = vst [vmem:[#allocation29_spill] sm:$0xff] %v12210_v21  ;;  %v12229_v32 = vcombine.low %v12219_v26, %v12204_v59  ;;  %v2181_v43 = vshrl.u32 %v12066_v1, 16  ;;  %v12237_v40 = vrot.slane %v2153_v22, 5  ;;  %v2159_v44 = vrot.slane %v2157_v25, 4 }
  0xd3   : > { %4805 = vrot.lane.b32.xlu1 %v16275_v53, %s10990_s16  ;;  %v2149_v53 = vrot.slane %v2147_v35, 5  ;;  %1540 = vst.msk [vmem:[#allocation2 + $0xac] sm:$0xf] %vm1441_vm2, %v1378_v6  ;;  %16279 = vst [vmem:[#allocation30_spill] sm:$0xff] %v12217_v61  ;;  %v1544_v6 = vld [vmem:[#allocation2 + $0xb4] sm:$0xf]  ;;  %v1382_v4 = vpop.permute.xlu0 %1381  ;;  %v2174_v59 = vor.u32 %v2173_v18, %v2170_v50 }
  0xd4   : > { %16282 = vst [vmem:[#allocation31_spill] sm:$0xff] %v12229_v32  ;;  %v12231_v35 = vrot.slane %v2136_v15, 4  ;;  %v2192_v55 = vshrl.u32 %v12108_v30, 16  ;;  %v2195_v21 = vshll.u32 %v12108_v30, 16  ;;  %v12243_v15 = vrot.slane %v2729_v13, 4 }
  0xd5   : > { %9900 = vmatmul.mubr.msk.bf16.gmra.mxu0 %vm1723_vm7, %v12217_v61  ;;  %v1302_v20 = vpop.permute.xlu1 %1301  ;;  %v2150_v24 = vor.u32 %v2149_v53, %v2146_v23  ;;  %v1545_v25 = vsel %vm11858_vm8, %v1382_v4, %v1544_v6  ;;  %v1457_v61 = vld [vmem:[#allocation2 + $0x20] sm:$0x1]  ;;  %v2743_v8 = vrot.slane %v12044_v12, 5  ;;  %v2183_v18 = vrot.slane %v2181_v43, 4 }
  0xd6   : > { %16283 = vst [vmem:[#allocation32_spill] sm:$0xff] %v12231_v35  ;;  %9903 = vmatprep.mubr.msk.bf16.mxu0 %vm1723_vm7, %v12229_v32  ;;  %v12245_v35 = vrot.slane %v2736_v19, 4  ;;  %v1451_v22 = vsel %vm12223_vm9, %v1302_v20, %v1450_v37  ;;  %1546 = vst [vmem:[#allocation2 + $0xb4] sm:$0xf] %v1545_v25  ;;  %v12253_v32 = vld [vmem:[#allocation2 + $0x9c] sm:$0xf]  ;;  %v12263_v37 = vsel %vm11827_vm0, %v8868_v9, %v2736_v19 }
  0xd7   : > { %1452 = vst [vmem:[#allocation2 + $0x14] sm:$0x1] %v1451_v22  ;;  %v12255_v13 = vld [vmem:[#allocation2 + $0xa0] sm:$0xf]  ;;  %16286 = vst [vmem:[#allocation35_spill] sm:$0xff] %v12263_v37  ;;  %v12265_v20 = vrot.slane %v2177_v46, 5  ;;  %v2160_v12 = vor.u32 %v2159_v44, %v12237_v40  ;;  %v1384_v6 = vpop.permute.xlu0 %1383 }
  0xd8   : > { %16284 = vst [vmem:[#allocation33_spill] sm:$0xff] %v12245_v35  ;;  %16285 = vst [vmem:[#allocation34_spill] sm:$0xff] %v12255_v13  ;;  %v2194_v4 = vrot.slane %v2192_v55, 4  ;;  %v2197_v23 = vrot.slane %v2195_v21, 5  ;;  %v2201_v53 = vshll.u32 %v12110_v0, 16  ;;  %v12271_v25 = vrot.slane %v2150_v24, 4 }
  0xd9   : > { %16287 = vst [vmem:[#allocation36_spill] sm:$0xff] %v12265_v20  ;;  %v1308_v50 = vpop.permute.xlu1 %1307  ;;  %v2205_v62 = vshrl.u32 %v12110_v0, 16  ;;  %v2216_v19 = vshrl.u32 %v12141_v17, 16  ;;  %v2219_v9 = vshll.u32 %v12141_v17, 16  ;;  %1547 = vst.msk [vmem:[#allocation2 + $0xb8] sm:$0xf] %vm1441_vm2, %v1384_v6  ;;  %v12281_v21 = vcombine.low %v12253_v32, %v12255_v13 }
  0xda   : > { %v12269_v22 = vld [vmem:[#allocation2 + $0xac] sm:$0xf]  ;;  %v1458_v46 = vsel %vm12223_vm9, %v1308_v50, %v1457_v61  ;;  %v12283_v43 = vld [vmem:[#allocation2 + $0xa8] sm:$0xf]  ;;  %v12285_v44 = vrot.slane %v2174_v59, 4  ;;  %v12289_v24 = vsel %vm11827_vm0, %v8869_v31, %v2743_v8  ;;  %v2184_v50 = vor.u32 %v2183_v18, %v12265_v20 }
  0xdb   : > { %16288 = vst [vmem:[#allocation37_spill] sm:$0xff] %v12269_v22  ;;  %16289 = vst [vmem:[#allocation38_spill] sm:$0xff] %v12281_v21  ;;  %v1471_v55 = vld [vmem:[#allocation2 + $0x38] sm:$0x1]  ;;  %v12293_v61 = vcombine.low %v12283_v43, %v12269_v22  ;;  %v8870_v6 = vrot.slane %v12078_v36, 9  ;;  %v2750_v13 = vrot.slane %v12066_v1, 5  ;;  %v2198_v31 = vor.u32 %v2197_v23, %v2194_v4  ;;  %v1314_v35 = vpop.permute.xlu0 %1313 }
  0xdc   : > { %16290 = vst [vmem:[#allocation39_spill] sm:$0xff] %v12283_v43  ;;  %16291 = vst [vmem:[#allocation40_spill] sm:$0xff] %v12289_v24  ;;  %v12300_v59 = vrot.slane %v2160_v12, 4  ;;  %v12302_v24 = vrot.slane %v2201_v53, 5  ;;  %v2207_v18 = vrot.slane %v2205_v62, 4  ;;  %v2218_v22 = vrot.slane %v2216_v19, 4 }
  0xdd   : > { %1459 = vst [vmem:[#allocation2 + $0x20] sm:$0x1] %v1458_v46  ;;  %16292 = vst [vmem:[#allocation41_spill] sm:$0xff] %v12293_v61  ;;  %9904 = vmatmul.mubr.msk.bf16.gmra.mxu0 %vm1723_vm7, %v12281_v21  ;;  %v2225_v46 = vshll.u32 %v12126_v28, 16  ;;  %v1320_v37 = vpop.permute.xlu1 %1319  ;;  %v2221_v36 = vrot.slane %v2219_v9, 5  ;;  %v2229_v1 = vshrl.u32 %v12126_v28, 16  ;;  %v1465_v12 = vsel %vm12223_vm9, %v1314_v35, %v1464_v48 }
  0xde   : > { %9907 = vmatprep.mubr.msk.bf16.mxu0 %vm1723_vm7, %v12293_v61  ;;  %v1472_v21 = vsel %vm12223_vm9, %v1320_v37, %v1471_v55  ;;  %v12312_v4 = vld [vmem:[#allocation2 + $0x14] sm:$0x1]  ;;  %v12318_v53 = vrot.slane %v2743_v8, 4  ;;  %1466 = vst [vmem:[#allocation2 + $0x2c] sm:$0x1] %v1465_v12  ;;  %v12325_v35 = vrot.slane %v2184_v50, 4  ;;  %v12329_v37 = vsel %vm11827_vm0, %v8870_v6, %v2750_v13 }
  0xdf   : > { %1473 = vst [vmem:[#allocation2 + $0x38] sm:$0x1] %v1472_v21  ;;  %v1485_v62 = vld [vmem:[#allocation2 + $0x50] sm:$0x1]  ;;  %v1478_v19 = vld [vmem:[#allocation2 + $0x44] sm:$0x1]  ;;  %v1326_v61 = vpop.permute.xlu0 %1325  ;;  %v2208_v48 = vor.u32 %v2207_v18, %v12302_v24  ;;  %v2222_v20 = vor.u32 %v2221_v36, %v2218_v22 }
  0xe0   : > { %16293 = vst [vmem:[#allocation42_spill] sm:$0xff] %v12318_v53  ;;  %v2019_v9 = vshll.u32 %v12312_v4, 16  ;;  %16294 = vst [vmem:[#allocation43_spill] sm:$0xff] %v12329_v37  ;;  %v12331_v55 = vrot.slane %v2750_v13, 4  ;;  %v12333_v8 = vrot.slane %v2198_v31, 4  ;;  %v12335_v21 = vrot.slane %v2225_v46, 5 }
  0xe1   : > { %v8871_v12 = vrot.slane %v12108_v30, 9  ;;  %v1332_v23 = vpop.permute.xlu1 %1331  ;;  %v12338_v43 = vld [vmem:[#allocation2 + $0xb4] sm:$0xf]  ;;  %v12340_v53 = vld [vmem:[#allocation2 + $0xb8] sm:$0xf]  ;;  %v12343_v6 = vrot.slane %v2229_v1, 4  ;;  %v1479_v31 = vsel %vm12223_vm9, %v1326_v61, %v1478_v19 }
  0xe2   : > { %16295 = vst [vmem:[#allocation44_spill] sm:$0xff] %v12331_v55  ;;  %v2021_v50 = vrot.slane %v2019_v9, 5  ;;  %v1486_v13 = vsel %vm12223_vm9, %v1332_v23, %v1485_v62  ;;  %v12351_v30 = vcombine.low %v12338_v43, %v12340_v53  ;;  %v1499_v46 = vld [vmem:[#allocation2 + $0x68] sm:$0x1]  ;;  %v2757_v55 = vrot.slane %v12110_v0, 5 }
  0xe3   : > { %1487 = vst [vmem:[#allocation2 + $0x50] sm:$0x1] %v1486_v13  ;;  %1480 = vst [vmem:[#allocation2 + $0x44] sm:$0x1] %v1479_v31  ;;  %v1492_v18 = vld [vmem:[#allocation2 + $0x5c] sm:$0x1]  ;;  %v16297_v0 = vsel %vm11812_vm15, %v11986_v47, %v11972_v56  ;;  %v16298_v31 = vcombine.low %v11841_v11, %v11846_v51 }
  0xe4   : > { %16296 = vst [vmem:[#allocation45_spill] sm:$0xff] %v12351_v30  ;;  %v1566_v37 = vld [vmem:[#allocation2 + $0x20] sm:$0x1]  ;;  %v2022_v22 = vsel %vm11812_vm15, %v12038_v45, %v2021_v50  ;;  %v2704_v36 = vrot.slane %v12312_v4, 5  ;;  %v8872_v61 = vrot.slane %v12141_v17, 9  ;;  %v10628_v45 = vld [vmem:[%s16041_s2 + $0x50] sm:$0xff]   ;;  %v1338_v50 = vpop.permute.xlu0 %1337 }
  0xe5   : > { %v2043_v1 = vshll.u32 %v1566_v37, 16  ;;  %9908 = vmatmul.mubr.msk.bf16.gmra.mxu0 %vm1723_vm7, %v12351_v30  ;;  %v12366_v23 = vcombine.low %v16297_v0, %v2022_v22  ;;  %v2711_v62 = vrot.slane %v1566_v37, 5  ;;  %v2764_v4 = vrot.slane %v12126_v28, 5  ;;  %v1344_v9 = vpop.permute.xlu1 %1343  ;;  %v12391_v11 = vld [vmem:[#allocation2 + $0x2c] sm:$0x1] }
  0xe6   : > { %9955 = vmatprep.mubr.msk.bf16.mxu0 %vm1723_vm7, %v16298_v31  ;;  %v12381_v47 = vrot.slane %v2208_v48, 4  ;;  %v12383_v37 = vrot.slane %v2222_v20, 4  ;;  %v1500_v22 = vsel %vm12223_vm9, %v1344_v9, %v1499_v46  ;;  %v12393_v51 = vld [vmem:[#allocation2 + $0x38] sm:$0x1]  ;;  %v12399_v20 = vsel %vm11827_vm0, %v8871_v12, %v2757_v55  ;;  %v1513_v48 = vld [vmem:[#allocation2 + $0x80] sm:$0x1] }
  0xe7   : > { %v2045_v13 = vrot.slane %v2043_v1, 5  ;;  %v1493_v1 = vsel %vm12223_vm9, %v1338_v50, %v1492_v18  ;;  %9918 = vmatmul.mubr.msk.bf16.vlgmr.msra.gmra.mxu1 %vm1723_vm7, %v12366_v23  ;;  %1501 = vst [vmem:[#allocation2 + $0x68] sm:$0x1] %v1500_v22  ;;  %v1506_v46 = vld [vmem:[#allocation2 + $0x74] sm:$0x1]  ;;  %v10891_v9 = vld [vmem:[%s16041_s2 + $0x58] sm:$0xff]   ;;  %v2705_v50 = vsel %vm11827_vm0, %v12017_v14, %v2704_v36  ;;  %v16299_v22 = vsel %vm11812_vm15, %v12025_v16, %v12008_v41 }
  0xe8   : > { %1494 = vst [vmem:[#allocation2 + $0x5c] sm:$0x1] %v1493_v1  ;;  %9988 = vmatpush3.bf16.msra.mxu1 %v10891_v9  ;;  %v2067_v12 = vshll.u32 %v12391_v11, 16  ;;  %v2091_v31 = vshll.u32 %v12393_v51, 16  ;;  %v2243_v14 = vshll.u32 %v12181_v39, 16  ;;  %v10630_v36 = vld [vmem:[%s16041_s2 + $0x48] sm:$0xff]   ;;  %v1350_v56 = vpop.permute.xlu0 %1349 }
  0xe9   : > { %v2046_v18 = vsel %vm11812_vm15, %v12097_v38, %v2045_v13  ;;  %v2712_v38 = vsel %vm11827_vm0, %v12062_v10, %v2711_v62  ;;  %9989 = vmatprep.subr.bf16.mxu1 %v10628_v45  ;;  %v12422_v13 = vrot.slane %v2757_v55, 4  ;;  %v1356_v9 = vpop.permute.xlu1 %1355  ;;  %v2249_v41 = vshll.u32 %v12183_v58, 16  ;;  %v1534_v17 = vld [vmem:[#allocation2 + $0xa4] sm:$0x1] }
  0xea   : > { %v12417_v1 = vcombine.low %v16299_v22, %v2046_v18  ;;  %v2069_v0 = vrot.slane %v2067_v12, 5  ;;  %v2093_v19 = vrot.slane %v2091_v31, 5  ;;  %v2253_v16 = vshrl.u32 %v12183_v58, 16  ;;  %v12440_v12 = vld [vmem:[#allocation2 + $0x44] sm:$0x1]  ;;  %v10629_v22 = vld [vmem:[%s16041_s2 + $0x68] sm:$0xff]  }
  0xeb   : > { %v1514_v10 = vsel %vm12223_vm9, %v1356_v9, %v1513_v48  ;;  %v1507_v55 = vsel %vm12223_vm9, %v1350_v56, %v1506_v46  ;;  %v12437_v62 = vcombine.low %v12029_v27, %v2705_v50  ;;  %v2718_v18 = vrot.slane %v12391_v11, 5  ;;  %v12442_v31 = vld [vmem:[#allocation2 + $0x50] sm:$0x1]  ;;  %v1527_v48 = vld [vmem:[#allocation2 + $0x98] sm:$0x1] }
  0xec   : > { %9921 = vmatprep.mubr.msk.bf16.mxu1 %vm1723_vm7, %v12417_v1  ;;  %1515 = vst [vmem:[#allocation2 + $0x80] sm:$0x1] %v1514_v10  ;;  %1508 = vst [vmem:[#allocation2 + $0x74] sm:$0x1] %v1507_v55  ;;  %v1520_v56 = vld [vmem:[#allocation2 + $0x8c] sm:$0x1]  ;;  %v12448_v46 = vcombine.low %v12050_v3, %v2712_v38  ;;  %v2070_v27 = vsel %vm11812_vm15, %v12143_v33, %v2069_v0  ;;  %v2094_v11 = vsel %vm11812_vm15, %v12161_v29, %v2093_v19 }
  0xed   : > { %16300 = vst [vmem:[#allocation46_spill] sm:$0xff] %v12437_v62  ;;  %v2115_v50 = vshll.u32 %v12440_v12, 16  ;;  %9990 = vmatpush3.bf16.msra.mxu1 %v10628_v45  ;;  %9956 = vmatmul.mubr.msk.bf16.vlgmr.msra.gmra.mxu0 %vm1723_vm7, %v12437_v62  ;;  %v16302_v3 = vsel %vm11812_vm15, %v12099_v7, %v12068_v54  ;;  %v16303_v33 = vsel %vm11812_vm15, %v12145_v57, %v12091_v42  ;;  %v2725_v29 = vrot.slane %v12393_v51, 5  ;;  %v12478_v19 = vld [vmem:[%s16041_s2 + $0x88] sm:$0xff]   ;;  %v1368_v54 = vpop.permute.xlu1 %1367  ;;  %v1362_v7 = vpop.permute.xlu0 %1361  ;;  %v1541_v57 = vld [vmem:[#allocation2 + $0xb0] sm:$0x1] }
  0xee   : > { %16301 = vst [vmem:[#allocation47_spill] sm:$0xff] %v12448_v46  ;;  %v12464_v38 = vcombine.low %v16302_v3, %v2070_v27  ;;  %v12471_v0 = vcombine.low %v16303_v33, %v2094_v11  ;;  %v2139_v45 = vshll.u32 %v12442_v31, 16  ;;  %9991 = vmatprep.subr.bf16.mxu1 %v10630_v36  ;;  %10026 = vmatpush3.bf16.msra.mxu0 %v11955_v52  ;;  %v12493_v9 = vrot.slane %v2764_v4, 4  ;;  %v16305_v3 = vld [vmem:[#allocation28_spill] sm:$0xff] }
  0xef   : > { %9959 = vmatprep.mubr.msk.bf16.mxu0 %vm1723_vm7, %v12448_v46  ;;  %v2117_v42 = vrot.slane %v2115_v50, 5  ;;  %v12489_v51 = vsel %vm11827_vm0, %v8872_v61, %v2764_v4  ;;  %v2264_v52 = vshrl.u32 %v12219_v26, 16  ;;  %v1528_v10 = vsel %vm12223_vm9, %v1368_v54, %v1527_v48  ;;  %v12505_v28 = vld [vmem:[#allocation2 + $0x5c] sm:$0x1]  ;;  %10027 = vmatprep.subr.bf16.mxu0 %v10629_v22  ;;  %v10631_v4 = vld [vmem:[%s16041_s2 + $0x60] sm:$0xff]  }
  0xf0   : > { %v1521_v55 = vsel %vm12223_vm9, %v1362_v7, %v1520_v56  ;;  %9922 = vmatmul.mubr.msk.bf16.gmra.mxu1 %vm1723_vm7, %v12464_v38  ;;  %v2719_v61 = vsel %vm11827_vm0, %v12132_v49, %v2718_v18  ;;  %v2141_v27 = vrot.slane %v2139_v45, 5  ;;  %1529 = vst [vmem:[#allocation2 + $0x98] sm:$0x1] %v1528_v10  ;;  %v12512_v48 = vld [vmem:[#allocation2 + $0x68] sm:$0x1]  ;;  %v16304_v18 = vshrl.u32 %v12181_v39, 16 }
  0xf1   : > { %1522 = vst [vmem:[#allocation2 + $0x8c] sm:$0x1] %v1521_v55  ;;  %9925 = vmatprep.mubr.msk.bf16.mxu1 %vm1723_vm7, %v12471_v0  ;;  %v2245_v11 = vrot.slane %v2243_v14, 5  ;;  %v2267_v50 = vshll.u32 %v12219_v26, 16  ;;  %9992 = vmatpush3.bf16.msra.mxu1 %v10630_v36  ;;  %v2726_v33 = vsel %vm11827_vm0, %v16305_v3, %v2725_v29  ;;  %v12524_v45 = vrot.slane %v2249_v41, 5  ;;  %v16306_v7 = vld [vmem:[#allocation9_spill] sm:$0xff]  ;;  %v1380_v55 = vpop.permute.xlu1 %1379  ;;  %v1374_v49 = vpop.permute.xlu0 %1373 }
  0xf2   : > { %v2242_v56 = vrot.slane %v16304_v18, 4  ;;  %v2255_v54 = vrot.slane %v2253_v16, 4  ;;  %v2273_v10 = vshll.u32 %v16306_v7, 16  ;;  %10063 = vmatprep.subr.bf16.mxu1 %v12478_v19  ;;  %v16307_v46 = vld [vmem:[#allocation22_spill] sm:$0xff]  ;;  %v16309_v14 = vld [vmem:[#allocation8_spill] sm:$0xff]  ;;  %v2163_v18 = vshll.u32 %v12505_v28, 16  ;;  %10028 = vmatpush3.bf16.msra.mxu0 %v10629_v22 }
  0xf3   : > { %v12529_v62 = vcombine.low %v16307_v46, %v2719_v61  ;;  %v2118_v36 = vsel %vm11812_vm15, %v16309_v14, %v2117_v42  ;;  %v2266_v29 = vrot.slane %v2264_v52, 4  ;;  %v1542_v41 = vsel %vm12223_vm9, %v1380_v55, %v1541_v57  ;;  %v16310_v3 = vld [vmem:[#allocation32_spill] sm:$0xff]  ;;  %10029 = vmatprep.subr.bf16.mxu0 %v10631_v4  ;;  %v12546_v42 = vld [vmem:[%s16041_s2 + $0xa0] sm:$0xff]   ;;  %v1548_v22 = vld [vmem:[#allocation2 + $0xbc] sm:$0x1] }
  0xf4   : > { %v1535_v16 = vsel %vm12223_vm9, %v1374_v49, %v1534_v17  ;;  %v2142_v30 = vsel %vm11812_vm15, %v16310_v3, %v2141_v27  ;;  %v2187_v46 = vshll.u32 %v12512_v48, 16  ;;  %1543 = vst [vmem:[#allocation2 + $0xb0] sm:$0x1] %v1542_v41  ;;  %v16311_v52 = vld [vmem:[#allocation27_spill] sm:$0xff]  ;;  %v2732_v17 = vrot.slane %v12440_v12, 5  ;;  %v16312_v27 = vld [vmem:[#allocation26_spill] sm:$0xff] }
  0xf5   : > { %16308 = vst [vmem:[#allocation28_spill] sm:$0xff] %v12529_v62  ;;  %1536 = vst [vmem:[#allocation2 + $0xa4] sm:$0x1] %v1535_v16  ;;  %v12549_v57 = vcombine.low %v16311_v52, %v2726_v33  ;;  %v2269_v61 = vrot.slane %v2267_v50, 5  ;;  %v2277_v49 = vshrl.u32 %v16306_v7, 16  ;;  %9960 = vmatmul.mubr.msk.bf16.gmra.mxu0 %vm1723_vm7, %v12529_v62  ;;  %v16313_v55 = vld [vmem:[#allocation23_spill] sm:$0xff]  ;;  %v2246_v16 = vor.u32 %v2245_v11, %v2242_v56  ;;  %v1386_v52 = vpop.permute.xlu0 %1385 }
  0xf6   : > { %v16314_v14 = vsel %vm11812_vm15, %v16312_v27, %v16313_v55  ;;  %v2739_v41 = vrot.slane %v12442_v31, 5  ;;  %v2256_v33 = vor.u32 %v2255_v54, %v12524_v45  ;;  %v16315_v12 = vsel %vm11812_vm15, %v12206_v60, %v12153_v2  ;;  %v12573_v27 = vld [vmem:[#allocation2 + $0x74] sm:$0x1]  ;;  %10030 = vmatpush3.bf16.msra.mxu0 %v10631_v4  ;;  %v1590_v54 = vld [vmem:[#allocation2 + $0x80] sm:$0x1] }
  0xf7   : > { %v12560_v3 = vcombine.low %v16314_v14, %v2118_v36  ;;  %9963 = vmatprep.mubr.msk.bf16.mxu0 %vm1723_vm7, %v12549_v57  ;;  %v12571_v50 = vcombine.low %v16315_v12, %v2142_v30  ;;  %v2165_v62 = vrot.slane %v2163_v18, 5  ;;  %v2288_v36 = vshrl.u32 %v12253_v32, 16  ;;  %10101 = vmatprep.subr.bf16.mxu0 %v12546_v42 }
  0xf8   : > { %v2291_v31 = vshll.u32 %v12253_v32, 16  ;;  %v1549_v56 = vsel %vm12223_vm9, %v1386_v52, %v1548_v22  ;;  %v2189_v11 = vrot.slane %v2187_v46, 5  ;;  %v16316_v2 = vor.u32 %v12343_v6, %v12335_v21  ;;  %v16317_v6 = vld [vmem:[#allocation33_spill] sm:$0xff] }
  0xf9   : > { %9926 = vmatmul.mubr.msk.bf16.gmra.mxu1 %vm1723_vm7, %v12560_v3  ;;  %v12586_v30 = vrot.slane %v2273_v10, 5  ;;  %1550 = vst [vmem:[#allocation2 + $0xbc] sm:$0x1] %v1549_v56  ;;  %v2733_v4 = vsel %vm11827_vm0, %v12243_v15, %v2732_v17  ;;  %v2270_v18 = vor.u32 %v2269_v61, %v2266_v29  ;;  %v2279_v46 = vrot.slane %v2277_v49, 4  ;;  %v16318_v61 = vld [vmem:[#allocation29_spill] sm:$0xff]  ;;  %v16319_v56 = vld [vmem:[#allocation35_spill] sm:$0xff] }
  0xfa   : > { %v12584_v60 = vrot.slane %v16316_v2, 4  ;;  %9929 = vmatprep.mubr.msk.bf16.mxu1 %vm1723_vm7, %v12571_v50  ;;  %v8873_v22 = vrot.slane %v12181_v39, 9  ;;  %v2740_v10 = vsel %vm11827_vm0, %v16317_v6, %v2739_v41  ;;  %v2211_v55 = vshll.u32 %v12573_v27, 16 }
  0xfb   : > { %v12599_v14 = vrot.slane %v2246_v16, 4  ;;  %v2771_v52 = vrot.slane %v12183_v58, 5  ;;  %v2166_v12 = vsel %vm11812_vm15, %v12300_v59, %v2165_v62  ;;  %v12605_v15 = vrot.slane %v2256_v33, 4 }
  0xfc   : > { %v2290_v29 = vrot.slane %v2288_v36, 4  ;;  %v2293_v17 = vrot.slane %v2291_v31, 5  ;;  %v12608_v39 = vcombine.low %v16318_v61, %v2733_v4  ;;  %v2190_v49 = vsel %vm11812_vm15, %v12325_v35, %v2189_v11  ;;  %v1593_v36 = vld [vmem:[#allocation2 + $0x8c] sm:$0x1] }
  0xfd   : > { %v2746_v41 = vrot.slane %v12505_v28, 5  ;;  %v2235_v16 = vshll.u32 %v1590_v54, 16  ;;  %v12615_v58 = vcombine.low %v16319_v56, %v2740_v10  ;;  %v2753_v2 = vrot.slane %v12512_v48, 5  ;;  %v16321_v11 = vld [vmem:[#allocation36_spill] sm:$0xff] }
  0xfe   : > { %v12618_v59 = vrot.slane %v2270_v18, 4  ;;  %v2280_v62 = vor.u32 %v2279_v46, %v12586_v30  ;;  %9964 = vmatmul.mubr.msk.bf16.gmra.mxu0 %vm1723_vm7, %v12608_v39  ;;  %v16320_v35 = vsel %vm11812_vm15, %v12271_v25, %v12237_v40  ;;  %v2213_v28 = vrot.slane %v2211_v55, 5  ;;  %v1596_v55 = vld [vmem:[#allocation2 + $0x98] sm:$0x1] }
  0xff   : > { %v12628_v33 = vcombine.low %v16320_v35, %v2166_v12  ;;  %v8874_v31 = vrot.slane %v12219_v26, 9  ;;  %v2778_v48 = vrot.slane %v16306_v7, 5  ;;  %9967 = vmatprep.mubr.msk.bf16.mxu0 %vm1723_vm7, %v12615_v58  ;;  %v16322_v4 = vsel %vm11812_vm15, %v12285_v44, %v16321_v11  ;;  %v16323_v26 = vld [vmem:[#allocation42_spill] sm:$0xff] }
 0x100   : > { %v12639_v18 = vcombine.low %v16322_v4, %v2190_v49  ;;  %v12643_v40 = vsel %vm11827_vm0, %v8873_v22, %v2771_v52  ;;  %v2773_v25 = vrot.slane %v2771_v52, 4  ;;  %v2294_v46 = vor.u32 %v2293_v17, %v2290_v29  ;;  %v16324_v44 = vld [vmem:[#allocation34_spill] sm:$0xff]  ;;  %v16325_v22 = vld [vmem:[#allocation44_spill] sm:$0xff] }
 0x101   : > { %9930 = vmatmul.mubr.msk.bf16.gmra.mxu1 %vm1723_vm7, %v12628_v33  ;;  %v2747_v7 = vsel %vm11827_vm0, %v16323_v26, %v2746_v41  ;;  %v2237_v6 = vrot.slane %v2235_v16, 5  ;;  %v2760_v10 = vrot.slane %v12573_v27, 5  ;;  %v2297_v12 = vshll.u32 %v16324_v44, 16  ;;  %v16326_v16 = vld [vmem:[#allocation40_spill] sm:$0xff]  ;;  %v16329_v26 = vld [vmem:[#allocation39_spill] sm:$0xff] }
 0x102   : > { %9933 = vmatprep.mubr.msk.bf16.mxu1 %vm1723_vm7, %v12639_v18  ;;  %v2754_v52 = vsel %vm11827_vm0, %v16325_v22, %v2753_v2  ;;  %v2767_v29 = vrot.slane %v1590_v54, 5  ;;  %v2252_v17 = vsel %vm11812_vm15, %v12599_v14, %v12524_v45  ;;  %v2259_v61 = vshll.u32 %v1593_v36, 16 }
 0x103   : > { %v2214_v27 = vsel %vm11812_vm15, %v12381_v47, %v2213_v28  ;;  %v2276_v49 = vsel %vm11812_vm15, %v12618_v59, %v12586_v30  ;;  %v2281_v41 = vrot.slane %v2280_v62, 4  ;;  %v12670_v54 = vsel %vm11827_vm0, %v8874_v31, %v2778_v48  ;;  %v16327_v47 = vld [vmem:[#allocation43_spill] sm:$0xff] }
 0x104   : > { %v12673_v56 = vcombine.low %v16326_v16, %v2747_v7  ;;  %v2283_v45 = vshll.u32 %v1596_v55, 16  ;;  %v12675_v14 = vrot.slane %v2294_v46, 4  ;;  %v2301_v2 = vshrl.u32 %v16324_v44, 16  ;;  %v12725_v16 = vld [vmem:[#allocation2 + $0xb0] sm:$0x1] }
 0x105   : > { %v12679_v35 = vcombine.low %v16327_v47, %v2754_v52  ;;  %v2238_v30 = vsel %vm11812_vm15, %v12584_v60, %v2237_v6  ;;  %v2761_v59 = vsel %vm11827_vm0, %v12422_v13, %v2760_v10  ;;  %v12687_v62 = vrot.slane %v2297_v12, 5  ;;  %v301_v60 = vld [vmem:[%s11301_s11 + $0xf0] sm:$0xff]  ;;  %v12702_v13 = vld [vmem:[#allocation2 + $0xa4] sm:$0x1] }
 0x106   : > { %v16328_v28 = vsel %vm11812_vm15, %v12333_v8, %v12302_v24  ;;  %v2768_v11 = vsel %vm11827_vm0, %v12493_v9, %v2767_v29  ;;  %v2261_v4 = vrot.slane %v2259_v61, 5  ;;  %v2774_v46 = vrot.slane %v1593_v36, 5  ;;  %9968 = vmatmul.mubr.msk.bf16.gmra.mxu0 %vm1723_vm7, %v12673_v56  ;;  %v16330_v10 = vld [vmem:[#allocation37_spill] sm:$0xff] }
 0x107   : > { %v12694_v31 = vcombine.low %v16328_v28, %v2214_v27  ;;  %v2312_v7 = vshrl.u32 %v16329_v26, 16  ;;  %v2315_v6 = vshll.u32 %v16329_v26, 16  ;;  %v2321_v24 = vshll.u32 %v16330_v10, 16  ;;  %9971 = vmatprep.mubr.msk.bf16.mxu0 %vm1723_vm7, %v12679_v35 }
 0x108   : > { %v2325_v8 = vshrl.u32 %v16330_v10, 16  ;;  %v16331_v9 = vsel %vm11812_vm15, %v12383_v37, %v12335_v21  ;;  %v2285_v12 = vrot.slane %v2283_v45, 5  ;;  %v2780_v22 = vrot.slane %v2778_v48, 4  ;;  %v302_v48 = vld [vmem:[%s11301_s11 + $0xf8] sm:$0xff] }
 0x109   : > { %v12715_v36 = vcombine.low %v16331_v9, %v2238_v30  ;;  %v2303_v52 = vrot.slane %v2301_v2, 4  ;;  %9934 = vmatmul.mubr.msk.bf16.gmra.mxu1 %vm1723_vm7, %v12694_v31  ;;  %v12720_v29 = vcombine.low %v12399_v20, %v2761_v59  ;;  %v12723_v61 = vcombine.low %v12489_v51, %v2768_v11 }
 0x10a   : > { %v2781_v27 = vrot.slane %v1596_v55, 5  ;;  %v9464_v47 = vpack.c.bf16 %v301_v60, %v301_v60  ;;  %v2262_v21 = vsel %vm11812_vm15, %v12605_v15, %v2261_v4  ;;  %v2775_v37 = vsel %vm11827_vm0, %v2773_v25, %v2774_v46 }
 0x10b   : > { %16332 = vst [vmem:[#allocation9_spill] sm:$0xff] %v12720_v29  ;;  %16333 = vst [vmem:[#allocation22_spill] sm:$0xff] %v12723_v61  ;;  %9937 = vmatprep.mubr.msk.bf16.mxu1 %vm1723_vm7, %v12715_v36  ;;  %v2300_v20 = vsel %vm11812_vm15, %v12675_v14, %v12687_v62  ;;  %v2307_v51 = vshll.u32 %v12702_v13, 16  ;;  %v2314_v55 = vrot.slane %v2312_v7, 4  ;;  %v2317_v45 = vrot.slane %v2315_v6, 5 }
 0x10c   : > { %v12740_v2 = vrot.slane %v2321_v24, 5  ;;  %v2327_v30 = vrot.slane %v2325_v8, 4  ;;  %v2286_v59 = vsel %vm11812_vm15, %v2281_v41, %v2285_v12  ;;  %v2304_v15 = vor.u32 %v2303_v52, %v12687_v62 }
 0x10d   : > { %v2331_v25 = vshll.u32 %v12725_v16, 16  ;;  %v2336_v28 = vshrl.u32 %v12338_v43, 16  ;;  %v2339_v11 = vshll.u32 %v12338_v43, 16  ;;  %v746_v14 = vshrl.u32 %v9464_v47, 16 }
 0x10e   : > { %v749_v4 = vshll.u32 %v9464_v47, 16  ;;  %v9465_v46 = vpack.c.bf16 %v302_v48, %v302_v48  ;;  %v12748_v60 = vcombine.low %v2252_v17, %v2262_v21  ;;  %v2782_v7 = vsel %vm11827_vm0, %v2780_v22, %v2781_v27  ;;  %9972 = vmatmul.mubr.msk.bf16.gmra.mxu0 %vm1723_vm7, %v12720_v29  ;;  %v922_v22 = vld [vmem:[#allocation2 + $0xc0] sm:$0xf]  ;;  %v12763_v21 = vld [vmem:[#allocation2 + $0xbc] sm:$0x1] }
 0x10f   : > { %v2345_v6 = vshll.u32 %v12340_v53, 16  ;;  %v2349_v41 = vshrl.u32 %v12340_v53, 16  ;;  %v2318_v62 = vor.u32 %v2317_v45, %v2314_v55  ;;  %v2328_v24 = vor.u32 %v2327_v30, %v12740_v2  ;;  %9975 = vmatprep.mubr.msk.bf16.mxu0 %vm1723_vm7, %v12723_v61  ;;  %v926_v29 = vld [vmem:[#allocation2 + $0xc8] sm:$0x1] }
 0x110   : > { %v748_v8 = vrot.slane %v746_v14, 7  ;;  %v754_v9 = vshrl.u32 %v9465_v46, 16  ;;  %v12759_v17 = vcombine.low %v2276_v49, %v2286_v59  ;;  %v2305_v12 = vrot.slane %v2304_v15, 4 }
 0x111   : > { %v2309_v52 = vrot.slane %v2307_v51, 5  ;;  %v757_v27 = vshll.u32 %v9465_v46, 16  ;;  %9938 = vmatmul.mubr.msk.bf16.gmra.mxu1 %vm1723_vm7, %v12748_v60  ;;  %v2333_v47 = vrot.slane %v2331_v25, 5  ;;  %v2338_v48 = vrot.slane %v2336_v28, 4 }
 0x112   : > { %v2341_v55 = vrot.slane %v2339_v11, 5  ;;  %v751_v45 = vor.u32 %v749_v4, %v748_v8  ;;  %9941 = vmatprep.mubr.msk.bf16.mxu1 %vm1723_vm7, %v12759_v17  ;;  %v2347_v30 = vrot.slane %v2345_v6, 5  ;;  %v2351_v14 = vrot.slane %v2349_v41, 4 }
 0x113   : > { %v752_v49 = vrot.slane %v748_v8, 4  ;;  %v756_v59 = vrot.slane %v754_v9, 7  ;;  %v12768_v51 = vcombine.low %v12643_v40, %v2775_v37  ;;  %v2319_v15 = vrot.slane %v2318_v62, 4 }
 0x114   : > { %v2329_v46 = vrot.slane %v2328_v24, 4  ;;  %v923_v25 = vsel %vm11366_vm6, %v751_v45, %v922_v22  ;;  %v2310_v28 = vsel %vm11812_vm15, %v2305_v12, %v2309_v52  ;;  %v2355_v11 = vshll.u32 %v12763_v21, 16  ;;  %v1390_v24 = vpop.permute.xlu0 %1389  ;;  %v1388_v22 = vpop.permute.xlu1 %1387 }
 0x115   : > { %924 = vst [vmem:[#allocation2 + $0xc0] sm:$0xf] %v923_v25  ;;  %v759_v4 = vor.u32 %v757_v27, %v756_v59  ;;  %v761_v6 = vrot.slane %v756_v59, 4  ;;  %v12776_v41 = vcombine.low %v12670_v54, %v2782_v7  ;;  %v2785_v37 = vrot.slane %v16324_v44, 5 }
 0x116   : > { %v2334_v40 = vsel %vm11812_vm15, %v2329_v46, %v2333_v47  ;;  %v2788_v62 = vrot.slane %v12702_v13, 5  ;;  %v2342_v8 = vor.u32 %v2341_v55, %v2338_v48  ;;  %v2352_v9 = vor.u32 %v2351_v14, %v2347_v30  ;;  %9976 = vmatmul.mubr.msk.bf16.gmra.mxu0 %vm1723_vm7, %v12768_v51 }
 0x117   : > { %v760_v52 = vsel %vm11180_vm3, %v752_v49, %v759_v4  ;;  %v927_v27 = vsel %vm11735_vm10, %v761_v6, %v926_v29  ;;  %v12788_v54 = vcombine.low %v2300_v20, %v2310_v28  ;;  %v2324_v44 = vsel %vm11812_vm15, %v2319_v15, %v12740_v2  ;;  %9979 = vmatprep.mubr.msk.bf16.mxu0 %vm1723_vm7, %v12776_v41 }
 0x118   : > { %v2792_v13 = vrot.slane %v16330_v10, 5  ;;  %v2795_v7 = vrot.slane %v12725_v16, 5  ;;  %925 = vst.msk [vmem:[#allocation2 + $0xc4] sm:$0xf] %vm811_vm4, %v760_v52  ;;  %928 = vst [vmem:[#allocation2 + $0xc8] sm:$0x1] %v927_v27  ;;  %v12798_v29 = vcombine.low %v2324_v44, %v2334_v40  ;;  %v1392_v28 = vpop.permute.xlu1 %1391 }
 0x119   : > { %v8875_v47 = vrot.slane %v12253_v32, 9  ;;  %v2787_v20 = vrot.slane %v2785_v37, 4  ;;  %v2357_v48 = vrot.slane %v2355_v11, 5  ;;  %1554 = vst.msk [vmem:[#allocation2 + $0xc4] sm:$0xf] %vm1441_vm2, %v1390_v24  ;;  %9942 = vmatmul.mubr.msk.bf16.gmra.mxu1 %vm1723_vm7, %v12788_v54  ;;  %v8876_v10 = vrot.slane %v16329_v26, 9 }
 0x11a   : > { %v2794_v16 = vrot.slane %v2792_v13, 4  ;;  %9945 = vmatprep.mubr.msk.bf16.mxu1 %vm1723_vm7, %v12798_v29  ;;  %v2343_v55 = vrot.slane %v2342_v8, 4  ;;  %v2353_v14 = vrot.slane %v2352_v9, 4  ;;  %v2799_v26 = vrot.slane %v12340_v53, 5  ;;  %v10634_v52 = vld [vmem:[%s16041_s2 + $0x80] sm:$0xff]   ;;  %v10636_v44 = vld [vmem:[%s16041_s2 + $0x78] sm:$0xff]  }
 0x11b   : > { %v2789_v2 = vsel %vm11827_vm0, %v2787_v20, %v2788_v62  ;;  %v2786_v59 = vsel %vm11827_vm0, %v8875_v47, %v2785_v37  ;;  %v2793_v4 = vsel %vm11827_vm0, %v8876_v10, %v2792_v13  ;;  %v2802_v37 = vrot.slane %v12763_v21, 5  ;;  %v16340_v27 = vld [vmem:[#allocation15_spill] sm:$0xff]  ;;  %v10635_v13 = vld [vmem:[%s16041_s2 + $0x98] sm:$0xff]   ;;  %v16346_v10 = vld [vmem:[#allocation21_spill] sm:$0xff] }
 0x11c   : > { %v2796_v32 = vsel %vm11827_vm0, %v2794_v16, %v2795_v7  ;;  %v1551_v49 = vld [vmem:[#allocation2 + $0xc0] sm:$0xf]  ;;  %v2358_v15 = vsel %vm11812_vm15, %v2353_v14, %v2357_v48  ;;  %v12818_v11 = vcombine.low %v2786_v59, %v2789_v2  ;;  %v2348_v40 = vsel %vm11812_vm15, %v2343_v55, %v2347_v30  ;;  %v16338_v30 = vld [vmem:[#allocation14_spill] sm:$0xff]  ;;  %v10637_v7 = vld [vmem:[%s16041_s2 + $0x90] sm:$0xff]  }
 0x11d   : > { %v1552_v25 = vsel %vm11858_vm8, %v1388_v22, %v1551_v49  ;;  %v12822_v6 = vcombine.low %v2793_v4, %v2796_v32  ;;  %v12829_v53 = vcombine.low %v2348_v40, %v2358_v15  ;;  %v2801_v8 = vrot.slane %v2799_v26, 4  ;;  %v16343_v47 = vld [vmem:[#allocation18_spill] sm:$0xff]  ;;  %v16344_v20 = vld [vmem:[#allocation19_spill] sm:$0xff]  ;;  %v16345_v48 = vld [vmem:[#allocation20_spill] sm:$0xff] }
 0x11e   : > { %1553 = vst [vmem:[#allocation2 + $0xc0] sm:$0xf] %v1552_v25  ;;  %9980 = vmatmul.mubr.msk.bf16.gmra.mxu0 %vm1723_vm7, %v12818_v11  ;;  %v8877_v21 = vrot.slane %v12338_v43, 9  ;;  %v16341_v43 = vld [vmem:[#allocation16_spill] sm:$0xff]  ;;  %v16348_v2 = vld [vmem:[#allocation25_spill] sm:$0xff]  ;;  %v16349_v55 = vld [vmem:[#allocation30_spill] sm:$0xff] }
 0x11f   : > { %v1555_v62 = vld [vmem:[#allocation2 + $0xc8] sm:$0x1]  ;;  %9983 = vmatprep.mubr.msk.bf16.mxu0 %vm1723_vm7, %v12822_v6  ;;  %v2803_v9 = vsel %vm11827_vm0, %v2801_v8, %v2802_v37  ;;  %v16350_v49 = vld [vmem:[#allocation31_spill] sm:$0xff]  ;;  %v16351_v59 = vld [vmem:[#allocation38_spill] sm:$0xff] }
 0x120   : > { %v1556_v24 = vsel %vm12223_vm9, %v1392_v28, %v1555_v62  ;;  %v2800_v63 = vsel %vm11827_vm0, %v8877_v21, %v2799_v26  ;;  %v16347_v16 = vld [vmem:[#allocation24_spill] sm:$0xff]  ;;  %v12913_v32 = vld [vmem:[#allocation2 + $0xc4] sm:$0xf]  ;;  %v16353_v8 = vld [vmem:[#allocation45_spill] sm:$0xff] }
 0x121   : > { %1557 = vst [vmem:[#allocation2 + $0xc8] sm:$0x1] %v1556_v24  ;;  %9946 = vmatmul.mubr.msk.bf16.gmra.mxu1 %vm1723_vm7, %v12829_v53  ;;  %v12844_v22 = vcombine.low %v2800_v63, %v2803_v9  ;;  %v3354_v46 = vshll.u32 %v12913_v32, 16  ;;  %v3358_v25 = vshrl.u32 %v12913_v32, 16  ;;  %v16352_v24 = vld [vmem:[#allocation41_spill] sm:$0xff] }
 0x122   : > { %9993 = vmatprep.mubr.msk.bf16.mxu1 %vm1723_vm7, %v16338_v30 }
 0x123   : > { %16339 = vst [vmem:[#allocation8_spill] sm:$0xff] %v12844_v22  ;;  %v3356_v40 = vrot.slane %v3354_v46, 5  ;;  %v3360_v37 = vrot.slane %v3358_v25, 4  ;;  %v10641_v25 = vld [vmem:[%s16041_s2 + $0xb0] sm:$0xff]  }
 0x125   : > { %v12911_v14 = vld [vmem:[#allocation2 + $0xc0] sm:$0xf]  ;;  %v3361_v21 = vor.u32 %v3360_v37, %v3356_v40  ;;  %v10642_v37 = vld [vmem:[%s16041_s2 + $0xc8] sm:$0xff]  }
 0x126   : > { %9984 = vmatmul.mubr.msk.bf16.gmra.mxu0 %vm1723_vm7, %v12844_v22  ;;  %v3345_v15 = vshrl.u32 %v12911_v14, 16  ;;  %v3348_v26 = vshll.u32 %v12911_v14, 16 }
 0x127   : > { %10031 = vmatprep.mubr.msk.bf16.mxu0 %vm1723_vm7, %v12366_v23  ;;  %v12869_v23 = vld [vmem:[%s16041_s2 + $0xb8] sm:$0xff]  }
 0x128   : > { %v3347_v28 = vrot.slane %v3345_v15, 4  ;;  %v3350_v4 = vrot.slane %v3348_v26, 5  ;;  %v12927_v62 = vld [vmem:[#allocation2 + $0xc8] sm:$0x1] }
 0x129   : > { %9994 = vmatmul.mubr.msk.bf16.vlgmr.msra.gmra.mxu1 %vm1723_vm7, %v16340_v27  ;;  %v3364_v9 = vshll.u32 %v12927_v62, 16  ;;  %v3598_v61 = vrot.slane %v12927_v62, 5 }
 0x12a   : > { %9997 = vmatprep.mubr.msk.bf16.mxu1 %vm1723_vm7, %v16341_v43  ;;  %10064 = vmatpush3.bf16.msra.mxu1 %v12478_v19  ;;  %v16342_v19 = vld [vmem:[#allocation17_spill] sm:$0xff]  ;;  %v3351_v30 = vor.u32 %v3350_v4, %v3347_v28  ;;  %v16356_v28 = vld [vmem:[#allocation47_spill] sm:$0xff]  ;;  %v16357_v4 = vld [vmem:[#allocation28_spill] sm:$0xff] }
 0x12b   : > { %10065 = vmatprep.subr.bf16.mxu1 %v10634_v52 }
 0x12c   : > { %v3352_v63 = vrot.slane %v3351_v30, 4 }
 0x12e   : > { %10066 = vmatpush3.bf16.msra.mxu1 %v10634_v52  ;;  %10032 = vmatmul.mubr.msk.bf16.vlgmr.msra.gmra.mxu0 %vm1723_vm7, %v12417_v1  ;;  %v3362_v52 = vrot.slane %v3361_v21, 4  ;;  %v3357_v15 = vsel %vm11812_vm15, %v3352_v63, %v3356_v40  ;;  %v10643_v40 = vld [vmem:[%s16041_s2 + $0xa8] sm:$0xff]  }
 0x12f   : > { %10067 = vmatprep.subr.bf16.mxu1 %v10636_v44  ;;  %10102 = vmatpush3.bf16.msra.mxu0 %v12546_v42  ;;  %v10640_v42 = vld [vmem:[%s16041_s2 + $0xd0] sm:$0xff]  }
 0x130   : > { %10035 = vmatprep.mubr.msk.bf16.mxu0 %vm1723_vm7, %v12464_v38  ;;  %10103 = vmatprep.subr.bf16.mxu0 %v10635_v13 }
 0x131   : > { %9998 = vmatmul.mubr.msk.bf16.gmra.mxu1 %vm1723_vm7, %v16342_v19 }
 0x132   : > { %10001 = vmatprep.mubr.msk.bf16.mxu1 %vm1723_vm7, %v16343_v47  ;;  %10068 = vmatpush3.bf16.msra.mxu1 %v10636_v44  ;;  %v3366_v44 = vrot.slane %v3364_v9, 5 }
 0x133   : > { %10139 = vmatprep.subr.bf16.mxu1 %v12869_v23  ;;  %10104 = vmatpush3.bf16.msra.mxu0 %v10635_v13  ;;  %v12940_v13 = vcombine.low %v12911_v14, %v12913_v32 }
 0x134   : > { %10105 = vmatprep.subr.bf16.mxu0 %v10637_v7  ;;  %v3367_v26 = vsel %vm11812_vm15, %v3362_v52, %v3366_v44 }
 0x135   : > { %v12952_v46 = vcombine.low %v3357_v15, %v3367_v26 }
 0x136   : > { %10036 = vmatmul.mubr.msk.bf16.gmra.mxu0 %vm1723_vm7, %v12471_v0 }
 0x137   : > { %10039 = vmatprep.mubr.msk.bf16.mxu0 %vm1723_vm7, %v12560_v3  ;;  %10106 = vmatpush3.bf16.msra.mxu0 %v10637_v7  ;;  %v16354_v7 = vld [vmem:[#allocation46_spill] sm:$0xff]  ;;  %16355 = vst [vmem:[#allocation32_spill] sm:$0xff] %v12952_v46 }
 0x138   : > { %10177 = vmatprep.subr.bf16.mxu0 %v10640_v42 }
 0x139   : > { %10002 = vmatmul.mubr.msk.bf16.gmra.mxu1 %vm1723_vm7, %v16344_v20 }
 0x13a   : > { %10005 = vmatprep.mubr.msk.bf16.mxu1 %vm1723_vm7, %v16345_v48 }
 0x13e   : > { %10040 = vmatmul.mubr.msk.bf16.gmra.mxu0 %vm1723_vm7, %v12571_v50 }
 0x13f   : > { %10043 = vmatprep.mubr.msk.bf16.mxu0 %vm1723_vm7, %v12628_v33 }
 0x141   : > { %10006 = vmatmul.mubr.msk.bf16.gmra.mxu1 %vm1723_vm7, %v16346_v10 }
 0x142   : > { %10009 = vmatprep.mubr.msk.bf16.mxu1 %vm1723_vm7, %v16347_v16 }
 0x146   : > { %10044 = vmatmul.mubr.msk.bf16.gmra.mxu0 %vm1723_vm7, %v12639_v18 }
 0x147   : > { %10047 = vmatprep.mubr.msk.bf16.mxu0 %vm1723_vm7, %v12694_v31 }
 0x149   : > { %10010 = vmatmul.mubr.msk.bf16.gmra.mxu1 %vm1723_vm7, %v16348_v2 }
 0x14a   : > { %10013 = vmatprep.mubr.msk.bf16.mxu1 %vm1723_vm7, %v16349_v55 }
 0x14e   : > { %10048 = vmatmul.mubr.msk.bf16.gmra.mxu0 %vm1723_vm7, %v12715_v36 }
 0x14f   : > { %10051 = vmatprep.mubr.msk.bf16.mxu0 %vm1723_vm7, %v12748_v60 }
 0x151   : > { %10014 = vmatmul.mubr.msk.bf16.gmra.mxu1 %vm1723_vm7, %v16350_v49 }
 0x152   : > { %10017 = vmatprep.mubr.msk.bf16.mxu1 %vm1723_vm7, %v16351_v59 }
 0x156   : > { %10052 = vmatmul.mubr.msk.bf16.gmra.mxu0 %vm1723_vm7, %v12759_v17 }
 0x157   : > { %10055 = vmatprep.mubr.msk.bf16.mxu0 %vm1723_vm7, %v12788_v54 }
 0x159   : > { %10018 = vmatmul.mubr.msk.bf16.gmra.mxu1 %vm1723_vm7, %v16352_v24 }
 0x15a   : > { %10021 = vmatprep.mubr.msk.bf16.mxu1 %vm1723_vm7, %v16353_v8 }
 0x15e   : > { %10056 = vmatmul.mubr.msk.bf16.gmra.mxu0 %vm1723_vm7, %v12798_v29 }
 0x15f   : > { %10059 = vmatprep.mubr.msk.bf16.mxu0 %vm1723_vm7, %v12829_v53 }
 0x161   : > { %10022 = vmatmul.mubr.msk.bf16.gmra.mxu1 %vm1723_vm7, %v12940_v13 }
 0x162   : > { %10069 = vmatprep.mubr.msk.bf16.mxu1 %vm1723_vm7, %v16354_v7 }
 0x166   : > { %10060 = vmatmul.mubr.msk.bf16.gmra.mxu0 %vm1723_vm7, %v12952_v46  ;;  %v13088_v46 = vld [vmem:[#allocation2 + $0xd0] sm:$0xf] }
 0x167   : > { %10107 = vmatprep.mubr.msk.bf16.mxu0 %vm1723_vm7, %v16340_v27 }
 0x169   : > { %10070 = vmatmul.mubr.msk.bf16.vlgmr.msra.gmra.mxu1 %vm1723_vm7, %v16356_v28 }
 0x16a   : > { %10073 = vmatprep.mubr.msk.bf16.mxu1 %vm1723_vm7, %v16357_v4  ;;  %10140 = vmatpush3.bf16.msra.mxu1 %v12869_v23  ;;  %v12972_v30 = vpop.f32.mrf.mxu0  ;;  %v10644_v23 = vld [vmem:[%s16041_s2 + $0xc0] sm:$0xff]  }
 0x16b   : > { %10141 = vmatprep.subr.bf16.mxu1 %v10641_v25 }
 0x16c   : > { %v12978_v27 = vpop.f32.mrf.mxu0 }
 0x16e   : > { %10142 = vmatpush3.bf16.msra.mxu1 %v10641_v25  ;;  %10108 = vmatmul.mubr.msk.bf16.vlgmr.msra.gmra.mxu0 %vm1723_vm7, %v16341_v43  ;;  %v12987_v43 = vpop.f32.mrf.mxu0 }
 0x16f   : > { %10143 = vmatprep.subr.bf16.mxu1 %v10643_v40  ;;  %10178 = vmatpush3.bf16.msra.mxu0 %v10640_v42 }
 0x170   : > { %10111 = vmatprep.mubr.msk.bf16.mxu0 %vm1723_vm7, %v16342_v19  ;;  %10179 = vmatprep.subr.bf16.mxu0 %v10642_v37  ;;  %v12989_v42 = vpop.f32.mrf.mxu0 }
 0x171   : > { %10074 = vmatmul.mubr.msk.bf16.gmra.mxu1 %vm1723_vm7, %v12549_v57 }
 0x172   : > { %10077 = vmatprep.mubr.msk.bf16.mxu1 %vm1723_vm7, %v12608_v39  ;;  %10144 = vmatpush3.bf16.msra.mxu1 %v10643_v40 }
 0x173   : > { %10180 = vmatpush3.bf16.msra.mxu0 %v10642_v37  ;;  %v12991_v19 = vpop.f32.mrf.mxu0  ;;  %v3595_v37 = vrot.slane %v12913_v32, 5 }
 0x174   : > { %10181 = vmatprep.subr.bf16.mxu0 %v10644_v23 }
 0x175   : > { %v12997_v21 = vpop.f32.mrf.mxu0 }
 0x176   : > { %10112 = vmatmul.mubr.msk.bf16.gmra.mxu0 %vm1723_vm7, %v16343_v47 }
 0x177   : > { %10115 = vmatprep.mubr.msk.bf16.mxu0 %vm1723_vm7, %v16344_v20  ;;  %10182 = vmatpush3.bf16.msra.mxu0 %v10644_v23  ;;  %v13003_v9 = vpop.f32.mrf.mxu0  ;;  %v16358_v20 = vld [vmem:[#allocation9_spill] sm:$0xff] }
 0x179   : > { %10078 = vmatmul.mubr.msk.bf16.gmra.mxu1 %vm1723_vm7, %v12615_v58  ;;  %v13005_v63 = vpop.f32.mrf.mxu0 }
 0x17a   : > { %10081 = vmatprep.mubr.msk.bf16.mxu1 %vm1723_vm7, %v12673_v56 }
 0x17d   : > { %v13007_v52 = vpop.f32.mrf.mxu0 }
 0x17e   : > { %10116 = vmatmul.mubr.msk.bf16.gmra.mxu0 %vm1723_vm7, %v16345_v48 }
 0x17f   : > { %10119 = vmatprep.mubr.msk.bf16.mxu0 %vm1723_vm7, %v16346_v10  ;;  %v13013_v47 = vpop.f32.mrf.mxu0  ;;  %v16359_v10 = vld [vmem:[#allocation22_spill] sm:$0xff] }
 0x181   : > { %10082 = vmatmul.mubr.msk.bf16.gmra.mxu1 %vm1723_vm7, %v12679_v35  ;;  %v13019_v44 = vpop.f32.mrf.mxu0 }
 0x182   : > { %10085 = vmatprep.mubr.msk.bf16.mxu1 %vm1723_vm7, %v16358_v20 }
 0x183   : > { %v13021_v7 = vpop.f32.mrf.mxu0 }
 0x185   : > { %v13023_v15 = vpop.f32.mrf.mxu0 }
 0x186   : > { %10120 = vmatmul.mubr.msk.bf16.gmra.mxu0 %vm1723_vm7, %v16347_v16 }
 0x187   : > { %10123 = vmatprep.mubr.msk.bf16.mxu0 %vm1723_vm7, %v16348_v2  ;;  %v13029_v48 = vpop.f32.mrf.mxu0 }
 0x189   : > { %10086 = vmatmul.mubr.msk.bf16.gmra.mxu1 %vm1723_vm7, %v16359_v10  ;;  %v13035_v26 = vpop.f32.mrf.mxu0 }
 0x18a   : > { %10089 = vmatprep.mubr.msk.bf16.mxu1 %vm1723_vm7, %v12768_v51 }
 0x18b   : > { %v13037_v25 = vpop.f32.mrf.mxu0 }
 0x18d   : > { %v13039_v40 = vpop.f32.mrf.mxu0 }
 0x18e   : > { %10124 = vmatmul.mubr.msk.bf16.gmra.mxu0 %vm1723_vm7, %v16349_v55  ;;  %v8971_v55 = vrot.slane %v12911_v14, 9 }
 0x18f   : > { %10127 = vmatprep.mubr.msk.bf16.mxu0 %vm1723_vm7, %v16350_v49  ;;  %v13045_v16 = vpop.f32.mrf.mxu0  ;;  %v3597_v49 = vrot.slane %v3595_v37, 4 }
 0x191   : > { %10090 = vmatmul.mubr.msk.bf16.gmra.mxu1 %vm1723_vm7, %v12776_v41  ;;  %v13051_v2 = vpop.f32.mrf.mxu0 }
 0x192   : > { %10093 = vmatprep.mubr.msk.bf16.mxu1 %vm1723_vm7, %v12818_v11 }
 0x193   : > { %v13054_v23 = vpop.f32.mrf.mxu0 }
 0x194   : > { %16360 = vst [vmem:[#allocation27_spill] sm:$0xff] %v13054_v23 }
 0x195   : > { %v13056_v45 = vpop.f32.mrf.mxu0 }
 0x196   : > { %10128 = vmatmul.mubr.msk.bf16.gmra.mxu0 %vm1723_vm7, %v16351_v59  ;;  %v3596_v59 = vsel %vm11827_vm0, %v8971_v55, %v3595_v37 }
 0x197   : > { %10131 = vmatprep.mubr.msk.bf16.mxu0 %vm1723_vm7, %v16352_v24  ;;  %v13064_v12 = vpop.f32.mrf.mxu0  ;;  %v3599_v24 = vsel %vm11827_vm0, %v3597_v49, %v3598_v61 }
 0x198   : > { %v13082_v62 = vcombine.low %v3596_v59, %v3599_v24 }
 0x199   : > { %10094 = vmatmul.mubr.msk.bf16.gmra.mxu1 %vm1723_vm7, %v12822_v6  ;;  %v13070_v32 = vpop.f32.mrf.mxu0 }
 0x19a   : > { %10097 = vmatprep.mubr.msk.bf16.mxu1 %vm1723_vm7, %v12844_v22  ;;  %16362 = vst [vmem:[#allocation23_spill] sm:$0xff] %v13082_v62  ;;  %v13086_v22 = vld [vmem:[#allocation2 + $0xcc] sm:$0xf] }
 0x19b   : > { %v13076_v14 = vpop.f32.mrf.mxu0 }
 0x19c   : > { %16361 = vst [vmem:[#allocation26_spill] sm:$0xff] %v13076_v14 }
 0x19d   : > { %v13078_v23 = vpop.f32.mrf.mxu0 }
 0x19e   : > { %10132 = vmatmul.mubr.msk.bf16.gmra.mxu0 %vm1723_vm7, %v16353_v8  ;;  %v8998_v8 = vcombine.low %v13086_v22, %v13088_v46 }
 0x19f   : > { %10135 = vmatprep.mubr.msk.bf16.mxu0 %vm1723_vm7, %v12940_v13  ;;  %v13090_v37 = vpop.f32.mrf.mxu0  ;;  %v13103_v13 = vld [vmem:[%s16042_s3] ss:$0 sm:$0xff] }
 0x1a0   : > { %v1935_v59 = vadd.f32 %v12972_v30, %v13103_v13 }
 0x1a1   : > { %10098 = vmatmul.mubr.msk.bf16.gmra.mxu1 %vm1723_vm7, %v13082_v62  ;;  %v13096_v61 = vpop.f32.mrf.mxu0 }
 0x1a2   : > { %10145 = vmatprep.mubr.msk.bf16.mxu1 %vm1723_vm7, %v12417_v1  ;;  %16363 = vst [vmem:[#allocation33_spill] sm:$0xff] %v13096_v61 }
 0x1a3   : > { %v13105_v55 = vpop.f32.mrf.mxu0 }
 0x1a4   : > { %16364 = vst [vmem:[#allocation29_spill] sm:$0xff] %v13105_v55  ;;  %v1933_v55 = vadd.f32 %v13103_v13, %v12978_v27  ;;  %v1934_v27 = vadd.f32 %v13103_v13, %v12989_v42 }
 0x1a5   : > { %v9909_v49 = vpop.f32.mrf.mxu0 }
 0x1a6   : > { %10136 = vmatmul.mubr.msk.bf16.gmra.mxu0 %vm1723_vm7, %v8998_v8  ;;  %v13111_v1 = vadd.f32 %v9909_v49, %v13103_v13 }
 0x1a7   : > { %10183 = vmatprep.mubr.msk.bf16.mxu0 %vm1723_vm7, %v16356_v28  ;;  %v1918_v24 = vpop.f32.mrf.mxu0  ;;  %v9919_v14 = vpop.f32.mrf.mxu1  ;;  %v1936_v28 = vadd.f32 %v12987_v43, %v13103_v13  ;;  %v1939_v43 = vadd.f32 %v12991_v19, %v13103_v13 }
 0x1a8   : > { %16365 = vst [vmem:[#allocation35_spill] sm:$0xff] %v13111_v1  ;;  %v13120_v34 = vadd.f32 %v13103_v13, %v1918_v24  ;;  %v2636_v8 = vadd.f32 %v9919_v14, %v1935_v59 }
 0x1a9   : > { %10146 = vmatmul.mubr.msk.bf16.vlgmr.msra.gmra.mxu1 %vm1723_vm7, %v12464_v38  ;;  %v9910_v30 = vpop.f32.mrf.mxu0  ;;  %v2507_v49 = vpop.f32.mrf.mxu1 }
 0x1aa   : > { %10149 = vmatprep.mubr.msk.bf16.mxu1 %vm1723_vm7, %v12471_v0  ;;  %v13127_v1 = vadd.f32 %v9910_v30, %v13103_v13  ;;  %v2634_v62 = vadd.f32 %v2507_v49, %v1933_v55 }
 0x1ab   : > { %v1921_v38 = vpop.f32.mrf.mxu0  ;;  %v9920_v61 = vpop.f32.mrf.mxu1 }
 0x1ac   : > { %16366 = vst [vmem:[#allocation36_spill] sm:$0xff] %v13127_v1  ;;  %v13132_v24 = vadd.f32 %v13103_v13, %v1921_v38  ;;  %v2637_v14 = vadd.f32 %v9920_v61, %v1936_v28  ;;  %v1937_v61 = vadd.f32 %v13103_v13, %v12997_v21 }
 0x1ad   : > { %v2510_v59 = vpop.f32.mrf.mxu1  ;;  %v9957_v0 = vpop.f32.mrf.mxu0 }
 0x1ae   : > { %16367 = vst [vmem:[#allocation42_spill] sm:$0xff] %v13132_v24  ;;  %10184 = vmatmul.mubr.msk.bf16.vlgmr.msra.gmra.mxu0 %vm1723_vm7, %v16357_v4  ;;  %v2635_v30 = vadd.f32 %v2510_v59, %v1934_v27  ;;  %v13138_v1 = vadd.f32 %v9957_v0, %v2636_v8  ;;  %v1940_v8 = vadd.f32 %v13003_v9, %v13103_v13 }
 0x1af   : > { %10187 = vmatprep.mubr.msk.bf16.mxu0 %vm1723_vm7, %v12549_v57  ;;  %v2952_v42 = vpop.f32.mrf.mxu0 }
 0x1b0   : > { %v9923_v55 = vpop.f32.mrf.mxu1  ;;  %v13146_v28 = vadd.f32 %v2952_v42, %v2634_v62 }
 0x1b1   : > { %10150 = vmatmul.mubr.msk.bf16.gmra.mxu1 %vm1723_vm7, %v12560_v3  ;;  %v2640_v49 = vadd.f32 %v9923_v55, %v1939_v43  ;;  %v9958_v19 = vpop.f32.mrf.mxu0  ;;  %v1938_v3 = vadd.f32 %v13103_v13, %v13005_v63  ;;  %v1941_v63 = vadd.f32 %v13103_v13, %v13013_v47 }
 0x1b2   : > { %10153 = vmatprep.mubr.msk.bf16.mxu1 %vm1723_vm7, %v12571_v50  ;;  %v2523_v4 = vpop.f32.mrf.mxu1  ;;  %v13152_v38 = vadd.f32 %v9958_v19, %v2637_v14  ;;  %v1943_v50 = vadd.f32 %v13007_v52, %v13103_v13 }
 0x1b3   : > { %v2638_v57 = vadd.f32 %v2523_v4, %v1937_v61  ;;  %v2955_v59 = vpop.f32.mrf.mxu0 }
 0x1b4   : > { %v9924_v27 = vpop.f32.mrf.mxu1  ;;  %v13156_v0 = vadd.f32 %v2955_v59, %v2635_v30 }
 0x1b5   : > { %v2641_v21 = vadd.f32 %v9924_v27, %v1940_v8  ;;  %v9961_v43 = vpop.f32.mrf.mxu0 }
 0x1b6   : > { %v2526_v62 = vpop.f32.mrf.mxu1  ;;  %10188 = vmatmul.mubr.msk.bf16.gmra.mxu0 %vm1723_vm7, %v12608_v39  ;;  %v13162_v55 = vadd.f32 %v9961_v43, %v2640_v49  ;;  %v1944_v49 = vadd.f32 %v13019_v44, %v13103_v13 }
 0x1b7   : > { %v2639_v9 = vadd.f32 %v2526_v62, %v1938_v3  ;;  %10191 = vmatprep.mubr.msk.bf16.mxu0 %vm1723_vm7, %v12615_v58  ;;  %v2968_v42 = vpop.f32.mrf.mxu0 }
 0x1b8   : > { %v13170_v61 = vadd.f32 %v2968_v42, %v2638_v57 }
 0x1b9   : > { %v9927_v14 = vpop.f32.mrf.mxu1  ;;  %10154 = vmatmul.mubr.msk.bf16.gmra.mxu1 %vm1723_vm7, %v12628_v33  ;;  %v9962_v52 = vpop.f32.mrf.mxu0  ;;  %v1942_v33 = vadd.f32 %v13103_v13, %v13021_v7  ;;  %v1945_v7 = vadd.f32 %v13103_v13, %v13029_v48 }
 0x1ba   : > { %v2644_v30 = vadd.f32 %v9927_v14, %v1943_v50  ;;  %10157 = vmatprep.mubr.msk.bf16.mxu1 %vm1723_vm7, %v12639_v18  ;;  %v13176_v4 = vadd.f32 %v9962_v52, %v2641_v21  ;;  %v1947_v18 = vadd.f32 %v13023_v15, %v13103_v13 }
 0x1bb   : > { %v2539_v39 = vpop.f32.mrf.mxu1  ;;  %v2971_v8 = vpop.f32.mrf.mxu0 }
 0x1bc   : > { %v2642_v58 = vadd.f32 %v2539_v39, %v1941_v63  ;;  %v13180_v27 = vadd.f32 %v2971_v8, %v2639_v9  ;;  %v1948_v9 = vadd.f32 %v13035_v26, %v13103_v13 }
 0x1bd   : > { %v9928_v19 = vpop.f32.mrf.mxu1 }
 0x1be   : > { %v2645_v47 = vadd.f32 %v9928_v19, %v1944_v49  ;;  %v9965_v59 = vpop.f32.mrf.mxu0  ;;  %10192 = vmatmul.mubr.msk.bf16.gmra.mxu0 %vm1723_vm7, %v12673_v56  ;;  %v4064_v19 = vshrl.u32 %v13088_v46, 16 }
 0x1bf   : > { %v2542_v57 = vpop.f32.mrf.mxu1  ;;  %v13186_v3 = vadd.f32 %v9965_v59, %v2644_v30  ;;  %10195 = vmatprep.mubr.msk.bf16.mxu0 %vm1723_vm7, %v12679_v35 }
 0x1c0   : > { %v2643_v44 = vadd.f32 %v2542_v57, %v1942_v33  ;;  %v2984_v62 = vpop.f32.mrf.mxu0 }
 0x1c1   : > { %v9931_v21 = vpop.f32.mrf.mxu1  ;;  %10158 = vmatmul.mubr.msk.bf16.gmra.mxu1 %vm1723_vm7, %v12694_v31  ;;  %v13194_v50 = vadd.f32 %v2984_v62, %v2642_v58  ;;  %v1946_v31 = vadd.f32 %v13103_v13, %v13037_v25  ;;  %v4051_v58 = vshrl.u32 %v13086_v22, 16  ;;  %v4054_v25 = vshll.u32 %v13086_v22, 16 }
 0x1c2   : > { %v2648_v43 = vadd.f32 %v9931_v21, %v1947_v18  ;;  %10161 = vmatprep.mubr.msk.bf16.mxu1 %vm1723_vm7, %v12715_v36  ;;  %v9966_v15 = vpop.f32.mrf.mxu0  ;;  %v1951_v36 = vadd.f32 %v13039_v40, %v13103_v13  ;;  %v1952_v18 = vadd.f32 %v13051_v2, %v13103_v13  ;;  %v1955_v2 = vadd.f32 %v13056_v45, %v13103_v13 }
 0x1c3   : > { %v2555_v56 = vpop.f32.mrf.mxu1  ;;  %v13200_v14 = vadd.f32 %v9966_v15, %v2645_v47  ;;  %v13232_v15 = vld [vmem:[#allocation2 + $0xd4] sm:$0x1] }
 0x1c4   : > { %v2646_v35 = vadd.f32 %v2555_v56, %v1945_v7  ;;  %v2987_v63 = vpop.f32.mrf.mxu0  ;;  %v4053_v7 = vrot.slane %v4051_v58, 4 }
 0x1c5   : > { %v9932_v42 = vpop.f32.mrf.mxu1  ;;  %v13204_v30 = vadd.f32 %v2987_v63, %v2643_v44 }
 0x1c6   : > { %v2649_v48 = vadd.f32 %v9932_v42, %v1948_v9  ;;  %v9969_v52 = vpop.f32.mrf.mxu0  ;;  %10196 = vmatmul.mubr.msk.bf16.gmra.mxu0 %vm1723_vm7, %v16358_v20  ;;  %v1949_v20 = vadd.f32 %v13103_v13, %v13045_v16  ;;  %v4056_v16 = vrot.slane %v4054_v25, 5  ;;  %v4066_v9 = vrot.slane %v4064_v19, 4 }
 0x1c7   : > { %v2558_v39 = vpop.f32.mrf.mxu1  ;;  %v13210_v49 = vadd.f32 %v9969_v52, %v2648_v43  ;;  %10199 = vmatprep.mubr.msk.bf16.mxu0 %vm1723_vm7, %v16359_v10  ;;  %v4060_v10 = vshll.u32 %v13088_v46, 16  ;;  %v4070_v52 = vshll.u32 %v13232_v15, 16  ;;  %v1956_v25 = vadd.f32 %v13070_v32, %v13103_v13 }
 0x1c8   : > { %v2647_v26 = vadd.f32 %v2558_v39, %v1946_v31  ;;  %v3000_v33 = vpop.f32.mrf.mxu0  ;;  %v4057_v39 = vor.u32 %v4056_v16, %v4053_v7  ;;  %v16369_v16 = vld [vmem:[#allocation32_spill] sm:$0xff] }
 0x1c9   : > { %v9935_v8 = vpop.f32.mrf.mxu1  ;;  %10162 = vmatmul.mubr.msk.bf16.gmra.mxu1 %vm1723_vm7, %v12748_v60  ;;  %v13221_v47 = vadd.f32 %v3000_v33, %v2646_v35 }
 0x1ca   : > { %v2652_v40 = vadd.f32 %v9935_v8, %v1951_v36  ;;  %10165 = vmatprep.mubr.msk.bf16.mxu1 %vm1723_vm7, %v12759_v17  ;;  %v9970_v59 = vpop.f32.mrf.mxu0  ;;  %v4062_v17 = vrot.slane %v4060_v10, 5  ;;  %v1953_v36 = vadd.f32 %v13103_v13, %v13064_v12  ;;  %v4072_v10 = vrot.slane %v4070_v52, 5 }
 0x1cb   : > { %v2571_v57 = vpop.f32.mrf.mxu1  ;;  %v13228_v21 = vadd.f32 %v9970_v59, %v2649_v48 }
 0x1cc   : > { %v2650_v44 = vadd.f32 %v2571_v57, %v1949_v20  ;;  %v3003_v62 = vpop.f32.mrf.mxu0  ;;  %v4067_v45 = vor.u32 %v4066_v9, %v4062_v17  ;;  %v4058_v20 = vrot.slane %v4057_v39, 4  ;;  %v9050_v9 = vrot.slane %v13086_v22, 9 }
 0x1cd   : > { %v9936_v60 = vpop.f32.mrf.mxu1  ;;  %v13230_v56 = vadd.f32 %v3003_v62, %v2647_v26 }
 0x1ce   : > { %v2653_v43 = vadd.f32 %v9936_v60, %v1952_v18  ;;  %v9973_v42 = vpop.f32.mrf.mxu0  ;;  %10200 = vmatmul.mubr.msk.bf16.gmra.mxu0 %vm1723_vm7, %v12768_v51  ;;  %v4301_v18 = vrot.slane %v13088_v46, 5  ;;  %v4063_v62 = vsel %vm11812_vm15, %v4058_v20, %v4062_v17  ;;  %v16370_v17 = vld [vmem:[#allocation33_spill] sm:$0xff]  ;;  %v16375_v20 = vld [vmem:[#allocation35_spill] sm:$0xff] }
 0x1cf   : > { %v13234_v35 = vpop.f32.mrf.mxu1  ;;  %v13240_v63 = vadd.f32 %v9973_v42, %v2652_v40  ;;  %10203 = vmatprep.mubr.msk.bf16.mxu0 %vm1723_vm7, %v12776_v41  ;;  %v4068_v40 = vrot.slane %v4067_v45, 4  ;;  %v1960_v42 = vadd.f32 %v16370_v17, %v13103_v13 }
 0x1d0   : > { %v3016_v48 = vpop.f32.mrf.mxu0 }
 0x1d1   : > { %v9939_v31 = vpop.f32.mrf.mxu1  ;;  %10166 = vmatmul.mubr.msk.bf16.gmra.mxu1 %vm1723_vm7, %v12788_v54  ;;  %v13249_v26 = vadd.f32 %v3016_v48, %v2650_v44 }
 0x1d2   : > { %v2656_v51 = vadd.f32 %v9939_v31, %v1955_v2  ;;  %10169 = vmatprep.mubr.msk.bf16.mxu1 %vm1723_vm7, %v12798_v29  ;;  %v9974_v41 = vpop.f32.mrf.mxu0  ;;  %v1959_v29 = vadd.f32 %v13078_v23, %v13103_v13  ;;  %v4303_v31 = vrot.slane %v4301_v18, 4 }
 0x1d3   : > { %v2587_v58 = vpop.f32.mrf.mxu1  ;;  %v13255_v54 = vadd.f32 %v9974_v41, %v2653_v43  ;;  %v4302_v41 = vsel %vm11827_vm0, %v9050_v9, %v4301_v18 }
 0x1d4   : > { %v2654_v19 = vadd.f32 %v2587_v58, %v1953_v36  ;;  %v13257_v33 = vpop.f32.mrf.mxu0  ;;  %v16372_v58 = vld [vmem:[#allocation8_spill] sm:$0xff] }
 0x1d5   : > { %v9940_v8 = vpop.f32.mrf.mxu1  ;;  %16368 = vst [vmem:[#allocation34_spill] sm:$0xff] %v13257_v33 }
 0x1d6   : > { %v2657_v12 = vadd.f32 %v9940_v8, %v1956_v25  ;;  %v9977_v59 = vpop.f32.mrf.mxu0  ;;  %10204 = vmatmul.mubr.msk.bf16.gmra.mxu0 %vm1723_vm7, %v12818_v11  ;;  %v1957_v11 = vadd.f32 %v13103_v13, %v13090_v37 }
 0x1d7   : > { %v13259_v57 = vpop.f32.mrf.mxu1  ;;  %v13265_v32 = vadd.f32 %v9977_v59, %v2656_v51  ;;  %10207 = vmatprep.mubr.msk.bf16.mxu0 %vm1723_vm7, %v12822_v6  ;;  %v4073_v6 = vsel %vm11812_vm15, %v4068_v40, %v4072_v10 }
 0x1d8   : > { %v3032_v60 = vpop.f32.mrf.mxu0  ;;  %v9024_v52 = vcombine.low %v4063_v62, %v4073_v6 }
 0x1d9   : > { %v9943_v44 = vpop.f32.mrf.mxu1  ;;  %10170 = vmatmul.mubr.msk.bf16.gmra.mxu1 %vm1723_vm7, %v12829_v53  ;;  %v13276_v23 = vadd.f32 %v3032_v60, %v2654_v19  ;;  %v4304_v53 = vrot.slane %v13232_v15, 5  ;;  %v16373_v15 = vld [vmem:[#allocation23_spill] sm:$0xff] }
 0x1da   : > { %v2660_v7 = vadd.f32 %v9943_v44, %v1959_v29  ;;  %10173 = vmatprep.mubr.msk.bf16.mxu1 %vm1723_vm7, %v16369_v16  ;;  %v9978_v43 = vpop.f32.mrf.mxu0 }
 0x1db   : > { %v2603_v46 = vpop.f32.mrf.mxu1  ;;  %v13286_v37 = vadd.f32 %v9978_v43, %v2657_v12  ;;  %v4305_v25 = vsel %vm11827_vm0, %v4303_v31, %v4304_v53 }
 0x1dc   : > { %v2658_v2 = vadd.f32 %v2603_v46, %v1957_v11  ;;  %v13288_v39 = vpop.f32.mrf.mxu0  ;;  %v9051_v29 = vcombine.low %v4302_v41, %v4305_v25  ;;  %v16377_v11 = vld [vmem:[#allocation36_spill] sm:$0xff] }
 0x1dd   : > { %v9944_v48 = vpop.f32.mrf.mxu1  ;;  %16371 = vst [vmem:[#allocation44_spill] sm:$0xff] %v13288_v39 }
 0x1de   : > { %v2661_v36 = vadd.f32 %v9944_v48, %v1960_v42  ;;  %v9981_v45 = vpop.f32.mrf.mxu0  ;;  %10208 = vmatmul.mubr.msk.bf16.gmra.mxu0 %vm1723_vm7, %v16372_v58 }
 0x1df   : > { %v13290_v51 = vpop.f32.mrf.mxu1  ;;  %v13294_v22 = vadd.f32 %v9981_v45, %v2660_v7  ;;  %10211 = vmatprep.mubr.msk.bf16.mxu0 %vm1723_vm7, %v16373_v15 }
 0x1e0   : > { %v3048_v8 = vpop.f32.mrf.mxu0 }
 0x1e1   : > { %v9947_v19 = vpop.f32.mrf.mxu1  ;;  %10174 = vmatmul.mubr.msk.bf16.gmra.mxu1 %vm1723_vm7, %v9024_v52  ;;  %v13304_v40 = vadd.f32 %v3048_v8, %v2658_v2 }
 0x1e2   : > { %v2664_v12 = vadd.f32 %v9947_v19, %v16375_v20  ;;  %v9982_v59 = vpop.f32.mrf.mxu0 }
 0x1e3   : > { %v2619_v10 = vpop.f32.mrf.mxu1  ;;  %v13307_v60 = vadd.f32 %v9982_v59, %v2661_v36 }
 0x1e4   : > { %v2662_v44 = vadd.f32 %v2619_v10, %v13120_v34  ;;  %v13309_v18 = vpop.f32.mrf.mxu0 }
 0x1e5   : > { %v9948_v62 = vpop.f32.mrf.mxu1  ;;  %16376 = vst [vmem:[#allocation40_spill] sm:$0xff] %v13309_v18 }
 0x1e6   : > { %v2665_v7 = vadd.f32 %v9948_v62, %v16377_v11  ;;  %v9985_v6 = vpop.f32.mrf.mxu0  ;;  %10212 = vmatmul.mubr.msk.bf16.gmra.mxu0 %vm1723_vm7, %v9051_v29 }
 0x1e7   : > { %v13312_v16 = vpop.f32.mrf.mxu1  ;;  %v13315_v46 = vadd.f32 %v9985_v6, %v2664_v12 }
 0x1e8   : > { %16378 = vst [vmem:[#allocation43_spill] sm:$0xff] %v13312_v16  ;;  %v3064_v43 = vpop.f32.mrf.mxu0 }
 0x1e9   : > { %v9995_v9 = vpop.f32.mrf.mxu1  ;;  %v13317_v53 = vadd.f32 %v3064_v43, %v2662_v44 }
 0x1ea   : > { %v3307_v34 = vadd.f32 %v9995_v9, %v13138_v1  ;;  %v9986_v17 = vpop.f32.mrf.mxu0 }
 0x1eb   : > { %v3178_v42 = vpop.f32.mrf.mxu1  ;;  %v13320_v2 = vadd.f32 %v9986_v17, %v2665_v7 }
 0x1ec   : > { %v3305_v31 = vadd.f32 %v3178_v42, %v13146_v28  ;;  %v13323_v48 = vpop.f32.mrf.mxu0 }
 0x1ed   : > { %16379 = vst [vmem:[#allocation39_spill] sm:$0xff] %v13323_v48  ;;  %v9996_v52 = vpop.f32.mrf.mxu1 }
 0x1ee   : > { %v3308_v36 = vadd.f32 %v9996_v52, %v13152_v38  ;;  %v10033_v58 = vpop.f32.mrf.mxu0 }
 0x1ef   : > { %v13326_v45 = vpop.f32.mrf.mxu1  ;;  %v13328_v15 = vadd.f32 %v10033_v58, %v3307_v34 }
 0x1f0   : > { %v3426_v25 = vpop.f32.mrf.mxu0 }
 0x1f1   : > { %v9999_v41 = vpop.f32.mrf.mxu1  ;;  %v13331_v19 = vadd.f32 %v3426_v25, %v3305_v31 }
 0x1f2   : > { %v3311_v1 = vadd.f32 %v9999_v41, %v13162_v55  ;;  %v10034_v20 = vpop.f32.mrf.mxu0 }
 0x1f3   : > { %v3194_v8 = vpop.f32.mrf.mxu1  ;;  %v13334_v12 = vadd.f32 %v10034_v20, %v3308_v36 }
 0x1f4   : > { %v3309_v28 = vadd.f32 %v3194_v8, %v13170_v61  ;;  %v13336_v59 = vpop.f32.mrf.mxu0 }
 0x1f5   : > { %v10000_v10 = vpop.f32.mrf.mxu1 }
 0x1f6   : > { %v3312_v38 = vadd.f32 %v10000_v10, %v13176_v4  ;;  %v10037_v44 = vpop.f32.mrf.mxu0 }
 0x1f7   : > { %v13339_v29 = vpop.f32.mrf.mxu1  ;;  %v13341_v62 = vadd.f32 %v10037_v44, %v3311_v1 }
 0x1f8   : > { %v3442_v55 = vpop.f32.mrf.mxu0 }
 0x1f9   : > { %v10003_v11 = vpop.f32.mrf.mxu1  ;;  %v13344_v6 = vadd.f32 %v3442_v55, %v3309_v28 }
 0x1fa   : > { %v3315_v7 = vadd.f32 %v10003_v11, %v13186_v3  ;;  %v10038_v61 = vpop.f32.mrf.mxu0 }
 0x1fb   : > { %v3210_v43 = vpop.f32.mrf.mxu1  ;;  %v13347_v34 = vadd.f32 %v10038_v61, %v3312_v38 }
 0x1fc   : > { %v3313_v9 = vadd.f32 %v3210_v43, %v13194_v50  ;;  %v13349_v42 = vpop.f32.mrf.mxu0 }
 0x1fd   : > { %v10004_v17 = vpop.f32.mrf.mxu1 }
 0x1fe   : > { %v3316_v4 = vadd.f32 %v10004_v17, %v13200_v14  ;;  %v10041_v52 = vpop.f32.mrf.mxu0 }
 0x1ff   : > { %v13352_v31 = vpop.f32.mrf.mxu1  ;;  %v13354_v36 = vadd.f32 %v10041_v52, %v3315_v7 }
 0x200   : > { %v3458_v3 = vpop.f32.mrf.mxu0 }
 0x201   : > { %v10007_v58 = vpop.f32.mrf.mxu1  ;;  %v13357_v25 = vadd.f32 %v3458_v3, %v3313_v9 }
 0x202   : > { %v3319_v41 = vadd.f32 %v10007_v58, %v13210_v49  ;;  %v10042_v50 = vpop.f32.mrf.mxu0 }
 0x203   : > { %v3226_v1 = vpop.f32.mrf.mxu1  ;;  %v13360_v20 = vadd.f32 %v10042_v50, %v3316_v4 }
 0x204   : > { %v3317_v8 = vadd.f32 %v3226_v1, %v13221_v47  ;;  %v13362_v10 = vpop.f32.mrf.mxu0 }
 0x205   : > { %v10008_v28 = vpop.f32.mrf.mxu1 }
 0x206   : > { %v3320_v14 = vadd.f32 %v10008_v28, %v13228_v21  ;;  %v10045_v44 = vpop.f32.mrf.mxu0 }
 0x207   : > { %v13365_v38 = vpop.f32.mrf.mxu1  ;;  %v13367_v11 = vadd.f32 %v10045_v44, %v3319_v41 }
 0x208   : > { %v3474_v49 = vpop.f32.mrf.mxu0 }
 0x209   : > { %v10011_v55 = vpop.f32.mrf.mxu1  ;;  %v13370_v43 = vadd.f32 %v3474_v49, %v3317_v8 }
 0x20a   : > { %v3323_v7 = vadd.f32 %v10011_v55, %v13240_v63  ;;  %v10046_v47 = vpop.f32.mrf.mxu0 }
 0x20b   : > { %v3242_v61 = vpop.f32.mrf.mxu1  ;;  %v13373_v17 = vadd.f32 %v10046_v47, %v3320_v14 }
 0x20c   : > { %v3321_v9 = vadd.f32 %v3242_v61, %v13249_v26  ;;  %v13375_v52 = vpop.f32.mrf.mxu0 }
 0x20d   : > { %v10012_v4 = vpop.f32.mrf.mxu1 }
 0x20e   : > { %v3324_v21 = vadd.f32 %v10012_v4, %v13255_v54  ;;  %v10049_v3 = vpop.f32.mrf.mxu0 }
 0x20f   : > { %v13378_v58 = vpop.f32.mrf.mxu1  ;;  %v13380_v41 = vadd.f32 %v10049_v3, %v3323_v7 }
 0x210   : > { %16380 = vst [vmem:[#allocation37_spill] sm:$0xff] %v13378_v58  ;;  %v3490_v63 = vpop.f32.mrf.mxu0 }
 0x211   : > { %v10015_v1 = vpop.f32.mrf.mxu1  ;;  %v13383_v8 = vadd.f32 %v3490_v63, %v3321_v9 }
 0x212   : > { %v3327_v50 = vadd.f32 %v10015_v1, %v13265_v32  ;;  %v10050_v26 = vpop.f32.mrf.mxu0 }
 0x213   : > { %v3258_v28 = vpop.f32.mrf.mxu1  ;;  %v13386_v44 = vadd.f32 %v10050_v26, %v3324_v21 }
 0x214   : > { %v3325_v14 = vadd.f32 %v3258_v28, %v13276_v23  ;;  %v13388_v49 = vpop.f32.mrf.mxu0 }
 0x215   : > { %v10016_v55 = vpop.f32.mrf.mxu1  ;;  %16381 = vst [vmem:[#allocation13_spill] sm:$0xff] %v13388_v49 }
 0x216   : > { %v3328_v54 = vadd.f32 %v10016_v55, %v13286_v37  ;;  %v10053_v7 = vpop.f32.mrf.mxu0 }
 0x217   : > { %v13391_v61 = vpop.f32.mrf.mxu1  ;;  %v13393_v47 = vadd.f32 %v10053_v7, %v3327_v50 }
 0x218   : > { %16382 = vst [vmem:[#allocation14_spill] sm:$0xff] %v13391_v61  ;;  %v3506_v32 = vpop.f32.mrf.mxu0 }
 0x219   : > { %v10019_v4 = vpop.f32.mrf.mxu1  ;;  %v13396_v3 = vadd.f32 %v3506_v32, %v3325_v14 }
 0x21a   : > { %v3331_v9 = vadd.f32 %v10019_v4, %v13294_v22  ;;  %v10054_v23 = vpop.f32.mrf.mxu0 }
 0x21b   : > { %v3274_v1 = vpop.f32.mrf.mxu1  ;;  %v13399_v63 = vadd.f32 %v10054_v23, %v3328_v54 }
 0x21c   : > { %v3329_v21 = vadd.f32 %v3274_v1, %v13304_v40  ;;  %v13401_v26 = vpop.f32.mrf.mxu0 }
 0x21d   : > { %v10020_v28 = vpop.f32.mrf.mxu1  ;;  %16383 = vst [vmem:[#allocation15_spill] sm:$0xff] %v13401_v26 }
 0x21e   : > { %v3332_v37 = vadd.f32 %v10020_v28, %v13307_v60  ;;  %v10057_v50 = vpop.f32.mrf.mxu0 }
 0x21f   : > { %v13404_v55 = vpop.f32.mrf.mxu1  ;;  %v13406_v7 = vadd.f32 %v10057_v50, %v3331_v9 }
 0x220   : > { %16384 = vst [vmem:[#allocation16_spill] sm:$0xff] %v13404_v55  ;;  %v3522_v22 = vpop.f32.mrf.mxu0 }
 0x221   : > { %v10023_v5 = vpop.f32.mrf.mxu1  ;;  %v13409_v4 = vadd.f32 %v3522_v22, %v3329_v21 }
 0x222   : > { %v3335_v14 = vadd.f32 %v10023_v5, %v13315_v46  ;;  %v10058_v40 = vpop.f32.mrf.mxu0 }
 0x223   : > { %v3290_v32 = vpop.f32.mrf.mxu1  ;;  %v13412_v1 = vadd.f32 %v10058_v40, %v3332_v37 }
 0x224   : > { %v3333_v54 = vadd.f32 %v3290_v32, %v13317_v53  ;;  %v13414_v13 = vpop.f32.mrf.mxu0 }
 0x225   : > { %v10024_v23 = vpop.f32.mrf.mxu1  ;;  %16385 = vst [vmem:[#allocation17_spill] sm:$0xff] %v13414_v13 }
 0x226   : > { %v3336_v60 = vadd.f32 %v10024_v23, %v13320_v2  ;;  %v10061_v9 = vpop.f32.mrf.mxu0 }
 0x227   : > { %v13417_v28 = vpop.f32.mrf.mxu1  ;;  %v13419_v50 = vadd.f32 %v10061_v9, %v3335_v14 }
 0x228   : > { %16386 = vst [vmem:[#allocation18_spill] sm:$0xff] %v13417_v28  ;;  %v3538_v55 = vpop.f32.mrf.mxu0 }
 0x229   : > { %v10071_v5 = vpop.f32.mrf.mxu1  ;;  %v13421_v46 = vadd.f32 %v3538_v55, %v3333_v54 }
 0x22a   : > { %v3787_v21 = vadd.f32 %v10071_v5, %v13328_v15  ;;  %v10062_v22 = vpop.f32.mrf.mxu0 }
 0x22b   : > { %v13424_v53 = vpop.f32.mrf.mxu1  ;;  %v13426_v37 = vadd.f32 %v10062_v22, %v3336_v60 }
 0x22c   : > { %v13428_v32 = vpop.f32.mrf.mxu0 }
 0x22d   : > { %16387 = vst [vmem:[#allocation19_spill] sm:$0xff] %v13428_v32  ;;  %v10072_v40 = vpop.f32.mrf.mxu1 }
 0x22e   : > { %v3788_v2 = vadd.f32 %v10072_v40, %v13334_v12  ;;  %v10109_v14 = vpop.f32.mrf.mxu0 }
 0x22f   : > { %v13431_v23 = vpop.f32.mrf.mxu1  ;;  %v13433_v9 = vadd.f32 %v10109_v14, %v3787_v21 }
 0x230   : > { %v13435_v55 = vpop.f32.mrf.mxu0 }
 0x231   : > { %v10075_v13 = vpop.f32.mrf.mxu1 }
 0x232   : > { %v3791_v15 = vadd.f32 %v10075_v13, %v13341_v62  ;;  %v10110_v5 = vpop.f32.mrf.mxu0 }
 0x233   : > { %v3674_v54 = vpop.f32.mrf.mxu1  ;;  %v13439_v22 = vadd.f32 %v10110_v5, %v3788_v2 }
 0x234   : > { %v3789_v60 = vadd.f32 %v3674_v54, %v13344_v6  ;;  %v13441_v28 = vpop.f32.mrf.mxu0 }
 0x235   : > { %v10076_v32 = vpop.f32.mrf.mxu1 }
 0x236   : > { %v3792_v12 = vadd.f32 %v10076_v32, %v13347_v34  ;;  %v10113_v21 = vpop.f32.mrf.mxu0 }
 0x237   : > { %v13444_v40 = vpop.f32.mrf.mxu1  ;;  %v13446_v14 = vadd.f32 %v10113_v21, %v3791_v15 }
 0x238   : > { %v3900_v48 = vpop.f32.mrf.mxu0 }
 0x239   : > { %v10079_v26 = vpop.f32.mrf.mxu1  ;;  %v13449_v62 = vadd.f32 %v3900_v48, %v3789_v60 }
 0x23a   : > { %v3795_v13 = vadd.f32 %v10079_v26, %v13354_v36  ;;  %v10114_v6 = vpop.f32.mrf.mxu0 }
 0x23b   : > { %v3690_v49 = vpop.f32.mrf.mxu1  ;;  %v13452_v54 = vadd.f32 %v10114_v6, %v3792_v12 }
 0x23c   : > { %v3793_v2 = vadd.f32 %v3690_v49, %v13357_v25  ;;  %v13454_v61 = vpop.f32.mrf.mxu0 }
 0x23d   : > { %v10080_v5 = vpop.f32.mrf.mxu1 }
 0x23e   : > { %v3796_v34 = vadd.f32 %v10080_v5, %v13360_v20  ;;  %v10117_v15 = vpop.f32.mrf.mxu0 }
 0x23f   : > { %v13457_v32 = vpop.f32.mrf.mxu1  ;;  %v13459_v21 = vadd.f32 %v10117_v15, %v3795_v13 }
 0x240   : > { %v3916_v36 = vpop.f32.mrf.mxu0 }
 0x241   : > { %v10083_v58 = vpop.f32.mrf.mxu1  ;;  %v13462_v26 = vadd.f32 %v3916_v36, %v3793_v2 }
 0x242   : > { %v3799_v48 = vadd.f32 %v10083_v58, %v13367_v11  ;;  %v10118_v25 = vpop.f32.mrf.mxu0 }
 0x243   : > { %v3706_v60 = vpop.f32.mrf.mxu1  ;;  %v13465_v12 = vadd.f32 %v10118_v25, %v3796_v34 }
 0x244   : > { %v3797_v49 = vadd.f32 %v3706_v60, %v13370_v43  ;;  %v13467_v16 = vpop.f32.mrf.mxu0 }
 0x245   : > { %v10084_v6 = vpop.f32.mrf.mxu1 }
 0x246   : > { %v3800_v20 = vadd.f32 %v10084_v6, %v13373_v17  ;;  %v10121_v13 = vpop.f32.mrf.mxu0 }
 0x247   : > { %v13470_v5 = vpop.f32.mrf.mxu1  ;;  %v13472_v15 = vadd.f32 %v10121_v13, %v3799_v48 }
 0x248   : > { %v3932_v11 = vpop.f32.mrf.mxu0 }
 0x249   : > { %v10087_v24 = vpop.f32.mrf.mxu1  ;;  %v13475_v2 = vadd.f32 %v3932_v11, %v3797_v49 }
 0x24a   : > { %v3803_v58 = vadd.f32 %v10087_v24, %v13380_v41  ;;  %v10122_v43 = vpop.f32.mrf.mxu0 }
 0x24b   : > { %v3722_v36 = vpop.f32.mrf.mxu1  ;;  %v13478_v60 = vadd.f32 %v10122_v43, %v3800_v20 }
 0x24c   : > { %v3801_v34 = vadd.f32 %v3722_v36, %v13383_v8  ;;  %v13480_v18 = vpop.f32.mrf.mxu0 }
 0x24d   : > { %v10088_v25 = vpop.f32.mrf.mxu1 }
 0x24e   : > { %v3804_v17 = vadd.f32 %v10088_v25, %v13386_v44  ;;  %v10125_v48 = vpop.f32.mrf.mxu0 }
 0x24f   : > { %v13483_v6 = vpop.f32.mrf.mxu1  ;;  %v13485_v13 = vadd.f32 %v10125_v48, %v3803_v58 }
 0x250   : > { %16388 = vst [vmem:[#allocation20_spill] sm:$0xff] %v13483_v6  ;;  %v3948_v24 = vpop.f32.mrf.mxu0 }
 0x251   : > { %v10091_v39 = vpop.f32.mrf.mxu1  ;;  %v13488_v49 = vadd.f32 %v3948_v24, %v3801_v34 }
 0x252   : > { %v3807_v41 = vadd.f32 %v10091_v39, %v13393_v47  ;;  %v10126_v8 = vpop.f32.mrf.mxu0 }
 0x253   : > { %v3738_v11 = vpop.f32.mrf.mxu1  ;;  %v13491_v36 = vadd.f32 %v10126_v8, %v3804_v17 }
 0x254   : > { %v3805_v20 = vadd.f32 %v3738_v11, %v13396_v3  ;;  %v13493_v33 = vpop.f32.mrf.mxu0 }
 0x255   : > { %16389 = vst [vmem:[#allocation21_spill] sm:$0xff] %v13491_v36  ;;  %v10092_v43 = vpop.f32.mrf.mxu1 }
 0x256   : > { %v3808_v44 = vadd.f32 %v10092_v43, %v13399_v63  ;;  %v10129_v58 = vpop.f32.mrf.mxu0 }
 0x257   : > { %v13496_v25 = vpop.f32.mrf.mxu1  ;;  %v13498_v48 = vadd.f32 %v10129_v58, %v3807_v41 }
 0x258   : > { %v3964_v39 = vpop.f32.mrf.mxu0 }
 0x259   : > { %16390 = vst [vmem:[#allocation24_spill] sm:$0xff] %v13498_v48  ;;  %v10095_v6 = vpop.f32.mrf.mxu1  ;;  %v13501_v34 = vadd.f32 %v3964_v39, %v3805_v20 }
 0x25a   : > { %v3811_v47 = vadd.f32 %v10095_v6, %v13406_v7  ;;  %v10130_v3 = vpop.f32.mrf.mxu0 }
 0x25b   : > { %v3754_v24 = vpop.f32.mrf.mxu1  ;;  %v13504_v11 = vadd.f32 %v10130_v3, %v3808_v44 }
 0x25c   : > { %v3809_v17 = vadd.f32 %v3754_v24, %v13409_v4  ;;  %v13506_v36 = vpop.f32.mrf.mxu0 }
 0x25d   : > { %16391 = vst [vmem:[#allocation25_spill] sm:$0xff] %v13504_v11  ;;  %v10096_v8 = vpop.f32.mrf.mxu1 }
 0x25e   : > { %v3812_v63 = vadd.f32 %v10096_v8, %v13412_v1  ;;  %v10133_v41 = vpop.f32.mrf.mxu0 }
 0x25f   : > { %v13509_v43 = vpop.f32.mrf.mxu1  ;;  %v13511_v58 = vadd.f32 %v10133_v41, %v3811_v47 }
 0x260   : > { %v3980_v7 = vpop.f32.mrf.mxu0 }
 0x261   : > { %16392 = vst [vmem:[#allocation30_spill] sm:$0xff] %v13511_v58  ;;  %v10099_v48 = vpop.f32.mrf.mxu1  ;;  %v13514_v20 = vadd.f32 %v3980_v7, %v3809_v17 }
 0x262   : > { %v3815_v6 = vadd.f32 %v10099_v48, %v13419_v50  ;;  %v10134_v4 = vpop.f32.mrf.mxu0 }
 0x263   : > { %v3770_v39 = vpop.f32.mrf.mxu1  ;;  %v13517_v24 = vadd.f32 %v10134_v4, %v3812_v63  ;;  %v3785_v63 = vadd.f32 %v13424_v53, %v13331_v19 }
 0x264   : > { %v3813_v44 = vadd.f32 %v3770_v39, %v13421_v46  ;;  %v13519_v11 = vpop.f32.mrf.mxu0  ;;  %v3306_v46 = vadd.f32 %v13326_v45, %v13156_v0 }
 0x265   : > { %16393 = vst [vmem:[#allocation31_spill] sm:$0xff] %v13517_v24  ;;  %v10100_v3 = vpop.f32.mrf.mxu1 }
 0x266   : > { %v3816_v1 = vadd.f32 %v10100_v3, %v13426_v37  ;;  %v10137_v47 = vpop.f32.mrf.mxu0  ;;  %v4011_v3 = vadd.f32 %v13435_v55, %v3785_v63 }
 0x267   : > { %v13522_v8 = vpop.f32.mrf.mxu1  ;;  %v13524_v41 = vadd.f32 %v10137_v47, %v3815_v6  ;;  %v3554_v6 = vadd.f32 %v13336_v59, %v3306_v46  ;;  %v3310_v59 = vadd.f32 %v13339_v29, %v13180_v27 }
 0x268   : > { %v3996_v58 = vpop.f32.mrf.mxu0 }
 0x269   : > { %16394 = vst [vmem:[#allocation38_spill] sm:$0xff] %v13524_v41  ;;  %v10147_v50 = vpop.f32.mrf.mxu1  ;;  %v13526_v48 = vadd.f32 %v3996_v58, %v3813_v44 }
 0x26a   : > { %v10138_v17 = vpop.f32.mrf.mxu0  ;;  %v4261_v58 = vadd.f32 %v10147_v50, %v13433_v9 }
 0x26b   : > { %16395 = vst [vmem:[#allocation41_spill] sm:$0xff] %v13526_v48  ;;  %v4132_v7 = vpop.f32.mrf.mxu1  ;;  %v13532_v39 = vadd.f32 %v10138_v17, %v3816_v1  ;;  %v3786_v48 = vadd.f32 %v13431_v23, %v3554_v6  ;;  %v3558_v6 = vadd.f32 %v13349_v42, %v3310_v59 }
 0x26c   : > { %v13534_v37 = vpop.f32.mrf.mxu0  ;;  %v4259_v41 = vadd.f32 %v4132_v7, %v4011_v3 }
 0x26d   : > { %v10148_v4 = vpop.f32.mrf.mxu1  ;;  %v4012_v19 = vadd.f32 %v13441_v28, %v3786_v48 }
 0x26e   : > { %v10185_v47 = vpop.f32.mrf.mxu0  ;;  %v4262_v53 = vadd.f32 %v10148_v4, %v13439_v22 }
 0x26f   : > { %v4135_v44 = vpop.f32.mrf.mxu1  ;;  %v4493_v0 = vadd.f32 %v10185_v47, %v4261_v58 }
 0x270   : > { %v4364_v24 = vpop.f32.mrf.mxu0  ;;  %v4260_v9 = vadd.f32 %v4135_v44, %v4012_v19 }
 0x271   : > { %v10151_v45 = vpop.f32.mrf.mxu1  ;;  %v9073_v1 = vmul.f32 -1.442695, %v4493_v0  ;;  %v4491_v17 = vadd.f32 %v4364_v24, %v4259_v41  ;;  %v3790_v41 = vadd.f32 %v13444_v40, %v3558_v6  ;;  %v3314_v40 = vadd.f32 %v13352_v31, %v13204_v30 }
 0x272   : > { %v10186_v46 = vpop.f32.mrf.mxu0  ;;  %v4265_v22 = vadd.f32 %v10151_v45, %v13446_v14 }
 0x273   : > { %v4148_v55 = vpop.f32.mrf.mxu1  ;;  %10691 = vpow2.f32 %v9073_v1  ;;  %v9071_v50 = vmul.f32 -1.442695, %v4491_v17  ;;  %v4494_v63 = vadd.f32 %v10186_v46, %v4262_v53  ;;  %v4016_v47 = vadd.f32 %v13454_v61, %v3790_v41 }
 0x274   : > { %v4367_v7 = vpop.f32.mrf.mxu0  ;;  %v4263_v27 = vadd.f32 %v4148_v55, %v13449_v62  ;;  %v3562_v61 = vadd.f32 %v13362_v10, %v3314_v40 }
 0x275   : > { %v10152_v23 = vpop.f32.mrf.mxu1  ;;  %10693 = vpow2.f32 %v9071_v50  ;;  %v9074_v3 = vmul.f32 -1.442695, %v4494_v63  ;;  %v4492_v28 = vadd.f32 %v4367_v7, %v4260_v9 }
 0x276   : > { %v10189_v24 = vpop.f32.mrf.mxu0  ;;  %v4266_v0 = vadd.f32 %v10152_v23, %v13452_v54  ;;  %v3794_v7 = vadd.f32 %v13457_v32, %v3562_v61  ;;  %v3318_v32 = vadd.f32 %v13365_v38, %v13230_v56  ;;  %v10892_v56 = vld [vmem:[%s16042_s3] ss:$0 sm:$0xff] }
 0x277   : > { %v4151_v48 = vpop.f32.mrf.mxu1  ;;  %10695 = vpow2.f32 %v9074_v3  ;;  %v9072_v29 = vmul.f32 -1.442695, %v4492_v28  ;;  %v4497_v4 = vadd.f32 %v10189_v24, %v4265_v22  ;;  %v16396_v38 = vld [vmem:[#allocation27_spill] sm:$0xff] }
 0x278   : > { %v4380_v44 = vpop.f32.mrf.mxu0  ;;  %v4264_v14 = vadd.f32 %v4151_v48, %v4016_v47  ;;  %v4020_v48 = vadd.f32 %v13467_v16, %v3794_v7 }
 0x279   : > { %v10155_v58 = vpop.f32.mrf.mxu1  ;;  %10697 = vpow2.f32 %v9072_v29  ;;  %v4495_v42 = vadd.f32 %v4380_v44, %v4263_v27  ;;  %v9077_v1 = vmul.f32 -1.442695, %v4497_v4 }
 0x27a   : > { %v10190_v53 = vpop.f32.mrf.mxu0  ;;  %v4269_v55 = vadd.f32 %v10155_v58, %v13459_v21 }
 0x27b   : > { %v4164_v19 = vpop.f32.mrf.mxu1  ;;  %v9075_v45 = vmul.f32 -1.442695, %v4495_v42  ;;  %v4498_v62 = vadd.f32 %v10190_v53, %v4266_v0  ;;  %v3566_v0 = vadd.f32 %v13375_v52, %v3318_v32  ;;  %v1950_v53 = vadd.f32 %v10892_v56, %v16396_v38  ;;  %v16399_v32 = vld [vmem:[#allocation34_spill] sm:$0xff] }
 0x27c   : > { %v4383_v59 = vpop.f32.mrf.mxu0  ;;  %v4267_v30 = vadd.f32 %v4164_v19, %v13462_v26 }
 0x27d   : > { %v10156_v17 = vpop.f32.mrf.mxu1  ;;  %10699 = vpow2.f32 %v9075_v45  ;;  %v4496_v46 = vadd.f32 %v4383_v59, %v4264_v14  ;;  %v9078_v31 = vmul.f32 -1.442695, %v4498_v62  ;;  %v16397_v14 = vld [vmem:[#allocation26_spill] sm:$0xff] }
 0x27e   : > { %v10193_v50 = vpop.f32.mrf.mxu0  ;;  %10701 = vpow2.f32 %v9077_v1  ;;  %v4270_v10 = vadd.f32 %v10156_v17, %v13465_v12  ;;  %v1954_v45 = vadd.f32 %v10892_v56, %v16397_v14  ;;  %v3798_v17 = vadd.f32 %v13470_v5, %v3566_v0  ;;  %v13574_v5 = vpop.permute.xlu1 %4749 }
 0x27f   : > { %v4167_v9 = vpop.f32.mrf.mxu1  ;;  %v9076_v54 = vmul.f32 -1.442695, %v4496_v46  ;;  %v4501_v63 = vadd.f32 %v10193_v50, %v4269_v55  ;;  %v13568_v55 = vpop.permute.xlu0 %4747 }
 0x280   : > { %v10692_v23 = vpop.eup %10691  ;;  %v4396_v3 = vpop.f32.mrf.mxu0  ;;  %v4268_v4 = vadd.f32 %v4167_v9, %v4020_v48 }
 0x281   : > { %v10159_v6 = vpop.f32.mrf.mxu1  ;;  %v4621_v28 = vadd.f32 1.0, %v10692_v23  ;;  %10703 = vpow2.f32 %v9076_v54  ;;  %v9081_v21 = vmul.f32 -1.442695, %v4501_v63  ;;  %v4499_v24 = vadd.f32 %v4396_v3, %v4267_v30  ;;  %v16398_v54 = vld [vmem:[#allocation29_spill] sm:$0xff] }
 0x282   : > { %v10694_v22 = vpop.eup %10693  ;;  %v10194_v27 = vpop.f32.mrf.mxu0  ;;  %v4273_v12 = vadd.f32 %v10159_v6, %v13472_v15  ;;  %v1958_v63 = vadd.f32 %v10892_v56, %v16398_v54  ;;  %v2651_v23 = vadd.f32 %v13234_v35, %v1950_v53  ;;  %v4024_v6 = vadd.f32 %v13480_v18, %v3798_v17  ;;  %v16404_v56 = vld [vmem:[#allocation37_spill] sm:$0xff]  ;;  %v16408_v54 = vld [vmem:[#allocation39_spill] sm:$0xff] }
 0x283   : > { %v4180_v41 = vpop.f32.mrf.mxu1  ;;  %10705 = vrcp.f32 %v4621_v28  ;;  %v4619_v29 = vadd.f32 1.0, %v10694_v22  ;;  %v9079_v58 = vmul.f32 -1.442695, %v4499_v24  ;;  %v4502_v44 = vadd.f32 %v10194_v27, %v4270_v10 }
 0x284   : > { %v10696_v26 = vpop.eup %10695  ;;  %10707 = vpow2.f32 %v9078_v31  ;;  %v4399_v42 = vpop.f32.mrf.mxu0  ;;  %v4271_v15 = vadd.f32 %v4180_v41, %v13475_v2  ;;  %v2655_v31 = vadd.f32 %v13259_v57, %v1954_v45  ;;  %v3096_v57 = vadd.f32 %v16399_v32, %v2651_v23  ;;  %v16409_v23 = vld [vmem:[#allocation15_spill] sm:$0xff] }
 0x285   : > { %v10160_v47 = vpop.f32.mrf.mxu1  ;;  %v4622_v16 = vadd.f32 1.0, %v10696_v26  ;;  %10709 = vpow2.f32 %v9081_v21  ;;  %v4500_v40 = vadd.f32 %v4399_v42, %v4268_v4  ;;  %v9082_v46 = vmul.f32 -1.442695, %v4502_v44  ;;  %v16401_v26 = vld [vmem:[#allocation40_spill] sm:$0xff]  ;;  %v4754_v45 = vpop.permute.xlu1 %4753 }
 0x286   : > { %v10698_v19 = vpop.eup %10697  ;;  %10711 = vrcp.f32 %v4619_v29  ;;  %v10197_v62 = vpop.f32.mrf.mxu0  ;;  %v4274_v7 = vadd.f32 %v10160_v47, %v13478_v60  ;;  %v2659_v21 = vadd.f32 %v13290_v51, %v1958_v63  ;;  %v16400_v29 = vld [vmem:[#allocation44_spill] sm:$0xff]  ;;  %v16402_v47 = vld [vmem:[#allocation42_spill] sm:$0xff]  ;;  %v16403_v51 = vld [vmem:[#allocation43_spill] sm:$0xff]  ;;  %v3322_v38 = vadd.f32 %v16404_v56, %v3096_v57 }
 0x287   : > { %v4183_v1 = vpop.f32.mrf.mxu1  ;;  %v4620_v52 = vadd.f32 1.0, %v10698_v19  ;;  %10713 = vpow2.f32 %v9079_v58  ;;  %v4505_v59 = vadd.f32 %v10197_v62, %v4273_v12  ;;  %v9080_v61 = vmul.f32 -1.442695, %v4500_v40  ;;  %v4752_v58 = vpop.permute.xlu0 %4751 }
 0x288   : > { %10715 = vrcp.f32 %v4622_v16  ;;  %v4412_v50 = vpop.f32.mrf.mxu0  ;;  %v4272_v35 = vadd.f32 %v4183_v1, %v4024_v6  ;;  %v3100_v18 = vadd.f32 %v16400_v29, %v2655_v31  ;;  %v3104_v4 = vadd.f32 %v16401_v26, %v2659_v21  ;;  %v16406_v1 = vld [vmem:[#allocation14_spill] sm:$0xff] }
 0x289   : > { %v10163_v9 = vpop.f32.mrf.mxu1  ;;  %10717 = vrcp.f32 %v4620_v52  ;;  %v4503_v2 = vadd.f32 %v4412_v50, %v4271_v15  ;;  %v9085_v48 = vmul.f32 -1.442695, %v4505_v59  ;;  %v2663_v42 = vadd.f32 %v16403_v51, %v16402_v47  ;;  %v16416_v47 = vld [vmem:[#allocation17_spill] sm:$0xff] }
 0x28a   : > { %v10700_v30 = vpop.eup %10699  ;;  %10719 = vpow2.f32 %v9080_v61  ;;  %v10198_v28 = vpop.f32.mrf.mxu0  ;;  %v4277_v0 = vadd.f32 %v10163_v9, %v13485_v13  ;;  %v3326_v62 = vadd.f32 %v16406_v1, %v3100_v18 }
 0x28b   : > { %v4196_v3 = vpop.f32.mrf.mxu1  ;;  %v4623_v22 = vadd.f32 1.0, %v10700_v30  ;;  %v4506_v10 = vadd.f32 %v10198_v28, %v4274_v7  ;;  %10721 = vpow2.f32 %v9082_v46  ;;  %v9083_v24 = vmul.f32 -1.442695, %v4503_v2  ;;  %v10702_v27 = vpop.eup %10701  ;;  %v16407_v46 = vld [vmem:[#allocation13_spill] sm:$0xff]  ;;  %v16410_v30 = vld [vmem:[#allocation16_spill] sm:$0xff] }
 0x28c   : > { %v4415_v41 = vpop.f32.mrf.mxu0  ;;  %v4625_v17 = vadd.f32 1.0, %v10702_v27  ;;  %v3570_v61 = vadd.f32 %v16407_v46, %v3322_v38  ;;  %v3108_v63 = vadd.f32 %v16408_v54, %v2663_v42  ;;  %v3574_v7 = vadd.f32 %v16409_v23, %v3326_v62  ;;  %v10646_v28 = vld [vmem:[%s16043_s4 + $0x10] sm:$0xff]   ;;  %v16413_v27 = vld [vmem:[#allocation18_spill] sm:$0xff] }
 0x28d   : > { %v13579_v60 = vpop.f32.mrf.mxu1  ;;  %10723 = vrcp.f32 %v4623_v22  ;;  %v4504_v16 = vadd.f32 %v4415_v41, %v4272_v35  ;;  %v9086_v14 = vmul.f32 -1.442695, %v4506_v10  ;;  %v3330_v31 = vadd.f32 %v16410_v30, %v3104_v4  ;;  %v16412_v22 = vld [vmem:[#allocation20_spill] sm:$0xff]  ;;  %10215 = vmatprep.subr.bf16.mxu1 %v10646_v28 }
 0x28e   : > { %v10704_v44 = vpop.eup %10703  ;;  %v10201_v19 = vpop.f32.mrf.mxu0  ;;  %10725 = vpow2.f32 %v9085_v48  ;;  %v3802_v48 = vadd.f32 %v16412_v22, %v3570_v61  ;;  %v4275_v10 = vadd.f32 %v4196_v3, %v13488_v49  ;;  %v3334_v32 = vadd.f32 %v16413_v27, %v3108_v63  ;;  %10216 = vmatpush3.bf16.msra.mxu1 %v10646_v28 }
 0x28f   : > { %v4199_v12 = vpop.f32.mrf.mxu1  ;;  %v4624_v53 = vadd.f32 1.0, %v10704_v44  ;;  %10727 = vpow2.f32 %v9083_v24  ;;  %v4509_v52 = vadd.f32 %v10201_v19, %v4277_v0  ;;  %v9084_v9 = vmul.f32 -1.442695, %v4504_v16  ;;  %v13607_v24 = vpop.permute.xlu0 %4755 }
 0x290   : > { %v13588_v40 = vpop.eup %10705  ;;  %v4428_v15 = vpop.f32.mrf.mxu0  ;;  %v3806_v57 = vadd.f32 %v13496_v25, %v3574_v7  ;;  %v4028_v49 = vadd.f32 %v13493_v33, %v3802_v48  ;;  %v3578_v51 = vadd.f32 %v16416_v47, %v3330_v31  ;;  %v16417_v25 = vld [vmem:[#allocation19_spill] sm:$0xff]  ;;  %v16420_v48 = vld [vmem:[#allocation24_spill] sm:$0xff] }
 0x291   : > { %16405 = vst [vmem:[#allocation45_spill] sm:$0xff] %v13588_v40  ;;  %v13591_v59 = vpop.f32.mrf.mxu1  ;;  %v10708_v13 = vpop.eup %10707  ;;  %10729 = vrcp.f32 %v4624_v53  ;;  %v4845_v35 = vmul.f32 %v13588_v40, %v4752_v58  ;;  %v9089_v29 = vmul.f32 -1.442695, %v4509_v52  ;;  %v4507_v3 = vadd.f32 %v4428_v15, %v4275_v10 }
 0x292   : > { %v10710_v50 = vpop.eup %10709  ;;  %v10202_v2 = vpop.f32.mrf.mxu0  ;;  %10731 = vpow2.f32 %v9086_v14  ;;  %v3582_v42 = vadd.f32 %v16417_v25, %v3334_v32  ;;  %v13623_v0 = vadd.f32 %v13506_v36, %v3806_v57  ;;  %v4626_v16 = vadd.f32 1.0, %v10708_v13 }
 0x293   : > { %v13597_v6 = vpop.f32.mrf.mxu1  ;;  %v13602_v21 = vpop.eup %10711  ;;  %10733 = vrcp.f32 %v4625_v17  ;;  %v4276_v14 = vadd.f32 %v4199_v12, %v4028_v49  ;;  %v13629_v1 = vpack.c.bf16 %v4845_v35, %v4845_v35  ;;  %v4629_v62 = vadd.f32 1.0, %v10710_v50  ;;  %v16418_v17 = vld [vmem:[#allocation21_spill] sm:$0xff] }
 0x294   : > { %16411 = vst [vmem:[#allocation46_spill] sm:$0xff] %v13602_v21  ;;  %v10714_v41 = vpop.eup %10713  ;;  %v4431_v26 = vpop.f32.mrf.mxu0  ;;  %10735 = vpow2.f32 %v9084_v9  ;;  %v4843_v53 = vmul.f32 %v13602_v21, %v13568_v55  ;;  %v4278_v52 = vadd.f32 %v13579_v60, %v16418_v17  ;;  %v3810_v46 = vadd.f32 %v13509_v43, %v3578_v51 }
 0x295   : > { %v13611_v18 = vpop.f32.mrf.mxu1  ;;  %v13613_v4 = vpop.eup %10715  ;;  %v4627_v33 = vadd.f32 1.0, %v10714_v41  ;;  %10737 = vpow2.f32 %v9089_v29  ;;  %v3814_v61 = vadd.f32 %v13522_v8, %v3582_v42  ;;  %v9087_v9 = vmul.f32 -1.442695, %v4507_v3 }
 0x296   : > { %16414 = vst [vmem:[#allocation47_spill] sm:$0xff] %v13613_v4  ;;  %v13616_v58 = vpop.permute.xlu1 %4757  ;;  %v13618_v44 = vpop.eup %10717  ;;  %v4846_v36 = vmul.f32 %v13613_v4, %v4754_v45  ;;  %v4508_v54 = vadd.f32 %v4431_v26, %v4276_v14  ;;  %10739 = vrcp.f32 %v4626_v16  ;;  %v4510_v50 = vadd.f32 %v10202_v2, %v4278_v52  ;;  %v16423_v16 = vld [vmem:[#allocation25_spill] sm:$0xff] }
 0x297   : > { %16415 = vst [vmem:[#allocation28_spill] sm:$0xff] %v13618_v44  ;;  %v13625_v19 = vpop.f32.mrf.mxu1  ;;  %v10205_v56 = vpop.f32.mrf.mxu0  ;;  %v4844_v60 = vmul.f32 %v13618_v44, %v13574_v5  ;;  %v13645_v45 = vadd.f32 %v13519_v11, %v3810_v46  ;;  %10741 = vrcp.f32 %v4627_v33  ;;  %v13647_v43 = vpack.c.bf16 %v4843_v53, %v4843_v53 }
 0x298   : > { %v10720_v38 = vpop.eup %10719  ;;  %v13636_v63 = vpop.permute.xlu0 %4759  ;;  %v4989_v8 = vshrl.u32 %v13629_v1, 16  ;;  %v13653_v28 = vadd.f32 %v13534_v37, %v3814_v61  ;;  %10743 = vrcp.f32 %v4629_v62  ;;  %v13655_v2 = vpack.c.bf16 %v4846_v36, %v4846_v36 }
 0x299   : > { %v4444_v15 = vpop.f32.mrf.mxu0  ;;  %v10722_v13 = vpop.eup %10721  ;;  %v4628_v12 = vadd.f32 1.0, %v10720_v38  ;;  %v4281_v11 = vadd.f32 %v13591_v59, %v16420_v48  ;;  %10745 = vpow2.f32 %v9087_v9  ;;  %v4279_v10 = vadd.f32 %v13597_v6, %v13501_v34  ;;  %v10647_v48 = vld [vmem:[%s16043_s4 + $0x8] sm:$0xff]  }
 0x29a   : > { %v13638_v55 = vpop.f32.mrf.mxu1  ;;  %v13642_v23 = vpop.eup %10723  ;;  %v4630_v5 = vadd.f32 1.0, %v10722_v13  ;;  %v9088_v35 = vmul.f32 -1.442695, %v4508_v54  ;;  %v13665_v37 = vpack.c.bf16 %v4844_v60, %v4844_v60  ;;  %v9090_v32 = vmul.f32 -1.442695, %v4510_v50  ;;  %10217 = vmatprep.subr.bf16.mxu1 %v10647_v48 }
 0x29b   : > { %16419 = vst [vmem:[#allocation9_spill] sm:$0xff] %v13642_v23  ;;  %v10206_v7 = vpop.f32.mrf.mxu0  ;;  %v13650_v30 = vpop.permute.xlu1 %4761  ;;  %10747 = vrcp.f32 %v4628_v12  ;;  %v4847_v57 = vmul.f32 %v13642_v23, %v13607_v24  ;;  %v4972_v26 = vshrl.u32 %v13647_v43, 16  ;;  %v13670_v59 = vrot.slane %v4989_v8, 7  ;;  %10218 = vmatpush3.bf16.msra.mxu1 %v10647_v48 }
 0x29c   : > { %v10726_v31 = vpop.eup %10725  ;;  %v13661_v41 = vpop.f32.mrf.mxu1  ;;  %v4992_v49 = vshll.u32 %v13629_v1, 16  ;;  %10749 = vrcp.f32 %v4630_v5  ;;  %v4997_v51 = vshrl.u32 %v13655_v2, 16  ;;  %v4513_v25 = vadd.f32 %v10205_v56, %v4281_v11 }
 0x29d   : > { %v10728_v22 = vpop.eup %10727  ;;  %v4633_v29 = vadd.f32 1.0, %v10726_v31  ;;  %v13673_v34 = vpop.permute.xlu0 %4763  ;;  %v4975_v24 = vshll.u32 %v13647_v43, 16  ;;  %v4282_v38 = vadd.f32 %v13611_v18, %v16423_v16  ;;  %10751 = vpow2.f32 %v9088_v35 }
 0x29e   : > { %v13663_v27 = vpop.eup %10729  ;;  %v4447_v6 = vpop.f32.mrf.mxu0  ;;  %v4631_v47 = vadd.f32 1.0, %v10728_v22  ;;  %v4980_v17 = vshrl.u32 %v13665_v37, 16  ;;  %10753 = vpow2.f32 %v9090_v32  ;;  %v13688_v56 = vpack.c.bf16 %v4847_v57, %v4847_v57 }
 0x29f   : > { %16421 = vst [vmem:[#allocation22_spill] sm:$0xff] %v13663_v27  ;;  %v10732_v3 = vpop.eup %10731  ;;  %v4848_v33 = vmul.f32 %v13663_v27, %v13616_v58  ;;  %v13683_v53 = vpop.f32.mrf.mxu1  ;;  %v4511_v52 = vadd.f32 %v4444_v15, %v4279_v10  ;;  %10755 = vrcp.f32 %v4633_v29  ;;  %v13690_v13 = vrot.slane %v4972_v26, 7 }
 0x2a0   : > { %v13676_v42 = vpop.eup %10733  ;;  %v13685_v14 = vpop.permute.xlu1 %4765  ;;  %v4634_v36 = vadd.f32 1.0, %v10732_v3  ;;  %v4995_v18 = vrot.slane %v13670_v59, 4  ;;  %10757 = vrcp.f32 %v4631_v47  ;;  %v13693_v58 = vrot.slane %v4997_v51, 7 }
 0x2a1   : > { %16422 = vst [vmem:[#allocation32_spill] sm:$0xff] %v13676_v42  ;;  %v10736_v62 = vpop.eup %10735  ;;  %v10209_v46 = vpop.f32.mrf.mxu0  ;;  %v9093_v61 = vmul.f32 -1.442695, %v4513_v25  ;;  %v9091_v9 = vmul.f32 -1.442695, %v4511_v52  ;;  %v13695_v60 = vpack.c.bf16 %v4848_v33, %v4848_v33  ;;  %v4849_v50 = vmul.f32 %v13676_v42, %v13636_v63 }
 0x2a2   : > { %v10738_v54 = vpop.eup %10737  ;;  %v4632_v12 = vadd.f32 1.0, %v10736_v62  ;;  %v4514_v15 = vadd.f32 %v10206_v7, %v4282_v38  ;;  %v13699_v43 = vpop.f32.mrf.mxu1  ;;  %v13703_v31 = vrot.slane %v4980_v17, 7  ;;  %v5000_v5 = vshll.u32 %v13655_v2, 16 }
 0x2a3   : > { %v13701_v8 = vpop.permute.xlu0 %4767  ;;  %v5006_v22 = vshrl.u32 %v13688_v56, 16  ;;  %10759 = vpow2.f32 %v9091_v9  ;;  %v13710_v11 = vpop.eup %10739  ;;  %v4978_v63 = vrot.slane %v13690_v13, 4  ;;  %v4280_v7 = vadd.f32 %v13625_v19, %v13623_v0 }
 0x2a4   : > { %16424 = vst [vmem:[#allocation33_spill] sm:$0xff] %v13710_v11  ;;  %10761 = vrcp.f32 %v4634_v36  ;;  %v9094_v10 = vmul.f32 -1.442695, %v4514_v15  ;;  %v4460_v35 = vpop.f32.mrf.mxu0  ;;  %v13715_v32 = vpop.permute.xlu1 %4769  ;;  %v4637_v57 = vadd.f32 1.0, %v10738_v54  ;;  %v4983_v29 = vshll.u32 %v13665_v37, 16  ;;  %v16427_v37 = vld [vmem:[#allocation30_spill] sm:$0xff] }
 0x2a5   : > { %v13717_v2 = vpop.eup %10741  ;;  %v13721_v26 = vor.u32 %v5000_v5, %v13693_v58  ;;  %10763 = vpow2.f32 %v9093_v61  ;;  %v5014_v47 = vshrl.u32 %v13695_v60, 16  ;;  %v13726_v0 = vpack.c.bf16 %v4849_v50, %v4849_v50  ;;  %v10175_v51 = vpop.f32.mrf.mxu1 }
 0x2a6   : > { %16425 = vst [vmem:[#allocation8_spill] sm:$0xff] %v13717_v2  ;;  %v13723_v3 = vpop.eup %10743  ;;  %10765 = vrcp.f32 %v4632_v12  ;;  %v4512_v19 = vadd.f32 %v4447_v6, %v4280_v7  ;;  %v4985_v16 = vor.u32 %v4983_v29, %v13703_v31  ;;  %v13729_v38 = vrot.slane %v5006_v22, 7  ;;  %v10210_v61 = vpop.f32.mrf.mxu0 }
 0x2a7   : > { %16426 = vst [vmem:[#allocation23_spill] sm:$0xff] %v13723_v3  ;;  %v10746_v25 = vpop.eup %10745  ;;  %v4285_v33 = vadd.f32 %v13638_v55, %v16427_v37  ;;  %10767 = vpow2.f32 %v9094_v10  ;;  %v4850_v17 = vmul.f32 %v13710_v11, %v13650_v30  ;;  %v4851_v52 = vmul.f32 %v13717_v2, %v13673_v34  ;;  %v13740_v9 = vpop.permute.xlu0 %4771 }
 0x2a8   : > { %v13733_v62 = vpop.eup %10747  ;;  %v9092_v6 = vmul.f32 -1.442695, %v4512_v19  ;;  %v4977_v36 = vor.u32 %v4975_v24, %v13690_v13  ;;  %10769 = vrcp.f32 %v4637_v57  ;;  %v5009_v54 = vshll.u32 %v13688_v56, 16  ;;  %v13751_v24 = vpop.f32.mrf.mxu1 }
 0x2a9   : > { %16428 = vst [vmem:[#allocation35_spill] sm:$0xff] %v13733_v62  ;;  %v4283_v55 = vadd.f32 %v13661_v41, %v13514_v20  ;;  %v4517_v12 = vadd.f32 %v10209_v46, %v4285_v33  ;;  %v13745_v50 = vpop.eup %10749  ;;  %v4635_v15 = vadd.f32 1.0, %v10746_v25  ;;  %v13747_v30 = vrot.slane %v5014_v47, 7  ;;  %v13753_v5 = vpop.permute.xlu1 %4773  ;;  %v10648_v20 = vld [vmem:[%s16043_s4] sm:$0xff]   ;;  %v16431_v25 = vld [vmem:[#allocation38_spill] sm:$0xff] }
 0x2aa   : > { %16429 = vst [vmem:[#allocation36_spill] sm:$0xff] %v13745_v50  ;;  %v5023_v34 = vshrl.u32 %v13726_v0, 16  ;;  %10771 = vpow2.f32 %v9092_v6  ;;  %5243 = vrot.lane.b32.xlu0 %v4977_v36, %s10991_s19  ;;  %v10752_v41 = vpop.eup %10751  ;;  %v5017_v22 = vshll.u32 %v13695_v60, 16  ;;  %v5026_v48 = vshll.u32 %v13726_v0, 16  ;;  %v16430_v47 = vld [vmem:[#allocation31_spill] sm:$0xff]  ;;  %v4463_v33 = vpop.f32.mrf.mxu0  ;;  %10219 = vmatprep.subr.bf16.mxu1 %v10648_v20 }
 0x2ab   : > { %v4852_v7 = vmul.f32 %v13733_v62, %v13685_v14  ;;  %v10754_v10 = vpop.eup %10753  ;;  %v13763_v57 = vpack.c.bf16 %v4850_v17, %v4850_v17  ;;  %v13765_v29 = vpack.c.bf16 %v4851_v52, %v4851_v52  ;;  %v4286_v19 = vadd.f32 %v13683_v53, %v16430_v47  ;;  %10220 = vmatpush3.bf16.msra.mxu1 %v10648_v20  ;;  %v10176_v47 = vpop.f32.mrf.mxu1 }
 0x2ac   : > { %v4289_v37 = vadd.f32 %v10175_v51, %v16431_v25  ;;  %v13770_v6 = vpop.eup %10755  ;;  %v9097_v60 = vmul.f32 -1.442695, %v4517_v12  ;;  %v4853_v36 = vmul.f32 %v13723_v3, %v13701_v8  ;;  %v4515_v46 = vadd.f32 %v4460_v35, %v4283_v55  ;;  %v13784_v12 = vpop.permute.xlu0 %4775 }
 0x2ad   : > { %16432 = vst [vmem:[#allocation27_spill] sm:$0xff] %v13770_v6  ;;  %v4994_v14 = vor.u32 %v4992_v49, %v13670_v59  ;;  %v13777_v17 = vpop.eup %10757  ;;  %10773 = vrcp.f32 %v4635_v15  ;;  %v4636_v53 = vadd.f32 1.0, %v10752_v41  ;;  %v13780_v51 = vor.u32 %v5017_v22, %v13747_v30  ;;  %v13798_v22 = vpop.permute.xlu1 %4777 }
 0x2ae   : > { %16433 = vst [vmem:[#allocation26_spill] sm:$0xff] %v13777_v17  ;;  %v13782_v52 = vrot.slane %v5023_v34, 7  ;;  %v13786_v25 = vpack.c.bf16 %v4852_v7, %v4852_v7  ;;  %v9095_v8 = vmul.f32 -1.442695, %v4515_v46  ;;  %v4986_v49 = vsel %vm11180_vm3, %v4978_v63, %v4985_v16  ;;  %v10213_v46 = vpop.f32.mrf.mxu0 }
 0x2af   : > { %5249 = vrot.lane.b32.xlu0 %v4994_v14, %s10991_s19  ;;  %v4518_v35 = vadd.f32 %v10210_v61, %v4286_v19  ;;  %v4638_v15 = vadd.f32 1.0, %v10754_v10  ;;  %v5031_v20 = vshrl.u32 %v13763_v57, 16  ;;  %v5040_v34 = vshrl.u32 %v13765_v29, 16  ;;  %5245 = vrot.lane.b32.xlu1 %v4986_v49, %s10991_s19 }
 0x2b0   : > { %v10760_v55 = vpop.eup %10759  ;;  %v4284_v41 = vadd.f32 %v13699_v43, %v13645_v45  ;;  %10775 = vpow2.f32 %v9097_v60  ;;  %v13802_v13 = vpack.c.bf16 %v4853_v36, %v4853_v36  ;;  %v13805_v16 = vadd.f32 %v10176_v47, %v13532_v39  ;;  %v4780_v47 = vpop.permute.xlu0 %4779 }
 0x2b1   : > { %v13800_v7 = vpop.eup %10761  ;;  %v9098_v63 = vmul.f32 -1.442695, %v4518_v35  ;;  %v5029_v10 = vrot.slane %v13782_v52, 4  ;;  %v4639_v19 = vadd.f32 1.0, %v10760_v55  ;;  %v5034_v45 = vshll.u32 %v13763_v57, 16 }
 0x2b2   : > { %16435 = vst [vmem:[#allocation29_spill] sm:$0xff] %v13800_v7  ;;  %v10764_v61 = vpop.eup %10763  ;;  %10777 = vpow2.f32 %v9095_v8  ;;  %v5048_v14 = vshrl.u32 %v13786_v25, 16  ;;  %v4854_v60 = vmul.f32 %v13745_v50, %v13715_v32  ;;  %v4516_v36 = vadd.f32 %v4463_v33, %v4284_v41 }
 0x2b3   : > { %v13809_v43 = vpop.eup %10765  ;;  %10779 = vrcp.f32 %v4636_v53  ;;  %v13814_v35 = vrot.slane %v5031_v20, 7  ;;  %v5011_v39 = vor.u32 %v5009_v54, %v13729_v38  ;;  %v5003_v57 = vsel %vm11180_vm3, %v4995_v18, %v13721_v26  ;;  %v4476_v53 = vpop.f32.mrf.mxu0 }
 0x2b4   : > { %16436 = vst [vmem:[#allocation34_spill] sm:$0xff] %v13809_v43  ;;  %v10768_v49 = vpop.eup %10767  ;;  %10781 = vpow2.f32 %v9098_v63  ;;  %v4641_v8 = vadd.f32 1.0, %v10764_v61  ;;  %v13824_v32 = vrot.slane %v5040_v34, 7  ;;  %v5057_v33 = vshrl.u32 %v13802_v13, 16  ;;  %5251 = vrot.lane.b32.xlu1 %v5003_v57, %s10991_s19  ;;  %v13835_v26 = vpop.permute.xlu1 %4781 }
 0x2b5   : > { %10783 = vrcp.f32 %v4638_v15  ;;  %v13828_v55 = vpop.eup %10769  ;;  %v4855_v56 = vmul.f32 %v13777_v17, %v13740_v9  ;;  %v9096_v59 = vmul.f32 -1.442695, %v4516_v36  ;;  %5255 = vrot.lane.b32.xlu0 %v5011_v39, %s10991_s19  ;;  %v13833_v18 = vadd.f32 %v10213_v46, %v4289_v37  ;;  %v4247_v36 = vpop.f32.mrf.mxu1 }
 0x2b6   : > { %16437 = vst [vmem:[#allocation44_spill] sm:$0xff] %v13828_v55  ;;  %10785 = vrcp.f32 %v4639_v19  ;;  %v4642_v15 = vadd.f32 1.0, %v10768_v49  ;;  %v5043_v20 = vshll.u32 %v13765_v29, 16  ;;  %v13838_v34 = vrot.slane %v5048_v14, 7  ;;  %v16438_v19 = vld [vmem:[#allocation41_spill] sm:$0xff]  ;;  %v10214_v37 = vpop.f32.mrf.mxu0  ;;  %v4784_v57 = vpop.permute.xlu0 %4783 }
 0x2b7   : > { %v10772_v54 = vpop.eup %10771  ;;  %v13840_v41 = vpack.c.bf16 %v4854_v60, %v4854_v60  ;;  %v5036_v63 = vor.u32 %v5034_v45, %v13814_v35  ;;  %v4287_v9 = vadd.f32 %v13751_v24, %v16438_v19  ;;  %10787 = vpow2.f32 %v9096_v59 }
 0x2b8   : > { %v4640_v61 = vadd.f32 1.0, %v10772_v54  ;;  %v5046_v46 = vrot.slane %v13824_v32, 4  ;;  %v5051_v39 = vshll.u32 %v13786_v25, 16  ;;  %v5060_v49 = vshll.u32 %v13802_v13, 16 }
 0x2b9   : > { %v4856_v29 = vmul.f32 %v13809_v43, %v13753_v5  ;;  %10789 = vrcp.f32 %v4641_v8  ;;  %v13850_v14 = vrot.slane %v5057_v33, 7  ;;  %v13852_v45 = vpack.c.bf16 %v4855_v56, %v4855_v56  ;;  %v4479_v33 = vpop.f32.mrf.mxu0  ;;  %v4786_v56 = vpop.permute.xlu1 %4785 }
 0x2ba   : > { %v4519_v60 = vadd.f32 %v4476_v53, %v4287_v9  ;;  %v13854_v24 = vpop.eup %10773  ;;  %10791 = vrcp.f32 %v4642_v15  ;;  %v5053_v59 = vor.u32 %v5051_v39, %v13838_v34  ;;  %v5065_v54 = vshrl.u32 %v13840_v41, 16 }
 0x2bb   : > { %16439 = vst [vmem:[#allocation40_spill] sm:$0xff] %v13854_v24  ;;  %v4288_v25 = vadd.f32 %v4247_v36, %v13653_v28  ;;  %10793 = vrcp.f32 %v4640_v61  ;;  %v5028_v5 = vor.u32 %v5026_v48, %v13782_v52  ;;  %v16440_v8 = vrot.slane %v13729_v38, 4 }
 0x2bc   : > { %v9099_v13 = vmul.f32 -1.442695, %v4519_v60  ;;  %v13867_v15 = vpack.c.bf16 %v4856_v29, %v4856_v29  ;;  %v4857_v19 = vmul.f32 %v13770_v6, %v13784_v12  ;;  %v13873_v28 = vadd.f32 %v10214_v37, %v13805_v16 }
 0x2bd   : > { %v5020_v53 = vsel %vm11180_vm3, %v16440_v8, %v13780_v51  ;;  %v4858_v0 = vmul.f32 %v13800_v7, %v13798_v22  ;;  %v10776_v48 = vpop.eup %10775  ;;  %v5063_v38 = vrot.slane %v13850_v14, 4  ;;  %v5074_v51 = vshrl.u32 %v13852_v45, 16  ;;  %5261 = vrot.lane.b32.xlu0 %v5028_v5, %s10991_s19 }
 0x2be   : > { %5257 = vrot.lane.b32.xlu1 %v5020_v53, %s10991_s19  ;;  %10795 = vpow2.f32 %v9099_v13  ;;  %v4859_v61 = vmul.f32 %v13854_v24, %v4780_v47  ;;  %v5068_v12 = vshll.u32 %v13840_v41, 16  ;;  %v5077_v36 = vshll.u32 %v13852_v45, 16  ;;  %v4788_v13 = vpop.permute.xlu0 %4787 }
 0x2bf   : > { %v10778_v9 = vpop.eup %10777  ;;  %v13883_v16 = vpack.c.bf16 %v4858_v0, %v4858_v0  ;;  %v4520_v37 = vadd.f32 %v4479_v33, %v4288_v25  ;;  %v13887_v29 = vrot.slane %v5065_v54, 7  ;;  %v5045_v60 = vor.u32 %v5043_v20, %v13824_v32 }
 0x2c0   : > { %v13885_v39 = vpop.eup %10779  ;;  %v4643_v22 = vadd.f32 1.0, %v10778_v9  ;;  %v5037_v47 = vsel %vm11180_vm3, %v5029_v10, %v5036_v63  ;;  %v4645_v41 = vadd.f32 1.0, %v10776_v48  ;;  %v5082_v45 = vshrl.u32 %v13867_v15, 16  ;;  %v4790_v10 = vpop.permute.xlu1 %4789 }
 0x2c1   : > { %16441 = vst [vmem:[#allocation42_spill] sm:$0xff] %v13885_v39  ;;  %v10782_v5 = vpop.eup %10781  ;;  %v13895_v8 = vpack.c.bf16 %v4857_v19, %v4857_v19  ;;  %v9100_v25 = vmul.f32 -1.442695, %v4520_v37  ;;  %v5076_v54 = vrot.slane %v5074_v51, 7  ;;  %v5099_v20 = vshrl.u32 %v13883_v16, 16  ;;  %5267 = vrot.lane.b32.xlu0 %v5045_v60, %s10991_s19 }
 0x2c2   : > { %5263 = vrot.lane.b32.xlu1 %v5037_v47, %s10991_s19  ;;  %v13898_v53 = vpop.eup %10783  ;;  %10797 = vrcp.f32 %v4643_v22  ;;  %v13901_v52 = vpack.c.bf16 %v4859_v61, %v4859_v61  ;;  %v4646_v33 = vadd.f32 1.0, %v10782_v5  ;;  %v4860_v19 = vmul.f32 %v13885_v39, %v13835_v26 }
 0x2c3   : > { %16442 = vst [vmem:[#allocation43_spill] sm:$0xff] %v13898_v53  ;;  %v13904_v63 = vpop.eup %10785  ;;  %10799 = vpow2.f32 %v9100_v25  ;;  %v4861_v0 = vmul.f32 %v13828_v55, %v4784_v57  ;;  %v5070_v48 = vor.u32 %v5068_v12, %v13887_v29  ;;  %v5085_v51 = vshll.u32 %v13867_v15, 16  ;;  %v4792_v15 = vpop.permute.xlu0 %4791  ;;  %v5450_v55 = vld [vmem:[#allocation2 + $0x78] sm:$0xf] }
 0x2c4   : > { %16443 = vst [vmem:[#allocation37_spill] sm:$0xff] %v13904_v63  ;;  %v5062_v9 = vor.u32 %v5060_v49, %v13850_v14  ;;  %v5054_v61 = vsel %vm11180_vm3, %v5046_v46, %v5053_v59  ;;  %v10788_v37 = vpop.eup %10787  ;;  %10801 = vrcp.f32 %v4645_v41  ;;  %v13916_v22 = vrot.slane %v5082_v45, 7 }
 0x2c5   : > { %v5091_v60 = vshrl.u32 %v13895_v8, 16  ;;  %v9515_v26 = vpack.c.bf16 %v4860_v19, %v4860_v19  ;;  %v4644_v57 = vadd.f32 1.0, %v10788_v37  ;;  %v5108_v12 = vshrl.u32 %v13901_v52, 16  ;;  %v4794_v19 = vpop.permute.xlu1 %4793 }
 0x2c6   : > { %5269 = vrot.lane.b32.xlu1 %v5054_v61, %s10991_s19  ;;  %5273 = vrot.lane.b32.xlu0 %v5062_v9, %s10991_s19  ;;  %v4862_v49 = vmul.f32 %v13898_v53, %v4786_v56  ;;  %v4863_v32 = vmul.f32 %v13904_v63, %v4788_v13  ;;  %v13924_v46 = vpop.eup %10789  ;;  %10803 = vrcp.f32 %v4646_v33  ;;  %v13926_v59 = vrot.slane %v5099_v20, 7 }
 0x2c7   : > { %16444 = vst [vmem:[#allocation14_spill] sm:$0xff] %v13924_v46  ;;  %v5116_v47 = vshrl.u32 %v9515_v26, 16  ;;  %v13928_v5 = vpack.c.bf16 %v4861_v0, %v4861_v0  ;;  %v13930_v41 = vpop.eup %10791  ;;  %10805 = vrcp.f32 %v4644_v57  ;;  %v5079_v25 = vor.u32 %v5077_v36, %v5076_v54 }
 0x2c8   : > { %16445 = vst [vmem:[#allocation13_spill] sm:$0xff] %v13930_v41  ;;  %v13932_v45 = vpack.c.bf16 %v4862_v49, %v4862_v49  ;;  %v13934_v9 = vpop.eup %10793  ;;  %v5087_v56 = vor.u32 %v5085_v51, %v13916_v22  ;;  %v5093_v13 = vrot.slane %v5091_v60, 7  ;;  %v5102_v61 = vshll.u32 %v13883_v16, 16 }
 0x2c9   : > { %16446 = vst [vmem:[#allocation39_spill] sm:$0xff] %v13934_v9  ;;  %v5071_v20 = vsel %vm11180_vm3, %v5063_v38, %v5070_v48  ;;  %v5080_v33 = vrot.slane %v5076_v54, 4  ;;  %v5094_v0 = vshll.u32 %v13895_v8, 16  ;;  %v13943_v37 = vpack.c.bf16 %v4863_v32, %v4863_v32  ;;  %v4796_v54 = vpop.permute.xlu0 %4795 }
 0x2ca   : > { %5279 = vrot.lane.b32.xlu0 %v5079_v25, %s10991_s19  ;;  %5275 = vrot.lane.b32.xlu1 %v5071_v20, %s10991_s19  ;;  %v5104_v51 = vor.u32 %v5102_v61, %v13926_v59  ;;  %v5110_v60 = vrot.slane %v5108_v12, 7  ;;  %v13948_v57 = vrot.slane %v5116_v47, 7  ;;  %v5125_v14 = vshrl.u32 %v13928_v5, 16 }
 0x2cb   : > { %v10796_v36 = vpop.eup %10795  ;;  %v5119_v49 = vshll.u32 %v9515_v26, 16  ;;  %v5133_v38 = vshrl.u32 %v13932_v45, 16  ;;  %v4864_v8 = vmul.f32 %v13934_v9, %v4790_v10  ;;  %v4865_v48 = vmul.f32 %v13924_v46, %v4792_v15  ;;  %v4798_v26 = vpop.permute.xlu1 %4797 }
 0x2cc   : > { %v4647_v16 = vadd.f32 1.0, %v10796_v36  ;;  %v5096_v32 = vor.u32 %v5094_v0, %v5093_v13  ;;  %v5088_v25 = vsel %vm11180_vm3, %v5080_v33, %v5087_v56  ;;  %v4866_v61 = vmul.f32 %v13930_v41, %v4794_v19 }
 0x2cd   : > { %v5111_v12 = vshll.u32 %v13901_v52, 16  ;;  %v5142_v47 = vshrl.u32 %v13943_v37, 16  ;;  %v5097_v10 = vrot.slane %v5093_v13, 4  ;;  %v5121_v36 = vor.u32 %v5119_v49, %v13948_v57 }
 0x2ce   : > { %10807 = vrcp.f32 %v4647_v16  ;;  %5281 = vrot.lane.b32.xlu1 %v5088_v25, %s10991_s19  ;;  %v5127_v15 = vrot.slane %v5125_v14, 7  ;;  %v9519_v0 = vpack.c.bf16 %v4864_v8, %v4864_v8  ;;  %5285 = vrot.lane.b32.xlu0 %v5096_v32, %s10991_s19  ;;  %v13964_v33 = vpack.c.bf16 %v4865_v48, %v4865_v48  ;;  %v4800_v48 = vpop.permute.xlu0 %4799 }
 0x2cf   : > { %v13960_v20 = vpop.eup %10797  ;;  %v13966_v19 = vpack.c.bf16 %v4866_v61, %v4866_v61  ;;  %v5113_v16 = vor.u32 %v5111_v12, %v5110_v60  ;;  %v13969_v25 = vrot.slane %v5133_v38, 7  ;;  %v5105_v13 = vsel %vm11180_vm3, %v5097_v10, %v5104_v51  ;;  %v10659_v51 = vld [vmem:[%s16043_s4 + $0x28] sm:$0xff]  }
 0x2d0   : > { %16447 = vst [vmem:[#allocation15_spill] sm:$0xff] %v13960_v20  ;;  %v10800_v56 = vpop.eup %10799  ;;  %v4867_v52 = vmul.f32 %v13960_v20, %v4796_v54  ;;  %v5150_v41 = vshrl.u32 %v9519_v0, 16  ;;  %v5114_v14 = vrot.slane %v5110_v60, 4  ;;  %v5128_v8 = vshll.u32 %v13928_v5, 16  ;;  %v13997_v20 = vld [vmem:[#allocation2 + $0x4] sm:$0xf]  ;;  %10253 = vmatprep.subr.bf16.mxu0 %v10659_v51 }
 0x2d1   : > { %v4648_v9 = vadd.f32 1.0, %v10800_v56  ;;  %v13973_v49 = vpop.eup %10801  ;;  %v5144_v32 = vrot.slane %v5142_v47, 7  ;;  %v5136_v54 = vshll.u32 %v13932_v45, 16  ;;  %v5145_v5 = vshll.u32 %v13943_v37, 16  ;;  %10254 = vmatpush3.bf16.msra.mxu0 %v10659_v51 }
 0x2d2   : > { %16448 = vst [vmem:[#allocation16_spill] sm:$0xff] %v13973_v49  ;;  %5287 = vrot.lane.b32.xlu1 %v5105_v13, %s10991_s19  ;;  %v13978_v61 = vrot.slane %v5150_v41, 7  ;;  %v9522_v38 = vpack.c.bf16 %v4867_v52, %v4867_v52  ;;  %5291 = vrot.lane.b32.xlu0 %v5113_v16, %s10991_s19  ;;  %v5159_v60 = vshrl.u32 %v13964_v33, 16  ;;  %v5167_v47 = vshrl.u32 %v13966_v19, 16  ;;  %v4802_v41 = vpop.permute.xlu1 %4801  ;;  %v13995_v13 = vld [vmem:[#allocation2] sm:$0xf] }
 0x2d3   : > { %10809 = vrcp.f32 %v4648_v9  ;;  %v13984_v12 = vpop.eup %10803  ;;  %v5122_v45 = vsel %vm11180_vm3, %v5114_v14, %v5121_v36  ;;  %v5138_v10 = vor.u32 %v5136_v54, %v13969_v25  ;;  %v5153_v56 = vshll.u32 %v9519_v0, 16 }
 0x2d4   : > { %16449 = vst [vmem:[#allocation20_spill] sm:$0xff] %v13984_v12  ;;  %v13991_v9 = vpop.eup %10805  ;;  %v4869_v52 = vmul.f32 %v13973_v49, %v4800_v48  ;;  %v5130_v16 = vor.u32 %v5128_v8, %v5127_v15  ;;  %v5131_v37 = vrot.slane %v5127_v15, 4  ;;  %v5147_v63 = vor.u32 %v5145_v5, %v5144_v32  ;;  %v14007_v8 = vld [vmem:[%s16043_s4 + $0x40] sm:$0xff]  }
 0x2d5   : > { %16450 = vst [vmem:[#allocation18_spill] sm:$0xff] %v13991_v9  ;;  %v5155_v36 = vor.u32 %v5153_v56, %v13978_v61  ;;  %v5176_v14 = vshrl.u32 %v9522_v38, 16  ;;  %v4868_v46 = vmul.f32 %v13991_v9, %v4798_v26  ;;  %v4870_v0 = vmul.f32 %v13984_v12, %v4802_v41  ;;  %v4804_v56 = vpop.permute.xlu0 %4803  ;;  %10291 = vmatprep.subr.bf16.mxu1 %v14007_v8 }
 0x2d6   : > { %5293 = vrot.lane.b32.xlu1 %v5122_v45, %s10991_s19  ;;  %5297 = vrot.lane.b32.xlu0 %v5130_v16, %s10991_s19  ;;  %v5161_v48 = vrot.slane %v5159_v60, 7  ;;  %v14009_v15 = vrot.slane %v5167_v47, 7  ;;  %v9136_v54 = vcombine.low %v13995_v13, %v13997_v20  ;;  %v5148_v51 = vrot.slane %v5144_v32, 4 }
 0x2d7   : > { %v9523_v5 = vpack.c.bf16 %v4868_v46, %v4868_v46  ;;  %v9524_v45 = vpack.c.bf16 %v4869_v52, %v4869_v52  ;;  %v5139_v26 = vsel %vm11180_vm3, %v5131_v37, %v5138_v10  ;;  %v5162_v41 = vshll.u32 %v13964_v33, 16 }
 0x2d8   : > { %v5170_v16 = vshll.u32 %v13966_v19, 16  ;;  %v9525_v9 = vpack.c.bf16 %v4870_v0, %v4870_v0  ;;  %10221 = vmatprep.mubr.msk.bf16.mxu1 %vm1723_vm7, %v9136_v54  ;;  %v5178_v32 = vrot.slane %v5176_v14, 7  ;;  %v5156_v47 = vsel %vm11180_vm3, %v5148_v51, %v5155_v36  ;;  %v4806_v14 = vpop.permute.xlu1 %4805 }
 0x2d9   : > { %v5184_v46 = vshrl.u32 %v9523_v5, 16  ;;  %v5164_v10 = vor.u32 %v5162_v41, %v5161_v48  ;;  %v5179_v33 = vshll.u32 %v9522_v38, 16  ;;  %v5187_v0 = vshll.u32 %v9523_v5, 16 }
 0x2da   : > { %5299 = vrot.lane.b32.xlu1 %v5139_v26, %s10991_s19  ;;  %5303 = vrot.lane.b32.xlu0 %v5147_v63, %s10991_s19  ;;  %v5172_v52 = vor.u32 %v5170_v16, %v14009_v15  ;;  %v5193_v26 = vshrl.u32 %v9524_v45, 16  ;;  %v5201_v54 = vshrl.u32 %v9525_v9, 16  ;;  %v5165_v12 = vrot.slane %v5161_v48, 4 }
 0x2db   : > { %v14020_v60 = vpop.eup %10807  ;;  %v14027_v37 = vrot.slane %v5184_v46, 7  ;;  %v5181_v63 = vor.u32 %v5179_v33, %v5178_v32  ;;  %v5196_v16 = vshll.u32 %v9524_v45, 16  ;;  %v5204_v46 = vshll.u32 %v9525_v9, 16 }
 0x2dc   : > { %16451 = vst [vmem:[#allocation17_spill] sm:$0xff] %v14020_v60  ;;  %v4871_v19 = vmul.f32 %v14020_v60, %v4804_v56  ;;  %v5173_v51 = vsel %vm11180_vm3, %v5165_v12, %v5172_v52  ;;  %v5182_v56 = vrot.slane %v5178_v32, 4  ;;  %v5195_v5 = vrot.slane %v5193_v26, 7 }
 0x2dd   : > { %v5189_v39 = vor.u32 %v5187_v0, %v14027_v37  ;;  %v14036_v41 = vrot.slane %v5201_v54, 7 }
 0x2de   : > { %v9526_v49 = vpack.c.bf16 %v4871_v19, %v4871_v19  ;;  %5305 = vrot.lane.b32.xlu1 %v5156_v47, %s10991_s19  ;;  %5309 = vrot.lane.b32.xlu0 %v5164_v10, %s10991_s19  ;;  %v5198_v19 = vor.u32 %v5196_v16, %v5195_v5  ;;  %v5199_v0 = vrot.slane %v5195_v5, 4  ;;  %v5926_v5 = vshrl.u32 %v13997_v20, 16  ;;  %v5501_v16 = vld [vmem:[#allocation2 + $0x8] sm:$0x1] }
 0x2df   : > { %v5190_v33 = vsel %vm11180_vm3, %v5182_v56, %v5189_v39  ;;  %v5206_v12 = vor.u32 %v5204_v46, %v14036_v41 }
 0x2e0   : > { %v14032_v36 = vpop.eup %10809  ;;  %v5210_v38 = vshrl.u32 %v9526_v49, 16  ;;  %v5213_v32 = vshll.u32 %v9526_v49, 16  ;;  %v5913_v49 = vshrl.u32 %v13995_v13, 16 }
 0x2e1   : > { %16452 = vst [vmem:[#allocation19_spill] sm:$0xff] %v14032_v36  ;;  %v4872_v48 = vmul.f32 %v14032_v36, %v4806_v14  ;;  %v5207_v14 = vsel %vm11180_vm3, %v5199_v0, %v5206_v12  ;;  %v5021_v12 = vrot.slane %v13747_v30, 4  ;;  %v5055_v30 = vrot.slane %v13838_v34, 4 }
 0x2e2   : > { %5311 = vrot.lane.b32.xlu1 %v5173_v51, %s10991_s19  ;;  %v5212_v47 = vrot.slane %v5210_v38, 7  ;;  %5315 = vrot.lane.b32.xlu0 %v5181_v63, %s10991_s19  ;;  %v5916_v63 = vshll.u32 %v13995_v13, 16  ;;  %v10666_v38 = vld [vmem:[%s16043_s4 + $0x20] sm:$0xff]   ;;  %v4987_v51 = vrot.slane %v13703_v31, 4  ;;  %v5915_v46 = vrot.slane %v5913_v49, 4 }
 0x2e3   : > { %v9527_v10 = vpack.c.bf16 %v4872_v48, %v4872_v48  ;;  %10255 = vmatprep.subr.bf16.mxu0 %v10666_v38  ;;  %v10669_v48 = vld [vmem:[%s16043_s4 + $0x18] sm:$0xff]   ;;  %v5004_v31 = vrot.slane %v13693_v58, 4  ;;  %v6631_v58 = vrot.slane %v5501_v16, 5 }
 0x2e4   : > { %v5215_v26 = vor.u32 %v5213_v32, %v5212_v47  ;;  %v5216_v39 = vrot.slane %v5212_v47, 4  ;;  %10256 = vmatpush3.bf16.msra.mxu0 %v10666_v38  ;;  %v5918_v47 = vrot.slane %v5916_v63, 5 }
 0x2e5   : > { %v5218_v52 = vshrl.u32 %v9527_v10, 16  ;;  %v5221_v54 = vshll.u32 %v9527_v10, 16  ;;  %v5922_v10 = vshll.u32 %v13997_v20, 16  ;;  %10257 = vmatprep.subr.bf16.mxu0 %v10669_v48 }
 0x2e6   : > { %5317 = vrot.lane.b32.xlu1 %v5190_v33, %s10991_s19  ;;  %5321 = vrot.lane.b32.xlu0 %v5198_v19, %s10991_s19  ;;  %v5928_v33 = vrot.slane %v5926_v5, 4  ;;  %v5932_v19 = vshll.u32 %v5501_v16, 16  ;;  %v5919_v32 = vor.u32 %v5918_v47, %v5915_v46  ;;  %v5106_v46 = vrot.slane %v13926_v59, 4  ;;  %v10893_v59 = vld [vmem:[%s11301_s11 + $0xf0] sm:$0xff] }
 0x2e7   : > { %v14045_v45 = vrot.slane %v5218_v52, 7  ;;  %v5924_v52 = vrot.slane %v5922_v10, 5  ;;  %v5140_v47 = vrot.slane %v13969_v25, 4  ;;  %v5191_v10 = vrot.slane %v14027_v37, 4  ;;  %v5387_v37 = vld [vmem:[#allocation2 + $0xc] sm:$0xf] }
 0x2e8   : > { %10258 = vmatpush3.bf16.msra.mxu0 %v10669_v48  ;;  %v5920_v0 = vrot.slane %v5919_v32, 4  ;;  %v5089_v48 = vrot.slane %v13916_v22, 4  ;;  %v5157_v22 = vrot.slane %v13978_v61, 4  ;;  %v5208_v25 = vrot.slane %v14036_v41, 4  ;;  %v5394_v41 = vld [vmem:[#allocation2 + $0x18] sm:$0xf] }
 0x2e9   : > { %v5223_v9 = vor.u32 %v5221_v54, %v14045_v45  ;;  %v6628_v54 = vrot.slane %v13997_v20, 5  ;;  %v5072_v20 = vrot.slane %v13887_v29, 4  ;;  %v5123_v29 = vrot.slane %v13948_v57, 4  ;;  %v10894_v57 = vld [vmem:[%s11301_s11 + $0xf8] sm:$0xff] }
 0x2ea   : > { %5323 = vrot.lane.b32.xlu1 %v5207_v14, %s10991_s19  ;;  %5327 = vrot.lane.b32.xlu0 %v5215_v26, %s10991_s19  ;;  %v9218_v26 = vrot.slane %v13995_v13, 9  ;;  %v5929_v14 = vor.u32 %v5928_v33, %v5924_v52  ;;  %v5225_v61 = vrot.slane %v14045_v45, 4 }
 0x2eb   : > { %v5224_v56 = vsel %vm11180_vm3, %v5216_v39, %v5223_v9  ;;  %v5038_v9 = vrot.slane %v13814_v35, 4  ;;  %v5934_v39 = vrot.slane %v5932_v19, 5  ;;  %v6630_v38 = vrot.slane %v6628_v54, 4 }
 0x2ec   : > { %v14078_v63 = vsel %vm11827_vm0, %v9218_v26, %v6628_v54  ;;  %v5930_v13 = vrot.slane %v5929_v14, 4  ;;  %v5401_v26 = vld [vmem:[#allocation2 + $0x24] sm:$0xf] }
 0x2ed   : > { %v14086_v35 = vsel %vm11827_vm0, %v6630_v38, %v6631_v58  ;;  %v9101_v38 = vmul.f32 -1.442695, %v13833_v18 }
 0x2ee   : > { %5247 = vrot.lane.b32.xlu1 %v4987_v51, %s10991_s19  ;;  %5329 = vrot.lane.b32.xlu0 %v5224_v56, %s10991_s19  ;;  %v5925_v56 = vsel %vm11812_vm15, %v5920_v0, %v5924_v52  ;;  %v5935_v34 = vsel %vm11812_vm15, %v5930_v13, %v5934_v39 }
 0x2ef   : > { %v9177_v16 = vcombine.low %v5925_v56, %v5935_v34  ;;  %10811 = vpow2.f32 %v9101_v38 }
 0x2f1   : > { %10259 = vmatprep.mubr.msk.bf16.mxu0 %vm1723_vm7, %v9177_v16 }
 0x2f2   : > { %5253 = vrot.lane.b32.xlu1 %v5004_v31, %s10991_s19  ;;  %5259 = vrot.lane.b32.xlu0 %v5021_v12, %s10991_s19  ;;  %v5174_v31 = vrot.slane %v14009_v15, 4  ;;  %v14120_v15 = vld [vmem:[%s16043_s4 + $0x58] sm:$0xff]  }
 0x2f3   : > { %10329 = vmatprep.subr.bf16.mxu0 %v14120_v15 }
 0x2f6   : > { %5265 = vrot.lane.b32.xlu1 %v5038_v9, %s10991_s19  ;;  %5271 = vrot.lane.b32.xlu0 %v5055_v30, %s10991_s19  ;;  %v10668_v30 = vld [vmem:[%s16043_s4 + $0x38] sm:$0xff]  }
 0x2fa   : > { %5277 = vrot.lane.b32.xlu1 %v5072_v20, %s10991_s19  ;;  %5283 = vrot.lane.b32.xlu0 %v5089_v48, %s10991_s19  ;;  %v9102_v20 = vmul.f32 -1.442695, %v13873_v28  ;;  %v5408_v28 = vld [vmem:[#allocation2 + $0x30] sm:$0xf] }
 0x2fc   : > { %10813 = vpow2.f32 %v9102_v20  ;;  %v5429_v20 = vld [vmem:[#allocation2 + $0x54] sm:$0xf] }
 0x2fe   : > { %5289 = vrot.lane.b32.xlu1 %v5106_v46, %s10991_s19  ;;  %5295 = vrot.lane.b32.xlu0 %v5123_v29, %s10991_s19  ;;  %v10670_v46 = vld [vmem:[%s16043_s4 + $0x30] sm:$0xff]  }
 0x302   : > { %5301 = vrot.lane.b32.xlu1 %v5140_v47, %s10991_s19  ;;  %5307 = vrot.lane.b32.xlu0 %v5157_v22, %s10991_s19 }
 0x306   : > { %5313 = vrot.lane.b32.xlu1 %v5174_v31, %s10991_s19  ;;  %5319 = vrot.lane.b32.xlu0 %v5191_v10, %s10991_s19  ;;  %v14170_v31 = vld [vmem:[%s16043_s4 + $0x70] sm:$0xff]   ;;  %v5415_v10 = vld [vmem:[#allocation2 + $0x3c] sm:$0xf] }
 0x30a   : > { %4807 = vrot.lane.b32.xlu1 %v10893_v59, %s10990_s16  ;;  %4809 = vrot.lane.b32.xlu0 %v10894_v57, %s10990_s16  ;;  %s15793_s16 = sshll.u32 %s257_s18, 8 }
 0x30b   : > { %s15813_s20 = scalar_lea.vmem [#allocation3], %s15793_s16 }
 0x30c   : > { %s8632_s26 = sshll.u32 %s15813_s20, 4  ;;  %s15993_s26 = int_to_ptr.vmem [resolvable:$true] %s8632_s26 }
 0x30d   : > { %p10934_p0 = scmp.lt.s32.totalorder %s15993_s26, %s10932_s9 }
 0x30e   : > { %5325 = vrot.lane.b32.xlu1 %v5208_v25, %s10991_s19  ;;  %5331 = vrot.lane.b32.xlu0 %v5225_v61, %s10991_s19 }
 0x31c   : > { %v5244_v33 = vpop.permute.xlu0 %5243 }
 0x31d   : > { %v5388_v12 = vsel %vm11366_vm6, %v5244_v33, %v5387_v37 }
 0x31e   : > { %5389 = vst [vmem:[#allocation2 + $0xc] sm:$0xf] %v5388_v12 }
 0x321   : > { %v5250_v32 = vpop.permute.xlu0 %5249  ;;  %v5246_v52 = vpop.permute.xlu1 %5245 }
 0x322   : > { %v5395_v45 = vsel %vm11366_vm6, %v5250_v32, %v5394_v41  ;;  %5390 = vst.msk [vmem:[#allocation2 + $0x10] sm:$0xf] %vm811_vm4, %v5246_v52  ;;  %v5422_v41 = vld [vmem:[#allocation2 + $0x48] sm:$0xf] }
 0x323   : > { %5396 = vst [vmem:[#allocation2 + $0x18] sm:$0xf] %v5395_v45 }
 0x325   : > { %v5502_v9 = vld [vmem:[#allocation2 + $0xc] sm:$0xf] }
 0x326   : > { %v5252_v0 = vpop.permute.xlu1 %5251  ;;  %v9219_v56 = vrot.slane %v5502_v9, 9  ;;  %v5937_v25 = vshrl.u32 %v5502_v9, 16  ;;  %v5940_v61 = vshll.u32 %v5502_v9, 16 }
 0x327   : > { %v5256_v54 = vpop.permute.xlu0 %5255  ;;  %5397 = vst.msk [vmem:[#allocation2 + $0x1c] sm:$0xf] %vm811_vm4, %v5252_v0 }
 0x328   : > { %v5402_v58 = vsel %vm11366_vm6, %v5256_v54, %v5401_v26  ;;  %v5939_v54 = vrot.slane %v5937_v25, 4 }
 0x329   : > { %5403 = vst [vmem:[#allocation2 + $0x24] sm:$0xf] %v5402_v58  ;;  %v14131_v14 = vld [vmem:[#allocation2 + $0x10] sm:$0xf]  ;;  %v5942_v58 = vrot.slane %v5940_v61, 5 }
 0x32a   : > { %v14134_v39 = vcombine.low %v5502_v9, %v14131_v14  ;;  %v16124_v13 = vrot.slane %v14131_v14, 5  ;;  %v14151_v16 = vld [vmem:[#allocation2 + $0x18] sm:$0xf]  ;;  %v5950_v9 = vshrl.u32 %v14131_v14, 16 }
 0x32b   : > { %v5961_v0 = vshrl.u32 %v14151_v16, 16  ;;  %v5964_v26 = vshll.u32 %v14151_v16, 16 }
 0x32c   : > { %16456 = vst [vmem:[#allocation21_spill] sm:$0xff] %v14134_v39  ;;  %10222 = vmatmul.mubr.msk.bf16.vlgmr.msra.gmra.mxu1 %vm1723_vm7, %v14134_v39  ;;  %v14149_v34 = vsel %vm11827_vm0, %v9219_v56, %v16124_v13  ;;  %v5946_v56 = vshll.u32 %v14131_v14, 16 }
 0x32d   : > { %10292 = vmatpush3.bf16.msra.mxu1 %v14007_v8 }
 0x32e   : > { %v14153_v18 = vld [vmem:[#allocation2 + $0x1c] sm:$0xf]  ;;  %10293 = vmatprep.subr.bf16.mxu1 %v10668_v30 }
 0x32f   : > { %v5262_v29 = vpop.permute.xlu0 %5261  ;;  %v14161_v8 = vcombine.low %v14151_v16, %v14153_v18  ;;  %v6642_v60 = vrot.slane %v14153_v18, 5 }
 0x330   : > { %v5258_v48 = vpop.permute.xlu1 %5257  ;;  %v5409_v47 = vsel %vm11366_vm6, %v5262_v29, %v5408_v28  ;;  %v14175_v33 = vld [vmem:[#allocation2 + $0x24] sm:$0xf]  ;;  %v10812_v29 = vpop.eup %10811 }
 0x331   : > { %5404 = vst.msk [vmem:[#allocation2 + $0x28] sm:$0xf] %vm811_vm4, %v5258_v48  ;;  %16457 = vst [vmem:[#allocation24_spill] sm:$0xff] %v14161_v8  ;;  %10225 = vmatprep.mubr.msk.bf16.mxu1 %vm1723_vm7, %v14161_v8  ;;  %10294 = vmatpush3.bf16.msra.mxu1 %v10668_v30 }
 0x332   : > { %5410 = vst [vmem:[#allocation2 + $0x30] sm:$0xf] %v5409_v47  ;;  %10295 = vmatprep.subr.bf16.mxu1 %v10670_v46  ;;  %v5974_v47 = vshrl.u32 %v14153_v18, 16 }
 0x333   : > { %v5268_v59 = vpop.permute.xlu0 %5267 }
 0x334   : > { %v5264_v22 = vpop.permute.xlu1 %5263  ;;  %v5416_v57 = vsel %vm11366_vm6, %v5268_v59, %v5415_v10  ;;  %v5970_v10 = vshll.u32 %v14153_v18, 16  ;;  %v5963_v59 = vrot.slane %v5961_v0, 4  ;;  %v5988_v0 = vshll.u32 %v14175_v33, 16 }
 0x335   : > { %5411 = vst.msk [vmem:[#allocation2 + $0x34] sm:$0xf] %vm811_vm4, %v5264_v22  ;;  %5417 = vst [vmem:[#allocation2 + $0x3c] sm:$0xf] %v5416_v57  ;;  %10296 = vmatpush3.bf16.msra.mxu1 %v10670_v46  ;;  %v5966_v57 = vrot.slane %v5964_v26, 5 }
 0x336   : > { %10367 = vmatprep.subr.bf16.mxu1 %v14170_v31  ;;  %v5436_v26 = vld [vmem:[#allocation2 + $0x60] sm:$0xf]  ;;  %v14221_v13 = vrot.slane %v5970_v10, 5 }
 0x338   : > { %v5270_v37 = vpop.permute.xlu1 %5269  ;;  %v14177_v12 = vld [vmem:[#allocation2 + $0x28] sm:$0xf]  ;;  %v5274_v32 = vpop.permute.xlu0 %5273 }
 0x339   : > { %5418 = vst.msk [vmem:[#allocation2 + $0x40] sm:$0xf] %vm811_vm4, %v5270_v37  ;;  %v14183_v45 = vcombine.low %v14175_v33, %v14177_v12  ;;  %v5423_v52 = vsel %vm11366_vm6, %v5274_v32, %v5422_v41  ;;  %v14192_v30 = vld [vmem:[#allocation2 + $0x30] sm:$0xf]  ;;  %v5943_v37 = vor.u32 %v5942_v58, %v5939_v54  ;;  %v14212_v41 = vrot.slane %v5946_v56, 5 }
 0x33a   : > { %5424 = vst [vmem:[#allocation2 + $0x48] sm:$0xf] %v5423_v52  ;;  %v5952_v32 = vrot.slane %v5950_v9, 4  ;;  %v10814_v52 = vpop.eup %10813  ;;  %v5976_v54 = vrot.slane %v5974_v47, 4  ;;  %v5967_v9 = vor.u32 %v5966_v57, %v5963_v59  ;;  %v9220_v59 = vrot.slane %v14151_v16, 9 }
 0x33b   : > { %16458 = vst [vmem:[#allocation25_spill] sm:$0xff] %v14183_v45  ;;  %10226 = vmatmul.mubr.msk.bf16.gmra.mxu1 %vm1723_vm7, %v14183_v45  ;;  %v4650_v56 = vadd.f32 1.0, %v10814_v52  ;;  %v5443_v57 = vld [vmem:[#allocation2 + $0x6c] sm:$0xf]  ;;  %v5994_v16 = vshll.u32 %v14177_v12, 16  ;;  %v6009_v53 = vshrl.u32 %v14192_v30, 16 }
 0x33c   : > { %v14194_v38 = vld [vmem:[#allocation2 + $0x34] sm:$0xf]  ;;  %v5280_v48 = vpop.permute.xlu0 %5279  ;;  %v5276_v46 = vpop.permute.xlu1 %5275  ;;  %v14208_v25 = vld [vmem:[#allocation2 + $0x3c] sm:$0xf]  ;;  %v5953_v36 = vor.u32 %v5952_v32, %v14212_v41  ;;  %v5977_v18 = vor.u32 %v5976_v54, %v14221_v13  ;;  %v6649_v50 = vrot.slane %v14177_v12, 5 }
 0x33d   : > { %v14199_v28 = vcombine.low %v14192_v30, %v14194_v38  ;;  %v5430_v22 = vsel %vm11366_vm6, %v5280_v48, %v5429_v20  ;;  %5425 = vst.msk [vmem:[#allocation2 + $0x4c] sm:$0xf] %vm811_vm4, %v5276_v46  ;;  %v4649_v20 = vadd.f32 1.0, %v10812_v29  ;;  %v14227_v29 = vrot.slane %v5943_v37, 4  ;;  %v5471_v45 = vld [vmem:[#allocation2 + $0x9c] sm:$0xf] }
 0x33e   : > { %5431 = vst [vmem:[#allocation2 + $0x54] sm:$0xf] %v5430_v22  ;;  %v5985_v22 = vshrl.u32 %v14175_v33, 16  ;;  %v14256_v54 = vrot.slane %v5953_v36, 4  ;;  %v6018_v24 = vshll.u32 %v14194_v38, 16  ;;  %v14276_v6 = vrot.slane %v5994_v16, 5 }
 0x33f   : > { %16459 = vst [vmem:[#allocation30_spill] sm:$0xff] %v14199_v28  ;;  %10229 = vmatprep.mubr.msk.bf16.mxu1 %vm1723_vm7, %v14199_v28  ;;  %10815 = vrcp.f32 %v4649_v20  ;;  %v5990_v20 = vrot.slane %v5988_v0, 5  ;;  %v6022_v0 = vshrl.u32 %v14194_v38, 16  ;;  %v6033_v2 = vshrl.u32 %v14208_v25, 16  ;;  %v5457_v16 = vld [vmem:[#allocation2 + $0x84] sm:$0xf] }
 0x340   : > { %v14210_v61 = vld [vmem:[#allocation2 + $0x40] sm:$0xf]  ;;  %v5282_v48 = vpop.permute.xlu1 %5281  ;;  %v5286_v5 = vpop.permute.xlu0 %5285  ;;  %v5987_v32 = vrot.slane %v5985_v22, 4  ;;  %v14258_v22 = vrot.slane %v6642_v60, 4  ;;  %10817 = vrcp.f32 %v4650_v56  ;;  %16464 = vst [vmem:[#allocation12_spill] sm:$0xff] %v14276_v6  ;;  %v6656_v23 = vrot.slane %v14194_v38, 5 }
 0x341   : > { %v14216_v46 = vcombine.low %v14208_v25, %v14210_v61  ;;  %5432 = vst.msk [vmem:[#allocation2 + $0x58] sm:$0xf] %vm811_vm4, %v5282_v48  ;;  %v5437_v58 = vsel %vm11366_vm6, %v5286_v5, %v5436_v26  ;;  %v14231_v10 = vld [vmem:[#allocation2 + $0x48] sm:$0xf]  ;;  %v16461_v5 = vrot.slane %v14131_v14, 5  ;;  %v6046_v11 = vshrl.u32 %v14210_v61, 16 }
 0x342   : > { %5438 = vst [vmem:[#allocation2 + $0x60] sm:$0xf] %v5437_v58  ;;  %v5998_v58 = vshrl.u32 %v14177_v12, 16  ;;  %v5991_v56 = vor.u32 %v5990_v20, %v5987_v32  ;;  %v6024_v12 = vrot.slane %v6022_v0, 4  ;;  %v9222_v0 = vrot.slane %v14192_v30, 9 }
 0x343   : > { %16460 = vst [vmem:[#allocation31_spill] sm:$0xff] %v14216_v46  ;;  %10230 = vmatmul.mubr.msk.bf16.gmra.mxu1 %vm1723_vm7, %v14216_v46  ;;  %v14237_v26 = vrot.slane %v16461_v5, 4  ;;  %v14249_v5 = vrot.slane %v5967_v9, 4 }
 0x344   : > { %v5288_v48 = vpop.permute.xlu1 %5287  ;;  %v14233_v47 = vld [vmem:[#allocation2 + $0x4c] sm:$0xf]  ;;  %v5292_v52 = vpop.permute.xlu0 %5291  ;;  %v6000_v62 = vrot.slane %v5998_v58, 4  ;;  %v6060_v58 = vshll.u32 %v14231_v10, 16 }
 0x345   : > { %5439 = vst.msk [vmem:[#allocation2 + $0x64] sm:$0xf] %vm811_vm4, %v5288_v48  ;;  %v14243_v37 = vcombine.low %v14231_v10, %v14233_v47  ;;  %v5444_v14 = vsel %vm11366_vm6, %v5292_v52, %v5443_v57  ;;  %v6012_v48 = vshll.u32 %v14192_v30, 16  ;;  %v14261_v9 = vld [vmem:[#allocation2 + $0x54] sm:$0xf]  ;;  %v6066_v40 = vshll.u32 %v14233_v47, 16 }
 0x346   : > { %5445 = vst [vmem:[#allocation2 + $0x6c] sm:$0xf] %v5444_v14  ;;  %v14271_v14 = vrot.slane %v5977_v18, 4  ;;  %v6011_v18 = vrot.slane %v6009_v53, 4  ;;  %v6057_v53 = vshrl.u32 %v14231_v10, 16  ;;  %v6062_v21 = vrot.slane %v6060_v58, 5 }
 0x347   : > { %16462 = vst [vmem:[#allocation38_spill] sm:$0xff] %v14243_v37  ;;  %10233 = vmatprep.mubr.msk.bf16.mxu1 %vm1723_vm7, %v14243_v37  ;;  %v6014_v32 = vrot.slane %v6012_v48, 5  ;;  %v9223_v58 = vrot.slane %v14208_v25, 9  ;;  %v14371_v39 = vrot.slane %v6066_v40, 5 }
 0x348   : > { %v5294_v57 = vpop.permute.xlu1 %5293  ;;  %v14263_v52 = vld [vmem:[#allocation2 + $0x58] sm:$0xf]  ;;  %v5298_v43 = vpop.permute.xlu0 %5297 }
 0x349   : > { %5446 = vst.msk [vmem:[#allocation2 + $0x70] sm:$0xf] %vm811_vm4, %v5294_v57  ;;  %v14269_v36 = vcombine.low %v14261_v9, %v14263_v52  ;;  %v5451_v17 = vsel %vm11366_vm6, %v5298_v43, %v5450_v55  ;;  %v6036_v57 = vshll.u32 %v14208_v25, 16  ;;  %v14283_v7 = vld [vmem:[#allocation2 + $0x60] sm:$0xf]  ;;  %v14293_v55 = vsel %vm11827_vm0, %v9220_v59, %v6642_v60  ;;  %16475 = vst [vmem:[#allocation57_spill] sm:$0xff] %v14371_v39 }
 0x34a   : > { %5452 = vst [vmem:[#allocation2 + $0x78] sm:$0xf] %v5451_v17  ;;  %v14295_v17 = vrot.slane %v6018_v24, 5  ;;  %v14304_v43 = vrot.slane %v5991_v56, 4  ;;  %v6001_v24 = vor.u32 %v6000_v62, %v14276_v6  ;;  %v14309_v59 = vrot.slane %v6649_v50, 4 }
 0x34b   : > { %16463 = vst [vmem:[#allocation41_spill] sm:$0xff] %v14269_v36  ;;  %10234 = vmatmul.mubr.msk.bf16.gmra.mxu1 %vm1723_vm7, %v14269_v36  ;;  %v6035_v56 = vrot.slane %v6033_v2, 4  ;;  %v6070_v62 = vshrl.u32 %v14233_v47, 16  ;;  %v6084_v36 = vshll.u32 %v14261_v9, 16 }
 0x34c   : > { %v5300_v20 = vpop.permute.xlu1 %5299  ;;  %v14285_v3 = vld [vmem:[#allocation2 + $0x64] sm:$0xf]  ;;  %v5304_v48 = vpop.permute.xlu0 %5303  ;;  %16466 = vst [vmem:[#allocation49_spill] sm:$0xff] %v14309_v59  ;;  %v6025_v30 = vor.u32 %v6024_v12, %v14295_v17 }
 0x34d   : > { %5453 = vst.msk [vmem:[#allocation2 + $0x7c] sm:$0xf] %vm811_vm4, %v5300_v20  ;;  %v14302_v27 = vcombine.low %v14283_v7, %v14285_v3  ;;  %v5458_v60 = vsel %vm11366_vm6, %v5304_v48, %v5457_v16  ;;  %v6015_v20 = vor.u32 %v6014_v32, %v6011_v18  ;;  %v14316_v44 = vld [vmem:[#allocation2 + $0x6c] sm:$0xf]  ;;  %v6038_v48 = vrot.slane %v6036_v57, 5  ;;  %v14326_v4 = vpop.eup %10815 }
 0x34e   : > { %5459 = vst [vmem:[#allocation2 + $0x84] sm:$0xf] %v5458_v60  ;;  %v6042_v60 = vshll.u32 %v14210_v61, 16  ;;  %16467 = vst [vmem:[#allocation50_spill] sm:$0xff] %v14326_v4  ;;  %v5464_v18 = vld [vmem:[#allocation2 + $0x90] sm:$0xf] }
 0x34f   : > { %16465 = vst [vmem:[#allocation48_spill] sm:$0xff] %v14302_v27  ;;  %10237 = vmatprep.mubr.msk.bf16.mxu1 %vm1723_vm7, %v14302_v27  ;;  %v6059_v32 = vrot.slane %v6057_v53, 4  ;;  %v6081_v57 = vshrl.u32 %v14261_v9, 16  ;;  %v14338_v27 = vrot.slane %v6001_v24, 4  ;;  %v14345_v53 = vrot.slane %v6656_v23, 4 }
 0x350   : > { %v5306_v42 = vpop.permute.xlu1 %5305  ;;  %v14318_v16 = vld [vmem:[#allocation2 + $0x70] sm:$0xf]  ;;  %v5310_v38 = vpop.permute.xlu0 %5309  ;;  %v16470_v24 = vrot.slane %v14175_v33, 9  ;;  %v6132_v59 = vshll.u32 %v14316_v44, 16 }
 0x351   : > { %5460 = vst.msk [vmem:[#allocation2 + $0x88] sm:$0xf] %vm811_vm4, %v5306_v42  ;;  %v14331_v2 = vcombine.low %v14316_v44, %v14318_v16  ;;  %v5465_v12 = vsel %vm11366_vm6, %v5310_v38, %v5464_v18  ;;  %v14343_v42 = vrot.slane %v6015_v20, 4  ;;  %16469 = vst [vmem:[#allocation52_spill] sm:$0xff] %v14345_v53  ;;  %v14348_v46 = vld [vmem:[#allocation2 + $0x78] sm:$0xf]  ;;  %v6063_v33 = vor.u32 %v6062_v21, %v6059_v32 }
 0x352   : > { %5466 = vst [vmem:[#allocation2 + $0x90] sm:$0xf] %v5465_v12  ;;  %v14352_v18 = vrot.slane %v6025_v30, 4  ;;  %v14358_v38 = vsel %vm11827_vm0, %v16470_v24, %v6649_v50  ;;  %v6039_v12 = vor.u32 %v6038_v48, %v6035_v56  ;;  %v14360_v20 = vrot.slane %v6046_v11, 4 }
 0x353   : > { %16468 = vst [vmem:[#allocation51_spill] sm:$0xff] %v14331_v2  ;;  %10238 = vmatmul.mubr.msk.bf16.gmra.mxu1 %vm1723_vm7, %v14331_v2  ;;  %16471 = vst [vmem:[#allocation53_spill] sm:$0xff] %v14358_v38  ;;  %v14362_v2 = vpop.eup %10817  ;;  %v14369_v30 = vrot.slane %v6042_v60, 5  ;;  %v6094_v50 = vshrl.u32 %v14263_v52, 16  ;;  %v6072_v56 = vrot.slane %v6070_v62, 4  ;;  %v6083_v48 = vrot.slane %v6081_v57, 4 }
 0x354   : > { %v5312_v37 = vpop.permute.xlu1 %5311  ;;  %v14350_v28 = vld [vmem:[#allocation2 + $0x7c] sm:$0xf]  ;;  %16472 = vst [vmem:[#allocation54_spill] sm:$0xff] %v14362_v2  ;;  %v5316_v25 = vpop.permute.xlu0 %5315  ;;  %v6105_v24 = vshrl.u32 %v14283_v7, 16  ;;  %v6086_v60 = vrot.slane %v6084_v36, 5  ;;  %v6090_v21 = vshll.u32 %v14263_v52, 16  ;;  %v14391_v62 = vsel %vm11827_vm0, %v9222_v0, %v6656_v23 }
 0x355   : > { %5467 = vst.msk [vmem:[#allocation2 + $0x94] sm:$0xf] %vm811_vm4, %v5312_v37  ;;  %v14367_v8 = vcombine.low %v14348_v46, %v14350_v28  ;;  %16474 = vst [vmem:[#allocation56_spill] sm:$0xff] %v14369_v30  ;;  %v5472_v11 = vsel %vm11366_vm6, %v5316_v25, %v5471_v45  ;;  %v6108_v37 = vshll.u32 %v14283_v7, 16  ;;  %v14381_v32 = vld [vmem:[#allocation2 + $0x84] sm:$0xf]  ;;  %v6049_v45 = vor.u32 %v14360_v20, %v14369_v30 }
 0x356   : > { %5473 = vst [vmem:[#allocation2 + $0x9c] sm:$0xf] %v5472_v11  ;;  %16476 = vst [vmem:[#allocation58_spill] sm:$0xff] %v14391_v62  ;;  %v14393_v57 = vrot.slane %v6039_v12, 4  ;;  %v6663_v36 = vrot.slane %v14210_v61, 5  ;;  %v6118_v25 = vshrl.u32 %v14285_v3, 16  ;;  %v6073_v61 = vor.u32 %v6072_v56, %v14371_v39 }
 0x357   : > { %16473 = vst [vmem:[#allocation55_spill] sm:$0xff] %v14367_v8  ;;  %10241 = vmatprep.mubr.msk.bf16.mxu1 %vm1723_vm7, %v14367_v8  ;;  %v5478_v11 = vld [vmem:[#allocation2 + $0xa8] sm:$0xf]  ;;  %v6114_v23 = vshll.u32 %v14285_v3, 16  ;;  %v14407_v12 = vrot.slane %v6063_v33, 4  ;;  %v6096_v4 = vrot.slane %v6094_v50, 4 }
 0x358   : > { %v5318_v40 = vpop.permute.xlu1 %5317  ;;  %v14383_v1 = vld [vmem:[#allocation2 + $0x88] sm:$0xf]  ;;  %16477 = vst [vmem:[#allocation59_spill] sm:$0xff] %v14393_v57  ;;  %v5322_v8 = vpop.permute.xlu0 %5321  ;;  %v14412_v62 = vrot.slane %v6090_v21, 5  ;;  %v6107_v38 = vrot.slane %v6105_v24, 4  ;;  %v6110_v53 = vrot.slane %v6108_v37, 5 }
 0x359   : > { %5474 = vst.msk [vmem:[#allocation2 + $0xa0] sm:$0xf] %vm811_vm4, %v5318_v40  ;;  %v14400_v2 = vcombine.low %v14381_v32, %v14383_v1  ;;  %v5479_v0 = vsel %vm11366_vm6, %v5322_v8, %v5478_v11  ;;  %16479 = vst [vmem:[#allocation61_spill] sm:$0xff] %v14407_v12  ;;  %v6087_v40 = vor.u32 %v6086_v60, %v6083_v48  ;;  %v6129_v20 = vshrl.u32 %v14316_v44, 16  ;;  %v14416_v8 = vld [vmem:[#allocation2 + $0x90] sm:$0xf] }
 0x35a   : > { %5480 = vst [vmem:[#allocation2 + $0xa8] sm:$0xf] %v5479_v0  ;;  %16480 = vst [vmem:[#allocation62_spill] sm:$0xff] %v14412_v62  ;;  %v5485_v48 = vld [vmem:[#allocation2 + $0xb4] sm:$0xf]  ;;  %v14435_v60 = vsel %vm11827_vm0, %v9223_v58, %v6663_v36  ;;  %v14437_v21 = vrot.slane %v6114_v23, 5 }
 0x35b   : > { %16478 = vst [vmem:[#allocation60_spill] sm:$0xff] %v14400_v2  ;;  %10242 = vmatmul.mubr.msk.bf16.gmra.mxu1 %vm1723_vm7, %v14400_v2  ;;  %16482 = vst [vmem:[#allocation64_spill] sm:$0xff] %v14435_v60  ;;  %v6120_v11 = vrot.slane %v6118_v25, 4  ;;  %v14441_v50 = vrot.slane %v6663_v36, 4  ;;  %v9224_v56 = vrot.slane %v14231_v10, 9  ;;  %v14447_v30 = vrot.slane %v6049_v45, 4 }
 0x35c   : > { %v5324_v6 = vpop.permute.xlu1 %5323  ;;  %v14418_v33 = vld [vmem:[#allocation2 + $0x94] sm:$0xf]  ;;  %v5328_v24 = vpop.permute.xlu0 %5327  ;;  %v14453_v25 = vrot.slane %v6073_v61, 4  ;;  %v14455_v36 = vrot.slane %v6087_v40, 4  ;;  %v6134_v45 = vrot.slane %v6132_v59, 5  ;;  %v6677_v58 = vrot.slane %v14263_v52, 5 }
 0x35d   : > { %5481 = vst.msk [vmem:[#allocation2 + $0xac] sm:$0xf] %vm811_vm4, %v5324_v6  ;;  %v14431_v37 = vcombine.low %v14416_v8, %v14418_v33  ;;  %v5486_v0 = vsel %vm11366_vm6, %v5328_v24, %v5485_v48  ;;  %16483 = vst [vmem:[#allocation65_spill] sm:$0xff] %v14441_v50  ;;  %v6670_v6 = vrot.slane %v14233_v47, 5  ;;  %v5391_v2 = vld [vmem:[#allocation2 + $0x14] sm:$0x1]  ;;  %v6097_v48 = vor.u32 %v6096_v4, %v14412_v62 }
 0x35e   : > { %5487 = vst [vmem:[#allocation2 + $0xb4] sm:$0xf] %v5486_v0  ;;  %v14457_v10 = vld [vmem:[#allocation2 + $0x9c] sm:$0xf]  ;;  %v6111_v24 = vor.u32 %v6110_v53, %v6107_v38  ;;  %v6131_v0 = vrot.slane %v6129_v20, 4  ;;  %v6121_v40 = vor.u32 %v6120_v11, %v14437_v21  ;;  %v6684_v53 = vrot.slane %v14285_v3, 5 }
 0x35f   : > { %16481 = vst [vmem:[#allocation63_spill] sm:$0xff] %v14431_v37  ;;  %10245 = vmatprep.mubr.msk.bf16.mxu1 %vm1723_vm7, %v14431_v37  ;;  %v14473_v4 = vsel %vm11827_vm0, %v9224_v56, %v6670_v6  ;;  %v14475_v59 = vrot.slane %v6670_v6, 4  ;;  %v6142_v38 = vshrl.u32 %v14318_v16, 16  ;;  %v6153_v20 = vshrl.u32 %v14348_v46, 16  ;;  %v5398_v52 = vld [vmem:[#allocation2 + $0x20] sm:$0x1] }
 0x360   : > { %v5248_v23 = vpop.permute.xlu1 %5247  ;;  %v14459_v47 = vld [vmem:[#allocation2 + $0xa0] sm:$0xf]  ;;  %v5330_v60 = vpop.permute.xlu0 %5329  ;;  %16486 = vst [vmem:[#allocation67_spill] sm:$0xff] %v14473_v4  ;;  %v6156_v11 = vshll.u32 %v14348_v46, 16  ;;  %v6135_v4 = vor.u32 %v6134_v45, %v6131_v0  ;;  %v5405_v39 = vld [vmem:[#allocation2 + $0x2c] sm:$0x1] }
 0x361   : > { %v5392_v37 = vsel %vm11735_vm10, %v5248_v23, %v5391_v2  ;;  %v14466_v61 = vcombine.low %v14457_v10, %v14459_v47  ;;  %5488 = vst.msk [vmem:[#allocation2 + $0xb8] sm:$0xf] %vm811_vm4, %v5330_v60  ;;  %16487 = vst [vmem:[#allocation68_spill] sm:$0xff] %v14475_v59  ;;  %v9225_v2 = vrot.slane %v14261_v9, 9  ;;  %v14485_v60 = vld [vmem:[#allocation2 + $0xa8] sm:$0xf] }
 0x362   : > { %5393 = vst [vmem:[#allocation2 + $0x14] sm:$0x1] %v5392_v37  ;;  %v6138_v37 = vshll.u32 %v14318_v16, 16  ;;  %v14493_v9 = vrot.slane %v6097_v48, 4  ;;  %v14495_v23 = vrot.slane %v6111_v24, 4  ;;  %v14503_v50 = vrot.slane %v6121_v40, 4 }
 0x363   : > { %16485 = vst [vmem:[#allocation66_spill] sm:$0xff] %v14466_v61  ;;  %10246 = vmatmul.mubr.msk.bf16.gmra.mxu1 %vm1723_vm7, %v14466_v61  ;;  %v14505_v57 = vrot.slane %v6677_v58, 4  ;;  %v6166_v3 = vshrl.u32 %v14350_v28, 16  ;;  %v9226_v24 = vrot.slane %v14283_v7, 9  ;;  %v14511_v0 = vrot.slane %v6684_v53, 4 }
 0x364   : > { %v5254_v56 = vpop.permute.xlu1 %5253  ;;  %v14487_v6 = vld [vmem:[#allocation2 + $0xac] sm:$0xf]  ;;  %v5260_v12 = vpop.permute.xlu0 %5259  ;;  %v5412_v45 = vld [vmem:[#allocation2 + $0x38] sm:$0x1]  ;;  %v6144_v40 = vrot.slane %v6142_v38, 4  ;;  %v6162_v7 = vshll.u32 %v14350_v28, 16 }
 0x365   : > { %16488 = vst [vmem:[#allocation69_spill] sm:$0xff] %v14487_v6  ;;  %v5399_v61 = vsel %vm11735_vm10, %v5254_v56, %v5398_v52  ;;  %v14501_v59 = vcombine.low %v14485_v60, %v14487_v6  ;;  %16490 = vst [vmem:[#allocation71_spill] sm:$0xff] %v14505_v57  ;;  %v5406_v48 = vsel %vm11735_vm10, %v5260_v12, %v5405_v39  ;;  %v14515_v52 = vrot.slane %v6138_v37, 5  ;;  %v5419_v39 = vld [vmem:[#allocation2 + $0x44] sm:$0x1] }
 0x366   : > { %5400 = vst [vmem:[#allocation2 + $0x20] sm:$0x1] %v5399_v61  ;;  %16491 = vst [vmem:[#allocation72_spill] sm:$0xff] %v14511_v0  ;;  %v6155_v56 = vrot.slane %v6153_v20, 4  ;;  %v6158_v6 = vrot.slane %v6156_v11, 5  ;;  %v14519_v12 = vrot.slane %v6135_v4, 4  ;;  %v14534_v4 = vsel %vm11827_vm0, %v9225_v2, %v6677_v58 }
 0x367   : > { %16489 = vst [vmem:[#allocation70_spill] sm:$0xff] %v14501_v59  ;;  %5407 = vst [vmem:[#allocation2 + $0x2c] sm:$0x1] %v5406_v48  ;;  %10249 = vmatprep.mubr.msk.bf16.mxu1 %vm1723_vm7, %v14501_v59  ;;  %v14524_v0 = vld [vmem:[#allocation2 + $0xb4] sm:$0xf]  ;;  %v14538_v11 = vsel %vm11827_vm0, %v9226_v24, %v6684_v53  ;;  %v6145_v58 = vor.u32 %v6144_v40, %v14515_v52 }
 0x368   : > { %v5266_v62 = vpop.permute.xlu1 %5265  ;;  %v5272_v59 = vpop.permute.xlu0 %5271  ;;  %v14526_v37 = vld [vmem:[#allocation2 + $0xb8] sm:$0xf]  ;;  %16492 = vst [vmem:[#allocation73_spill] sm:$0xff] %v14534_v4  ;;  %v6159_v2 = vor.u32 %v6158_v6, %v6155_v56  ;;  %v14548_v4 = vrot.slane %v6166_v3, 4  ;;  %v16494_v6 = vcombine.low %v14078_v63, %v14086_v35 }
 0x369   : > { %v5413_v48 = vsel %vm11735_vm10, %v5266_v62, %v5412_v45  ;;  %v5504_v38 = vld [vmem:[#allocation2 + $0x14] sm:$0x1]  ;;  %v5420_v45 = vsel %vm11735_vm10, %v5272_v59, %v5419_v39  ;;  %v14545_v61 = vcombine.low %v14524_v0, %v14526_v37  ;;  %v5426_v59 = vld [vmem:[#allocation2 + $0x50] sm:$0x1]  ;;  %v14554_v62 = vrot.slane %v6162_v7, 5 }
 0x36a   : > { %5414 = vst [vmem:[#allocation2 + $0x38] sm:$0x1] %v5413_v48  ;;  %v5956_v57 = vshll.u32 %v5504_v38, 16  ;;  %5421 = vst [vmem:[#allocation2 + $0x44] sm:$0x1] %v5420_v45  ;;  %v6638_v20 = vrot.slane %v5504_v38, 5 }
 0x36b   : > { %16493 = vst [vmem:[#allocation74_spill] sm:$0xff] %v14545_v61  ;;  %10250 = vmatmul.mubr.msk.bf16.gmra.mxu1 %vm1723_vm7, %v14545_v61  ;;  %v5433_v45 = vld [vmem:[#allocation2 + $0x5c] sm:$0x1]  ;;  %v9227_v7 = vrot.slane %v14316_v44, 9  ;;  %v16496_v44 = vsel %vm11812_vm15, %v14227_v29, %v14212_v41  ;;  %v6169_v41 = vor.u32 %v14548_v4, %v14554_v62  ;;  %v6691_v29 = vrot.slane %v14318_v16, 5 }
 0x36c   : > { %v5278_v39 = vpop.permute.xlu1 %5277  ;;  %v5958_v48 = vrot.slane %v5956_v57, 5  ;;  %v5284_v40 = vpop.permute.xlu0 %5283  ;;  %10297 = vmatprep.mubr.msk.bf16.mxu1 %vm1723_vm7, %v16494_v6  ;;  %v6639_v3 = vsel %vm11827_vm0, %v14237_v26, %v6638_v20 }
 0x36d   : > { %v5427_v38 = vsel %vm11735_vm10, %v5278_v39, %v5426_v59  ;;  %v5507_v56 = vld [vmem:[#allocation2 + $0x20] sm:$0x1]  ;;  %v5434_v59 = vsel %vm11735_vm10, %v5284_v40, %v5433_v45  ;;  %v14576_v35 = vcombine.low %v14149_v34, %v6639_v3  ;;  %v14588_v40 = vrot.slane %v6145_v58, 4  ;;  %v10673_v34 = vld [vmem:[%s16043_s4 + $0x50] sm:$0xff]  }
 0x36e   : > { %5428 = vst [vmem:[#allocation2 + $0x50] sm:$0x1] %v5427_v38  ;;  %v5959_v63 = vsel %vm11812_vm15, %v14256_v54, %v5958_v48  ;;  %v6645_v26 = vrot.slane %v5507_v56, 5  ;;  %v14578_v20 = vld [vmem:[#allocation2 + $0x2c] sm:$0x1]  ;;  %v5980_v38 = vshll.u32 %v5507_v56, 16 }
 0x36f   : > { %16495 = vst [vmem:[#allocation75_spill] sm:$0xff] %v14576_v35  ;;  %5435 = vst [vmem:[#allocation2 + $0x5c] sm:$0x1] %v5434_v59  ;;  %v14585_v39 = vcombine.low %v16496_v44, %v5959_v63  ;;  %v6004_v45 = vshll.u32 %v14578_v20, 16  ;;  %v5440_v54 = vld [vmem:[#allocation2 + $0x68] sm:$0x1] }
 0x370   : > { %v5290_v48 = vpop.permute.xlu1 %5289  ;;  %v6646_v6 = vsel %vm11827_vm0, %v14258_v22, %v6645_v26  ;;  %v14596_v3 = vrot.slane %v6159_v2, 4  ;;  %v5447_v56 = vld [vmem:[#allocation2 + $0x74] sm:$0x1]  ;;  %v5296_v59 = vpop.permute.xlu0 %5295  ;;  %v5982_v44 = vrot.slane %v5980_v38, 5  ;;  %v6652_v38 = vrot.slane %v14578_v20, 5 }
 0x371   : > { %v5441_v58 = vsel %vm11735_vm10, %v5290_v48, %v5440_v54  ;;  %10260 = vmatmul.mubr.msk.bf16.vlgmr.msra.gmra.mxu0 %vm1723_vm7, %v14585_v39  ;;  %v14606_v63 = vcombine.low %v14293_v55, %v6646_v6  ;;  %v6006_v22 = vrot.slane %v6004_v45, 5  ;;  %v5513_v2 = vld [vmem:[#allocation2 + $0x38] sm:$0x1]  ;;  %v5448_v4 = vsel %vm11735_vm10, %v5296_v59, %v5447_v56  ;;  %v14611_v24 = vld [vmem:[#allocation2 + $0x44] sm:$0x1]  ;;  %v10674_v6 = vld [vmem:[%s16043_s4 + $0x68] sm:$0xff]  }
 0x372   : > { %5442 = vst [vmem:[#allocation2 + $0x68] sm:$0x1] %v5441_v58  ;;  %v6028_v57 = vshll.u32 %v5513_v2, 16  ;;  %v9228_v54 = vrot.slane %v14348_v46, 9  ;;  %10330 = vmatpush3.bf16.msra.mxu0 %v14120_v15  ;;  %5449 = vst [vmem:[#allocation2 + $0x74] sm:$0x1] %v5448_v4  ;;  %v5983_v55 = vsel %vm11812_vm15, %v14271_v14, %v5982_v44  ;;  %v16498_v14 = vsel %vm11812_vm15, %v14249_v5, %v14221_v13 }
 0x373   : > { %16497 = vst [vmem:[#allocation76_spill] sm:$0xff] %v14606_v63  ;;  %v6659_v45 = vrot.slane %v5513_v2, 5  ;;  %v6698_v48 = vrot.slane %v14350_v28, 5  ;;  %10331 = vmatprep.subr.bf16.mxu0 %v10673_v34  ;;  %v10675_v58 = vld [vmem:[%s16043_s4 + $0x48] sm:$0xff]   ;;  %10298 = vmatmul.mubr.msk.bf16.vlgmr.msra.gmra.mxu1 %vm1723_vm7, %v14576_v35  ;;  %v5454_v15 = vld [vmem:[#allocation2 + $0x80] sm:$0x1]  ;;  %v14633_v28 = vcombine.low %v16498_v14, %v5983_v55  ;;  %v6007_v20 = vsel %vm11812_vm15, %v14338_v27, %v6006_v22 }
 0x374   : > { %v5302_v56 = vpop.permute.xlu1 %5301  ;;  %v6030_v59 = vrot.slane %v6028_v57, 5  ;;  %v6052_v44 = vshll.u32 %v14611_v24, 16  ;;  %10301 = vmatprep.mubr.msk.bf16.mxu1 %vm1723_vm7, %v14606_v63  ;;  %v5461_v4 = vld [vmem:[#allocation2 + $0x8c] sm:$0x1]  ;;  %v5308_v26 = vpop.permute.xlu0 %5307  ;;  %v14649_v5 = vrot.slane %v6169_v41, 4  ;;  %v14655_v27 = vsel %vm11827_vm0, %v9227_v7, %v6691_v29  ;;  %10368 = vmatpush3.bf16.msra.mxu1 %v14170_v31  ;;  %v16521_v35 = vld [vmem:[#allocation61_spill] sm:$0xff] }
 0x375   : > { %v5455_v2 = vsel %vm11735_vm10, %v5302_v56, %v5454_v15  ;;  %v14643_v53 = vld [vmem:[#allocation2 + $0x50] sm:$0x1]  ;;  %v5462_v22 = vsel %vm11735_vm10, %v5308_v26, %v5461_v4  ;;  %10263 = vmatprep.mubr.msk.bf16.mxu0 %vm1723_vm7, %v14633_v28  ;;  %v5468_v31 = vld [vmem:[#allocation2 + $0x98] sm:$0x1]  ;;  %v16499_v15 = vld [vmem:[#allocation12_spill] sm:$0xff]  ;;  %v16501_v14 = vsel %vm11812_vm15, %v14343_v42, %v14295_v17  ;;  %10369 = vmatprep.subr.bf16.mxu1 %v10674_v6  ;;  %v6666_v46 = vrot.slane %v14611_v24, 5 }
 0x376   : > { %5456 = vst [vmem:[#allocation2 + $0x80] sm:$0x1] %v5455_v2  ;;  %v6031_v41 = vsel %vm11812_vm15, %v14352_v18, %v6030_v59  ;;  %v6076_v55 = vshll.u32 %v14643_v53, 16  ;;  %10332 = vmatpush3.bf16.msra.mxu0 %v10673_v34  ;;  %5463 = vst [vmem:[#allocation2 + $0x8c] sm:$0x1] %v5462_v22  ;;  %v16500_v56 = vsel %vm11812_vm15, %v14304_v43, %v16499_v15  ;;  %v16502_v59 = vld [vmem:[#allocation49_spill] sm:$0xff] }
 0x377   : > { %v14673_v26 = vcombine.low %v16500_v56, %v6007_v20  ;;  %v14680_v18 = vcombine.low %v16501_v14, %v6031_v41  ;;  %v6653_v34 = vsel %vm11827_vm0, %v16502_v59, %v6652_v38  ;;  %10333 = vmatprep.subr.bf16.mxu0 %v10675_v58  ;;  %v10676_v2 = vld [vmem:[%s16043_s4 + $0x60] sm:$0xff]   ;;  %v14691_v43 = vld [vmem:[%s16043_s4 + $0x88] sm:$0xff]   ;;  %v6054_v22 = vrot.slane %v6052_v44, 5  ;;  %v14708_v7 = vld [vmem:[#allocation2 + $0x5c] sm:$0x1] }
 0x378   : > { %v5314_v20 = vpop.permute.xlu1 %5313  ;;  %v5475_v4 = vld [vmem:[#allocation2 + $0xa4] sm:$0x1]  ;;  %v16503_v17 = vld [vmem:[#allocation52_spill] sm:$0xff]  ;;  %v16504_v38 = vshrl.u32 %v14381_v32, 16  ;;  %v16505_v15 = vshll.u32 %v14381_v32, 16  ;;  %v5320_v59 = vpop.permute.xlu0 %5319  ;;  %v6078_v13 = vrot.slane %v6076_v55, 5  ;;  %10370 = vmatpush3.bf16.msra.mxu1 %v10674_v6  ;;  %v14728_v16 = vsel %vm11827_vm0, %v9228_v54, %v6698_v48 }
 0x379   : > { %v6660_v42 = vsel %vm11827_vm0, %v16503_v17, %v6659_v45  ;;  %v5469_v14 = vsel %vm11735_vm10, %v5314_v20, %v5468_v31  ;;  %10264 = vmatmul.mubr.msk.bf16.gmra.mxu0 %vm1723_vm7, %v14673_v26  ;;  %v14712_v45 = vrot.slane %v6691_v29, 4  ;;  %v6186_v44 = vshll.u32 %v14383_v1, 16  ;;  %v16506_v31 = vld [vmem:[#allocation53_spill] sm:$0xff]  ;;  %v14722_v55 = vld [vmem:[#allocation2 + $0x68] sm:$0x1]  ;;  %v14735_v6 = vld [vmem:[%s16043_s4 + $0xa0] sm:$0xff]   ;;  %10371 = vmatprep.subr.bf16.mxu1 %v10676_v2 }
 0x37a   : > { %v14698_v41 = vrot.slane %v16504_v38, 4  ;;  %v14702_v56 = vrot.slane %v16505_v15, 5  ;;  %5470 = vst [vmem:[#allocation2 + $0x98] sm:$0x1] %v5469_v14  ;;  %v5476_v17 = vsel %vm11735_vm10, %v5320_v59, %v5475_v4  ;;  %10267 = vmatprep.mubr.msk.bf16.mxu0 %vm1723_vm7, %v14680_v18  ;;  %v14720_v20 = vcombine.low %v16506_v31, %v6653_v34  ;;  %10334 = vmatpush3.bf16.msra.mxu0 %v10675_v58  ;;  %v16508_v34 = vld [vmem:[#allocation58_spill] sm:$0xff] }
 0x37b   : > { %v14730_v29 = vrot.slane %v6698_v48, 4  ;;  %5477 = vst [vmem:[#allocation2 + $0xa4] sm:$0x1] %v5476_v17  ;;  %v14739_v38 = vcombine.low %v16508_v34, %v6660_v42  ;;  %v6673_v15 = vrot.slane %v14643_v53, 5  ;;  %10405 = vmatprep.subr.bf16.mxu0 %v14691_v43  ;;  %v6055_v48 = vsel %vm11812_vm15, %v14447_v30, %v6054_v22  ;;  %v16511_v53 = vld [vmem:[#allocation50_spill] sm:$0xff] }
 0x37c   : > { %16507 = vst [vmem:[#allocation12_spill] sm:$0xff] %v14720_v20  ;;  %10302 = vmatmul.mubr.msk.bf16.gmra.mxu1 %vm1723_vm7, %v14720_v20  ;;  %v4808_v54 = vpop.permute.xlu1 %4807  ;;  %v6100_v58 = vshll.u32 %v14708_v7, 16  ;;  %v6183_v42 = vor.u32 %v14702_v56, %v14698_v41  ;;  %v16510_v24 = vshrl.u32 %v14383_v1, 16  ;;  %v4810_v17 = vpop.permute.xlu0 %4809  ;;  %v6079_v31 = vsel %vm11812_vm15, %v14453_v25, %v6078_v13  ;;  %v16512_v56 = vld [vmem:[#allocation54_spill] sm:$0xff]  ;;  %v16515_v13 = vld [vmem:[#allocation59_spill] sm:$0xff]  ;;  %v16519_v41 = vld [vmem:[#allocation65_spill] sm:$0xff] }
 0x37d   : > { %16509 = vst [vmem:[#allocation49_spill] sm:$0xff] %v14739_v38  ;;  %v4873_v59 = vmul.f32 %v16511_v53, %v4808_v54  ;;  %10305 = vmatprep.mubr.msk.bf16.mxu1 %vm1723_vm7, %v14739_v38  ;;  %v6124_v30 = vshll.u32 %v14722_v55, 16  ;;  %v14763_v22 = vrot.slane %v6186_v44, 5  ;;  %10372 = vmatpush3.bf16.msra.mxu1 %v10676_v2  ;;  %v4874_v34 = vmul.f32 %v16512_v56, %v4810_v17  ;;  %v16516_v44 = vld [vmem:[#allocation56_spill] sm:$0xff]  ;;  %v5482_v20 = vld [vmem:[#allocation2 + $0xb0] sm:$0x1] }
 0x37e   : > { %v14754_v14 = vrot.slane %v16510_v24, 4  ;;  %v16513_v24 = vshrl.u32 %v14416_v8, 16  ;;  %v16514_v4 = vshll.u32 %v14416_v8, 16  ;;  %10443 = vmatprep.subr.bf16.mxu1 %v14735_v6  ;;  %v16517_v2 = vsel %vm11812_vm15, %v16515_v13, %v16516_v44  ;;  %v5489_v63 = vld [vmem:[#allocation2 + $0xbc] sm:$0x1]  ;;  %v16522_v13 = vld [vmem:[#allocation57_spill] sm:$0xff] }
 0x37f   : > { %v9528_v25 = vpack.c.bf16 %v4873_v59, %v4873_v59  ;;  %v14781_v53 = vcombine.low %v16517_v2, %v6055_v48  ;;  %v6667_v17 = vsel %vm11827_vm0, %v16519_v41, %v6666_v46  ;;  %v9529_v38 = vpack.c.bf16 %v4874_v34, %v4874_v34  ;;  %v14801_v34 = vld [vmem:[#allocation2 + $0x74] sm:$0x1] }
 0x380   : > { %v14769_v54 = vrot.slane %v16513_v24, 4  ;;  %v14773_v57 = vrot.slane %v16514_v4, 5  ;;  %v16520_v24 = vld [vmem:[#allocation68_spill] sm:$0xff]  ;;  %v5326_v59 = vpop.permute.xlu1 %5325  ;;  %v16523_v48 = vsel %vm11812_vm15, %v16521_v35, %v16522_v13  ;;  %v6102_v2 = vrot.slane %v6100_v58, 5  ;;  %v5332_v41 = vpop.permute.xlu0 %5331  ;;  %v14814_v13 = vld [vmem:[#allocation2 + $0x80] sm:$0x1] }
 0x381   : > { %16518 = vst [vmem:[#allocation52_spill] sm:$0xff] %v14781_v53  ;;  %v6674_v56 = vsel %vm11827_vm0, %v16520_v24, %v6673_v15  ;;  %v14795_v44 = vcombine.low %v16523_v48, %v6079_v31  ;;  %v5227_v61 = vshrl.u32 %v9528_v25, 16  ;;  %v5483_v46 = vsel %vm11735_vm10, %v5326_v59, %v5482_v20  ;;  %10268 = vmatmul.mubr.msk.bf16.gmra.mxu0 %vm1723_vm7, %v14781_v53  ;;  %v16525_v58 = vld [vmem:[#allocation64_spill] sm:$0xff]  ;;  %v16526_v20 = vld [vmem:[#allocation67_spill] sm:$0xff] }
 0x382   : > { %v6126_v15 = vrot.slane %v6124_v30, 5  ;;  %v6210_v24 = vshll.u32 %v14418_v33, 16  ;;  %v5235_v4 = vshrl.u32 %v9529_v38, 16  ;;  %5484 = vst [vmem:[#allocation2 + $0xb0] sm:$0x1] %v5483_v46  ;;  %v5490_v35 = vsel %vm11735_vm10, %v5332_v41, %v5489_v63 }
 0x383   : > { %16524 = vst [vmem:[#allocation53_spill] sm:$0xff] %v14795_v44  ;;  %10271 = vmatprep.mubr.msk.bf16.mxu0 %vm1723_vm7, %v14795_v44  ;;  %v14809_v31 = vcombine.low %v16525_v58, %v6667_v17  ;;  %v14812_v59 = vcombine.low %v16526_v20, %v6674_v56  ;;  %v5229_v30 = vrot.slane %v5227_v61, 7  ;;  %v5230_v48 = vshll.u32 %v9528_v25, 16  ;;  %5491 = vst [vmem:[#allocation2 + $0xbc] sm:$0x1] %v5490_v35 }
 0x384   : > { %v6680_v53 = vrot.slane %v14708_v7, 5  ;;  %v6687_v46 = vrot.slane %v14722_v55, 5  ;;  %v5237_v19 = vrot.slane %v5235_v4, 7  ;;  %v5238_v63 = vshll.u32 %v9529_v38, 16  ;;  %v16527_v4 = vld [vmem:[#allocation62_spill] sm:$0xff] }
 0x385   : > { %10306 = vmatmul.mubr.msk.bf16.gmra.mxu1 %vm1723_vm7, %v14809_v31  ;;  %v6103_v17 = vsel %vm11812_vm15, %v14493_v9, %v6102_v2  ;;  %v6148_v56 = vshll.u32 %v14801_v34, 16  ;;  %v5232_v41 = vor.u32 %v5230_v48, %v5229_v30  ;;  %v5233_v58 = vrot.slane %v5229_v30, 4  ;;  %v16535_v48 = vld [vmem:[#allocation72_spill] sm:$0xff] }
 0x386   : > { %10309 = vmatprep.mubr.msk.bf16.mxu1 %vm1723_vm7, %v14812_v59  ;;  %v6127_v61 = vsel %vm11812_vm15, %v14503_v50, %v6126_v15  ;;  %v6172_v7 = vshll.u32 %v14814_v13, 16  ;;  %v5240_v55 = vor.u32 %v5238_v63, %v5237_v19  ;;  %v14830_v38 = vrot.slane %v6183_v42, 4  ;;  %v16530_v50 = vld [vmem:[#allocation71_spill] sm:$0xff] }
 0x387   : > { %v6193_v25 = vor.u32 %v14754_v14, %v14763_v22  ;;  %v6207_v9 = vor.u32 %v14773_v57, %v14769_v54  ;;  %5333 = vrot.lane.b32.xlu1 %v5232_v41, %s10991_s19  ;;  %v16528_v2 = vsel %vm11812_vm15, %v14455_v36, %v16527_v4  ;;  %v6681_v42 = vsel %vm11827_vm0, %v16530_v50, %v6680_v53 }
 0x388   : > { %v14842_v35 = vcombine.low %v16528_v2, %v6103_v17  ;;  %v14847_v15 = vrot.slane %v6210_v24, 5  ;;  %v16531_v14 = vshrl.u32 %v14418_v33, 16  ;;  %v5241_v57 = vsel %vm11180_vm3, %v5233_v58, %v5240_v55  ;;  %v16536_v24 = vld [vmem:[#allocation69_spill] sm:$0xff]  ;;  %v5534_v55 = vld [vmem:[#allocation2 + $0x8c] sm:$0x1] }
 0x389   : > { %v16533_v54 = vsel %vm11812_vm15, %v14495_v23, %v14437_v21  ;;  %v6688_v63 = vsel %vm11827_vm0, %v16535_v48, %v6687_v46  ;;  %v6150_v53 = vrot.slane %v6148_v56, 5  ;;  %v6262_v17 = vshrl.u32 %v16536_v24, 16  ;;  %5335 = vrot.lane.b32.xlu0 %v5241_v57, %s10991_s19  ;;  %v16537_v21 = vld [vmem:[#allocation73_spill] sm:$0xff]  ;;  %v14877_v56 = vld [vmem:[#allocation2 + $0x98] sm:$0x1] }
 0x38a   : > { %16529 = vst [vmem:[#allocation58_spill] sm:$0xff] %v14842_v35  ;;  %v6216_v20 = vrot.slane %v16531_v14, 4  ;;  %v14858_v36 = vcombine.low %v16533_v54, %v6127_v61  ;;  %v5242_v41 = vrot.slane %v5237_v19, 4  ;;  %10272 = vmatmul.mubr.msk.bf16.gmra.mxu0 %vm1723_vm7, %v14842_v35  ;;  %v6174_v58 = vrot.slane %v6172_v7, 5 }
 0x38b   : > { %v9229_v4 = vrot.slane %v14381_v32, 9  ;;  %v14871_v23 = vcombine.low %v16537_v21, %v6681_v42  ;;  %v6189_v19 = vsel %vm11812_vm15, %v14830_v38, %v14763_v22  ;;  %v6194_v46 = vrot.slane %v6193_v25, 4 }
 0x38c   : > { %16534 = vst [vmem:[#allocation59_spill] sm:$0xff] %v14858_v36  ;;  %10275 = vmatprep.mubr.msk.bf16.mxu0 %vm1723_vm7, %v14858_v36  ;;  %v14879_v61 = vrot.slane %v6207_v9, 4  ;;  %v6273_v7 = vshrl.u32 %v14524_v0, 16  ;;  %v6276_v32 = vshll.u32 %v14524_v0, 16  ;;  %5337 = vrot.lane.b32.xlu1 %v5242_v41, %s10991_s19  ;;  %v14885_v2 = vcombine.low %v14538_v11, %v6688_v63 }
 0x38d   : > { %16538 = vst [vmem:[#allocation56_spill] sm:$0xff] %v14871_v23  ;;  %v6694_v50 = vrot.slane %v14801_v34, 5  ;;  %10310 = vmatmul.mubr.msk.bf16.gmra.mxu1 %vm1723_vm7, %v14871_v23  ;;  %v6151_v22 = vsel %vm11812_vm15, %v14588_v40, %v6150_v53  ;;  %v6701_v38 = vrot.slane %v14814_v13, 5  ;;  %v6196_v25 = vshll.u32 %v5534_v55, 16 }
 0x38e   : > { %16539 = vst [vmem:[#allocation65_spill] sm:$0xff] %v14885_v2  ;;  %v6217_v9 = vor.u32 %v6216_v20, %v14847_v15  ;;  %10313 = vmatprep.mubr.msk.bf16.mxu1 %vm1723_vm7, %v14885_v2  ;;  %v6175_v11 = vsel %vm11812_vm15, %v14649_v5, %v6174_v58  ;;  %v6220_v34 = vshll.u32 %v14877_v56, 16  ;;  %v6705_v42 = vrot.slane %v14383_v1, 5  ;;  %v14936_v58 = vld [vmem:[#allocation2 + $0xa4] sm:$0x1] }
 0x38f   : > { %v6234_v14 = vshll.u32 %v14459_v47, 16  ;;  %v6213_v40 = vsel %vm11812_vm15, %v14879_v61, %v14847_v15  ;;  %v9230_v13 = vrot.slane %v14416_v8, 9  ;;  %v16540_v20 = vshrl.u32 %v14457_v10, 16 }
 0x390   : > { %v16541_v57 = vshll.u32 %v14457_v10, 16  ;;  %v16542_v1 = vsel %vm11812_vm15, %v14519_v12, %v14515_v52  ;;  %v6695_v48 = vsel %vm11827_vm0, %v14712_v45, %v6694_v50  ;;  %v6712_v15 = vrot.slane %v14418_v33, 5 }
 0x391   : > { %v6227_v30 = vrot.slane %v16540_v20, 4  ;;  %v14917_v5 = vcombine.low %v16542_v1, %v6151_v22  ;;  %v6258_v8 = vshll.u32 %v16536_v24, 16  ;;  %v16544_v63 = vsel %vm11812_vm15, %v14596_v3, %v14554_v62  ;;  %v5543_v22 = vld [vmem:[#allocation2 + $0xb0] sm:$0x1] }
 0x392   : > { %v6230_v54 = vrot.slane %v16541_v57, 5  ;;  %v14929_v53 = vcombine.low %v16544_v63, %v6175_v11  ;;  %v6702_v52 = vsel %vm11827_vm0, %v14730_v29, %v6701_v38  ;;  %v6198_v12 = vrot.slane %v6196_v25, 5 }
 0x393   : > { %16543 = vst [vmem:[#allocation68_spill] sm:$0xff] %v14917_v5  ;;  %v6218_v41 = vrot.slane %v6217_v9, 4  ;;  %10276 = vmatmul.mubr.msk.bf16.gmra.mxu0 %vm1723_vm7, %v14917_v5  ;;  %v6222_v45 = vrot.slane %v6220_v34, 5  ;;  %v6708_v33 = vrot.slane %v5534_v55, 5  ;;  %v6236_v21 = vrot.slane %v6234_v14, 5 }
 0x394   : > { %16545 = vst [vmem:[#allocation61_spill] sm:$0xff] %v14929_v53  ;;  %v16546_v61 = vshrl.u32 %v14459_v47, 16  ;;  %10279 = vmatprep.mubr.msk.bf16.mxu0 %vm1723_vm7, %v14929_v53  ;;  %v14943_v62 = vcombine.low %v14655_v27, %v6695_v48  ;;  %v6707_v3 = vrot.slane %v6705_v42, 4  ;;  %v6231_v29 = vor.u32 %v6230_v54, %v6227_v30 }
 0x395   : > { %v16548_v38 = vshrl.u32 %v14485_v60, 16  ;;  %v14948_v55 = vcombine.low %v14728_v16, %v6702_v52  ;;  %v16550_v9 = vshll.u32 %v14485_v60, 16  ;;  %v6260_v34 = vrot.slane %v6258_v8, 5 }
 0x396   : > { %v6240_v50 = vrot.slane %v16546_v61, 4  ;;  %16547 = vst [vmem:[#allocation57_spill] sm:$0xff] %v14943_v62  ;;  %v6264_v14 = vrot.slane %v6262_v17, 4  ;;  %10314 = vmatmul.mubr.msk.bf16.gmra.mxu1 %vm1723_vm7, %v14943_v62  ;;  %v6199_v27 = vsel %vm11812_vm15, %v6194_v46, %v6198_v12  ;;  %v6706_v20 = vsel %vm11827_vm0, %v9229_v4, %v6705_v42 }
 0x397   : > { %v6251_v25 = vrot.slane %v16548_v38, 4  ;;  %16549 = vst [vmem:[#allocation64_spill] sm:$0xff] %v14948_v55  ;;  %v6254_v11 = vrot.slane %v16550_v9, 5  ;;  %v6715_v30 = vrot.slane %v14877_v56, 5  ;;  %v6244_v57 = vshll.u32 %v14936_v58, 16  ;;  %10317 = vmatprep.mubr.msk.bf16.mxu1 %vm1723_vm7, %v14948_v55 }
 0x398   : > { %v6223_v16 = vsel %vm11812_vm15, %v6218_v41, %v6222_v45  ;;  %v6709_v17 = vsel %vm11827_vm0, %v6707_v3, %v6708_v33  ;;  %v6241_v54 = vor.u32 %v6240_v50, %v6236_v21  ;;  %v6268_v1 = vshll.u32 %v5543_v22, 16  ;;  %v5546_v50 = vld [vmem:[#allocation2 + $0xbc] sm:$0x1] }
 0x399   : > { %v6286_v46 = vshrl.u32 %v14526_v37, 16  ;;  %v6713_v4 = vsel %vm11827_vm0, %v9230_v13, %v6712_v15  ;;  %v6714_v42 = vrot.slane %v6712_v15, 4  ;;  %v6282_v56 = vshll.u32 %v14526_v37, 16 }
 0x39a   : > { %v14970_v48 = vcombine.low %v6189_v19, %v6199_v27  ;;  %v6232_v8 = vrot.slane %v6231_v29, 4  ;;  %v6255_v63 = vor.u32 %v6254_v11, %v6251_v25  ;;  %v6265_v52 = vor.u32 %v6264_v14, %v6260_v34 }
 0x39b   : > { %v14972_v12 = vcombine.low %v6213_v40, %v6223_v16  ;;  %v14974_v41 = vcombine.low %v6706_v20, %v6709_v17  ;;  %v6716_v45 = vsel %vm11827_vm0, %v6714_v42, %v6715_v30  ;;  %v6246_v33 = vrot.slane %v6244_v57, 5 }
 0x39c   : > { %16551 = vst [vmem:[#allocation67_spill] sm:$0xff] %v14970_v48  ;;  %10280 = vmatmul.mubr.msk.bf16.gmra.mxu0 %vm1723_vm7, %v14970_v48  ;;  %v6242_v13 = vrot.slane %v6241_v54, 4  ;;  %v6270_v15 = vrot.slane %v6268_v1, 5  ;;  %v6719_v61 = vrot.slane %v14459_v47, 5  ;;  %v6726_v19 = vrot.slane %v16536_v24, 5 }
 0x39d   : > { %16552 = vst [vmem:[#allocation62_spill] sm:$0xff] %v14972_v12  ;;  %16553 = vst [vmem:[#allocation71_spill] sm:$0xff] %v14974_v41  ;;  %10283 = vmatprep.mubr.msk.bf16.mxu0 %vm1723_vm7, %v14972_v12  ;;  %v6275_v40 = vrot.slane %v6273_v7, 4  ;;  %v6278_v3 = vrot.slane %v6276_v32, 5  ;;  %v6284_v29 = vrot.slane %v6282_v56, 5  ;;  %v6288_v38 = vrot.slane %v6286_v46, 4 }
 0x39e   : > { %v14988_v25 = vcombine.low %v6713_v4, %v6716_v45  ;;  %v6256_v9 = vrot.slane %v6255_v63, 4  ;;  %v6266_v11 = vrot.slane %v6265_v52, 4  ;;  %v6722_v47 = vrot.slane %v14936_v58, 5  ;;  %10318 = vmatmul.mubr.msk.bf16.gmra.mxu1 %vm1723_vm7, %v14974_v41 }
 0x39f   : > { %v6247_v24 = vsel %vm11812_vm15, %v6242_v13, %v6246_v33  ;;  %v6729_v14 = vrot.slane %v5543_v22, 5  ;;  %v6292_v27 = vshll.u32 %v5546_v50, 16  ;;  %v6721_v32 = vrot.slane %v6719_v61, 4 }
 0x3a0   : > { %10321 = vmatprep.mubr.msk.bf16.mxu1 %vm1723_vm7, %v14988_v25  ;;  %v6271_v7 = vsel %vm11812_vm15, %v6266_v11, %v6270_v15  ;;  %v6237_v20 = vsel %vm11812_vm15, %v6232_v8, %v6236_v21  ;;  %v6728_v30 = vrot.slane %v6726_v19, 4  ;;  %v6279_v58 = vor.u32 %v6278_v3, %v6275_v40  ;;  %v16558_v3 = vld [vmem:[#allocation24_spill] sm:$0xff]  ;;  %v16560_v11 = vld [vmem:[#allocation30_spill] sm:$0xff] }
 0x3a1   : > { %v6289_v57 = vor.u32 %v6288_v38, %v6284_v29  ;;  %v15001_v16 = vcombine.low %v6237_v20, %v6247_v24  ;;  %v6261_v17 = vsel %vm11812_vm15, %v6256_v9, %v6260_v34  ;;  %v9231_v22 = vrot.slane %v14457_v10, 9  ;;  %v10680_v38 = vld [vmem:[%s16043_s4 + $0x98] sm:$0xff]   ;;  %v16562_v24 = vld [vmem:[#allocation52_spill] sm:$0xff]  ;;  %v16567_v20 = vld [vmem:[#allocation55_spill] sm:$0xff] }
 0x3a2   : > { %v6723_v54 = vsel %vm11827_vm0, %v6721_v32, %v6722_v47  ;;  %v15008_v1 = vcombine.low %v6261_v17, %v6271_v7  ;;  %v9232_v46 = vrot.slane %v14485_v60, 9  ;;  %v6730_v21 = vsel %vm11827_vm0, %v6728_v30, %v6729_v14  ;;  %v15076_v9 = vld [vmem:[%s16043_s4 + $0xb8] sm:$0xff]   ;;  %v16561_v47 = vld [vmem:[#allocation31_spill] sm:$0xff]  ;;  %v16565_v7 = vld [vmem:[#allocation48_spill] sm:$0xff] }
 0x3a3   : > { %16554 = vst [vmem:[#allocation6_spill] sm:$0xff] %v15001_v16  ;;  %v6294_v4 = vrot.slane %v6292_v27, 5  ;;  %v6720_v42 = vsel %vm11827_vm0, %v9231_v22, %v6719_v61  ;;  %v6733_v34 = vrot.slane %v14526_v37, 5  ;;  %v6280_v56 = vrot.slane %v6279_v58, 4  ;;  %v16563_v14 = vld [vmem:[#allocation38_spill] sm:$0xff]  ;;  %v16564_v27 = vld [vmem:[#allocation41_spill] sm:$0xff] }
 0x3a4   : > { %16555 = vst [vmem:[#allocation72_spill] sm:$0xff] %v15008_v1  ;;  %10284 = vmatmul.mubr.msk.bf16.gmra.mxu0 %vm1723_vm7, %v15001_v16  ;;  %v15020_v10 = vcombine.low %v6720_v42, %v6723_v54  ;;  %v6727_v60 = vsel %vm11827_vm0, %v9232_v46, %v6726_v19  ;;  %v6290_v8 = vrot.slane %v6289_v57, 4  ;;  %v6736_v52 = vrot.slane %v5546_v50, 5  ;;  %v16557_v50 = vld [vmem:[#allocation21_spill] sm:$0xff]  ;;  %v16566_v32 = vld [vmem:[#allocation51_spill] sm:$0xff]  ;;  %v16568_v30 = vld [vmem:[#allocation60_spill] sm:$0xff] }
 0x3a5   : > { %10287 = vmatprep.mubr.msk.bf16.mxu0 %vm1723_vm7, %v15008_v1  ;;  %v15024_v63 = vcombine.low %v6727_v60, %v6730_v21  ;;  %v6735_v37 = vrot.slane %v6733_v34, 4  ;;  %v6285_v33 = vsel %vm11812_vm15, %v6280_v56, %v6284_v29  ;;  %v9233_v15 = vrot.slane %v14524_v0, 9  ;;  %v10679_v0 = vld [vmem:[%s16043_s4 + $0x80] sm:$0xff]   ;;  %v16559_v29 = vld [vmem:[#allocation25_spill] sm:$0xff]  ;;  %v16570_v57 = vld [vmem:[#allocation66_spill] sm:$0xff] }
 0x3a6   : > { %10322 = vmatmul.mubr.msk.bf16.gmra.mxu1 %vm1723_vm7, %v15020_v10  ;;  %v6295_v45 = vsel %vm11812_vm15, %v6290_v8, %v6294_v4  ;;  %v16569_v58 = vld [vmem:[#allocation63_spill] sm:$0xff]  ;;  %v16571_v17 = vld [vmem:[#allocation70_spill] sm:$0xff] }
 0x3a7   : > { %10325 = vmatprep.mubr.msk.bf16.mxu1 %vm1723_vm7, %v15024_v63  ;;  %v15034_v13 = vcombine.low %v6285_v33, %v6295_v45  ;;  %v6737_v61 = vsel %vm11827_vm0, %v6735_v37, %v6736_v52  ;;  %v6734_v19 = vsel %vm11827_vm0, %v9233_v15, %v6733_v34  ;;  %v16572_v22 = vld [vmem:[#allocation74_spill] sm:$0xff]  ;;  %v5492_v42 = vld [vmem:[#allocation2 + $0xc0] sm:$0xf]  ;;  %v5496_v37 = vld [vmem:[#allocation2 + $0xc8] sm:$0x1] }
 0x3a8   : > { %v15045_v40 = vcombine.low %v6734_v19, %v6737_v61 }
 0x3a9   : > { %16556 = vst [vmem:[#allocation69_spill] sm:$0xff] %v15034_v13 }
 0x3ac   : > { %10288 = vmatmul.mubr.msk.bf16.gmra.mxu0 %vm1723_vm7, %v15034_v13 }
 0x3ad   : > { %10335 = vmatprep.mubr.msk.bf16.mxu0 %vm1723_vm7, %v16557_v50 }
 0x3ae   : > { %10326 = vmatmul.mubr.msk.bf16.gmra.mxu1 %vm1723_vm7, %v15045_v40 }
 0x3af   : > { %10373 = vmatprep.mubr.msk.bf16.mxu1 %vm1723_vm7, %v14585_v39  ;;  %v10681_v39 = vld [vmem:[%s16043_s4 + $0x78] sm:$0xff]  }
 0x3b4   : > { %10336 = vmatmul.mubr.msk.bf16.vlgmr.msra.gmra.mxu0 %vm1723_vm7, %v16558_v3 }
 0x3b5   : > { %10339 = vmatprep.mubr.msk.bf16.mxu0 %vm1723_vm7, %v16559_v29  ;;  %10406 = vmatpush3.bf16.msra.mxu0 %v14691_v43  ;;  %v10682_v43 = vld [vmem:[%s16043_s4 + $0x90] sm:$0xff]  }
 0x3b6   : > { %10407 = vmatprep.subr.bf16.mxu0 %v10679_v0  ;;  %10374 = vmatmul.mubr.msk.bf16.vlgmr.msra.gmra.mxu1 %vm1723_vm7, %v14633_v28 }
 0x3b7   : > { %10377 = vmatprep.mubr.msk.bf16.mxu1 %vm1723_vm7, %v14673_v26  ;;  %10444 = vmatpush3.bf16.msra.mxu1 %v14735_v6  ;;  %v15085_v6 = vld [vmem:[%s16043_s4 + $0xd0] sm:$0xff]  }
 0x3b8   : > { %10445 = vmatprep.subr.bf16.mxu1 %v10680_v38 }
 0x3b9   : > { %10408 = vmatpush3.bf16.msra.mxu0 %v10679_v0 }
 0x3ba   : > { %10409 = vmatprep.subr.bf16.mxu0 %v10681_v39 }
 0x3bb   : > { %10446 = vmatpush3.bf16.msra.mxu1 %v10680_v38 }
 0x3bc   : > { %10340 = vmatmul.mubr.msk.bf16.gmra.mxu0 %vm1723_vm7, %v16560_v11  ;;  %10447 = vmatprep.subr.bf16.mxu1 %v10682_v43 }
 0x3bd   : > { %10343 = vmatprep.mubr.msk.bf16.mxu0 %vm1723_vm7, %v16561_v47  ;;  %10410 = vmatpush3.bf16.msra.mxu0 %v10681_v39 }
 0x3be   : > { %10481 = vmatprep.subr.bf16.mxu0 %v15076_v9  ;;  %10378 = vmatmul.mubr.msk.bf16.gmra.mxu1 %vm1723_vm7, %v14680_v18 }
 0x3bf   : > { %10381 = vmatprep.mubr.msk.bf16.mxu1 %vm1723_vm7, %v16562_v24  ;;  %10448 = vmatpush3.bf16.msra.mxu1 %v10682_v43 }
 0x3c0   : > { %10519 = vmatprep.subr.bf16.mxu1 %v15085_v6 }
 0x3c4   : > { %10344 = vmatmul.mubr.msk.bf16.gmra.mxu0 %vm1723_vm7, %v16563_v14 }
 0x3c5   : > { %10347 = vmatprep.mubr.msk.bf16.mxu0 %vm1723_vm7, %v16564_v27 }
 0x3c6   : > { %10382 = vmatmul.mubr.msk.bf16.gmra.mxu1 %vm1723_vm7, %v14795_v44 }
 0x3c7   : > { %10385 = vmatprep.mubr.msk.bf16.mxu1 %vm1723_vm7, %v14842_v35 }
 0x3cc   : > { %10348 = vmatmul.mubr.msk.bf16.gmra.mxu0 %vm1723_vm7, %v16565_v7 }
 0x3cd   : > { %10351 = vmatprep.mubr.msk.bf16.mxu0 %vm1723_vm7, %v16566_v32 }
 0x3ce   : > { %10386 = vmatmul.mubr.msk.bf16.gmra.mxu1 %vm1723_vm7, %v14858_v36 }
 0x3cf   : > { %10389 = vmatprep.mubr.msk.bf16.mxu1 %vm1723_vm7, %v14917_v5 }
 0x3d4   : > { %10352 = vmatmul.mubr.msk.bf16.gmra.mxu0 %vm1723_vm7, %v16567_v20 }
 0x3d5   : > { %10355 = vmatprep.mubr.msk.bf16.mxu0 %vm1723_vm7, %v16568_v30 }
 0x3d6   : > { %10390 = vmatmul.mubr.msk.bf16.gmra.mxu1 %vm1723_vm7, %v14929_v53 }
 0x3d7   : > { %10393 = vmatprep.mubr.msk.bf16.mxu1 %vm1723_vm7, %v14970_v48 }
 0x3dc   : > { %10356 = vmatmul.mubr.msk.bf16.gmra.mxu0 %vm1723_vm7, %v16569_v58 }
 0x3dd   : > { %10359 = vmatprep.mubr.msk.bf16.mxu0 %vm1723_vm7, %v16570_v57 }
 0x3de   : > { %10394 = vmatmul.mubr.msk.bf16.gmra.mxu1 %vm1723_vm7, %v14972_v12 }
 0x3df   : > { %10397 = vmatprep.mubr.msk.bf16.mxu1 %vm1723_vm7, %v15001_v16  ;;  %v16575_v16 = vld [vmem:[#allocation75_spill] sm:$0xff] }
 0x3e4   : > { %10360 = vmatmul.mubr.msk.bf16.gmra.mxu0 %vm1723_vm7, %v16571_v17 }
 0x3e5   : > { %10363 = vmatprep.mubr.msk.bf16.mxu0 %vm1723_vm7, %v16572_v22 }
 0x3e6   : > { %10398 = vmatmul.mubr.msk.bf16.gmra.mxu1 %vm1723_vm7, %v15008_v1 }
 0x3e7   : > { %10401 = vmatprep.mubr.msk.bf16.mxu1 %vm1723_vm7, %v15034_v13 }
 0x3ec   : > { %v15133_v54 = vpop.f32.mrf.mxu1 }
 0x3ee   : > { %v15135_v46 = vpop.f32.mrf.mxu1 }
 0x3f0   : > { %v15137_v21 = vpop.f32.mrf.mxu1 }
 0x3f2   : > { %v15139_v4 = vpop.f32.mrf.mxu1 }
 0x3f9   : > { %v5334_v34 = vpop.permute.xlu1 %5333 }
 0x3fa   : > { %v5493_v56 = vsel %vm11366_vm6, %v5334_v34, %v5492_v42 }
 0x3fb   : > { %v15143_v8 = vpop.f32.mrf.mxu1  ;;  %5494 = vst [vmem:[#allocation2 + $0xc0] sm:$0xf] %v5493_v56  ;;  %v5336_v52 = vpop.permute.xlu0 %5335 }
 0x3fc   : > { %5495 = vst.msk [vmem:[#allocation2 + $0xc4] sm:$0xf] %vm811_vm4, %v5336_v52 }
 0x3fd   : > { %v15146_v45 = vpop.f32.mrf.mxu1 }
 0x3fe   : > { %v5338_v33 = vpop.permute.xlu1 %5337 }
 0x3ff   : > { %v5497_v61 = vsel %vm11735_vm10, %v5338_v33, %v5496_v37  ;;  %v15150_v19 = vpop.f32.mrf.mxu1 }
 0x400   : > { %5498 = vst [vmem:[#allocation2 + $0xc8] sm:$0x1] %v5497_v61 }
 0x401   : > { %v15152_v50 = vpop.f32.mrf.mxu1 }
 0x402   : > { %v15156_v38 = vld [vmem:[#allocation2 + $0xc0] sm:$0xf] }
 0x403   : > { %v15154_v0 = vpop.f32.mrf.mxu1  ;;  %v15158_v39 = vld [vmem:[#allocation2 + $0xc4] sm:$0xf]  ;;  %v7279_v43 = vshrl.u32 %v15156_v38, 16  ;;  %v7282_v42 = vshll.u32 %v15156_v38, 16 }
 0x404   : > { %v15166_v60 = vcombine.low %v15156_v38, %v15158_v39  ;;  %v7292_v56 = vshrl.u32 %v15158_v39, 16  ;;  %v7288_v52 = vshll.u32 %v15158_v39, 16 }
 0x405   : > { %v15162_v34 = vpop.f32.mrf.mxu1  ;;  %v7281_v37 = vrot.slane %v7279_v43, 4  ;;  %v7284_v33 = vrot.slane %v7282_v42, 5 }
 0x406   : > { %10364 = vmatmul.mubr.msk.bf16.gmra.mxu0 %vm1723_vm7, %v15166_v60  ;;  %v7290_v13 = vrot.slane %v7288_v52, 5  ;;  %v7294_v1 = vrot.slane %v7292_v56, 4 }
 0x407   : > { %v15172_v15 = vpop.f32.mrf.mxu1  ;;  %v15174_v61 = vld [vmem:[#allocation2 + $0xc8] sm:$0x1]  ;;  %10411 = vmatprep.mubr.msk.bf16.mxu0 %vm1723_vm7, %v16575_v16  ;;  %v7285_v12 = vor.u32 %v7284_v33, %v7281_v37  ;;  %v10686_v37 = vld [vmem:[%s16043_s4 + $0xb0] sm:$0xff]  }
 0x408   : > { %v7298_v48 = vshll.u32 %v15174_v61, 16  ;;  %v7295_v5 = vor.u32 %v7294_v1, %v7290_v13  ;;  %v16577_v1 = vld [vmem:[#allocation76_spill] sm:$0xff] }
 0x409   : > { %v15179_v53 = vpop.f32.mrf.mxu1  ;;  %v7286_v43 = vrot.slane %v7285_v12, 4  ;;  %v10687_v33 = vld [vmem:[%s16043_s4 + $0xc8] sm:$0xff]  }
 0x40a   : > { %v7300_v42 = vrot.slane %v7298_v48, 5  ;;  %v7296_v36 = vrot.slane %v7295_v5, 4  ;;  %v16578_v5 = vld [vmem:[#allocation12_spill] sm:$0xff] }
 0x40b   : > { %v15181_v35 = vpop.f32.mrf.mxu1  ;;  %v7291_v44 = vsel %vm11812_vm15, %v7286_v43, %v7290_v13 }
 0x40c   : > { %v7301_v56 = vsel %vm11812_vm15, %v7296_v36, %v7300_v42  ;;  %v10688_v36 = vld [vmem:[%s16043_s4 + $0xa8] sm:$0xff]   ;;  %v10689_v42 = vld [vmem:[%s16043_s4 + $0xc0] sm:$0xff]  }
 0x40d   : > { %v15187_v52 = vpop.f32.mrf.mxu1  ;;  %v15189_v16 = vcombine.low %v7291_v44, %v7301_v56 }
 0x40e   : > { %10412 = vmatmul.mubr.msk.bf16.vlgmr.msra.gmra.mxu0 %vm1723_vm7, %v16577_v1 }
 0x40f   : > { %16576 = vst [vmem:[#allocation73_spill] sm:$0xff] %v15189_v16  ;;  %10402 = vmatmul.mubr.msk.bf16.gmra.mxu1 %vm1723_vm7, %v15189_v16  ;;  %10415 = vmatprep.mubr.msk.bf16.mxu0 %vm1723_vm7, %v16578_v5  ;;  %v15200_v48 = vpop.f32.mrf.mxu1 }
 0x410   : > { %10449 = vmatprep.mubr.msk.bf16.mxu1 %vm1723_vm7, %v16558_v3  ;;  %10482 = vmatpush3.bf16.msra.mxu0 %v15076_v9  ;;  %v16579_v3 = vld [vmem:[#allocation49_spill] sm:$0xff] }
 0x411   : > { %v15205_v44 = vpop.f32.mrf.mxu1  ;;  %10483 = vmatprep.subr.bf16.mxu0 %v10686_v37 }
 0x413   : > { %v15210_v12 = vpop.f32.mrf.mxu1 }
 0x414   : > { %10484 = vmatpush3.bf16.msra.mxu0 %v10686_v37 }
 0x415   : > { %v15212_v13 = vpop.f32.mrf.mxu1  ;;  %10485 = vmatprep.subr.bf16.mxu0 %v10688_v36 }
 0x416   : > { %10416 = vmatmul.mubr.msk.bf16.gmra.mxu0 %vm1723_vm7, %v16579_v3 }
 0x417   : > { %10419 = vmatprep.mubr.msk.bf16.mxu0 %vm1723_vm7, %v14809_v31  ;;  %10450 = vmatmul.mubr.msk.bf16.vlgmr.msra.gmra.mxu1 %vm1723_vm7, %v16559_v29  ;;  %v15223_v9 = vpop.f32.mrf.mxu1 }
 0x418   : > { %10520 = vmatpush3.bf16.msra.mxu1 %v15085_v6  ;;  %10453 = vmatprep.mubr.msk.bf16.mxu1 %vm1723_vm7, %v16560_v11 }
 0x419   : > { %v15228_v43 = vpop.f32.mrf.mxu1  ;;  %10521 = vmatprep.subr.bf16.mxu1 %v10687_v33  ;;  %10486 = vmatpush3.bf16.msra.mxu0 %v10688_v36 }
 0x41b   : > { %v15233_v56 = vpop.f32.mrf.mxu1 }
 0x41c   : > { %10522 = vmatpush3.bf16.msra.mxu1 %v10687_v33 }
 0x41d   : > { %v15235_v37 = vpop.f32.mrf.mxu1  ;;  %10523 = vmatprep.subr.bf16.mxu1 %v10689_v42 }
 0x41e   : > { %10420 = vmatmul.mubr.msk.bf16.gmra.mxu0 %vm1723_vm7, %v14812_v59 }
 0x41f   : > { %10423 = vmatprep.mubr.msk.bf16.mxu0 %vm1723_vm7, %v14871_v23  ;;  %10454 = vmatmul.mubr.msk.bf16.gmra.mxu1 %vm1723_vm7, %v16561_v47  ;;  %v15243_v29 = vpop.f32.mrf.mxu1 }
 0x420   : > { %10457 = vmatprep.mubr.msk.bf16.mxu1 %vm1723_vm7, %v16563_v14  ;;  %10524 = vmatpush3.bf16.msra.mxu1 %v10689_v42  ;;  %v15270_v42 = vld [vmem:[%s16044_s5] ss:$0 sm:$0xff] }
 0x421   : > { %v15247_v11 = vpop.f32.mrf.mxu1 }
 0x423   : > { %v15249_v6 = vpop.f32.mrf.mxu1 }
 0x425   : > { %v15251_v36 = vpop.f32.mrf.mxu1 }
 0x426   : > { %10424 = vmatmul.mubr.msk.bf16.gmra.mxu0 %vm1723_vm7, %v14885_v2 }
 0x427   : > { %10427 = vmatprep.mubr.msk.bf16.mxu0 %vm1723_vm7, %v14943_v62  ;;  %10458 = vmatmul.mubr.msk.bf16.gmra.mxu1 %vm1723_vm7, %v16564_v27  ;;  %v15259_v47 = vpop.f32.mrf.mxu1  ;;  %v5875_v27 = vadd.f32 %v15133_v54, %v15270_v42  ;;  %v5873_v62 = vadd.f32 %v15270_v42, %v15135_v46 }
 0x428   : > { %10461 = vmatprep.mubr.msk.bf16.mxu1 %vm1723_vm7, %v16565_v7 }
 0x429   : > { %v15263_v14 = vpop.f32.mrf.mxu1 }
 0x42a   : > { %16580 = vst [vmem:[#allocation21_spill] sm:$0xff] %v15263_v14 }
 0x42b   : > { %v15265_v33 = vpop.f32.mrf.mxu1 }
 0x42c   : > { %16581 = vst [vmem:[#allocation24_spill] sm:$0xff] %v15265_v33 }
 0x42d   : > { %v15272_v51 = vpop.f32.mrf.mxu1 }
 0x42e   : > { %16582 = vst [vmem:[#allocation25_spill] sm:$0xff] %v15272_v51  ;;  %10428 = vmatmul.mubr.msk.bf16.gmra.mxu0 %vm1723_vm7, %v14948_v55 }
 0x42f   : > { %10431 = vmatprep.mubr.msk.bf16.mxu0 %vm1723_vm7, %v14974_v41  ;;  %10462 = vmatmul.mubr.msk.bf16.gmra.mxu1 %vm1723_vm7, %v16566_v32  ;;  %v15282_v7 = vpop.f32.mrf.mxu1  ;;  %v5876_v41 = vadd.f32 %v15137_v21, %v15270_v42 }
 0x430   : > { %16583 = vst [vmem:[#allocation30_spill] sm:$0xff] %v15282_v7  ;;  %10465 = vmatprep.mubr.msk.bf16.mxu1 %vm1723_vm7, %v16567_v20  ;;  %v5874_v7 = vadd.f32 %v15270_v42, %v15139_v4 }
 0x431   : > { %v10261_v16 = vpop.f32.mrf.mxu0  ;;  %v15288_v51 = vpop.f32.mrf.mxu1 }
 0x432   : > { %v6573_v55 = vadd.f32 %v10261_v16, %v5875_v27  ;;  %v5877_v16 = vadd.f32 %v15270_v42, %v15146_v45  ;;  %v5878_v45 = vadd.f32 %v15270_v42, %v15152_v50  ;;  %v5883_v50 = vadd.f32 %v15154_v0, %v15270_v42 }
 0x433   : > { %v6444_v2 = vpop.f32.mrf.mxu0  ;;  %v10299_v33 = vpop.f32.mrf.mxu1 }
 0x434   : > { %v6571_v32 = vadd.f32 %v6444_v2, %v5873_v62  ;;  %v15292_v23 = vadd.f32 %v10299_v33, %v6573_v55  ;;  %v5879_v62 = vadd.f32 %v15143_v8, %v15270_v42  ;;  %v5880_v8 = vadd.f32 %v15150_v19, %v15270_v42 }
 0x435   : > { %v10262_v54 = vpop.f32.mrf.mxu0  ;;  %v6886_v14 = vpop.f32.mrf.mxu1 }
 0x436   : > { %v6574_v20 = vadd.f32 %v10262_v54, %v5876_v41  ;;  %10432 = vmatmul.mubr.msk.bf16.gmra.mxu0 %vm1723_vm7, %v14988_v25  ;;  %v15298_v46 = vadd.f32 %v6886_v14, %v6571_v32  ;;  %v7529_v32 = vrot.slane %v15158_v39, 5  ;;  %v9327_v39 = vrot.slane %v15156_v38, 9 }
 0x437   : > { %10435 = vmatprep.mubr.msk.bf16.mxu0 %vm1723_vm7, %v15020_v10  ;;  %10466 = vmatmul.mubr.msk.bf16.gmra.mxu1 %vm1723_vm7, %v16568_v30  ;;  %v6447_v2 = vpop.f32.mrf.mxu0  ;;  %v10300_v21 = vpop.f32.mrf.mxu1 }
 0x438   : > { %v6572_v55 = vadd.f32 %v6447_v2, %v5874_v7  ;;  %10469 = vmatprep.mubr.msk.bf16.mxu1 %vm1723_vm7, %v16569_v58  ;;  %v15308_v41 = vadd.f32 %v10300_v21, %v6574_v20  ;;  %v7532_v20 = vrot.slane %v15174_v61, 5  ;;  %v7531_v61 = vrot.slane %v7529_v32, 4 }
 0x439   : > { %v10265_v4 = vpop.f32.mrf.mxu0  ;;  %v6889_v33 = vpop.f32.mrf.mxu1  ;;  %v7530_v0 = vsel %vm11827_vm0, %v9327_v39, %v7529_v32  ;;  %v5887_v32 = vadd.f32 %v15181_v35, %v15270_v42 }
 0x43a   : > { %v6577_v14 = vadd.f32 %v10265_v4, %v5879_v62  ;;  %v15312_v27 = vadd.f32 %v6889_v33, %v6572_v55 }
 0x43b   : > { %v6460_v30 = vpop.f32.mrf.mxu0 }
 0x43c   : > { %v6575_v7 = vadd.f32 %v6460_v30, %v5877_v16  ;;  %v10303_v54 = vpop.f32.mrf.mxu1  ;;  %v7533_v30 = vsel %vm11827_vm0, %v7531_v61, %v7532_v20 }
 0x43d   : > { %v15317_v2 = vadd.f32 %v10303_v54, %v6577_v14  ;;  %v10266_v58 = vpop.f32.mrf.mxu0 }
 0x43e   : > { %v6578_v62 = vadd.f32 %v10266_v58, %v5880_v8  ;;  %v6902_v21 = vpop.f32.mrf.mxu1  ;;  %10436 = vmatmul.mubr.msk.bf16.gmra.mxu0 %vm1723_vm7, %v15024_v63 }
 0x43f   : > { %v15324_v55 = vadd.f32 %v6902_v21, %v6575_v7  ;;  %10439 = vmatprep.mubr.msk.bf16.mxu0 %vm1723_vm7, %v15045_v40  ;;  %10470 = vmatmul.mubr.msk.bf16.gmra.mxu1 %vm1723_vm7, %v16570_v57  ;;  %v6463_v19 = vpop.f32.mrf.mxu0  ;;  %v5881_v57 = vadd.f32 %v15270_v42, %v15162_v34  ;;  %v5882_v34 = vadd.f32 %v15270_v42, %v15179_v53  ;;  %v15365_v53 = vld [vmem:[#allocation2 + $0xcc] sm:$0xf] }
 0x440   : > { %v6576_v4 = vadd.f32 %v6463_v19, %v5878_v45  ;;  %v10304_v16 = vpop.f32.mrf.mxu1  ;;  %10473 = vmatprep.mubr.msk.bf16.mxu1 %vm1723_vm7, %v16571_v17  ;;  %v5884_v17 = vadd.f32 %v15172_v15, %v15270_v42 }
 0x441   : > { %v15335_v14 = vadd.f32 %v10304_v16, %v6578_v62  ;;  %v10269_v33 = vpop.f32.mrf.mxu0  ;;  %v15347_v62 = vcombine.low %v7530_v0, %v7533_v30  ;;  %v15367_v16 = vld [vmem:[#allocation2 + $0xd0] sm:$0xf] }
 0x442   : > { %v6581_v8 = vadd.f32 %v10269_v33, %v5883_v50  ;;  %v6905_v38 = vpop.f32.mrf.mxu1 }
 0x443   : > { %v15341_v7 = vadd.f32 %v6905_v38, %v6576_v4  ;;  %v6476_v54 = vpop.f32.mrf.mxu0  ;;  %v9354_v38 = vcombine.low %v15365_v53, %v15367_v16 }
 0x444   : > { %v6579_v58 = vadd.f32 %v6476_v54, %v5881_v57 }
 0x445   : > { %v10307_v45 = vpop.f32.mrf.mxu1  ;;  %v10270_v20 = vpop.f32.mrf.mxu0 }
 0x446   : > { %v15349_v21 = vadd.f32 %v10307_v45, %v6581_v8  ;;  %v6582_v19 = vadd.f32 %v10270_v20, %v5884_v17  ;;  %10440 = vmatmul.mubr.msk.bf16.gmra.mxu0 %vm1723_vm7, %v15347_v62  ;;  %v5886_v45 = vadd.f32 %v15270_v42, %v15205_v44 }
 0x447   : > { %v6918_v61 = vpop.f32.mrf.mxu1  ;;  %10474 = vmatmul.mubr.msk.bf16.gmra.mxu1 %vm1723_vm7, %v16572_v22  ;;  %10487 = vmatprep.mubr.msk.bf16.mxu0 %vm1723_vm7, %v14633_v28  ;;  %v6479_v15 = vpop.f32.mrf.mxu0  ;;  %v5885_v22 = vadd.f32 %v15270_v42, %v15187_v52 }
 0x448   : > { %v15355_v50 = vadd.f32 %v6918_v61, %v6579_v58  ;;  %v6580_v39 = vadd.f32 %v6479_v15, %v5882_v34  ;;  %10477 = vmatprep.mubr.msk.bf16.mxu1 %vm1723_vm7, %v15166_v60  ;;  %v5888_v60 = vadd.f32 %v15200_v48, %v15270_v42 }
 0x449   : > { %v10308_v4 = vpop.f32.mrf.mxu1 }
 0x44a   : > { %v15369_v33 = vadd.f32 %v10308_v4, %v6582_v19  ;;  %v10273_v30 = vpop.f32.mrf.mxu0  ;;  %v5891_v19 = vadd.f32 %v15210_v12, %v15270_v42 }
 0x44b   : > { %v6585_v28 = vadd.f32 %v10273_v30, %v5887_v32  ;;  %v6921_v57 = vpop.f32.mrf.mxu1 }
 0x44c   : > { %v15373_v8 = vadd.f32 %v6921_v57, %v6580_v39  ;;  %v6492_v35 = vpop.f32.mrf.mxu0 }
 0x44d   : > { %v6583_v54 = vadd.f32 %v6492_v35, %v5885_v22  ;;  %v10311_v0 = vpop.f32.mrf.mxu1  ;;  %v5892_v22 = vadd.f32 %v15223_v9, %v15270_v42 }
 0x44e   : > { %v15379_v17 = vadd.f32 %v10311_v0, %v6585_v28  ;;  %v10274_v58 = vpop.f32.mrf.mxu0  ;;  %10488 = vmatmul.mubr.msk.bf16.vlgmr.msra.gmra.mxu0 %vm1723_vm7, %v14673_v26  ;;  %v5889_v26 = vadd.f32 %v15270_v42, %v15212_v13  ;;  %v5895_v0 = vadd.f32 %v15233_v56, %v15270_v42 }
 0x44f   : > { %v6586_v52 = vadd.f32 %v10274_v58, %v5888_v60  ;;  %v6934_v20 = vpop.f32.mrf.mxu1  ;;  %10478 = vmatmul.mubr.msk.bf16.gmra.mxu1 %vm1723_vm7, %v9354_v38  ;;  %10491 = vmatprep.mubr.msk.bf16.mxu0 %vm1723_vm7, %v14680_v18 }
 0x450   : > { %v15385_v34 = vadd.f32 %v6934_v20, %v6583_v54  ;;  %v6495_v48 = vpop.f32.mrf.mxu0  ;;  %10525 = vmatprep.mubr.msk.bf16.mxu1 %vm1723_vm7, %v16577_v1  ;;  %v5890_v1 = vadd.f32 %v15270_v42, %v15228_v43  ;;  %v16584_v54 = vld [vmem:[#allocation53_spill] sm:$0xff] }
 0x451   : > { %v6584_v61 = vadd.f32 %v6495_v48, %v5886_v45  ;;  %v10312_v15 = vpop.f32.mrf.mxu1 }
 0x452   : > { %v15394_v44 = vadd.f32 %v10312_v15, %v6586_v52  ;;  %v5893_v52 = vadd.f32 %v15270_v42, %v15235_v37 }
 0x453   : > { %v10277_v32 = vpop.f32.mrf.mxu0  ;;  %v6937_v4 = vpop.f32.mrf.mxu1 }
 0x454   : > { %v6589_v39 = vadd.f32 %v10277_v32, %v5891_v19  ;;  %v15398_v30 = vadd.f32 %v6937_v4, %v6584_v61  ;;  %v5896_v61 = vadd.f32 %v15243_v29, %v15270_v42 }
 0x455   : > { %v6508_v18 = vpop.f32.mrf.mxu0 }
 0x456   : > { %v6587_v12 = vadd.f32 %v6508_v18, %v5889_v26  ;;  %v10315_v28 = vpop.f32.mrf.mxu1  ;;  %10492 = vmatmul.mubr.msk.bf16.gmra.mxu0 %vm1723_vm7, %v16562_v24  ;;  %v16585_v18 = vld [vmem:[#allocation58_spill] sm:$0xff] }
 0x457   : > { %v15402_v57 = vadd.f32 %v10315_v28, %v6589_v39  ;;  %v10278_v35 = vpop.f32.mrf.mxu0  ;;  %10495 = vmatprep.mubr.msk.bf16.mxu0 %vm1723_vm7, %v16584_v54  ;;  %10526 = vmatmul.mubr.msk.bf16.vlgmr.msra.gmra.mxu1 %vm1723_vm7, %v16578_v5 }
 0x458   : > { %v6590_v38 = vadd.f32 %v10278_v35, %v5892_v22  ;;  %v6950_v60 = vpop.f32.mrf.mxu1  ;;  %10529 = vmatprep.mubr.msk.bf16.mxu1 %vm1723_vm7, %v16579_v3  ;;  %v5894_v3 = vadd.f32 %v15270_v42, %v15247_v11  ;;  %v16586_v22 = vld [vmem:[#allocation59_spill] sm:$0xff] }
 0x459   : > { %v15408_v13 = vadd.f32 %v6950_v60, %v6587_v12  ;;  %v6511_v9 = vpop.f32.mrf.mxu0  ;;  %v5899_v12 = vadd.f32 %v15249_v6, %v15270_v42 }
 0x45a   : > { %v6588_v58 = vadd.f32 %v6511_v9, %v5890_v1  ;;  %v10316_v45 = vpop.f32.mrf.mxu1 }
 0x45b   : > { %v15418_v43 = vadd.f32 %v10316_v45, %v6590_v38  ;;  %v5897_v38 = vadd.f32 %v15270_v42, %v15251_v36 }
 0x45c   : > { %v10281_v24 = vpop.f32.mrf.mxu0  ;;  %v6953_v48 = vpop.f32.mrf.mxu1 }
 0x45d   : > { %v6593_v20 = vadd.f32 %v10281_v24, %v5895_v0  ;;  %v15422_v19 = vadd.f32 %v6953_v48, %v6588_v58  ;;  %v5900_v0 = vadd.f32 %v15259_v47, %v15270_v42 }
 0x45e   : > { %v6524_v5 = vpop.f32.mrf.mxu0  ;;  %v10319_v15 = vpop.f32.mrf.mxu1  ;;  %10496 = vmatmul.mubr.msk.bf16.gmra.mxu0 %vm1723_vm7, %v16585_v18 }
 0x45f   : > { %v6591_v56 = vadd.f32 %v6524_v5, %v5893_v52  ;;  %v15426_v32 = vadd.f32 %v10319_v15, %v6593_v20  ;;  %10499 = vmatprep.mubr.msk.bf16.mxu0 %vm1723_vm7, %v16586_v22  ;;  %10530 = vmatmul.mubr.msk.bf16.gmra.mxu1 %vm1723_vm7, %v14809_v31  ;;  %v16588_v5 = vld [vmem:[#allocation68_spill] sm:$0xff] }
 0x460   : > { %v10282_v26 = vpop.f32.mrf.mxu0  ;;  %v6966_v4 = vpop.f32.mrf.mxu1  ;;  %10533 = vmatprep.mubr.msk.bf16.mxu1 %vm1723_vm7, %v14812_v59  ;;  %v16587_v59 = vld [vmem:[#allocation21_spill] sm:$0xff]  ;;  %v16591_v15 = vld [vmem:[#allocation24_spill] sm:$0xff] }
 0x461   : > { %v6594_v39 = vadd.f32 %v10282_v26, %v5896_v61  ;;  %v15432_v37 = vadd.f32 %v6966_v4, %v6591_v56  ;;  %v5898_v52 = vadd.f32 %v15270_v42, %v16587_v59  ;;  %v16589_v61 = vld [vmem:[#allocation61_spill] sm:$0xff]  ;;  %v16590_v56 = vld [vmem:[#allocation56_spill] sm:$0xff]  ;;  %v5903_v26 = vadd.f32 %v16591_v15, %v15270_v42 }
 0x462   : > { %v6527_v29 = vpop.f32.mrf.mxu0  ;;  %v10320_v35 = vpop.f32.mrf.mxu1  ;;  %v16592_v4 = vld [vmem:[#allocation65_spill] sm:$0xff]  ;;  %v7985_v59 = vshrl.u32 %v15365_v53, 16 }
 0x463   : > { %v6592_v28 = vadd.f32 %v6527_v29, %v5894_v3  ;;  %v15442_v11 = vadd.f32 %v10320_v35, %v6594_v39  ;;  %v16593_v29 = vld [vmem:[#allocation25_spill] sm:$0xff] }
 0x464   : > { %v10285_v1 = vpop.f32.mrf.mxu0  ;;  %v6969_v54 = vpop.f32.mrf.mxu1  ;;  %v16597_v15 = vld [vmem:[#allocation57_spill] sm:$0xff] }
 0x465   : > { %v6597_v60 = vadd.f32 %v10285_v1, %v5899_v12  ;;  %v15446_v9 = vadd.f32 %v6969_v54, %v6592_v28  ;;  %v5901_v12 = vadd.f32 %v15270_v42, %v16593_v29 }
 0x466   : > { %v6540_v31 = vpop.f32.mrf.mxu0  ;;  %v10323_v58 = vpop.f32.mrf.mxu1  ;;  %10500 = vmatmul.mubr.msk.bf16.gmra.mxu0 %vm1723_vm7, %v16588_v5  ;;  %v7988_v5 = vshll.u32 %v15365_v53, 16 }
 0x467   : > { %v6595_v6 = vadd.f32 %v6540_v31, %v5897_v38  ;;  %v15450_v45 = vadd.f32 %v10323_v58, %v6597_v60  ;;  %10503 = vmatprep.mubr.msk.bf16.mxu0 %vm1723_vm7, %v16589_v61  ;;  %10534 = vmatmul.mubr.msk.bf16.gmra.mxu1 %vm1723_vm7, %v16590_v56  ;;  %v16594_v60 = vld [vmem:[#allocation30_spill] sm:$0xff]  ;;  %v7998_v61 = vshrl.u32 %v15367_v16, 16 }
 0x468   : > { %v10286_v24 = vpop.f32.mrf.mxu0  ;;  %v6982_v48 = vpop.f32.mrf.mxu1  ;;  %10537 = vmatprep.mubr.msk.bf16.mxu1 %vm1723_vm7, %v16592_v4  ;;  %v5904_v54 = vadd.f32 %v16594_v60, %v15270_v42  ;;  %v7990_v60 = vrot.slane %v7988_v5, 5  ;;  %v16601_v5 = vld [vmem:[#allocation71_spill] sm:$0xff] }
 0x469   : > { %v6598_v20 = vadd.f32 %v10286_v24, %v5900_v0  ;;  %v15456_v36 = vadd.f32 %v6982_v48, %v6595_v6  ;;  %v5902_v24 = vadd.f32 %v15270_v42, %v15288_v51  ;;  %v16595_v48 = vld [vmem:[#allocation67_spill] sm:$0xff]  ;;  %v7994_v42 = vshll.u32 %v15367_v16, 16 }
 0x46a   : > { %v6543_v47 = vpop.f32.mrf.mxu0  ;;  %v10324_v39 = vpop.f32.mrf.mxu1 }
 0x46b   : > { %v6596_v3 = vadd.f32 %v6543_v47, %v5898_v52  ;;  %v15466_v18 = vadd.f32 %v10324_v39, %v6598_v20  ;;  %v16596_v47 = vld [vmem:[#allocation62_spill] sm:$0xff]  ;;  %v16598_v39 = vld [vmem:[#allocation64_spill] sm:$0xff] }
 0x46c   : > { %v10289_v22 = vpop.f32.mrf.mxu0  ;;  %v6985_v35 = vpop.f32.mrf.mxu1 }
 0x46d   : > { %v6601_v28 = vadd.f32 %v10289_v22, %v5903_v26  ;;  %v15470_v1 = vadd.f32 %v6985_v35, %v6596_v3 }
 0x46e   : > { %v6556_v38 = vpop.f32.mrf.mxu0  ;;  %v10327_v0 = vpop.f32.mrf.mxu1  ;;  %10504 = vmatmul.mubr.msk.bf16.gmra.mxu0 %vm1723_vm7, %v16595_v48 }
 0x46f   : > { %v6599_v31 = vadd.f32 %v6556_v38, %v5901_v12  ;;  %v15474_v6 = vadd.f32 %v10327_v0, %v6601_v28  ;;  %10507 = vmatprep.mubr.msk.bf16.mxu0 %vm1723_vm7, %v16596_v47  ;;  %10538 = vmatmul.mubr.msk.bf16.gmra.mxu1 %vm1723_vm7, %v16597_v15  ;;  %v7987_v28 = vrot.slane %v7985_v59, 4  ;;  %v16599_v15 = vld [vmem:[#allocation6_spill] sm:$0xff]  ;;  %v16600_v59 = vld [vmem:[#allocation72_spill] sm:$0xff] }
 0x470   : > { %v10290_v58 = vpop.f32.mrf.mxu0  ;;  %v6998_v20 = vpop.f32.mrf.mxu1  ;;  %10541 = vmatprep.mubr.msk.bf16.mxu1 %vm1723_vm7, %v16598_v39 }
 0x471   : > { %v6602_v52 = vadd.f32 %v10290_v58, %v5904_v54  ;;  %v15483_v56 = vadd.f32 %v6998_v20, %v6599_v31  ;;  %v7996_v54 = vrot.slane %v7994_v42, 5  ;;  %v8000_v31 = vrot.slane %v7998_v61, 4 }
 0x472   : > { %v6559_v51 = vpop.f32.mrf.mxu0  ;;  %v10328_v3 = vpop.f32.mrf.mxu1  ;;  %v7991_v61 = vor.u32 %v7990_v60, %v7987_v28 }
 0x473   : > { %v6600_v26 = vadd.f32 %v6559_v51, %v5902_v24  ;;  %v15492_v4 = vadd.f32 %v10328_v3, %v6602_v52  ;;  %v15498_v24 = vld [vmem:[#allocation2 + $0xd4] sm:$0x1]  ;;  %v8001_v51 = vor.u32 %v8000_v31, %v7996_v54 }
 0x474   : > { %v10337_v22 = vpop.f32.mrf.mxu0  ;;  %v7001_v29 = vpop.f32.mrf.mxu1  ;;  %v8004_v42 = vshll.u32 %v15498_v24, 16 }
 0x475   : > { %v7241_v12 = vadd.f32 %v10337_v22, %v15292_v23  ;;  %v15495_v35 = vadd.f32 %v7001_v29, %v6600_v26  ;;  %v8002_v28 = vrot.slane %v8001_v51, 4  ;;  %v8235_v51 = vrot.slane %v15367_v16, 5 }
 0x476   : > { %v7112_v38 = vpop.f32.mrf.mxu0  ;;  %v10375_v58 = vpop.f32.mrf.mxu1  ;;  %10508 = vmatmul.mubr.msk.bf16.gmra.mxu0 %vm1723_vm7, %v16599_v15  ;;  %v8006_v60 = vrot.slane %v8004_v42, 5  ;;  %v16603_v15 = vld [vmem:[#allocation73_spill] sm:$0xff] }
 0x477   : > { %v7239_v0 = vadd.f32 %v7112_v38, %v15298_v46  ;;  %v15500_v20 = vadd.f32 %v10375_v58, %v7241_v12  ;;  %10511 = vmatprep.mubr.msk.bf16.mxu0 %vm1723_vm7, %v16600_v59  ;;  %10542 = vmatmul.mubr.msk.bf16.gmra.mxu1 %vm1723_vm7, %v16601_v5 }
 0x478   : > { %v10338_v52 = vpop.f32.mrf.mxu0  ;;  %v7360_v47 = vpop.f32.mrf.mxu1  ;;  %10545 = vmatprep.mubr.msk.bf16.mxu1 %vm1723_vm7, %v14988_v25 }
 0x479   : > { %v7242_v48 = vadd.f32 %v10338_v52, %v15308_v41  ;;  %v15505_v23 = vadd.f32 %v7360_v47, %v7239_v0  ;;  %v7992_v0 = vrot.slane %v7991_v61, 4  ;;  %v16602_v47 = vld [vmem:[#allocation69_spill] sm:$0xff] }
 0x47a   : > { %v7115_v46 = vpop.f32.mrf.mxu0  ;;  %v10376_v41 = vpop.f32.mrf.mxu1 }
 0x47b   : > { %v7240_v26 = vadd.f32 %v7115_v46, %v15312_v27  ;;  %v15515_v3 = vadd.f32 %v10376_v41, %v7242_v48  ;;  %v7997_v5 = vsel %vm11812_vm15, %v7992_v0, %v7996_v54  ;;  %v8007_v46 = vsel %vm11812_vm15, %v8002_v28, %v8006_v60 }
 0x47c   : > { %v10341_v39 = vpop.f32.mrf.mxu0  ;;  %v7363_v29 = vpop.f32.mrf.mxu1  ;;  %v8237_v0 = vrot.slane %v8235_v51, 4 }
 0x47d   : > { %v7245_v22 = vadd.f32 %v10341_v39, %v15317_v2  ;;  %v15518_v12 = vadd.f32 %v7363_v29, %v7240_v26  ;;  %v9380_v39 = vcombine.low %v7997_v5, %v8007_v46 }
 0x47e   : > { %v7128_v38 = vpop.f32.mrf.mxu0  ;;  %v10379_v58 = vpop.f32.mrf.mxu1  ;;  %10512 = vmatmul.mubr.msk.bf16.gmra.mxu0 %vm1723_vm7, %v16602_v47 }
 0x47f   : > { %v7243_v31 = vadd.f32 %v7128_v38, %v15324_v55  ;;  %v15521_v27 = vadd.f32 %v10379_v58, %v7245_v22  ;;  %10515 = vmatprep.mubr.msk.bf16.mxu0 %vm1723_vm7, %v16603_v15  ;;  %10546 = vmatmul.mubr.msk.bf16.gmra.mxu1 %vm1723_vm7, %v15020_v10 }
 0x480   : > { %v10342_v52 = vpop.f32.mrf.mxu0  ;;  %v7376_v48 = vpop.f32.mrf.mxu1  ;;  %10549 = vmatprep.mubr.msk.bf16.mxu1 %vm1723_vm7, %v15024_v63  ;;  %v8238_v63 = vrot.slane %v15498_v24, 5 }
 0x481   : > { %v7246_v25 = vadd.f32 %v10342_v52, %v15335_v14  ;;  %v15526_v2 = vadd.f32 %v7376_v48, %v7243_v31 }
 0x482   : > { %v7131_v59 = vpop.f32.mrf.mxu0  ;;  %v10380_v61 = vpop.f32.mrf.mxu1 }
 0x483   : > { %v7244_v14 = vadd.f32 %v7131_v59, %v15341_v7  ;;  %v15540_v42 = vadd.f32 %v10380_v61, %v7246_v25  ;;  %v9406_v7 = vrot.slane %v15365_v53, 9 }
 0x484   : > { %v10345_v26 = vpop.f32.mrf.mxu0  ;;  %v7379_v41 = vpop.f32.mrf.mxu1 }
 0x485   : > { %v7249_v10 = vadd.f32 %v10345_v26, %v15349_v21  ;;  %v15543_v22 = vadd.f32 %v7379_v41, %v7244_v14  ;;  %v8236_v24 = vsel %vm11827_vm0, %v9406_v7, %v8235_v51 }
 0x486   : > { %v7144_v54 = vpop.f32.mrf.mxu0  ;;  %v10383_v38 = vpop.f32.mrf.mxu1  ;;  %10516 = vmatmul.mubr.msk.bf16.gmra.mxu0 %vm1723_vm7, %v9380_v39 }
 0x487   : > { %v7247_v29 = vadd.f32 %v7144_v54, %v15355_v50  ;;  %v15548_v28 = vadd.f32 %v10383_v38, %v7249_v10  ;;  %10550 = vmatmul.mubr.msk.bf16.gmra.mxu1 %vm1723_vm7, %v15045_v40 }
 0x488   : > { %v10346_v16 = vpop.f32.mrf.mxu0  ;;  %v7392_v31 = vpop.f32.mrf.mxu1  ;;  %10553 = vmatprep.mubr.msk.bf16.mxu1 %vm1723_vm7, %v15347_v62 }
 0x489   : > { %v7250_v60 = vadd.f32 %v10346_v16, %v15369_v33  ;;  %v15552_v21 = vadd.f32 %v7392_v31, %v7247_v29  ;;  %v8239_v33 = vsel %vm11827_vm0, %v8237_v0, %v8238_v63 }
 0x48a   : > { %v7147_v50 = vpop.f32.mrf.mxu0  ;;  %v10384_v53 = vpop.f32.mrf.mxu1 }
 0x48b   : > { %v7248_v58 = vadd.f32 %v7147_v50, %v15373_v8  ;;  %v15563_v52 = vadd.f32 %v10384_v53, %v7250_v60  ;;  %v9407_v8 = vcombine.low %v8236_v24, %v8239_v33 }
 0x48c   : > { %v10349_v25 = vpop.f32.mrf.mxu0  ;;  %v7395_v47 = vpop.f32.mrf.mxu1 }
 0x48d   : > { %v7253_v48 = vadd.f32 %v10349_v25, %v15379_v17  ;;  %v15566_v40 = vadd.f32 %v7395_v47, %v7248_v58 }
 0x48e   : > { %v7160_v15 = vpop.f32.mrf.mxu0  ;;  %v10387_v55 = vpop.f32.mrf.mxu1 }
 0x48f   : > { %v7251_v59 = vadd.f32 %v7160_v15, %v15385_v34  ;;  %v15569_v62 = vadd.f32 %v10387_v55, %v7253_v48  ;;  %10554 = vmatmul.mubr.msk.bf16.gmra.mxu1 %vm1723_vm7, %v9407_v8 }
 0x490   : > { %v10350_v5 = vpop.f32.mrf.mxu0  ;;  %v7408_v49 = vpop.f32.mrf.mxu1 }
 0x491   : > { %v7254_v46 = vadd.f32 %v10350_v5, %v15394_v44  ;;  %v15572_v14 = vadd.f32 %v7408_v49, %v7251_v59 }
 0x492   : > { %v7163_v61 = vpop.f32.mrf.mxu0  ;;  %v10388_v51 = vpop.f32.mrf.mxu1 }
 0x493   : > { %v7252_v17 = vadd.f32 %v7163_v61, %v15398_v30  ;;  %v15576_v26 = vadd.f32 %v10388_v51, %v7254_v46 }
 0x494   : > { %v10353_v10 = vpop.f32.mrf.mxu0  ;;  %v7411_v41 = vpop.f32.mrf.mxu1 }
 0x495   : > { %v7257_v34 = vadd.f32 %v10353_v10, %v15402_v57  ;;  %v15579_v39 = vadd.f32 %v7411_v41, %v7252_v17 }
 0x496   : > { %v7176_v54 = vpop.f32.mrf.mxu0  ;;  %v10391_v29 = vpop.f32.mrf.mxu1 }
 0x497   : > { %v7255_v44 = vadd.f32 %v7176_v54, %v15408_v13  ;;  %v15582_v38 = vadd.f32 %v10391_v29, %v7257_v34 }
 0x498   : > { %v10354_v7 = vpop.f32.mrf.mxu0  ;;  %v7424_v63 = vpop.f32.mrf.mxu1 }
 0x499   : > { %v7258_v0 = vadd.f32 %v10354_v7, %v15418_v43  ;;  %v15585_v30 = vadd.f32 %v7424_v63, %v7255_v44 }
 0x49a   : > { %v7179_v16 = vpop.f32.mrf.mxu0  ;;  %v10392_v31 = vpop.f32.mrf.mxu1 }
 0x49b   : > { %v7256_v60 = vadd.f32 %v7179_v16, %v15422_v19  ;;  %v15588_v57 = vadd.f32 %v10392_v31, %v7258_v0 }
 0x49c   : > { %v10357_v50 = vpop.f32.mrf.mxu0  ;;  %v7427_v53 = vpop.f32.mrf.mxu1 }
 0x49d   : > { %16605 = vst [vmem:[#allocation31_spill] sm:$0xff] %v15588_v57  ;;  %v7261_v58 = vadd.f32 %v10357_v50, %v15426_v32  ;;  %v15591_v13 = vadd.f32 %v7427_v53, %v7256_v60 }
 0x49e   : > { %v7192_v24 = vpop.f32.mrf.mxu0  ;;  %v10395_v25 = vpop.f32.mrf.mxu1 }
 0x49f   : > { %16606 = vst [vmem:[#allocation52_spill] sm:$0xff] %v15591_v13  ;;  %v7259_v33 = vadd.f32 %v7192_v24, %v15432_v37  ;;  %v15594_v43 = vadd.f32 %v10395_v25, %v7261_v58 }
 0x4a0   : > { %v10358_v48 = vpop.f32.mrf.mxu0  ;;  %v7440_v15 = vpop.f32.mrf.mxu1 }
 0x4a1   : > { %16607 = vst [vmem:[#allocation38_spill] sm:$0xff] %v15594_v43  ;;  %v7262_v47 = vadd.f32 %v10358_v48, %v15442_v11  ;;  %v15597_v19 = vadd.f32 %v7440_v15, %v7259_v33 }
 0x4a2   : > { %v7195_v8 = vpop.f32.mrf.mxu0  ;;  %v10396_v55 = vpop.f32.mrf.mxu1 }
 0x4a3   : > { %16608 = vst [vmem:[#allocation41_spill] sm:$0xff] %v15597_v19  ;;  %v7260_v59 = vadd.f32 %v7195_v8, %v15446_v9  ;;  %v15600_v32 = vadd.f32 %v10396_v55, %v7262_v47 }
 0x4a4   : > { %v10361_v5 = vpop.f32.mrf.mxu0  ;;  %v7443_v49 = vpop.f32.mrf.mxu1 }
 0x4a5   : > { %16609 = vst [vmem:[#allocation48_spill] sm:$0xff] %v15600_v32  ;;  %v7265_v46 = vadd.f32 %v10361_v5, %v15450_v45  ;;  %v15603_v37 = vadd.f32 %v7443_v49, %v7260_v59 }
 0x4a6   : > { %v7208_v61 = vpop.f32.mrf.mxu0  ;;  %v10399_v51 = vpop.f32.mrf.mxu1 }
 0x4a7   : > { %16610 = vst [vmem:[#allocation51_spill] sm:$0xff] %v15603_v37  ;;  %v7263_v17 = vadd.f32 %v7208_v61, %v15456_v36  ;;  %v15606_v11 = vadd.f32 %v10399_v51, %v7265_v46 }
 0x4a8   : > { %v10362_v10 = vpop.f32.mrf.mxu0  ;;  %v7456_v41 = vpop.f32.mrf.mxu1 }
 0x4a9   : > { %16611 = vst [vmem:[#allocation55_spill] sm:$0xff] %v15606_v11  ;;  %v7266_v34 = vadd.f32 %v10362_v10, %v15466_v18  ;;  %v15609_v9 = vadd.f32 %v7456_v41, %v7263_v17 }
 0x4aa   : > { %v7211_v54 = vpop.f32.mrf.mxu0  ;;  %v10400_v29 = vpop.f32.mrf.mxu1 }
 0x4ab   : > { %16612 = vst [vmem:[#allocation60_spill] sm:$0xff] %v15609_v9  ;;  %v7264_v44 = vadd.f32 %v7211_v54, %v15470_v1  ;;  %v15612_v45 = vadd.f32 %v10400_v29, %v7266_v34 }
 0x4ac   : > { %v7459_v7 = vpop.f32.mrf.mxu1 }
 0x4ad   : > { %16613 = vst [vmem:[#allocation63_spill] sm:$0xff] %v15612_v45  ;;  %v15614_v0 = vadd.f32 %v7459_v7, %v7264_v44 }
 0x4af   : > { %16614 = vst [vmem:[#allocation66_spill] sm:$0xff] %v15614_v0 }
 0x4c6   : > { %v10365_v63 = vpop.f32.mrf.mxu0 }
 0x4c7   : > { %v7269_v36 = vadd.f32 %v10365_v63, %v15474_v6 }
 0x4c8   : > { %v7224_v16 = vpop.f32.mrf.mxu0 }
 0x4c9   : > { %v7267_v60 = vadd.f32 %v7224_v16, %v15483_v56 }
 0x4ca   : > { %v10366_v31 = vpop.f32.mrf.mxu0 }
 0x4cb   : > { %v7270_v18 = vadd.f32 %v10366_v31, %v15492_v4 }
 0x4cc   : > { %v7227_v50 = vpop.f32.mrf.mxu0 }
 0x4cd   : > { %v7268_v58 = vadd.f32 %v7227_v50, %v15495_v35 }
 0x4ce   : > { %v15620_v53 = vpop.f32.mrf.mxu0 }
 0x4cf   : > { %v10403_v1 = vpop.f32.mrf.mxu1 }
 0x4d0   : > { %v15622_v24 = vadd.f32 %v10403_v1, %v7269_v36  ;;  %v15624_v33 = vpop.f32.mrf.mxu0 }
 0x4d1   : > { %v7472_v25 = vpop.f32.mrf.mxu1 }
 0x4d2   : > { %16615 = vst [vmem:[#allocation70_spill] sm:$0xff] %v15622_v24  ;;  %v15626_v48 = vadd.f32 %v7472_v25, %v7267_v60  ;;  %v15628_v6 = vpop.f32.mrf.mxu0 }
 0x4d3   : > { %v10404_v47 = vpop.f32.mrf.mxu1 }
 0x4d4   : > { %16616 = vst [vmem:[#allocation74_spill] sm:$0xff] %v15626_v48  ;;  %v15630_v56 = vadd.f32 %v10404_v47, %v7270_v18  ;;  %v15632_v15 = vpop.f32.mrf.mxu0 }
 0x4d5   : > { %v7475_v4 = vpop.f32.mrf.mxu1 }
 0x4d6   : > { %16617 = vst [vmem:[#allocation7_spill] sm:$0xff] %v15630_v56  ;;  %v15634_v8 = vadd.f32 %v7475_v4, %v7268_v58  ;;  %v15636_v35 = vpop.f32.mrf.mxu0 }
 0x4d7   : > { %v15638_v59 = vpop.f32.mrf.mxu1 }
 0x4d8   : > { %16618 = vst [vmem:[#allocation10_spill] sm:$0xff] %v15634_v8  ;;  %v15640_v55 = vpop.f32.mrf.mxu0 }
 0x4d9   : > { %v15642_v5 = vpop.f32.mrf.mxu1 }
 0x4da   : > { %v15644_v46 = vpop.f32.mrf.mxu0 }
 0x4db   : > { %v15646_v49 = vpop.f32.mrf.mxu1 }
 0x4dc   : > { %v15648_v61 = vpop.f32.mrf.mxu0 }
 0x4dd   : > { %v15650_v17 = vpop.f32.mrf.mxu1 }
 0x4de   : > { %v15652_v51 = vpop.f32.mrf.mxu0 }
 0x4df   : > { %v15654_v10 = vpop.f32.mrf.mxu1 }
 0x4e0   : > { %v15656_v34 = vpop.f32.mrf.mxu0 }
 0x4e1   : > { %v15658_v41 = vpop.f32.mrf.mxu1 }
 0x4e2   : > { %v15660_v54 = vpop.f32.mrf.mxu0 }
 0x4e3   : > { %v15662_v44 = vpop.f32.mrf.mxu1 }
 0x4e4   : > { %v15664_v29 = vpop.f32.mrf.mxu0 }
 0x4e5   : > { %v15666_v7 = vpop.f32.mrf.mxu1 }
 0x4e6   : > { %v15668_v63 = vpop.f32.mrf.mxu0 }
 0x4e7   : > { %v15670_v36 = vpop.f32.mrf.mxu1 }
 0x4e8   : > { %v15672_v16 = vpop.f32.mrf.mxu0 }
 0x4e9   : > { %v15674_v60 = vpop.f32.mrf.mxu1 }
 0x4ea   : > { %v15676_v31 = vpop.f32.mrf.mxu0 }
 0x4eb   : > { %v15678_v18 = vpop.f32.mrf.mxu1 }
 0x4ec   : > { %v15680_v50 = vpop.f32.mrf.mxu0 }
 0x4ed   : > { %v15682_v58 = vpop.f32.mrf.mxu1 }
 0x4ee   : > { %v15684_v1 = vpop.f32.mrf.mxu0 }
 0x4ef   : > { %v15686_v25 = vpop.f32.mrf.mxu1 }
 0x4f0   : > { %v15688_v47 = vpop.f32.mrf.mxu0 }
 0x4f1   : > { %v15690_v4 = vpop.f32.mrf.mxu1 }
 0x4f2   : > { %v15692_v8 = vpop.f32.mrf.mxu0 }
 0x4f3   : > { %16619 = vst [vmem:[#allocation75_spill] sm:$0xff] %v15692_v8  ;;  %v15694_v56 = vpop.f32.mrf.mxu1 }
 0x4f4   : > { %16620 = vst [vmem:[#allocation76_spill] sm:$0xff] %v15694_v56  ;;  %v15696_v48 = vpop.f32.mrf.mxu0 }
 0x4f5   : > { %16621 = vst [vmem:[#allocation12_spill] sm:$0xff] %v15696_v48  ;;  %v15698_v24 = vpop.f32.mrf.mxu1 }
 0x4f6   : > { %16622 = vst [vmem:[#allocation49_spill] sm:$0xff] %v15698_v24  ;;  %v15700_v0 = vpop.f32.mrf.mxu0 }
 0x4f7   : > { %16623 = vst [vmem:[#allocation53_spill] sm:$0xff] %v15700_v0  ;;  %v15702_v45 = vpop.f32.mrf.mxu1 }
 0x4f8   : > { %16624 = vst [vmem:[#allocation58_spill] sm:$0xff] %v15702_v45  ;;  %v15704_v9 = vpop.f32.mrf.mxu0 }
 0x4f9   : > { %16625 = vst [vmem:[#allocation59_spill] sm:$0xff] %v15704_v9  ;;  %v15706_v11 = vpop.f32.mrf.mxu1 }
 0x4fa   : > { %16626 = vst [vmem:[#allocation21_spill] sm:$0xff] %v15706_v11  ;;  %v15708_v37 = vpop.f32.mrf.mxu0 }
 0x4fb   : > { %16627 = vst [vmem:[#allocation68_spill] sm:$0xff] %v15708_v37  ;;  %v15710_v32 = vpop.f32.mrf.mxu1 }
 0x4fc   : > { %16628 = vst [vmem:[#allocation61_spill] sm:$0xff] %v15710_v32  ;;  %v15712_v19 = vpop.f32.mrf.mxu0 }
 0x4fd   : > { %16629 = vst [vmem:[#allocation56_spill] sm:$0xff] %v15712_v19  ;;  %v15714_v43 = vpop.f32.mrf.mxu1 }
 0x4fe   : > { %16630 = vst [vmem:[#allocation24_spill] sm:$0xff] %v15714_v43  ;;  %v15716_v13 = vpop.f32.mrf.mxu0 }
 0x4ff   : > { %16631 = vst [vmem:[#allocation65_spill] sm:$0xff] %v15716_v13  ;;  %v15718_v48 = vpop.f32.mrf.mxu1 }
 0x500   : > { %16632 = vst [vmem:[#allocation25_spill] sm:$0xff] %v15718_v48  ;;  %v15720_v8 = vpop.f32.mrf.mxu0 }
 0x501   : > { %16633 = vst [vmem:[#allocation30_spill] sm:$0xff] %v15720_v8  ;;  %v15722_v0 = vpop.f32.mrf.mxu1 }
 0x502   : > { %16634 = vst [vmem:[#allocation67_spill] sm:$0xff] %v15722_v0  ;;  %v15724_v45 = vpop.f32.mrf.mxu0 }
 0x503   : > { %16635 = vst [vmem:[#allocation62_spill] sm:$0xff] %v15724_v45  ;;  %v15726_v9 = vpop.f32.mrf.mxu1 }
 0x504   : > { %16636 = vst [vmem:[#allocation57_spill] sm:$0xff] %v15726_v9  ;;  %v15728_v11 = vpop.f32.mrf.mxu0 }
 0x505   : > { %16637 = vst [vmem:[#allocation64_spill] sm:$0xff] %v15728_v11  ;;  %v15730_v37 = vpop.f32.mrf.mxu1 }
 0x506   : > { %16638 = vst [vmem:[#allocation6_spill] sm:$0xff] %v15730_v37  ;;  %v15732_v32 = vpop.f32.mrf.mxu0 }
 0x507   : > { %16639 = vst [vmem:[#allocation72_spill] sm:$0xff] %v15732_v32  ;;  %v15734_v19 = vpop.f32.mrf.mxu1  ;;  %v7721_v32 = vadd.f32 %v15620_v53, %v15500_v20  ;;  %v7720_v20 = vadd.f32 %v15632_v15, %v15518_v12 }
 0x508   : > { %16640 = vst [vmem:[#allocation71_spill] sm:$0xff] %v15734_v19  ;;  %v15736_v43 = vpop.f32.mrf.mxu0 }
 0x509   : > { %16641 = vst [vmem:[#allocation69_spill] sm:$0xff] %v15736_v43  ;;  %v15738_v13 = vpop.f32.mrf.mxu1 }
 0x50a   : > { %16642 = vst [vmem:[#allocation73_spill] sm:$0xff] %v15738_v13  ;;  %v15740_v48 = vpop.f32.mrf.mxu0 }
 0x50b   : > { %16643 = vst [vmem:[#allocation11_spill] sm:$0xff] %v15740_v48  ;;  %v15742_v8 = vpop.f32.mrf.mxu1  ;;  %v7719_v48 = vadd.f32 %v15624_v33, %v15505_v23 }
 0x50c   : > { %16644 = vst [vmem:[#allocation77_spill] sm:$0xff] %v15742_v8  ;;  %v15744_v0 = vpop.f32.mrf.mxu0  ;;  %v7947_v8 = vadd.f32 %v15638_v59, %v7721_v32  ;;  %v7725_v32 = vadd.f32 %v15636_v35, %v15521_v27  ;;  %v7726_v27 = vadd.f32 %v15644_v46, %v15540_v42  ;;  %v7729_v42 = vadd.f32 %v15652_v51, %v15548_v28 }
 0x50d   : > { %16645 = vst [vmem:[#allocation78_spill] sm:$0xff] %v15744_v0  ;;  %v15746_v45 = vpop.f32.mrf.mxu1 }
 0x50e   : > { %16646 = vst [vmem:[#allocation79_spill] sm:$0xff] %v15746_v45  ;;  %v10489_v9 = vpop.f32.mrf.mxu0  ;;  %v7945_v45 = vadd.f32 %v15642_v5, %v7719_v48  ;;  %v7951_v12 = vadd.f32 %v15654_v10, %v7725_v32 }
 0x50f   : > { %v15748_v11 = vpop.f32.mrf.mxu1 }
 0x510   : > { %16647 = vst [vmem:[#allocation80_spill] sm:$0xff] %v15748_v11  ;;  %v8066_v37 = vpop.f32.mrf.mxu0  ;;  %v7722_v11 = vadd.f32 %v15628_v6, %v15515_v3  ;;  %v7723_v6 = vadd.f32 %v15640_v55, %v15526_v2  ;;  %v7724_v2 = vadd.f32 %v15648_v61, %v15543_v22  ;;  %v7952_v55 = vadd.f32 %v15662_v44, %v7726_v27 }
 0x511   : > { %v15750_v57 = vpop.f32.mrf.mxu1  ;;  %v7727_v22 = vadd.f32 %v15656_v34, %v15552_v21  ;;  %v7730_v21 = vadd.f32 %v15660_v54, %v15563_v52  ;;  %v7728_v34 = vadd.f32 %v15664_v29, %v15566_v40  ;;  %v16651_v29 = vld [vmem:[#allocation45_spill] sm:$0xff] }
 0x512   : > { %16648 = vst [vmem:[#allocation81_spill] sm:$0xff] %v15750_v57  ;;  %v10490_v43 = vpop.f32.mrf.mxu0  ;;  %v8195_v57 = vadd.f32 %v10489_v9, %v7947_v8  ;;  %v7948_v53 = vadd.f32 %v15646_v49, %v7722_v11 }
 0x513   : > { %v15754_v19 = vpop.f32.mrf.mxu1  ;;  %v7953_v51 = vadd.f32 %v15674_v60, %v7727_v22  ;;  %v7956_v52 = vadd.f32 %v15678_v18, %v7730_v21  ;;  %v7954_v54 = vadd.f32 %v15682_v58, %v7728_v34 }
 0x514   : > { %16649 = vst [vmem:[#allocation82_spill] sm:$0xff] %v15754_v19  ;;  %v8069_v0 = vpop.f32.mrf.mxu0  ;;  %v8193_v19 = vadd.f32 %v8066_v37, %v7945_v45  ;;  %v8196_v3 = vadd.f32 %v10490_v43, %v7948_v53 }
 0x515   : > { %v15759_v13 = vpop.f32.mrf.mxu1 }
 0x516   : > { %16650 = vst [vmem:[#allocation83_spill] sm:$0xff] %v15759_v13  ;;  %v10493_v24 = vpop.f32.mrf.mxu0  ;;  %v7946_v13 = vadd.f32 %v15650_v17, %v7720_v20 }
 0x517   : > { %v10527_v56 = vpop.f32.mrf.mxu1  ;;  %v8199_v43 = vadd.f32 %v10493_v24, %v7951_v12  ;;  %v7950_v24 = vadd.f32 %v15666_v7, %v7724_v2  ;;  %v10897_v2 = vld [vmem:[%s11301_s11 + $0x18] sm:$0xff] }
 0x518   : > { %v8427_v23 = vadd.f32 %v10527_v56, %v8195_v57  ;;  %v8082_v33 = vpop.f32.mrf.mxu0  ;;  %v8194_v11 = vadd.f32 %v8069_v0, %v7946_v13  ;;  %v7949_v56 = vadd.f32 %v15658_v41, %v7723_v6  ;;  %v7955_v41 = vadd.f32 %v15670_v36, %v7729_v42  ;;  %v16653_v42 = vld [vmem:[#allocation47_spill] sm:$0xff] }
 0x519   : > { %v8298_v59 = vpop.f32.mrf.mxu1 }
 0x51a   : > { %10819 = vtanh.f32 %v8427_v23  ;;  %v8425_v48 = vadd.f32 %v8298_v59, %v8193_v19  ;;  %v10494_v9 = vpop.f32.mrf.mxu0  ;;  %v8197_v13 = vadd.f32 %v8082_v33, %v7949_v56  ;;  %v10895_v59 = vld [vmem:[%s11301_s11 + $0x10] sm:$0xff]  ;;  %v7731_v56 = vadd.f32 %v15672_v16, %v15572_v14 }
 0x51b   : > { %v10528_v8 = vpop.f32.mrf.mxu1  ;;  %v8200_v49 = vadd.f32 %v10494_v9, %v7952_v55 }
 0x51c   : > { %10821 = vtanh.f32 %v8425_v48  ;;  %v8428_v57 = vadd.f32 %v10528_v8, %v8196_v3  ;;  %v8085_v37 = vpop.f32.mrf.mxu0  ;;  %v7733_v8 = vadd.f32 %v15668_v63, %v15569_v62  ;;  %v7734_v62 = vadd.f32 %v15676_v31, %v15576_v26 }
 0x51d   : > { %v8301_v45 = vpop.f32.mrf.mxu1  ;;  %v8198_v44 = vadd.f32 %v8085_v37, %v7950_v24  ;;  %v7957_v26 = vadd.f32 %v15690_v4, %v7731_v56  ;;  %v10898_v24 = vld [vmem:[%s11301_s11 + $0x8] sm:$0xff] }
 0x51e   : > { %10823 = vtanh.f32 %v8428_v57  ;;  %v8426_v19 = vadd.f32 %v8301_v45, %v8194_v11  ;;  %v10497_v15 = vpop.f32.mrf.mxu0  ;;  %v10896_v11 = vld [vmem:[%s11301_s11] sm:$0xff]  ;;  %v7959_v14 = vadd.f32 %v15686_v25, %v7733_v8  ;;  %v7737_v25 = vadd.f32 %v15684_v1, %v15582_v38  ;;  %v16655_v38 = vld [vmem:[#allocation76_spill] sm:$0xff] }
 0x51f   : > { %v10531_v35 = vpop.f32.mrf.mxu1  ;;  %v8203_v7 = vadd.f32 %v10497_v15, %v7955_v41  ;;  %v16654_v41 = vld [vmem:[#allocation28_spill] sm:$0xff]  ;;  %v7960_v1 = vadd.f32 %v16655_v38, %v7734_v62  ;;  %v16658_v8 = vld [vmem:[#allocation31_spill] sm:$0xff] }
 0x520   : > { %10825 = vtanh.f32 %v8426_v19  ;;  %v8431_v0 = vadd.f32 %v10531_v35, %v8199_v43  ;;  %v8098_v5 = vpop.f32.mrf.mxu0  ;;  %v16652_v19 = vld [vmem:[#allocation46_spill] sm:$0xff]  ;;  %v16661_v62 = vld [vmem:[#allocation52_spill] sm:$0xff] }
 0x521   : > { %v8314_v46 = vpop.f32.mrf.mxu1  ;;  %v8201_v48 = vadd.f32 %v8098_v5, %v7953_v51 }
 0x522   : > { %10827 = vtanh.f32 %v8431_v0  ;;  %v8429_v17 = vadd.f32 %v8314_v46, %v8197_v13  ;;  %v10498_v10 = vpop.f32.mrf.mxu0  ;;  %v7732_v0 = vadd.f32 %v15680_v50, %v15579_v39 }
 0x523   : > { %v10532_v61 = vpop.f32.mrf.mxu1  ;;  %v8204_v63 = vadd.f32 %v10498_v10, %v7956_v52 }
 0x524   : > { %10829 = vtanh.f32 %v8429_v17  ;;  %v8432_v20 = vadd.f32 %v10532_v61, %v8200_v49  ;;  %v8101_v53 = vpop.f32.mrf.mxu0 }
 0x525   : > { %v8317_v28 = vpop.f32.mrf.mxu1  ;;  %v8202_v18 = vadd.f32 %v8101_v53, %v7954_v54 }
 0x526   : > { %10831 = vtanh.f32 %v8432_v20  ;;  %v8430_v23 = vadd.f32 %v8317_v28, %v8198_v44  ;;  %v10501_v33 = vpop.f32.mrf.mxu0  ;;  %v10899_v20 = vld [vmem:[%s11301_s11 + $0x30] sm:$0xff] }
 0x527   : > { %v10820_v32 = vpop.eup %10819  ;;  %v10535_v36 = vpop.f32.mrf.mxu1  ;;  %v8207_v4 = vadd.f32 %v10501_v33, %v7959_v14 }
 0x528   : > { %v8491_v3 = vsub.f32 %v10820_v32, %v10895_v59  ;;  %10833 = vtanh.f32 %v8430_v23  ;;  %v8435_v60 = vadd.f32 %v10535_v36, %v8203_v7  ;;  %v8114_v9 = vpop.f32.mrf.mxu0  ;;  %v7735_v7 = vadd.f32 %v15688_v47, %v15585_v30  ;;  %v16656_v23 = vld [vmem:[#allocation49_spill] sm:$0xff]  ;;  %v16657_v36 = vld [vmem:[#allocation32_spill] sm:$0xff]  ;;  %v16659_v30 = vld [vmem:[#allocation75_spill] sm:$0xff] }
 0x529   : > { %v10822_v6 = vpop.eup %10821  ;;  %v8330_v40 = vpop.f32.mrf.mxu1  ;;  %v8205_v10 = vadd.f32 %v8114_v9, %v7957_v26  ;;  %v7958_v33 = vadd.f32 %v16656_v23, %v7732_v0  ;;  %v7738_v47 = vadd.f32 %v16659_v30, %v16658_v8  ;;  %v10902_v0 = vld [vmem:[%s11301_s11 + $0x28] sm:$0xff] }
 0x52a   : > { %v8523_v12 = vmul.f32 %v16651_v29, %v8491_v3  ;;  %v8489_v57 = vsub.f32 %v10822_v6, %v10896_v11  ;;  %10835 = vtanh.f32 %v8435_v60  ;;  %v8433_v37 = vadd.f32 %v8330_v40, %v8201_v48  ;;  %v10502_v27 = vpop.f32.mrf.mxu0  ;;  %v10900_v3 = vld [vmem:[%s11301_s11 + $0x20] sm:$0xff] }
 0x52b   : > { %v10824_v45 = vpop.eup %10823  ;;  %v10536_v58 = vpop.f32.mrf.mxu1  ;;  %v8208_v52 = vadd.f32 %v10502_v27, %v7960_v1  ;;  %v16671_v1 = vld [vmem:[#allocation23_spill] sm:$0xff] }
 0x52c   : > { %v8555_v43 = vadd.f32 %v10895_v59, %v8523_v12  ;;  %v8521_v15 = vmul.f32 %v16652_v19, %v8489_v57  ;;  %v8492_v35 = vsub.f32 %v10824_v45, %v10897_v2  ;;  %10837 = vtanh.f32 %v8433_v37  ;;  %v8117_v55 = vpop.f32.mrf.mxu0  ;;  %v16660_v12 = vld [vmem:[#allocation9_spill] sm:$0xff]  ;;  %v10901_v57 = vld [vmem:[%s11301_s11 + $0x38] sm:$0xff] }
 0x52d   : > { %v10826_v13 = vpop.eup %10825  ;;  %v8436_v16 = vadd.f32 %v10536_v58, %v8204_v63  ;;  %v8333_v31 = vpop.f32.mrf.mxu1  ;;  %v8206_v54 = vadd.f32 %v8117_v55, %v7958_v33  ;;  %v16662_v63 = vld [vmem:[#allocation12_spill] sm:$0xff]  ;;  %v16663_v58 = vld [vmem:[#allocation58_spill] sm:$0xff]  ;;  %v16665_v55 = vld [vmem:[#allocation33_spill] sm:$0xff] }
 0x52e   : > { %8588 = vst.msk [vmem:[%s15813_s20 + $0x10] sm:$0xff] %vm8585_vm1, %v8555_v43  ;;  %v8553_v5 = vadd.f32 %v10896_v11, %v8521_v15  ;;  %v8524_v46 = vmul.f32 %v16653_v42, %v8492_v35  ;;  %v8490_v49 = vsub.f32 %v10826_v13, %v10898_v24  ;;  %v8434_v17 = vadd.f32 %v8333_v31, %v8202_v18  ;;  %v10505_v39 = vpop.f32.mrf.mxu0  ;;  %v16664_v43 = vld [vmem:[#allocation21_spill] sm:$0xff]  ;;  %v10904_v33 = vld [vmem:[%s11301_s11 + $0x40] sm:$0xff] }
 0x52f   : > { %v10828_v50 = vpop.eup %10827  ;;  %10839 = vtanh.f32 %v8436_v16  ;;  %v10539_v22 = vpop.f32.mrf.mxu1  ;;  %v7736_v18 = vadd.f32 %v16662_v63, %v16661_v62  ;;  %v7963_v27 = vadd.f32 %v16663_v58, %v7737_v25  ;;  %v7961_v19 = vadd.f32 %v16664_v43, %v7735_v7 }
 0x530   : > { %8586 = vst.msk [vmem:[%s15813_s20] sm:$0xff] %vm8585_vm1, %v8553_v5  ;;  %v8556_v61 = vadd.f32 %v10897_v2, %v8524_v46  ;;  %v8522_v44 = vmul.f32 %v16654_v41, %v8490_v49  ;;  %v8495_v53 = vsub.f32 %v10828_v50, %v10899_v20  ;;  %10841 = vtanh.f32 %v8434_v17  ;;  %v8130_v28 = vpop.f32.mrf.mxu0  ;;  %v16666_v5 = vld [vmem:[#allocation61_spill] sm:$0xff]  ;;  %v16667_v50 = vld [vmem:[#allocation22_spill] sm:$0xff] }
 0x531   : > { %v10830_v51 = vpop.eup %10829  ;;  %v8439_v32 = vadd.f32 %v10539_v22, %v8207_v4  ;;  %v8346_v21 = vpop.f32.mrf.mxu1  ;;  %v7964_v42 = vadd.f32 %v16666_v5, %v7738_v47  ;;  %v8211_v46 = vadd.f32 %v10505_v39, %v7963_v27  ;;  %v10903_v4 = vld [vmem:[%s11301_s11 + $0x50] sm:$0xff]  ;;  %v16668_v41 = vld [vmem:[#allocation38_spill] sm:$0xff]  ;;  %v16675_v47 = vld [vmem:[#allocation8_spill] sm:$0xff] }
 0x532   : > { %8589 = vst.msk [vmem:[%s15813_s20 + $0x18] sm:$0xff] %vm8585_vm1, %v8556_v61  ;;  %v8554_v34 = vadd.f32 %v10898_v24, %v8522_v44  ;;  %v8527_v59 = vmul.f32 %v16657_v36, %v8495_v53  ;;  %v8493_v48 = vsub.f32 %v10830_v51, %v10900_v3  ;;  %v8437_v60 = vadd.f32 %v8346_v21, %v8205_v10  ;;  %v10506_v9 = vpop.f32.mrf.mxu0  ;;  %v16669_v44 = vld [vmem:[#allocation53_spill] sm:$0xff]  ;;  %v16670_v53 = vld [vmem:[#allocation24_spill] sm:$0xff] }
 0x533   : > { %v10832_v6 = vpop.eup %10831  ;;  %10843 = vtanh.f32 %v8439_v32  ;;  %v10540_v40 = vpop.f32.mrf.mxu1  ;;  %v8209_v24 = vadd.f32 %v8130_v28, %v7961_v19  ;;  %v7962_v39 = vadd.f32 %v16670_v53, %v7736_v18  ;;  %v8212_v28 = vadd.f32 %v10506_v9, %v7964_v42  ;;  %v16672_v36 = vld [vmem:[#allocation41_spill] sm:$0xff]  ;;  %v10906_v27 = vld [vmem:[%s11301_s11 + $0x48] sm:$0xff] }
 0x534   : > { %8587 = vst.msk [vmem:[%s15813_s20 + $0x8] sm:$0xff] %vm8585_vm1, %v8554_v34  ;;  %v8559_v29 = vadd.f32 %v10899_v20, %v8527_v59  ;;  %v8525_v11 = vmul.f32 %v16660_v12, %v8493_v48  ;;  %v8496_v37 = vsub.f32 %v10832_v6, %v10901_v57  ;;  %10845 = vtanh.f32 %v8437_v60  ;;  %v8133_v45 = vpop.f32.mrf.mxu0  ;;  %v16673_v59 = vld [vmem:[#allocation59_spill] sm:$0xff]  ;;  %v16674_v48 = vld [vmem:[#allocation25_spill] sm:$0xff]  ;;  %v16676_v12 = vld [vmem:[#allocation48_spill] sm:$0xff] }
 0x535   : > { %v10834_v56 = vpop.eup %10833  ;;  %v8440_v15 = vadd.f32 %v10540_v40, %v8208_v52  ;;  %v8349_v2 = vpop.f32.mrf.mxu1  ;;  %v7741_v20 = vadd.f32 %v16669_v44, %v16668_v41  ;;  %v8210_v6 = vadd.f32 %v8133_v45, %v7962_v39  ;;  %v10905_v45 = vld [vmem:[%s11301_s11 + $0x58] sm:$0xff]  ;;  %v16684_v5 = vld [vmem:[#allocation36_spill] sm:$0xff]  ;;  %v10907_v44 = vld [vmem:[%s11301_s11 + $0x70] sm:$0xff] }
 0x536   : > { %8592 = vst.msk [vmem:[%s15813_s20 + $0x30] sm:$0xff] %vm8585_vm1, %v8559_v29  ;;  %v8557_v35 = vadd.f32 %v10900_v3, %v8525_v11  ;;  %v8528_v13 = vmul.f32 %v16665_v55, %v8496_v37  ;;  %v8494_v14 = vsub.f32 %v10834_v56, %v10902_v0  ;;  %v8438_v26 = vadd.f32 %v8349_v2, %v8206_v54  ;;  %v10509_v16 = vpop.f32.mrf.mxu0  ;;  %v16677_v11 = vld [vmem:[#allocation68_spill] sm:$0xff]  ;;  %v16678_v37 = vld [vmem:[#allocation67_spill] sm:$0xff] }
 0x537   : > { %v10836_v31 = vpop.eup %10835  ;;  %10847 = vtanh.f32 %v8440_v15  ;;  %v10543_v49 = vpop.f32.mrf.mxu1  ;;  %v7739_v3 = vadd.f32 %v16673_v59, %v16672_v36  ;;  %v7967_v60 = vadd.f32 %v16674_v48, %v7741_v20  ;;  %v16679_v2 = vld [vmem:[#allocation51_spill] sm:$0xff] }
 0x538   : > { %8590 = vst.msk [vmem:[%s15813_s20 + $0x20] sm:$0xff] %vm8585_vm1, %v8557_v35  ;;  %v8560_v17 = vadd.f32 %v10901_v57, %v8528_v13  ;;  %v8526_v25 = vmul.f32 %v16667_v50, %v8494_v14  ;;  %v8499_v10 = vsub.f32 %v10836_v31, %v10903_v4  ;;  %10849 = vtanh.f32 %v8438_v26  ;;  %v8146_v22 = vpop.f32.mrf.mxu0  ;;  %v16680_v35 = vld [vmem:[#allocation56_spill] sm:$0xff]  ;;  %v16681_v13 = vld [vmem:[#allocation55_spill] sm:$0xff]  ;;  %v16683_v26 = vld [vmem:[#allocation57_spill] sm:$0xff] }
 0x539   : > { %v10838_v61 = vpop.eup %10837  ;;  %v8443_v51 = vadd.f32 %v10543_v49, %v8211_v46  ;;  %v8362_v7 = vpop.f32.mrf.mxu1  ;;  %v7742_v57 = vadd.f32 %v16677_v11, %v16676_v12  ;;  %v7965_v56 = vadd.f32 %v16678_v37, %v7739_v3  ;;  %v8215_v63 = vadd.f32 %v10509_v16, %v7967_v60  ;;  %v16691_v59 = vld [vmem:[#allocation71_spill] sm:$0xff] }
 0x53a   : > { %8593 = vst.msk [vmem:[%s15813_s20 + $0x38] sm:$0xff] %vm8585_vm1, %v8560_v17  ;;  %v8558_v38 = vadd.f32 %v10902_v0, %v8526_v25  ;;  %v8531_v23 = vmul.f32 %v16671_v1, %v8499_v10  ;;  %v8497_v32 = vsub.f32 %v10838_v61, %v10904_v33  ;;  %v8441_v21 = vadd.f32 %v8362_v7, %v8209_v24  ;;  %v10510_v34 = vpop.f32.mrf.mxu0  ;;  %v16682_v0 = vld [vmem:[#allocation65_spill] sm:$0xff]  ;;  %v16685_v24 = vld [vmem:[#allocation35_spill] sm:$0xff]  ;;  %v16686_v10 = vld [vmem:[#allocation6_spill] sm:$0xff] }
 0x53b   : > { %10851 = vtanh.f32 %v8443_v51  ;;  %v10544_v9 = vpop.f32.mrf.mxu1  ;;  %v7740_v55 = vadd.f32 %v16680_v35, %v16679_v2  ;;  %v7745_v14 = vadd.f32 %v16682_v0, %v16681_v13  ;;  %v7968_v31 = vadd.f32 %v16683_v26, %v7742_v57  ;;  %v10908_v51 = vld [vmem:[%s11301_s11 + $0x60] sm:$0xff]  ;;  %v10909_v57 = vld [vmem:[%s11301_s11 + $0x78] sm:$0xff]  ;;  %v16697_v2 = vld [vmem:[#allocation77_spill] sm:$0xff] }
 0x53c   : > { %v10840_v8 = vpop.eup %10839  ;;  %8591 = vst.msk [vmem:[%s15813_s20 + $0x28] sm:$0xff] %vm8585_vm1, %v8558_v38  ;;  %v8563_v30 = vadd.f32 %v10903_v4, %v8531_v23  ;;  %v8529_v52 = vmul.f32 %v16675_v47, %v8497_v32  ;;  %10853 = vtanh.f32 %v8441_v21  ;;  %v8444_v54 = vadd.f32 %v10544_v9, %v8212_v28  ;;  %v8149_v40 = vpop.f32.mrf.mxu0  ;;  %v16688_v23 = vld [vmem:[#allocation30_spill] sm:$0xff]  ;;  %v16689_v32 = vld [vmem:[#allocation63_spill] sm:$0xff] }
 0x53d   : > { %v10842_v29 = vpop.eup %10841  ;;  %v8500_v62 = vsub.f32 %v10840_v8, %v10905_v45  ;;  %v8365_v18 = vpop.f32.mrf.mxu1  ;;  %v8213_v17 = vadd.f32 %v8146_v22, %v7965_v56  ;;  %v7966_v61 = vadd.f32 %v16686_v10, %v7740_v55  ;;  %v8216_v53 = vadd.f32 %v10510_v34, %v7968_v31  ;;  %v16687_v22 = vld [vmem:[#allocation60_spill] sm:$0xff]  ;;  %v16690_v21 = vld [vmem:[#allocation62_spill] sm:$0xff]  ;;  %v16692_v48 = vld [vmem:[#allocation27_spill] sm:$0xff] }
 0x53e   : > { %8596 = vst.msk [vmem:[%s15813_s20 + $0x50] sm:$0xff] %vm8585_vm1, %v8563_v30  ;;  %v8561_v58 = vadd.f32 %v10904_v33, %v8529_v52  ;;  %v8498_v43 = vsub.f32 %v10842_v29, %v10906_v27  ;;  %10855 = vtanh.f32 %v8444_v54  ;;  %v8442_v19 = vadd.f32 %v8365_v18, %v8210_v6  ;;  %v10513_v15 = vpop.f32.mrf.mxu0  ;;  %v16693_v9 = vld [vmem:[#allocation26_spill] sm:$0xff]  ;;  %v16694_v29 = vld [vmem:[#allocation73_spill] sm:$0xff] }
 0x53f   : > { %v8532_v16 = vmul.f32 %v16684_v5, %v8500_v62  ;;  %v10547_v42 = vpop.f32.mrf.mxu1  ;;  %v7743_v33 = vadd.f32 %v16688_v23, %v16687_v22  ;;  %v7746_v36 = vadd.f32 %v16690_v21, %v16689_v32  ;;  %v7971_v3 = vadd.f32 %v16691_v59, %v7745_v14  ;;  %v16698_v55 = vld [vmem:[#allocation29_spill] sm:$0xff]  ;;  %v16699_v14 = vld [vmem:[#allocation34_spill] sm:$0xff]  ;;  %v16705_v22 = vld [vmem:[#allocation80_spill] sm:$0xff] }
 0x540   : > { %v10844_v46 = vpop.eup %10843  ;;  %8594 = vst.msk [vmem:[%s15813_s20 + $0x40] sm:$0xff] %vm8585_vm1, %v8561_v58  ;;  %v8530_v49 = vmul.f32 %v16685_v24, %v8498_v43  ;;  %10857 = vtanh.f32 %v8442_v19  ;;  %v8447_v50 = vadd.f32 %v10547_v42, %v8215_v63  ;;  %v8162_v25 = vpop.f32.mrf.mxu0  ;;  %v8214_v30 = vadd.f32 %v8149_v40, %v7966_v61  ;;  %v10910_v63 = vld [vmem:[%s11301_s11 + $0x68] sm:$0xff]  ;;  %v16700_v42 = vld [vmem:[#allocation70_spill] sm:$0xff] }
 0x541   : > { %v10846_v4 = vpop.eup %10845  ;;  %v8564_v41 = vadd.f32 %v10905_v45, %v8532_v16  ;;  %v8503_v20 = vsub.f32 %v10844_v46, %v10907_v44  ;;  %v8378_v39 = vpop.f32.mrf.mxu1  ;;  %v7969_v12 = vadd.f32 %v16694_v29, %v7743_v33  ;;  %v8219_v56 = vadd.f32 %v10513_v15, %v7971_v3  ;;  %v16696_v43 = vld [vmem:[#allocation64_spill] sm:$0xff]  ;;  %v10913_v59 = vld [vmem:[%s11301_s11 + $0x98] sm:$0xff] }
 0x542   : > { %v8562_v28 = vadd.f32 %v10906_v27, %v8530_v49  ;;  %v8501_v7 = vsub.f32 %v10846_v4, %v10908_v51  ;;  %10859 = vtanh.f32 %v8447_v50  ;;  %v8445_v38 = vadd.f32 %v8378_v39, %v8213_v17  ;;  %v10514_v1 = vpop.f32.mrf.mxu0  ;;  %v16695_v27 = vld [vmem:[#allocation66_spill] sm:$0xff]  ;;  %v16701_v46 = vld [vmem:[#allocation72_spill] sm:$0xff]  ;;  %v10911_v17 = vld [vmem:[%s11301_s11 + $0x90] sm:$0xff] }
 0x543   : > { %8597 = vst.msk [vmem:[%s15813_s20 + $0x58] sm:$0xff] %vm8585_vm1, %v8564_v41  ;;  %v8535_v34 = vmul.f32 %v16692_v48, %v8503_v20  ;;  %v10548_v60 = vpop.f32.mrf.mxu1  ;;  %v7744_v19 = vadd.f32 %v16696_v43, %v16695_v27  ;;  %v7972_v35 = vadd.f32 %v16697_v2, %v7746_v36  ;;  %v8217_v31 = vadd.f32 %v8162_v25, %v7969_v12  ;;  %v10912_v41 = vld [vmem:[%s11301_s11 + $0x80] sm:$0xff]  ;;  %v16702_v39 = vld [vmem:[#allocation74_spill] sm:$0xff]  ;;  %v16706_v33 = vld [vmem:[#allocation44_spill] sm:$0xff] }
 0x544   : > { %v10848_v6 = vpop.eup %10847  ;;  %8595 = vst.msk [vmem:[%s15813_s20 + $0x48] sm:$0xff] %vm8585_vm1, %v8562_v28  ;;  %v8533_v8 = vmul.f32 %v16693_v9, %v8501_v7  ;;  %10861 = vtanh.f32 %v8445_v38  ;;  %v8448_v47 = vadd.f32 %v10548_v60, %v8216_v53  ;;  %v8165_v52 = vpop.f32.mrf.mxu0  ;;  %v7749_v24 = vadd.f32 %v16701_v46, %v16700_v42  ;;  %v16703_v28 = vld [vmem:[#allocation69_spill] sm:$0xff]  ;;  %v16704_v7 = vld [vmem:[#allocation79_spill] sm:$0xff]  ;;  %v16707_v21 = vld [vmem:[#allocation40_spill] sm:$0xff] }
 0x545   : > { %v10850_v54 = vpop.eup %10849  ;;  %v8567_v11 = vadd.f32 %v10907_v44, %v8535_v34  ;;  %v8504_v37 = vsub.f32 %v10848_v6, %v10909_v57  ;;  %v8381_v45 = vpop.f32.mrf.mxu1  ;;  %v8220_v4 = vadd.f32 %v10514_v1, %v7972_v35  ;;  %v7970_v38 = vadd.f32 %v16704_v7, %v7744_v19  ;;  %v16708_v60 = vld [vmem:[#allocation7_spill] sm:$0xff]  ;;  %v16713_v43 = vld [vmem:[#allocation42_spill] sm:$0xff]  ;;  %v10915_v2 = vld [vmem:[%s11301_s11 + $0xb0] sm:$0xff] }
 0x546   : > { %v8565_v62 = vadd.f32 %v10908_v51, %v8533_v8  ;;  %v8502_v18 = vsub.f32 %v10850_v54, %v10910_v63  ;;  %10863 = vtanh.f32 %v8448_v47  ;;  %v8446_v58 = vadd.f32 %v8381_v45, %v8214_v30  ;;  %v10517_v40 = vpop.f32.mrf.mxu0  ;;  %v16709_v6 = vld [vmem:[#allocation11_spill] sm:$0xff]  ;;  %v16716_v42 = vld [vmem:[#allocation14_spill] sm:$0xff] }
 0x547   : > { %8600 = vst.msk [vmem:[%s15813_s20 + $0x70] sm:$0xff] %vm8585_vm1, %v8567_v11  ;;  %v8536_v13 = vmul.f32 %v16698_v55, %v8504_v37  ;;  %v10551_v0 = vpop.f32.mrf.mxu1  ;;  %v7747_v51 = vadd.f32 %v16703_v28, %v16702_v39  ;;  %v7975_v23 = vadd.f32 %v16705_v22, %v7749_v24  ;;  %v7750_v9 = vadd.f32 %v16709_v6, %v16708_v60  ;;  %v16710_v12 = vld [vmem:[#allocation43_spill] sm:$0xff] }
 0x548   : > { %v10852_v15 = vpop.eup %10851  ;;  %8598 = vst.msk [vmem:[%s15813_s20 + $0x60] sm:$0xff] %vm8585_vm1, %v8565_v62  ;;  %v8534_v26 = vmul.f32 %v16699_v14, %v8502_v18  ;;  %10865 = vtanh.f32 %v8446_v58  ;;  %v8451_v5 = vadd.f32 %v10551_v0, %v8219_v56  ;;  %v8178_v20 = vpop.f32.mrf.mxu0  ;;  %v8218_v30 = vadd.f32 %v8165_v52, %v7970_v38  ;;  %v16711_v62 = vld [vmem:[#allocation81_spill] sm:$0xff]  ;;  %v16712_v18 = vld [vmem:[#allocation82_spill] sm:$0xff]  ;;  %v10916_v24 = vld [vmem:[%s11301_s11 + $0xa0] sm:$0xff] }
 0x549   : > { %v10854_v16 = vpop.eup %10853  ;;  %v8568_v49 = vadd.f32 %v10909_v57, %v8536_v13  ;;  %v8507_v50 = vsub.f32 %v10852_v15, %v10911_v17  ;;  %v8394_v10 = vpop.f32.mrf.mxu1  ;;  %v8223_v47 = vadd.f32 %v10517_v40, %v7975_v23  ;;  %v10914_v57 = vld [vmem:[%s11301_s11 + $0x88] sm:$0xff]  ;;  %v7976_v58 = vadd.f32 %v16712_v18, %v7750_v9  ;;  %v16714_v0 = vld [vmem:[#allocation10_spill] sm:$0xff]  ;;  %v16719_v23 = vld [vmem:[#allocation13_spill] sm:$0xff] }
 0x54a   : > { %v8566_v61 = vadd.f32 %v10910_v63, %v8534_v26  ;;  %v8505_v44 = vsub.f32 %v10854_v16, %v10912_v41  ;;  %10867 = vtanh.f32 %v8451_v5  ;;  %v8449_v25 = vadd.f32 %v8394_v10, %v8217_v31  ;;  %v10518_v56 = vpop.f32.mrf.mxu0  ;;  %v16715_v15 = vld [vmem:[#allocation78_spill] sm:$0xff] }
 0x54b   : > { %v10856_v53 = vpop.eup %10855  ;;  %8601 = vst.msk [vmem:[%s15813_s20 + $0x78] sm:$0xff] %vm8585_vm1, %v8568_v49  ;;  %v8539_v1 = vmul.f32 %v16706_v33, %v8507_v50  ;;  %v10552_v32 = vpop.f32.mrf.mxu1  ;;  %v7973_v63 = vadd.f32 %v16711_v62, %v7747_v51  ;;  %v7748_v14 = vadd.f32 %v16715_v15, %v16714_v0  ;;  %v8224_v31 = vadd.f32 %v10518_v56, %v7976_v58 }
 0x54c   : > { %8599 = vst.msk [vmem:[%s15813_s20 + $0x68] sm:$0xff] %vm8585_vm1, %v8566_v61  ;;  %v8537_v36 = vmul.f32 %v16707_v21, %v8505_v44  ;;  %v8508_v3 = vsub.f32 %v10856_v53, %v10913_v59  ;;  %10869 = vtanh.f32 %v8449_v25  ;;  %v8452_v48 = vadd.f32 %v10552_v32, %v8220_v4  ;;  %v16717_v4 = vld [vmem:[#allocation83_spill] sm:$0xff]  ;;  %v10917_v53 = vld [vmem:[%s11301_s11 + $0xb8] sm:$0xff] }
 0x54d   : > { %v10858_v34 = vpop.eup %10857  ;;  %v8571_v8 = vadd.f32 %v10911_v17, %v8539_v1  ;;  %v8397_v54 = vpop.f32.mrf.mxu1  ;;  %v8221_v26 = vadd.f32 %v8178_v20, %v7973_v63  ;;  %v7974_v10 = vadd.f32 %v16717_v4, %v7748_v14  ;;  %v16718_v20 = vld [vmem:[#allocation37_spill] sm:$0xff]  ;;  %v10918_v1 = vld [vmem:[%s11301_s11 + $0xa8] sm:$0xff] }
 0x54e   : > { %v8569_v29 = vadd.f32 %v10912_v41, %v8537_v36  ;;  %v8540_v11 = vmul.f32 %v16710_v12, %v8508_v3  ;;  %v8506_v37 = vsub.f32 %v10858_v34, %v10914_v57  ;;  %10871 = vtanh.f32 %v8452_v48  ;;  %v8181_v17 = vpop.f32.mrf.mxu0  ;;  %v16720_v3 = vld [vmem:[#allocation39_spill] sm:$0xff]  ;;  %v10919_v34 = vld [vmem:[%s11301_s11 + $0xd0] sm:$0xff]  ;;  %v16723_v63 = vld [vmem:[#allocation20_spill] sm:$0xff] }
 0x54f   : > { %v10860_v45 = vpop.eup %10859  ;;  %8604 = vst.msk [vmem:[%s15813_s20 + $0x90] sm:$0xff] %vm8585_vm1, %v8571_v8  ;;  %v8450_v27 = vadd.f32 %v8397_v54, %v8218_v30  ;;  %v10555_v52 = vpop.f32.mrf.mxu1  ;;  %v8222_v7 = vadd.f32 %v8181_v17, %v7974_v10  ;;  %v16721_v8 = vld [vmem:[#allocation16_spill] sm:$0xff]  ;;  %v16727_v17 = vld [vmem:[#allocation54_spill] sm:$0xff] }
 0x550   : > { %8602 = vst.msk [vmem:[%s15813_s20 + $0x80] sm:$0xff] %vm8585_vm1, %v8569_v29  ;;  %v8572_v40 = vadd.f32 %v10913_v59, %v8540_v11  ;;  %v8538_v19 = vmul.f32 %v16713_v43, %v8506_v37  ;;  %v8511_v35 = vsub.f32 %v10860_v45, %v10915_v2  ;;  %v8455_v55 = vadd.f32 %v10555_v52, %v8223_v47  ;;  %v10920_v47 = vld [vmem:[%s11301_s11 + $0xc0] sm:$0xff]  ;;  %v10921_v37 = vld [vmem:[%s11301_s11 + $0xd8] sm:$0xff]  ;;  %v10923_v43 = vld [vmem:[%s11301_s11 + $0xf0] sm:$0xff] }
 0x551   : > { %v10862_v13 = vpop.eup %10861  ;;  %10873 = vtanh.f32 %v8450_v27  ;;  %v8410_v5 = vpop.f32.mrf.mxu1  ;;  %v16722_v11 = vld [vmem:[#allocation15_spill] sm:$0xff]  ;;  %v10922_v27 = vld [vmem:[%s11301_s11 + $0xc8] sm:$0xff] }
 0x552   : > { %8605 = vst.msk [vmem:[%s15813_s20 + $0x98] sm:$0xff] %vm8585_vm1, %v8572_v40  ;;  %v8570_v16 = vadd.f32 %v10914_v57, %v8538_v19  ;;  %v8543_v46 = vmul.f32 %v16716_v42, %v8511_v35  ;;  %v8509_v49 = vsub.f32 %v10862_v13, %v10916_v24  ;;  %10875 = vtanh.f32 %v8455_v55  ;;  %v16725_v13 = vld [vmem:[#allocation50_spill] sm:$0xff]  ;;  %v10926_v10 = vld [vmem:[%s11301_s11 + $0xe8] sm:$0xff] }
 0x553   : > { %v10864_v50 = vpop.eup %10863  ;;  %v8453_v61 = vadd.f32 %v8410_v5, %v8221_v26  ;;  %v10556_v41 = vpop.f32.mrf.mxu1  ;;  %v10924_v26 = vld [vmem:[%s11301_s11 + $0xe0] sm:$0xff] }
 0x554   : > { %8603 = vst.msk [vmem:[%s15813_s20 + $0x88] sm:$0xff] %vm8585_vm1, %v8570_v16  ;;  %v8575_v44 = vadd.f32 %v10915_v2, %v8543_v46  ;;  %v8541_v25 = vmul.f32 %v16718_v20, %v8509_v49  ;;  %v8512_v39 = vsub.f32 %v10864_v50, %v10917_v53  ;;  %v8456_v28 = vadd.f32 %v10556_v41, %v8224_v31  ;;  %v16724_v2 = vld [vmem:[#allocation18_spill] sm:$0xff]  ;;  %v16726_v46 = vld [vmem:[#allocation17_spill] sm:$0xff] }
 0x555   : > { %v10866_v51 = vpop.eup %10865  ;;  %10877 = vtanh.f32 %v8453_v61  ;;  %v8413_v38 = vpop.f32.mrf.mxu1  ;;  %v10925_v16 = vld [vmem:[%s11301_s11 + $0xf8] sm:$0xff]  ;;  %s10927_s11 = scalar_lea.vmem %s15993_s26, 4096 }
 0x556   : > { %8608 = vst.msk [vmem:[%s15813_s20 + $0xb0] sm:$0xff] %vm8585_vm1, %v8575_v44  ;;  %v8573_v22 = vadd.f32 %v10916_v24, %v8541_v25  ;;  %v8544_v33 = vmul.f32 %v16719_v23, %v8512_v39  ;;  %v8510_v32 = vsub.f32 %v10866_v51, %v10918_v1  ;;  %10879 = vtanh.f32 %v8456_v28  ;;  %v16728_v44 = vld [vmem:[#allocation19_spill] sm:$0xff]  ;;  %p10928_p11 = scmp.ne.s32.totalorder %s15993_s26, %s10927_s11  ;;  %p10935_p1 = scmp.lt.s32.totalorder %s10933_s12, %s10927_s11 }
 0x557   : > { %v10868_v21 = vpop.eup %10867  ;;  %v8454_v36 = vadd.f32 %v8413_v38, %v8222_v7 }
 0x558   : > { %8606 = vst.msk [vmem:[%s15813_s20 + $0xa0] sm:$0xff] %vm8585_vm1, %v8573_v22  ;;  %v8576_v59 = vadd.f32 %v10917_v53, %v8544_v33  ;;  %v8542_v48 = vmul.f32 %v16720_v3, %v8510_v32  ;;  %v8515_v60 = vsub.f32 %v10868_v21, %v10919_v34  ;;  %p10929_p12 = pnand %p10928_p11, %p11068_p5  ;;  %p10936_p2 = por %p10935_p1, %p10934_p0 }
 0x559   : > { %v10870_v6 = vpop.eup %10869  ;;  %10881 = vtanh.f32 %v8454_v36 }
 0x55a   : > { %8609 = vst.msk [vmem:[%s15813_s20 + $0xb8] sm:$0xff] %vm8585_vm1, %v8576_v59  ;;  %v8574_v9 = vadd.f32 %v10918_v1, %v8542_v48  ;;  %v8547_v30 = vmul.f32 %v16721_v8, %v8515_v60  ;;  %v8513_v54 = vsub.f32 %v10870_v6, %v10920_v47  ;;  %p10930_p13 = pneg %p10929_p12 }
 0x55b   : > { %v10872_v29 = vpop.eup %10871 }
 0x55c   : > { %8607 = vst.msk [vmem:[%s15813_s20 + $0xa8] sm:$0xff] %vm8585_vm1, %v8574_v9  ;;  %v8579_v12 = vadd.f32 %v10919_v34, %v8547_v30  ;;  %v8545_v57 = vmul.f32 %v16722_v11, %v8513_v54  ;;  %v8516_v56 = vsub.f32 %v10872_v29, %v10921_v37  ;;  %p10937_p3 = pnand %p10936_p2, %p10930_p13 }
 0x55e   : > { %v10874_v45 = vpop.eup %10873  ;;  %8612 = vst.msk [vmem:[%s15813_s20 + $0xd0] sm:$0xff] %vm8585_vm1, %v8579_v12  ;;  %v8577_v62 = vadd.f32 %v10920_v47, %v8545_v57  ;;  %v8548_v18 = vmul.f32 %v16723_v63, %v8516_v56 }
 0x55f   : > { %v10876_v58 = vpop.eup %10875  ;;  %v8514_v52 = vsub.f32 %v10874_v45, %v10922_v27 }
 0x560   : > { %8610 = vst.msk [vmem:[%s15813_s20 + $0xc0] sm:$0xff] %vm8585_vm1, %v8577_v62  ;;  %v8580_v40 = vadd.f32 %v10921_v37, %v8548_v18  ;;  %v8519_v19 = vsub.f32 %v10876_v58, %v10923_v43 }
 0x561   : > { %v8546_v35 = vmul.f32 %v16724_v2, %v8514_v52 }
 0x562   : > { %v10878_v55 = vpop.eup %10877  ;;  %8613 = vst.msk [vmem:[%s15813_s20 + $0xd8] sm:$0xff] %vm8585_vm1, %v8580_v40  ;;  %v8551_v0 = vmul.f32 %v16725_v13, %v8519_v19 }
 0x563   : > { %v10880_v15 = vpop.eup %10879  ;;  %v8578_v14 = vadd.f32 %v10922_v27, %v8546_v35  ;;  %v8517_v31 = vsub.f32 %v10878_v55, %v10924_v26 }
 0x564   : > { %v8583_v5 = vadd.f32 %v10923_v43, %v8551_v0  ;;  %v8520_v42 = vsub.f32 %v10880_v15, %v10925_v16 }
 0x565   : > { %8611 = vst.msk [vmem:[%s15813_s20 + $0xc8] sm:$0xff] %vm8585_vm1, %v8578_v14  ;;  %v8549_v24 = vmul.f32 %v16726_v46, %v8517_v31 }
 0x566   : > { %v10882_v49 = vpop.eup %10881  ;;  %8616 = vst.msk [vmem:[%s15813_s20 + $0xf0] sm:$0xff] %vm8585_vm1, %v8583_v5  ;;  %v8552_v50 = vmul.f32 %v16727_v17, %v8520_v42 }
 0x567   : > { %v8581_v4 = vadd.f32 %v10924_v26, %v8549_v24  ;;  %v8518_v61 = vsub.f32 %v10882_v49, %v10926_v10 }
 0x568   : > { %v8584_v41 = vadd.f32 %v10925_v16, %v8552_v50 }
 0x569   : > { %8614 = vst.msk [vmem:[%s15813_s20 + $0xe0] sm:$0xff] %vm8585_vm1, %v8581_v4  ;;  %v8550_v20 = vmul.f32 %v16728_v44, %v8518_v61 }
 0x56a   : > { %8617 = vst.msk [vmem:[%s15813_s20 + $0xf8] sm:$0xff] %vm8585_vm1, %v8584_v41 }
 0x56b   : > { %v8582_v25 = vadd.f32 %v10926_v10, %v8550_v20 }
 0x56d   : > { %8615 = vst.msk [vmem:[%s15813_s20 + $0xe8] sm:$0xff] %vm8585_vm1, %v8582_v25 }
 0x56e   : > { %10940 = shalt.err (!%p10937_p3)
}
 0x56f   : > { %s10941_s13 = scalar_lea.hbm %s15991_s29, 4096  ;;  %s10945_s18 = scalar_lea.hbm %s16045_s6, 8192 }
 0x570   : > { %p10942_p4 = scmp.ne.s32.totalorder %s15991_s29, %s10941_s13  ;;  %p10946_p9 = scmp.lt.s32.totalorder %s15991_s29, %s16045_s6 }
 0x571   : > { %p10947_p10 = scmp.lt.s32.totalorder %s10945_s18, %s10941_s13 }
 0x572   : > { %p10943_p7 = pnand %p10942_p4, %p11068_p5 }
 0x573   : > { %p10948_p11 = por %p10947_p10, %p10946_p9 }
 0x574   : > { %p10944_p8 = pneg %p10943_p7 }
 0x576   : > { %p10949_p12 = pnand %p10948_p11, %p10944_p8 }
 0x578   : > { %10952 = shalt.err (!%p10949_p12)
}
 0x579   : > { %s10993_s15 = smov 128   ;;  %s10994_s28 = smov 8  }
 0x57a   : > { %10557 = dma.vmem_to_hbm [thread:$0]  (%p11068_p5), %s15993_s26, 4096, %s15991_s29, %s15999_s25, %s10993_s15, %s10993_s15, %s10994_s28  }
 0x57b PF: > { %p10563_p13 = scmp.ge.s32.totalorder %s10987_s24, 2  ;;  %s8647_s19 = sand.u32 1, %s10975_s21  }
 0x57c   : > { %s8648_s11 = scalar_lea.sflag [#allocation4], %s8647_s19 }
 0x57d   : > { %p10560_p0 = pnand %p10563_p13, %p11072_p6 }
 0x57f   : > { %p10561_p1 = pneg %p10560_p0 }
 0x581   : > { %10970 = dma.done.wait (%p10561_p1), %s8648_s11, 4096  }
 0x582   : > { %10972 = vsyncadd (%p10561_p1), %s8648_s11, 4294963200  ;;  %p16_p2 = scmp.ge.s32.totalorder %s11055_s27, 4   ;;  %s16729_s21 = smov %s10979_s22 }
 0x583   : > { %s16730_s22 = smov %s10983_s23  ;;  %s16731_s23 = smov %s11066_s30 }
 0x584   : > { %s16732_s24 = smov %s11055_s27  ;;  %18 = sbr.rel (!%p16_p2) target bundleno = 3 (0x3), region = 99 }
 0x589   :  { %8653 = vsyncpa [#allocation4], 1 }
 0x58a   :  { %8655 = vsyncpa [#allocation4 + $0x1], 1 }

</bundles_post_ra>
